<compile_context>
chip_gen: v5e
topology: v5e:2x2
jax: 0.10.0
libtpu: 0.0.40
codegen_flags: <defaults>
</compile_context>

<pallas_src>
import functools

import jax
import jax.numpy as jnp
from jax import lax
from jax.experimental import pallas as pl
from jax.experimental.pallas import tpu as pltpu


# ----------------------------------------------------------------------------
# Fused kernel: 3 stacked LSTM layers + Linear + LogSoftmax, no grid.
# Gate order matches PyTorch: i, f, g, o.  Each gate occupies a lane-aligned
# 128-wide block of the (B_pad, 4*HP) gate matrix.
# ----------------------------------------------------------------------------
def _fused_lstm_classifier_kernel(x_ref, wih_ref, whh_ref, b_ref, hw_ref, hb_ref,
                                  out_ref, seq_ref, pre_ref, h_ref, c_ref):
    TB = x_ref.shape[0]                 # T * B_pad   (static)
    CB = h_ref.shape[0]                 # B_pad       (static, multiple of 8)
    HP = h_ref.shape[-1]                # padded hidden width (multiple of 128)
    T = TB // CB

    def sig(v):
        # sigmoid via a single tanh: one EUP push instead of exp + reciprocal.
        return 0.5 * jnp.tanh(0.5 * v) + 0.5

    unroll = min(T, 8)

    for layer in range(3):              # static unroll over stacked LSTMs
        src = x_ref if layer == 0 else seq_ref

        # --- hoisted input projection + bias for ALL time steps (one GEMM) ---
        lhs = src[...]
        if lhs.dtype != jnp.bfloat16:
            lhs = lhs.astype(jnp.bfloat16)
        pre_ref[...] = (jnp.dot(lhs, wih_ref[layer],
                                preferred_element_type=jnp.float32)
                        + b_ref[layer])                     # (T*CB, 4*HP) f32

        h_ref[...] = jnp.zeros_like(h_ref)
        c_ref[...] = jnp.zeros_like(c_ref)

        # Loop-invariant recurrent weights: read once, stays resident as the
        # MXU RHS across all unrolled time steps.
        w_hh = whh_ref[layer]                                # (HP, 4*HP) bf16
        write_seq = layer < 2

        def step(t, carry, w_hh=w_hh, write_seq=write_seq):
            row = pl.multiple_of(t * CB, CB)
            gates = pre_ref[pl.ds(row, CB), :] + jnp.dot(
                h_ref[...].astype(jnp.bfloat16), w_hh,
                preferred_element_type=jnp.float32)          # (CB, 4*HP) f32
            i = sig(gates[:, 0 * HP:1 * HP])
            f = sig(gates[:, 1 * HP:2 * HP])
            g = jnp.tanh(gates[:, 2 * HP:3 * HP])
            o = sig(gates[:, 3 * HP:4 * HP])
            # Padded hidden lanes stay exactly 0: their gates are 0 (zero weight
            # columns, zero bias), so f*c = 0.5*0 and i*g = 0.5*tanh(0) = 0.
            c_new = f * c_ref[...] + i * g
            h_new = o * jnp.tanh(c_new)
            c_ref[...] = c_new
            h_ref[...] = h_new
            if write_seq:
                # inter-layer activation stays in VMEM; the buffer was fully
                # consumed by this layer's bulk pre-GEMM, so overwriting is safe.
                seq_ref[pl.ds(row, CB), :] = h_new
            return carry

        lax.fori_loop(0, T, step, 0, unroll=unroll)

    # --- fused Linear + LogSoftmax head on the final hidden state (in VMEM) ---
    # Head accumulation stays f32 (padded output columns carry a -1e30 bias).
    logits = (jnp.dot(h_ref[...].astype(jnp.bfloat16), hw_ref[...],
                      preferred_element_type=jnp.float32)
              + hb_ref[...])                                  # (CB, OP) f32
    m = jnp.max(logits, axis=-1, keepdims=True)
    z = logits - m
    out_ref[...] = z - jnp.log(jnp.sum(jnp.exp(z), axis=-1, keepdims=True))


# ----------------------------------------------------------------------------
# Parameter preparation: pad / stack PyTorch-layout LSTM weights into the
# lane-aligned layout used by the kernel.  Done once, outside the jit'd forward.
# ----------------------------------------------------------------------------
def _round_up(x, m):
    return ((x + m - 1) // m) * m


def _place_gates(w_t, H, HP):
    """w_t: (K, 4H) -> (K, 4*HP); gate k's real H columns land at lane offset k*HP."""
    K = w_t.shape[0]
    out = jnp.zeros((K, 4 * HP), jnp.float32)
    for k in range(4):
        out = out.at[:, k * HP:k * HP + H].set(w_t[:, k * H:(k + 1) * H])
    return out


def prepare_params(params, hidden_size, input_size, output_size):
    HP = _round_up(max([input_size] + list(hidden_size)), 128)   # padded width
    OP = _round_up(output_size, 128)                             # padded out width

    in_dims = [input_size, hidden_size[0], hidden_size[1]]
    wih_l, whh_l, b_l = [], [], []
    for l in range(3):
        w_ih, w_hh, b_ih, b_hh = params[f"lstm{l}"]
        H, D = hidden_size[l], in_dims[l]
        wih = (jnp.zeros((HP, 4 * HP), jnp.float32)
               .at[:D, :].set(_place_gates(w_ih.T.astype(jnp.float32), H, HP)))
        whh = (jnp.zeros((HP, 4 * HP), jnp.float32)
               .at[:H, :].set(_place_gates(w_hh.T.astype(jnp.float32), H, HP)))
        b = _place_gates((b_ih + b_hh).reshape(1, 4 * H).astype(jnp.float32), H, HP)
        wih_l.append(wih)
        whh_l.append(whh)
        b_l.append(b)

    wih_stack = jnp.stack(wih_l).astype(jnp.bfloat16)            # (3, HP, 4*HP)
    whh_stack = jnp.stack(whh_l).astype(jnp.bfloat16)            # (3, HP, 4*HP)
    b_stack = jnp.stack(b_l)                                     # (3, 1, 4*HP) f32

    H2 = hidden_size[2]
    head_w = (jnp.zeros((HP, OP), jnp.float32)
              .at[:H2, :output_size].set(params["label_w"].T.astype(jnp.float32))
              .astype(jnp.bfloat16))
    # padded output columns get -1e30 so they vanish in the (f32) log-softmax
    head_b = (jnp.full((1, OP), -1e30, jnp.float32)
              .at[0, :output_size].set(params["label_b"].astype(jnp.float32)))

    return {
        "embedding": params["embedding"].astype(jnp.float32),
        "wih": wih_stack, "whh": whh_stack, "b": b_stack,
        "head_w": head_w, "head_b": head_b,
        "HP": HP, "OP": OP, "E": input_size, "O": output_size,
    }


def _vmem_limit_bytes(T, B_pad, HP, OP):
    inputs = (T * B_pad * HP * 2                 # x (bf16)
              + 2 * 3 * HP * 4 * HP * 2          # W_ih + W_hh stacks (bf16)
              + 3 * 4 * HP * 4                   # biases (f32)
              + HP * OP * 2 + OP * 4)            # head
    outputs = B_pad * OP * 4
    scratch = (T * B_pad * HP * 4                # inter-layer sequence (f32)
               + T * B_pad * 4 * HP * 4          # hoisted input projection (f32)
               + 2 * B_pad * HP * 4)             # h, c
    total = 2 * (inputs + outputs) + scratch     # double-buffer headroom on I/O
    return int(min(max(total + (8 << 20), 32 << 20), 64 << 20))


# ----------------------------------------------------------------------------
# Full forward: embedding lookup (glue) + one fused Pallas call.
# ----------------------------------------------------------------------------
def lstm_classifier_forward(prepped, input_sentence):
    B, T = input_sentence.shape
    HP, OP, E, O = prepped["HP"], prepped["OP"], prepped["E"], prepped["O"]
    B_pad = max(8, _round_up(B, 8))              # f32 sublane tile

    # Embedding lookup directly in time-major order (folds input.permute(1,0,2)
    # into the gather); pad batch/feature and cast to bf16 for a lane-dense,
    # half-size HBM->VMEM transfer.  Layout is 2-D: row = t*B_pad + b.
    emb = jnp.take(prepped["embedding"], input_sentence.T, axis=0)   # (T, B, E)
    x = jnp.zeros((T, B_pad, HP), jnp.bfloat16)
    x = x.at[:, :B, :E].set(emb.astype(jnp.bfloat16))
    x2d = x.reshape(T * B_pad, HP)

    log_prob_padded = pl.pallas_call(
        _fused_lstm_classifier_kernel,
        out_shape=jax.ShapeDtypeStruct((B_pad, OP), jnp.float32),
        scratch_shapes=[
            pltpu.VMEM((T * B_pad, HP), jnp.float32),       # inter-layer sequence
            pltpu.VMEM((T * B_pad, 4 * HP), jnp.float32),   # hoisted input proj
            pltpu.VMEM((B_pad, HP), jnp.float32),           # hidden state
            pltpu.VMEM((B_pad, HP), jnp.float32),           # cell state
        ],
        compiler_params=pltpu.CompilerParams(
            vmem_limit_bytes=_vmem_limit_bytes(T, B_pad, HP, OP)),
    )(x2d, prepped["wih"], prepped["whh"], prepped["b"],
      prepped["head_w"], prepped["head_b"])

    return log_prob_padded[:B, :O]


# ----------------------------------------------------------------------------
# Pure-JAX f32 reference (mirrors the PyTorch module) for a correctness check.
# ----------------------------------------------------------------------------
def reference_forward(params, input_sentence):
    emb = jnp.take(params["embedding"], input_sentence, axis=0)     # (B, T, E)
    x = jnp.transpose(emb, (1, 0, 2))                               # (T, B, E)

    def lstm(x, w_ih, w_hh, b_ih, b_hh):
        T, B, _ = x.shape
        H = w_hh.shape[1]

        def step(carry, x_t):
            h, c = carry
            gates = x_t @ w_ih.T + h @ w_hh.T + b_ih + b_hh
            i, f, g, o = jnp.split(gates, 4, axis=-1)
            c = jax.nn.sigmoid(f) * c + jax.nn.sigmoid(i) * jnp.tanh(g)
            h = jax.nn.sigmoid(o) * jnp.tanh(c)
            return (h, c), h

        init = (jnp.zeros((B, H), jnp.float32), jnp.zeros((B, H), jnp.float32))
        (h, _), ys = lax.scan(step, init, x)
        return ys, h

    y0, _ = lstm(x, *params["lstm0"])
    y1, _ = lstm(y0, *params["lstm1"])
    _, h2 = lstm(y1, *params["lstm2"])
    logits = h2 @ params["label_w"].T + params["label_b"]
    return jax.nn.log_softmax(logits, axis=1)


# ----------------------------------------------------------------------------
# Deterministic parameter init (PyTorch-style uniform(-1/sqrt(H), 1/sqrt(H))).
# ----------------------------------------------------------------------------
def init_params(key, vocab_size, input_size, hidden_size, output_size):
    keys = jax.random.split(key, 16)
    ki = iter(keys)

    def u(key, shape, k):
        return jax.random.uniform(key, shape, jnp.float32, minval=-k, maxval=k)

    params = {}
    params["embedding"] = jax.random.normal(next(ki), (vocab_size, input_size),
                                            jnp.float32)

    in_dims = [input_size, hidden_size[0], hidden_size[1]]
    for layer in range(3):
        H, D = hidden_size[layer], in_dims[layer]
        k = 1.0 / jnp.sqrt(H)
        params[f"lstm{layer}"] = (
            u(next(ki), (4 * H, D), k),   # w_ih
            u(next(ki), (4 * H, H), k),   # w_hh
            u(next(ki), (4 * H,), k),     # b_ih
            u(next(ki), (4 * H,), k),     # b_hh
        )

    kf = 1.0 / jnp.sqrt(hidden_size[2])
    params["label_w"] = u(next(ki), (output_size, hidden_size[2]), kf)
    params["label_b"] = u(next(ki), (output_size,), kf)
    return params


if __name__ == "__main__":
    # Small shapes consistent with the module's forward.
    batch_size = 2
    seq_len = 8
    vocab_size = 50
    input_size = 16                      # embedding dim
    hidden_size = [32, 32, 32]
    output_size = 4

    key = jax.random.PRNGKey(0)
    pkey, dkey = jax.random.split(key)
    params = init_params(pkey, vocab_size, input_size, hidden_size, output_size)
    prepped = prepare_params(params, hidden_size, input_size, output_size)

    # input_sentence: (batch_size, num_sequences) of token ids
    input_sentence = jax.random.randint(dkey, (batch_size, seq_len), 0, vocab_size,
                                        dtype=jnp.int32)

    fwd = jax.jit(functools.partial(lstm_classifier_forward, prepped))
    log_prob = fwd(input_sentence)
    jax.block_until_ready(log_prob)

    assert log_prob.shape == (batch_size, output_size)
    # rows of a log-softmax must normalize
    assert jnp.allclose(jnp.exp(log_prob).sum(axis=1), 1.0, atol=1e-3)
    # compare against the pure-JAX f32 reference (loose tol: bf16 MXU inputs)
    ref = reference_forward(params, input_sentence)
    assert jnp.allclose(log_prob, ref, atol=1e-1)
    print("KERNEL_OK")
</pallas_src>

<mosaic_0001>
module attributes {stable_mosaic.version = 11 : i64} {
  func.func @_fused_lstm_classifier_kernel(%arg0: memref<64x128xbf16, #tpu.memory_space<vmem>>, %arg1: memref<3x128x512xbf16, #tpu.memory_space<vmem>>, %arg2: memref<3x128x512xbf16, #tpu.memory_space<vmem>>, %arg3: memref<3x1x512xf32, #tpu.memory_space<vmem>>, %arg4: memref<128x128xbf16, #tpu.memory_space<vmem>>, %arg5: memref<1x128xf32, #tpu.memory_space<vmem>>, %arg6: memref<8x128xf32, #tpu.memory_space<vmem>>, %arg7: memref<64x128xf32, #tpu.memory_space<vmem>>, %arg8: memref<64x512xf32, #tpu.memory_space<vmem>>, %arg9: memref<8x128xf32, #tpu.memory_space<vmem>>, %arg10: memref<8x128xf32, #tpu.memory_space<vmem>>) attributes {dimension_semantics = [], scalar_prefetch = 0 : i64, scratch_operands = 4 : i64, tpu.core_type = #tpu.core_type<tc>} {
    %c0 = arith.constant 0 : index
    %c0_0 = arith.constant 0 : index
    %0 = vector.load %arg0[%c0, %c0_0] : memref<64x128xbf16, #tpu.memory_space<vmem>>, vector<64x128xbf16>
    %c0_1 = arith.constant 0 : index
    %c0_2 = arith.constant 0 : index
    %c0_3 = arith.constant 0 : index
    %1 = vector.load %arg1[%c0_1, %c0_2, %c0_3] : memref<3x128x512xbf16, #tpu.memory_space<vmem>>, vector<1x128x512xbf16>
    %2 = vector.shape_cast %1 : vector<1x128x512xbf16> to vector<128x512xbf16>
    %cst = arith.constant dense<0.000000e+00> : vector<64x512xf32>
    %3 = tpu.matmul %0, %2, %cst {dimension_numbers = #tpu.dot_dimension_numbers<[1], [0], [0], [1], [0, 0, 1, 1], [], []>} : vector<64x128xbf16>, vector<128x512xbf16>, vector<64x512xf32> -> vector<64x512xf32>
    %c0_4 = arith.constant 0 : index
    %c0_5 = arith.constant 0 : index
    %c0_6 = arith.constant 0 : index
    %4 = vector.load %arg3[%c0_4, %c0_5, %c0_6] : memref<3x1x512xf32, #tpu.memory_space<vmem>>, vector<1x1x512xf32>
    %5 = vector.shape_cast %4 : vector<1x1x512xf32> to vector<1x512xf32>
    %6 = vector.broadcast %5 : vector<1x512xf32> to vector<64x512xf32>
    %7 = arith.addf %3, %6 : vector<64x512xf32>
    %c0_7 = arith.constant 0 : index
    %c0_8 = arith.constant 0 : index
    %8 = vector.load %arg8[%c0_7, %c0_8] : memref<64x512xf32, #tpu.memory_space<vmem>>, vector<64x512xf32>
    tpu.vector_store %arg8[%c0_7, %c0_8], %7 {strides = array<i32>} : memref<64x512xf32, #tpu.memory_space<vmem>>, vector<64x512xf32>,
    %cst_9 = arith.constant 0.000000e+00 : f32
    %9 = vector.broadcast %cst_9 : f32 to vector<8x128xf32>
    %c0_10 = arith.constant 0 : index
    %c0_11 = arith.constant 0 : index
    %10 = vector.load %arg9[%c0_10, %c0_11] : memref<8x128xf32, #tpu.memory_space<vmem>>, vector<8x128xf32>
    tpu.vector_store %arg9[%c0_10, %c0_11], %9 {strides = array<i32>} : memref<8x128xf32, #tpu.memory_space<vmem>>, vector<8x128xf32>,
    %cst_12 = arith.constant 0.000000e+00 : f32
    %11 = vector.broadcast %cst_12 : f32 to vector<8x128xf32>
    %c0_13 = arith.constant 0 : index
    %c0_14 = arith.constant 0 : index
    %12 = vector.load %arg10[%c0_13, %c0_14] : memref<8x128xf32, #tpu.memory_space<vmem>>, vector<8x128xf32>
    tpu.vector_store %arg10[%c0_13, %c0_14], %11 {strides = array<i32>} : memref<8x128xf32, #tpu.memory_space<vmem>>, vector<8x128xf32>,
    %c0_15 = arith.constant 0 : index
    %c0_16 = arith.constant 0 : index
    %c0_17 = arith.constant 0 : index
    %13 = vector.load %arg2[%c0_15, %c0_16, %c0_17] : memref<3x128x512xbf16, #tpu.memory_space<vmem>>, vector<1x128x512xbf16>
    %14 = vector.shape_cast %13 : vector<1x128x512xbf16> to vector<128x512xbf16>
    %c0_i32 = arith.constant 0 : i32
    %c8_i32 = arith.constant 8 : i32
    %15 = arith.muli %c0_i32, %c8_i32 : i32
    %16 = tpu.assume_multiple %15, 8 : i32
    %17 = arith.index_cast %16 : i32 to index
    %c0_18 = arith.constant 0 : index
    %18 = vector.load %arg8[%17, %c0_18] : memref<64x512xf32, #tpu.memory_space<vmem>>, vector<8x512xf32>
    %c0_19 = arith.constant 0 : index
    %c0_20 = arith.constant 0 : index
    %19 = vector.load %arg9[%c0_19, %c0_20] : memref<8x128xf32, #tpu.memory_space<vmem>>, vector<8x128xf32>
    %20 = arith.truncf %19 : vector<8x128xf32> to vector<8x128xbf16>
    %cst_21 = arith.constant dense<0.000000e+00> : vector<8x512xf32>
    %21 = tpu.matmul %20, %14, %cst_21 {dimension_numbers = #tpu.dot_dimension_numbers<[1], [0], [0], [1], [0, 0, 1, 1], [], []>} : vector<8x128xbf16>, vector<128x512xbf16>, vector<8x512xf32> -> vector<8x512xf32>
    %22 = arith.addf %18, %21 : vector<8x512xf32>
    %23 = vector.extract_strided_slice %22 {offsets = [0, 0], sizes = [8, 128], strides = [1, 1]} : vector<8x512xf32> to vector<8x128xf32>
    %cst_22 = arith.constant 5.000000e-01 : f32
    %24 = vector.broadcast %cst_22 : f32 to vector<8x128xf32>
    %25 = arith.mulf %24, %23 : vector<8x128xf32>
    %26 = math.tanh %25 : vector<8x128xf32>
    %cst_23 = arith.constant 5.000000e-01 : f32
    %27 = vector.broadcast %cst_23 : f32 to vector<8x128xf32>
    %28 = arith.mulf %27, %26 : vector<8x128xf32>
    %cst_24 = arith.constant 5.000000e-01 : f32
    %29 = vector.broadcast %cst_24 : f32 to vector<8x128xf32>
    %30 = arith.addf %28, %29 : vector<8x128xf32>
    %31 = vector.extract_strided_slice %22 {offsets = [0, 128], sizes = [8, 128], strides = [1, 1]} : vector<8x512xf32> to vector<8x128xf32>
    %cst_25 = arith.constant 5.000000e-01 : f32
    %32 = vector.broadcast %cst_25 : f32 to vector<8x128xf32>
    %33 = arith.mulf %32, %31 : vector<8x128xf32>
    %34 = math.tanh %33 : vector<8x128xf32>
    %cst_26 = arith.constant 5.000000e-01 : f32
    %35 = vector.broadcast %cst_26 : f32 to vector<8x128xf32>
    %36 = arith.mulf %35, %34 : vector<8x128xf32>
    %cst_27 = arith.constant 5.000000e-01 : f32
    %37 = vector.broadcast %cst_27 : f32 to vector<8x128xf32>
    %38 = arith.addf %36, %37 : vector<8x128xf32>
    %39 = vector.extract_strided_slice %22 {offsets = [0, 256], sizes = [8, 128], strides = [1, 1]} : vector<8x512xf32> to vector<8x128xf32>
    %40 = math.tanh %39 : vector<8x128xf32>
    %41 = vector.extract_strided_slice %22 {offsets = [0, 384], sizes = [8, 128], strides = [1, 1]} : vector<8x512xf32> to vector<8x128xf32>
    %cst_28 = arith.constant 5.000000e-01 : f32
    %42 = vector.broadcast %cst_28 : f32 to vector<8x128xf32>
    %43 = arith.mulf %42, %41 : vector<8x128xf32>
    %44 = math.tanh %43 : vector<8x128xf32>
    %cst_29 = arith.constant 5.000000e-01 : f32
    %45 = vector.broadcast %cst_29 : f32 to vector<8x128xf32>
    %46 = arith.mulf %45, %44 : vector<8x128xf32>
    %cst_30 = arith.constant 5.000000e-01 : f32
    %47 = vector.broadcast %cst_30 : f32 to vector<8x128xf32>
    %48 = arith.addf %46, %47 : vector<8x128xf32>
    %c0_31 = arith.constant 0 : index
    %c0_32 = arith.constant 0 : index
    %49 = vector.load %arg10[%c0_31, %c0_32] : memref<8x128xf32, #tpu.memory_space<vmem>>, vector<8x128xf32>
    %50 = arith.mulf %38, %49 : vector<8x128xf32>
    %51 = arith.mulf %30, %40 : vector<8x128xf32>
    %52 = arith.addf %50, %51 : vector<8x128xf32>
    %53 = math.tanh %52 : vector<8x128xf32>
    %54 = arith.mulf %48, %53 : vector<8x128xf32>
    %c0_33 = arith.constant 0 : index
    %c0_34 = arith.constant 0 : index
    %55 = vector.load %arg10[%c0_33, %c0_34] : memref<8x128xf32, #tpu.memory_space<vmem>>, vector<8x128xf32>
    tpu.vector_store %arg10[%c0_33, %c0_34], %52 {strides = array<i32>} : memref<8x128xf32, #tpu.memory_space<vmem>>, vector<8x128xf32>,
    %c0_35 = arith.constant 0 : index
    %c0_36 = arith.constant 0 : index
    %56 = vector.load %arg9[%c0_35, %c0_36] : memref<8x128xf32, #tpu.memory_space<vmem>>, vector<8x128xf32>
    tpu.vector_store %arg9[%c0_35, %c0_36], %54 {strides = array<i32>} : memref<8x128xf32, #tpu.memory_space<vmem>>, vector<8x128xf32>,
    %57 = arith.index_cast %16 : i32 to index
    %c0_37 = arith.constant 0 : index
    %58 = vector.load %arg7[%57, %c0_37] : memref<64x128xf32, #tpu.memory_space<vmem>>, vector<8x128xf32>
    tpu.vector_store %arg7[%57, %c0_37], %54 {strides = array<i32>} : memref<64x128xf32, #tpu.memory_space<vmem>>, vector<8x128xf32>,
    %c1_i32 = arith.constant 1 : i32
    %c8_i32_38 = arith.constant 8 : i32
    %59 = arith.muli %c1_i32, %c8_i32_38 : i32
    %60 = tpu.assume_multiple %59, 8 : i32
    %61 = arith.index_cast %60 : i32 to index
    %c0_39 = arith.constant 0 : index
    %62 = vector.load %arg8[%61, %c0_39] : memref<64x512xf32, #tpu.memory_space<vmem>>, vector<8x512xf32>
    %c0_40 = arith.constant 0 : index
    %c0_41 = arith.constant 0 : index
    %63 = vector.load %arg9[%c0_40, %c0_41] : memref<8x128xf32, #tpu.memory_space<vmem>>, vector<8x128xf32>
    %64 = arith.truncf %63 : vector<8x128xf32> to vector<8x128xbf16>
    %cst_42 = arith.constant dense<0.000000e+00> : vector<8x512xf32>
    %65 = tpu.matmul %64, %14, %cst_42 {dimension_numbers = #tpu.dot_dimension_numbers<[1], [0], [0], [1], [0, 0, 1, 1], [], []>} : vector<8x128xbf16>, vector<128x512xbf16>, vector<8x512xf32> -> vector<8x512xf32>
    %66 = arith.addf %62, %65 : vector<8x512xf32>
    %67 = vector.extract_strided_slice %66 {offsets = [0, 0], sizes = [8, 128], strides = [1, 1]} : vector<8x512xf32> to vector<8x128xf32>
    %cst_43 = arith.constant 5.000000e-01 : f32
    %68 = vector.broadcast %cst_43 : f32 to vector<8x128xf32>
    %69 = arith.mulf %68, %67 : vector<8x128xf32>
    %70 = math.tanh %69 : vector<8x128xf32>
    %cst_44 = arith.constant 5.000000e-01 : f32
    %71 = vector.broadcast %cst_44 : f32 to vector<8x128xf32>
    %72 = arith.mulf %71, %70 : vector<8x128xf32>
    %cst_45 = arith.constant 5.000000e-01 : f32
    %73 = vector.broadcast %cst_45 : f32 to vector<8x128xf32>
    %74 = arith.addf %72, %73 : vector<8x128xf32>
    %75 = vector.extract_strided_slice %66 {offsets = [0, 128], sizes = [8, 128], strides = [1, 1]} : vector<8x512xf32> to vector<8x128xf32>
    %cst_46 = arith.constant 5.000000e-01 : f32
    %76 = vector.broadcast %cst_46 : f32 to vector<8x128xf32>
    %77 = arith.mulf %76, %75 : vector<8x128xf32>
    %78 = math.tanh %77 : vector<8x128xf32>
    %cst_47 = arith.constant 5.000000e-01 : f32
    %79 = vector.broadcast %cst_47 : f32 to vector<8x128xf32>
    %80 = arith.mulf %79, %78 : vector<8x128xf32>
    %cst_48 = arith.constant 5.000000e-01 : f32
    %81 = vector.broadcast %cst_48 : f32 to vector<8x128xf32>
    %82 = arith.addf %80, %81 : vector<8x128xf32>
    %83 = vector.extract_strided_slice %66 {offsets = [0, 256], sizes = [8, 128], strides = [1, 1]} : vector<8x512xf32> to vector<8x128xf32>
    %84 = math.tanh %83 : vector<8x128xf32>
    %85 = vector.extract_strided_slice %66 {offsets = [0, 384], sizes = [8, 128], strides = [1, 1]} : vector<8x512xf32> to vector<8x128xf32>
    %cst_49 = arith.constant 5.000000e-01 : f32
    %86 = vector.broadcast %cst_49 : f32 to vector<8x128xf32>
    %87 = arith.mulf %86, %85 : vector<8x128xf32>
    %88 = math.tanh %87 : vector<8x128xf32>
    %cst_50 = arith.constant 5.000000e-01 : f32
    %89 = vector.broadcast %cst_50 : f32 to vector<8x128xf32>
    %90 = arith.mulf %89, %88 : vector<8x128xf32>
    %cst_51 = arith.constant 5.000000e-01 : f32
    %91 = vector.broadcast %cst_51 : f32 to vector<8x128xf32>
    %92 = arith.addf %90, %91 : vector<8x128xf32>
    %c0_52 = arith.constant 0 : index
    %c0_53 = arith.constant 0 : index
    %93 = vector.load %arg10[%c0_52, %c0_53] : memref<8x128xf32, #tpu.memory_space<vmem>>, vector<8x128xf32>
    %94 = arith.mulf %82, %93 : vector<8x128xf32>
    %95 = arith.mulf %74, %84 : vector<8x128xf32>
    %96 = arith.addf %94, %95 : vector<8x128xf32>
    %97 = math.tanh %96 : vector<8x128xf32>
    %98 = arith.mulf %92, %97 : vector<8x128xf32>
    %c0_54 = arith.constant 0 : index
    %c0_55 = arith.constant 0 : index
    %99 = vector.load %arg10[%c0_54, %c0_55] : memref<8x128xf32, #tpu.memory_space<vmem>>, vector<8x128xf32>
    tpu.vector_store %arg10[%c0_54, %c0_55], %96 {strides = array<i32>} : memref<8x128xf32, #tpu.memory_space<vmem>>, vector<8x128xf32>,
    %c0_56 = arith.constant 0 : index
    %c0_57 = arith.constant 0 : index
    %100 = vector.load %arg9[%c0_56, %c0_57] : memref<8x128xf32, #tpu.memory_space<vmem>>, vector<8x128xf32>
    tpu.vector_store %arg9[%c0_56, %c0_57], %98 {strides = array<i32>} : memref<8x128xf32, #tpu.memory_space<vmem>>, vector<8x128xf32>,
    %101 = arith.index_cast %60 : i32 to index
    %c0_58 = arith.constant 0 : index
    %102 = vector.load %arg7[%101, %c0_58] : memref<64x128xf32, #tpu.memory_space<vmem>>, vector<8x128xf32>
    tpu.vector_store %arg7[%101, %c0_58], %98 {strides = array<i32>} : memref<64x128xf32, #tpu.memory_space<vmem>>, vector<8x128xf32>,
    %c2_i32 = arith.constant 2 : i32
    %c8_i32_59 = arith.constant 8 : i32
    %103 = arith.muli %c2_i32, %c8_i32_59 : i32
    %104 = tpu.assume_multiple %103, 8 : i32
    %105 = arith.index_cast %104 : i32 to index
    %c0_60 = arith.constant 0 : index
    %106 = vector.load %arg8[%105, %c0_60] : memref<64x512xf32, #tpu.memory_space<vmem>>, vector<8x512xf32>
    %c0_61 = arith.constant 0 : index
    %c0_62 = arith.constant 0 : index
    %107 = vector.load %arg9[%c0_61, %c0_62] : memref<8x128xf32, #tpu.memory_space<vmem>>, vector<8x128xf32>
    %108 = arith.truncf %107 : vector<8x128xf32> to vector<8x128xbf16>
    %cst_63 = arith.constant dense<0.000000e+00> : vector<8x512xf32>
    %109 = tpu.matmul %108, %14, %cst_63 {dimension_numbers = #tpu.dot_dimension_numbers<[1], [0], [0], [1], [0, 0, 1, 1], [], []>} : vector<8x128xbf16>, vector<128x512xbf16>, vector<8x512xf32> -> vector<8x512xf32>
    %110 = arith.addf %106, %109 : vector<8x512xf32>
    %111 = vector.extract_strided_slice %110 {offsets = [0, 0], sizes = [8, 128], strides = [1, 1]} : vector<8x512xf32> to vector<8x128xf32>
    %cst_64 = arith.constant 5.000000e-01 : f32
    %112 = vector.broadcast %cst_64 : f32 to vector<8x128xf32>
    %113 = arith.mulf %112, %111 : vector<8x128xf32>
    %114 = math.tanh %113 : vector<8x128xf32>
    %cst_65 = arith.constant 5.000000e-01 : f32
    %115 = vector.broadcast %cst_65 : f32 to vector<8x128xf32>
    %116 = arith.mulf %115, %114 : vector<8x128xf32>
    %cst_66 = arith.constant 5.000000e-01 : f32
    %117 = vector.broadcast %cst_66 : f32 to vector<8x128xf32>
    %118 = arith.addf %116, %117 : vector<8x128xf32>
    %119 = vector.extract_strided_slice %110 {offsets = [0, 128], sizes = [8, 128], strides = [1, 1]} : vector<8x512xf32> to vector<8x128xf32>
    %cst_67 = arith.constant 5.000000e-01 : f32
    %120 = vector.broadcast %cst_67 : f32 to vector<8x128xf32>
    %121 = arith.mulf %120, %119 : vector<8x128xf32>
    %122 = math.tanh %121 : vector<8x128xf32>
    %cst_68 = arith.constant 5.000000e-01 : f32
    %123 = vector.broadcast %cst_68 : f32 to vector<8x128xf32>
    %124 = arith.mulf %123, %122 : vector<8x128xf32>
    %cst_69 = arith.constant 5.000000e-01 : f32
    %125 = vector.broadcast %cst_69 : f32 to vector<8x128xf32>
    %126 = arith.addf %124, %125 : vector<8x128xf32>
    %127 = vector.extract_strided_slice %110 {offsets = [0, 256], sizes = [8, 128], strides = [1, 1]} : vector<8x512xf32> to vector<8x128xf32>
    %128 = math.tanh %127 : vector<8x128xf32>
    %129 = vector.extract_strided_slice %110 {offsets = [0, 384], sizes = [8, 128], strides = [1, 1]} : vector<8x512xf32> to vector<8x128xf32>
    %cst_70 = arith.constant 5.000000e-01 : f32
    %130 = vector.broadcast %cst_70 : f32 to vector<8x128xf32>
    %131 = arith.mulf %130, %129 : vector<8x128xf32>
    %132 = math.tanh %131 : vector<8x128xf32>
    %cst_71 = arith.constant 5.000000e-01 : f32
    %133 = vector.broadcast %cst_71 : f32 to vector<8x128xf32>
    %134 = arith.mulf %133, %132 : vector<8x128xf32>
    %cst_72 = arith.constant 5.000000e-01 : f32
    %135 = vector.broadcast %cst_72 : f32 to vector<8x128xf32>
    %136 = arith.addf %134, %135 : vector<8x128xf32>
    %c0_73 = arith.constant 0 : index
    %c0_74 = arith.constant 0 : index
    %137 = vector.load %arg10[%c0_73, %c0_74] : memref<8x128xf32, #tpu.memory_space<vmem>>, vector<8x128xf32>
    %138 = arith.mulf %126, %137 : vector<8x128xf32>
    %139 = arith.mulf %118, %128 : vector<8x128xf32>
    %140 = arith.addf %138, %139 : vector<8x128xf32>
    %141 = math.tanh %140 : vector<8x128xf32>
    %142 = arith.mulf %136, %141 : vector<8x128xf32>
    %c0_75 = arith.constant 0 : index
    %c0_76 = arith.constant 0 : index
    %143 = vector.load %arg10[%c0_75, %c0_76] : memref<8x128xf32, #tpu.memory_space<vmem>>, vector<8x128xf32>
    tpu.vector_store %arg10[%c0_75, %c0_76], %140 {strides = array<i32>} : memref<8x128xf32, #tpu.memory_space<vmem>>, vector<8x128xf32>,
    %c0_77 = arith.constant 0 : index
    %c0_78 = arith.constant 0 : index
    %144 = vector.load %arg9[%c0_77, %c0_78] : memref<8x128xf32, #tpu.memory_space<vmem>>, vector<8x128xf32>
    tpu.vector_store %arg9[%c0_77, %c0_78], %142 {strides = array<i32>} : memref<8x128xf32, #tpu.memory_space<vmem>>, vector<8x128xf32>,
    %145 = arith.index_cast %104 : i32 to index
    %c0_79 = arith.constant 0 : index
    %146 = vector.load %arg7[%145, %c0_79] : memref<64x128xf32, #tpu.memory_space<vmem>>, vector<8x128xf32>
    tpu.vector_store %arg7[%145, %c0_79], %142 {strides = array<i32>} : memref<64x128xf32, #tpu.memory_space<vmem>>, vector<8x128xf32>,
    %c3_i32 = arith.constant 3 : i32
    %c8_i32_80 = arith.constant 8 : i32
    %147 = arith.muli %c3_i32, %c8_i32_80 : i32
    %148 = tpu.assume_multiple %147, 8 : i32
    %149 = arith.index_cast %148 : i32 to index
    %c0_81 = arith.constant 0 : index
    %150 = vector.load %arg8[%149, %c0_81] : memref<64x512xf32, #tpu.memory_space<vmem>>, vector<8x512xf32>
    %c0_82 = arith.constant 0 : index
    %c0_83 = arith.constant 0 : index
    %151 = vector.load %arg9[%c0_82, %c0_83] : memref<8x128xf32, #tpu.memory_space<vmem>>, vector<8x128xf32>
    %152 = arith.truncf %151 : vector<8x128xf32> to vector<8x128xbf16>
    %cst_84 = arith.constant dense<0.000000e+00> : vector<8x512xf32>
    %153 = tpu.matmul %152, %14, %cst_84 {dimension_numbers = #tpu.dot_dimension_numbers<[1], [0], [0], [1], [0, 0, 1, 1], [], []>} : vector<8x128xbf16>, vector<128x512xbf16>, vector<8x512xf32> -> vector<8x512xf32>
    %154 = arith.addf %150, %153 : vector<8x512xf32>
    %155 = vector.extract_strided_slice %154 {offsets = [0, 0], sizes = [8, 128], strides = [1, 1]} : vector<8x512xf32> to vector<8x128xf32>
    %cst_85 = arith.constant 5.000000e-01 : f32
    %156 = vector.broadcast %cst_85 : f32 to vector<8x128xf32>
    %157 = arith.mulf %156, %155 : vector<8x128xf32>
    %158 = math.tanh %157 : vector<8x128xf32>
    %cst_86 = arith.constant 5.000000e-01 : f32
    %159 = vector.broadcast %cst_86 : f32 to vector<8x128xf32>
    %160 = arith.mulf %159, %158 : vector<8x128xf32>
    %cst_87 = arith.constant 5.000000e-01 : f32
    %161 = vector.broadcast %cst_87 : f32 to vector<8x128xf32>
    %162 = arith.addf %160, %161 : vector<8x128xf32>
    %163 = vector.extract_strided_slice %154 {offsets = [0, 128], sizes = [8, 128], strides = [1, 1]} : vector<8x512xf32> to vector<8x128xf32>
    %cst_88 = arith.constant 5.000000e-01 : f32
    %164 = vector.broadcast %cst_88 : f32 to vector<8x128xf32>
    %165 = arith.mulf %164, %163 : vector<8x128xf32>
    %166 = math.tanh %165 : vector<8x128xf32>
    %cst_89 = arith.constant 5.000000e-01 : f32
    %167 = vector.broadcast %cst_89 : f32 to vector<8x128xf32>
    %168 = arith.mulf %167, %166 : vector<8x128xf32>
    %cst_90 = arith.constant 5.000000e-01 : f32
    %169 = vector.broadcast %cst_90 : f32 to vector<8x128xf32>
    %170 = arith.addf %168, %169 : vector<8x128xf32>
    %171 = vector.extract_strided_slice %154 {offsets = [0, 256], sizes = [8, 128], strides = [1, 1]} : vector<8x512xf32> to vector<8x128xf32>
    %172 = math.tanh %171 : vector<8x128xf32>
    %173 = vector.extract_strided_slice %154 {offsets = [0, 384], sizes = [8, 128], strides = [1, 1]} : vector<8x512xf32> to vector<8x128xf32>
    %cst_91 = arith.constant 5.000000e-01 : f32
    %174 = vector.broadcast %cst_91 : f32 to vector<8x128xf32>
    %175 = arith.mulf %174, %173 : vector<8x128xf32>
    %176 = math.tanh %175 : vector<8x128xf32>
    %cst_92 = arith.constant 5.000000e-01 : f32
    %177 = vector.broadcast %cst_92 : f32 to vector<8x128xf32>
    %178 = arith.mulf %177, %176 : vector<8x128xf32>
    %cst_93 = arith.constant 5.000000e-01 : f32
    %179 = vector.broadcast %cst_93 : f32 to vector<8x128xf32>
    %180 = arith.addf %178, %179 : vector<8x128xf32>
    %c0_94 = arith.constant 0 : index
    %c0_95 = arith.constant 0 : index
    %181 = vector.load %arg10[%c0_94, %c0_95] : memref<8x128xf32, #tpu.memory_space<vmem>>, vector<8x128xf32>
    %182 = arith.mulf %170, %181 : vector<8x128xf32>
    %183 = arith.mulf %162, %172 : vector<8x128xf32>
    %184 = arith.addf %182, %183 : vector<8x128xf32>
    %185 = math.tanh %184 : vector<8x128xf32>
    %186 = arith.mulf %180, %185 : vector<8x128xf32>
    %c0_96 = arith.constant 0 : index
    %c0_97 = arith.constant 0 : index
    %187 = vector.load %arg10[%c0_96, %c0_97] : memref<8x128xf32, #tpu.memory_space<vmem>>, vector<8x128xf32>
    tpu.vector_store %arg10[%c0_96, %c0_97], %184 {strides = array<i32>} : memref<8x128xf32, #tpu.memory_space<vmem>>, vector<8x128xf32>,
    %c0_98 = arith.constant 0 : index
    %c0_99 = arith.constant 0 : index
    %188 = vector.load %arg9[%c0_98, %c0_99] : memref<8x128xf32, #tpu.memory_space<vmem>>, vector<8x128xf32>
    tpu.vector_store %arg9[%c0_98, %c0_99], %186 {strides = array<i32>} : memref<8x128xf32, #tpu.memory_space<vmem>>, vector<8x128xf32>,
    %189 = arith.index_cast %148 : i32 to index
    %c0_100 = arith.constant 0 : index
    %190 = vector.load %arg7[%189, %c0_100] : memref<64x128xf32, #tpu.memory_space<vmem>>, vector<8x128xf32>
    tpu.vector_store %arg7[%189, %c0_100], %186 {strides = array<i32>} : memref<64x128xf32, #tpu.memory_space<vmem>>, vector<8x128xf32>,
    %c4_i32 = arith.constant 4 : i32
    %c8_i32_101 = arith.constant 8 : i32
    %191 = arith.muli %c4_i32, %c8_i32_101 : i32
    %192 = tpu.assume_multiple %191, 8 : i32
    %193 = arith.index_cast %192 : i32 to index
    %c0_102 = arith.constant 0 : index
    %194 = vector.load %arg8[%193, %c0_102] : memref<64x512xf32, #tpu.memory_space<vmem>>, vector<8x512xf32>
    %c0_103 = arith.constant 0 : index
    %c0_104 = arith.constant 0 : index
    %195 = vector.load %arg9[%c0_103, %c0_104] : memref<8x128xf32, #tpu.memory_space<vmem>>, vector<8x128xf32>
    %196 = arith.truncf %195 : vector<8x128xf32> to vector<8x128xbf16>
    %cst_105 = arith.constant dense<0.000000e+00> : vector<8x512xf32>
    %197 = tpu.matmul %196, %14, %cst_105 {dimension_numbers = #tpu.dot_dimension_numbers<[1], [0], [0], [1], [0, 0, 1, 1], [], []>} : vector<8x128xbf16>, vector<128x512xbf16>, vector<8x512xf32> -> vector<8x512xf32>
    %198 = arith.addf %194, %197 : vector<8x512xf32>
    %199 = vector.extract_strided_slice %198 {offsets = [0, 0], sizes = [8, 128], strides = [1, 1]} : vector<8x512xf32> to vector<8x128xf32>
    %cst_106 = arith.constant 5.000000e-01 : f32
    %200 = vector.broadcast %cst_106 : f32 to vector<8x128xf32>
    %201 = arith.mulf %200, %199 : vector<8x128xf32>
    %202 = math.tanh %201 : vector<8x128xf32>
    %cst_107 = arith.constant 5.000000e-01 : f32
    %203 = vector.broadcast %cst_107 : f32 to vector<8x128xf32>
    %204 = arith.mulf %203, %202 : vector<8x128xf32>
    %cst_108 = arith.constant 5.000000e-01 : f32
    %205 = vector.broadcast %cst_108 : f32 to vector<8x128xf32>
    %206 = arith.addf %204, %205 : vector<8x128xf32>
    %207 = vector.extract_strided_slice %198 {offsets = [0, 128], sizes = [8, 128], strides = [1, 1]} : vector<8x512xf32> to vector<8x128xf32>
    %cst_109 = arith.constant 5.000000e-01 : f32
    %208 = vector.broadcast %cst_109 : f32 to vector<8x128xf32>
    %209 = arith.mulf %208, %207 : vector<8x128xf32>
    %210 = math.tanh %209 : vector<8x128xf32>
    %cst_110 = arith.constant 5.000000e-01 : f32
    %211 = vector.broadcast %cst_110 : f32 to vector<8x128xf32>
    %212 = arith.mulf %211, %210 : vector<8x128xf32>
    %cst_111 = arith.constant 5.000000e-01 : f32
    %213 = vector.broadcast %cst_111 : f32 to vector<8x128xf32>
    %214 = arith.addf %212, %213 : vector<8x128xf32>
    %215 = vector.extract_strided_slice %198 {offsets = [0, 256], sizes = [8, 128], strides = [1, 1]} : vector<8x512xf32> to vector<8x128xf32>
    %216 = math.tanh %215 : vector<8x128xf32>
    %217 = vector.extract_strided_slice %198 {offsets = [0, 384], sizes = [8, 128], strides = [1, 1]} : vector<8x512xf32> to vector<8x128xf32>
    %cst_112 = arith.constant 5.000000e-01 : f32
    %218 = vector.broadcast %cst_112 : f32 to vector<8x128xf32>
    %219 = arith.mulf %218, %217 : vector<8x128xf32>
    %220 = math.tanh %219 : vector<8x128xf32>
    %cst_113 = arith.constant 5.000000e-01 : f32
    %221 = vector.broadcast %cst_113 : f32 to vector<8x128xf32>
    %222 = arith.mulf %221, %220 : vector<8x128xf32>
    %cst_114 = arith.constant 5.000000e-01 : f32
    %223 = vector.broadcast %cst_114 : f32 to vector<8x128xf32>
    %224 = arith.addf %222, %223 : vector<8x128xf32>
    %c0_115 = arith.constant 0 : index
    %c0_116 = arith.constant 0 : index
    %225 = vector.load %arg10[%c0_115, %c0_116] : memref<8x128xf32, #tpu.memory_space<vmem>>, vector<8x128xf32>
    %226 = arith.mulf %214, %225 : vector<8x128xf32>
    %227 = arith.mulf %206, %216 : vector<8x128xf32>
    %228 = arith.addf %226, %227 : vector<8x128xf32>
    %229 = math.tanh %228 : vector<8x128xf32>
    %230 = arith.mulf %224, %229 : vector<8x128xf32>
    %c0_117 = arith.constant 0 : index
    %c0_118 = arith.constant 0 : index
    %231 = vector.load %arg10[%c0_117, %c0_118] : memref<8x128xf32, #tpu.memory_space<vmem>>, vector<8x128xf32>
    tpu.vector_store %arg10[%c0_117, %c0_118], %228 {strides = array<i32>} : memref<8x128xf32, #tpu.memory_space<vmem>>, vector<8x128xf32>,
    %c0_119 = arith.constant 0 : index
    %c0_120 = arith.constant 0 : index
    %232 = vector.load %arg9[%c0_119, %c0_120] : memref<8x128xf32, #tpu.memory_space<vmem>>, vector<8x128xf32>
    tpu.vector_store %arg9[%c0_119, %c0_120], %230 {strides = array<i32>} : memref<8x128xf32, #tpu.memory_space<vmem>>, vector<8x128xf32>,
    %233 = arith.index_cast %192 : i32 to index
    %c0_121 = arith.constant 0 : index
    %234 = vector.load %arg7[%233, %c0_121] : memref<64x128xf32, #tpu.memory_space<vmem>>, vector<8x128xf32>
    tpu.vector_store %arg7[%233, %c0_121], %230 {strides = array<i32>} : memref<64x128xf32, #tpu.memory_space<vmem>>, vector<8x128xf32>,
    %c5_i32 = arith.constant 5 : i32
    %c8_i32_122 = arith.constant 8 : i32
    %235 = arith.muli %c5_i32, %c8_i32_122 : i32
    %236 = tpu.assume_multiple %235, 8 : i32
    %237 = arith.index_cast %236 : i32 to index
    %c0_123 = arith.constant 0 : index
    %238 = vector.load %arg8[%237, %c0_123] : memref<64x512xf32, #tpu.memory_space<vmem>>, vector<8x512xf32>
    %c0_124 = arith.constant 0 : index
    %c0_125 = arith.constant 0 : index
    %239 = vector.load %arg9[%c0_124, %c0_125] : memref<8x128xf32, #tpu.memory_space<vmem>>, vector<8x128xf32>
    %240 = arith.truncf %239 : vector<8x128xf32> to vector<8x128xbf16>
    %cst_126 = arith.constant dense<0.000000e+00> : vector<8x512xf32>
    %241 = tpu.matmul %240, %14, %cst_126 {dimension_numbers = #tpu.dot_dimension_numbers<[1], [0], [0], [1], [0, 0, 1, 1], [], []>} : vector<8x128xbf16>, vector<128x512xbf16>, vector<8x512xf32> -> vector<8x512xf32>
    %242 = arith.addf %238, %241 : vector<8x512xf32>
    %243 = vector.extract_strided_slice %242 {offsets = [0, 0], sizes = [8, 128], strides = [1, 1]} : vector<8x512xf32> to vector<8x128xf32>
    %cst_127 = arith.constant 5.000000e-01 : f32
    %244 = vector.broadcast %cst_127 : f32 to vector<8x128xf32>
    %245 = arith.mulf %244, %243 : vector<8x128xf32>
    %246 = math.tanh %245 : vector<8x128xf32>
    %cst_128 = arith.constant 5.000000e-01 : f32
    %247 = vector.broadcast %cst_128 : f32 to vector<8x128xf32>
    %248 = arith.mulf %247, %246 : vector<8x128xf32>
    %cst_129 = arith.constant 5.000000e-01 : f32
    %249 = vector.broadcast %cst_129 : f32 to vector<8x128xf32>
    %250 = arith.addf %248, %249 : vector<8x128xf32>
    %251 = vector.extract_strided_slice %242 {offsets = [0, 128], sizes = [8, 128], strides = [1, 1]} : vector<8x512xf32> to vector<8x128xf32>
    %cst_130 = arith.constant 5.000000e-01 : f32
    %252 = vector.broadcast %cst_130 : f32 to vector<8x128xf32>
    %253 = arith.mulf %252, %251 : vector<8x128xf32>
    %254 = math.tanh %253 : vector<8x128xf32>
    %cst_131 = arith.constant 5.000000e-01 : f32
    %255 = vector.broadcast %cst_131 : f32 to vector<8x128xf32>
    %256 = arith.mulf %255, %254 : vector<8x128xf32>
    %cst_132 = arith.constant 5.000000e-01 : f32
    %257 = vector.broadcast %cst_132 : f32 to vector<8x128xf32>
    %258 = arith.addf %256, %257 : vector<8x128xf32>
    %259 = vector.extract_strided_slice %242 {offsets = [0, 256], sizes = [8, 128], strides = [1, 1]} : vector<8x512xf32> to vector<8x128xf32>
    %260 = math.tanh %259 : vector<8x128xf32>
    %261 = vector.extract_strided_slice %242 {offsets = [0, 384], sizes = [8, 128], strides = [1, 1]} : vector<8x512xf32> to vector<8x128xf32>
    %cst_133 = arith.constant 5.000000e-01 : f32
    %262 = vector.broadcast %cst_133 : f32 to vector<8x128xf32>
    %263 = arith.mulf %262, %261 : vector<8x128xf32>
    %264 = math.tanh %263 : vector<8x128xf32>
    %cst_134 = arith.constant 5.000000e-01 : f32
    %265 = vector.broadcast %cst_134 : f32 to vector<8x128xf32>
    %266 = arith.mulf %265, %264 : vector<8x128xf32>
    %cst_135 = arith.constant 5.000000e-01 : f32
    %267 = vector.broadcast %cst_135 : f32 to vector<8x128xf32>
    %268 = arith.addf %266, %267 : vector<8x128xf32>
    %c0_136 = arith.constant 0 : index
    %c0_137 = arith.constant 0 : index
    %269 = vector.load %arg10[%c0_136, %c0_137] : memref<8x128xf32, #tpu.memory_space<vmem>>, vector<8x128xf32>
    %270 = arith.mulf %258, %269 : vector<8x128xf32>
    %271 = arith.mulf %250, %260 : vector<8x128xf32>
    %272 = arith.addf %270, %271 : vector<8x128xf32>
    %273 = math.tanh %272 : vector<8x128xf32>
    %274 = arith.mulf %268, %273 : vector<8x128xf32>
    %c0_138 = arith.constant 0 : index
    %c0_139 = arith.constant 0 : index
    %275 = vector.load %arg10[%c0_138, %c0_139] : memref<8x128xf32, #tpu.memory_space<vmem>>, vector<8x128xf32>
    tpu.vector_store %arg10[%c0_138, %c0_139], %272 {strides = array<i32>} : memref<8x128xf32, #tpu.memory_space<vmem>>, vector<8x128xf32>,
    %c0_140 = arith.constant 0 : index
    %c0_141 = arith.constant 0 : index
    %276 = vector.load %arg9[%c0_140, %c0_141] : memref<8x128xf32, #tpu.memory_space<vmem>>, vector<8x128xf32>
    tpu.vector_store %arg9[%c0_140, %c0_141], %274 {strides = array<i32>} : memref<8x128xf32, #tpu.memory_space<vmem>>, vector<8x128xf32>,
    %277 = arith.index_cast %236 : i32 to index
    %c0_142 = arith.constant 0 : index
    %278 = vector.load %arg7[%277, %c0_142] : memref<64x128xf32, #tpu.memory_space<vmem>>, vector<8x128xf32>
    tpu.vector_store %arg7[%277, %c0_142], %274 {strides = array<i32>} : memref<64x128xf32, #tpu.memory_space<vmem>>, vector<8x128xf32>,
    %c6_i32 = arith.constant 6 : i32
    %c8_i32_143 = arith.constant 8 : i32
    %279 = arith.muli %c6_i32, %c8_i32_143 : i32
    %280 = tpu.assume_multiple %279, 8 : i32
    %281 = arith.index_cast %280 : i32 to index
    %c0_144 = arith.constant 0 : index
    %282 = vector.load %arg8[%281, %c0_144] : memref<64x512xf32, #tpu.memory_space<vmem>>, vector<8x512xf32>
    %c0_145 = arith.constant 0 : index
    %c0_146 = arith.constant 0 : index
    %283 = vector.load %arg9[%c0_145, %c0_146] : memref<8x128xf32, #tpu.memory_space<vmem>>, vector<8x128xf32>
    %284 = arith.truncf %283 : vector<8x128xf32> to vector<8x128xbf16>
    %cst_147 = arith.constant dense<0.000000e+00> : vector<8x512xf32>
    %285 = tpu.matmul %284, %14, %cst_147 {dimension_numbers = #tpu.dot_dimension_numbers<[1], [0], [0], [1], [0, 0, 1, 1], [], []>} : vector<8x128xbf16>, vector<128x512xbf16>, vector<8x512xf32> -> vector<8x512xf32>
    %286 = arith.addf %282, %285 : vector<8x512xf32>
    %287 = vector.extract_strided_slice %286 {offsets = [0, 0], sizes = [8, 128], strides = [1, 1]} : vector<8x512xf32> to vector<8x128xf32>
    %cst_148 = arith.constant 5.000000e-01 : f32
    %288 = vector.broadcast %cst_148 : f32 to vector<8x128xf32>
    %289 = arith.mulf %288, %287 : vector<8x128xf32>
    %290 = math.tanh %289 : vector<8x128xf32>
    %cst_149 = arith.constant 5.000000e-01 : f32
    %291 = vector.broadcast %cst_149 : f32 to vector<8x128xf32>
    %292 = arith.mulf %291, %290 : vector<8x128xf32>
    %cst_150 = arith.constant 5.000000e-01 : f32
    %293 = vector.broadcast %cst_150 : f32 to vector<8x128xf32>
    %294 = arith.addf %292, %293 : vector<8x128xf32>
    %295 = vector.extract_strided_slice %286 {offsets = [0, 128], sizes = [8, 128], strides = [1, 1]} : vector<8x512xf32> to vector<8x128xf32>
    %cst_151 = arith.constant 5.000000e-01 : f32
    %296 = vector.broadcast %cst_151 : f32 to vector<8x128xf32>
    %297 = arith.mulf %296, %295 : vector<8x128xf32>
    %298 = math.tanh %297 : vector<8x128xf32>
    %cst_152 = arith.constant 5.000000e-01 : f32
    %299 = vector.broadcast %cst_152 : f32 to vector<8x128xf32>
    %300 = arith.mulf %299, %298 : vector<8x128xf32>
    %cst_153 = arith.constant 5.000000e-01 : f32
    %301 = vector.broadcast %cst_153 : f32 to vector<8x128xf32>
    %302 = arith.addf %300, %301 : vector<8x128xf32>
    %303 = vector.extract_strided_slice %286 {offsets = [0, 256], sizes = [8, 128], strides = [1, 1]} : vector<8x512xf32> to vector<8x128xf32>
    %304 = math.tanh %303 : vector<8x128xf32>
    %305 = vector.extract_strided_slice %286 {offsets = [0, 384], sizes = [8, 128], strides = [1, 1]} : vector<8x512xf32> to vector<8x128xf32>
    %cst_154 = arith.constant 5.000000e-01 : f32
    %306 = vector.broadcast %cst_154 : f32 to vector<8x128xf32>
    %307 = arith.mulf %306, %305 : vector<8x128xf32>
    %308 = math.tanh %307 : vector<8x128xf32>
    %cst_155 = arith.constant 5.000000e-01 : f32
    %309 = vector.broadcast %cst_155 : f32 to vector<8x128xf32>
    %310 = arith.mulf %309, %308 : vector<8x128xf32>
    %cst_156 = arith.constant 5.000000e-01 : f32
    %311 = vector.broadcast %cst_156 : f32 to vector<8x128xf32>
    %312 = arith.addf %310, %311 : vector<8x128xf32>
    %c0_157 = arith.constant 0 : index
    %c0_158 = arith.constant 0 : index
    %313 = vector.load %arg10[%c0_157, %c0_158] : memref<8x128xf32, #tpu.memory_space<vmem>>, vector<8x128xf32>
    %314 = arith.mulf %302, %313 : vector<8x128xf32>
    %315 = arith.mulf %294, %304 : vector<8x128xf32>
    %316 = arith.addf %314, %315 : vector<8x128xf32>
    %317 = math.tanh %316 : vector<8x128xf32>
    %318 = arith.mulf %312, %317 : vector<8x128xf32>
    %c0_159 = arith.constant 0 : index
    %c0_160 = arith.constant 0 : index
    %319 = vector.load %arg10[%c0_159, %c0_160] : memref<8x128xf32, #tpu.memory_space<vmem>>, vector<8x128xf32>
    tpu.vector_store %arg10[%c0_159, %c0_160], %316 {strides = array<i32>} : memref<8x128xf32, #tpu.memory_space<vmem>>, vector<8x128xf32>,
    %c0_161 = arith.constant 0 : index
    %c0_162 = arith.constant 0 : index
    %320 = vector.load %arg9[%c0_161, %c0_162] : memref<8x128xf32, #tpu.memory_space<vmem>>, vector<8x128xf32>
    tpu.vector_store %arg9[%c0_161, %c0_162], %318 {strides = array<i32>} : memref<8x128xf32, #tpu.memory_space<vmem>>, vector<8x128xf32>,
    %321 = arith.index_cast %280 : i32 to index
    %c0_163 = arith.constant 0 : index
    %322 = vector.load %arg7[%321, %c0_163] : memref<64x128xf32, #tpu.memory_space<vmem>>, vector<8x128xf32>
    tpu.vector_store %arg7[%321, %c0_163], %318 {strides = array<i32>} : memref<64x128xf32, #tpu.memory_space<vmem>>, vector<8x128xf32>,
    %c7_i32 = arith.constant 7 : i32
    %c8_i32_164 = arith.constant 8 : i32
    %323 = arith.muli %c7_i32, %c8_i32_164 : i32
    %324 = tpu.assume_multiple %323, 8 : i32
    %325 = arith.index_cast %324 : i32 to index
    %c0_165 = arith.constant 0 : index
    %326 = vector.load %arg8[%325, %c0_165] : memref<64x512xf32, #tpu.memory_space<vmem>>, vector<8x512xf32>
    %c0_166 = arith.constant 0 : index
    %c0_167 = arith.constant 0 : index
    %327 = vector.load %arg9[%c0_166, %c0_167] : memref<8x128xf32, #tpu.memory_space<vmem>>, vector<8x128xf32>
    %328 = arith.truncf %327 : vector<8x128xf32> to vector<8x128xbf16>
    %cst_168 = arith.constant dense<0.000000e+00> : vector<8x512xf32>
    %329 = tpu.matmul %328, %14, %cst_168 {dimension_numbers = #tpu.dot_dimension_numbers<[1], [0], [0], [1], [0, 0, 1, 1], [], []>} : vector<8x128xbf16>, vector<128x512xbf16>, vector<8x512xf32> -> vector<8x512xf32>
    %330 = arith.addf %326, %329 : vector<8x512xf32>
    %331 = vector.extract_strided_slice %330 {offsets = [0, 0], sizes = [8, 128], strides = [1, 1]} : vector<8x512xf32> to vector<8x128xf32>
    %cst_169 = arith.constant 5.000000e-01 : f32
    %332 = vector.broadcast %cst_169 : f32 to vector<8x128xf32>
    %333 = arith.mulf %332, %331 : vector<8x128xf32>
    %334 = math.tanh %333 : vector<8x128xf32>
    %cst_170 = arith.constant 5.000000e-01 : f32
    %335 = vector.broadcast %cst_170 : f32 to vector<8x128xf32>
    %336 = arith.mulf %335, %334 : vector<8x128xf32>
    %cst_171 = arith.constant 5.000000e-01 : f32
    %337 = vector.broadcast %cst_171 : f32 to vector<8x128xf32>
    %338 = arith.addf %336, %337 : vector<8x128xf32>
    %339 = vector.extract_strided_slice %330 {offsets = [0, 128], sizes = [8, 128], strides = [1, 1]} : vector<8x512xf32> to vector<8x128xf32>
    %cst_172 = arith.constant 5.000000e-01 : f32
    %340 = vector.broadcast %cst_172 : f32 to vector<8x128xf32>
    %341 = arith.mulf %340, %339 : vector<8x128xf32>
    %342 = math.tanh %341 : vector<8x128xf32>
    %cst_173 = arith.constant 5.000000e-01 : f32
    %343 = vector.broadcast %cst_173 : f32 to vector<8x128xf32>
    %344 = arith.mulf %343, %342 : vector<8x128xf32>
    %cst_174 = arith.constant 5.000000e-01 : f32
    %345 = vector.broadcast %cst_174 : f32 to vector<8x128xf32>
    %346 = arith.addf %344, %345 : vector<8x128xf32>
    %347 = vector.extract_strided_slice %330 {offsets = [0, 256], sizes = [8, 128], strides = [1, 1]} : vector<8x512xf32> to vector<8x128xf32>
    %348 = math.tanh %347 : vector<8x128xf32>
    %349 = vector.extract_strided_slice %330 {offsets = [0, 384], sizes = [8, 128], strides = [1, 1]} : vector<8x512xf32> to vector<8x128xf32>
    %cst_175 = arith.constant 5.000000e-01 : f32
    %350 = vector.broadcast %cst_175 : f32 to vector<8x128xf32>
    %351 = arith.mulf %350, %349 : vector<8x128xf32>
    %352 = math.tanh %351 : vector<8x128xf32>
    %cst_176 = arith.constant 5.000000e-01 : f32
    %353 = vector.broadcast %cst_176 : f32 to vector<8x128xf32>
    %354 = arith.mulf %353, %352 : vector<8x128xf32>
    %cst_177 = arith.constant 5.000000e-01 : f32
    %355 = vector.broadcast %cst_177 : f32 to vector<8x128xf32>
    %356 = arith.addf %354, %355 : vector<8x128xf32>
    %c0_178 = arith.constant 0 : index
    %c0_179 = arith.constant 0 : index
    %357 = vector.load %arg10[%c0_178, %c0_179] : memref<8x128xf32, #tpu.memory_space<vmem>>, vector<8x128xf32>
    %358 = arith.mulf %346, %357 : vector<8x128xf32>
    %359 = arith.mulf %338, %348 : vector<8x128xf32>
    %360 = arith.addf %358, %359 : vector<8x128xf32>
    %361 = math.tanh %360 : vector<8x128xf32>
    %362 = arith.mulf %356, %361 : vector<8x128xf32>
    %c0_180 = arith.constant 0 : index
    %c0_181 = arith.constant 0 : index
    %363 = vector.load %arg10[%c0_180, %c0_181] : memref<8x128xf32, #tpu.memory_space<vmem>>, vector<8x128xf32>
    tpu.vector_store %arg10[%c0_180, %c0_181], %360 {strides = array<i32>} : memref<8x128xf32, #tpu.memory_space<vmem>>, vector<8x128xf32>,
    %c0_182 = arith.constant 0 : index
    %c0_183 = arith.constant 0 : index
    %364 = vector.load %arg9[%c0_182, %c0_183] : memref<8x128xf32, #tpu.memory_space<vmem>>, vector<8x128xf32>
    tpu.vector_store %arg9[%c0_182, %c0_183], %362 {strides = array<i32>} : memref<8x128xf32, #tpu.memory_space<vmem>>, vector<8x128xf32>,
    %365 = arith.index_cast %324 : i32 to index
    %c0_184 = arith.constant 0 : index
    %366 = vector.load %arg7[%365, %c0_184] : memref<64x128xf32, #tpu.memory_space<vmem>>, vector<8x128xf32>
    tpu.vector_store %arg7[%365, %c0_184], %362 {strides = array<i32>} : memref<64x128xf32, #tpu.memory_space<vmem>>, vector<8x128xf32>,
    %c8_i32_185 = arith.constant 8 : i32
    %c0_186 = arith.constant 0 : index
    %c0_187 = arith.constant 0 : index
    %367 = vector.load %arg7[%c0_186, %c0_187] : memref<64x128xf32, #tpu.memory_space<vmem>>, vector<64x128xf32>
    %368 = arith.truncf %367 : vector<64x128xf32> to vector<64x128xbf16>
    %c1 = arith.constant 1 : index
    %c0_188 = arith.constant 0 : index
    %c0_189 = arith.constant 0 : index
    %369 = vector.load %arg1[%c1, %c0_188, %c0_189] : memref<3x128x512xbf16, #tpu.memory_space<vmem>>, vector<1x128x512xbf16>
    %370 = vector.shape_cast %369 : vector<1x128x512xbf16> to vector<128x512xbf16>
    %cst_190 = arith.constant dense<0.000000e+00> : vector<64x512xf32>
    %371 = tpu.matmul %368, %370, %cst_190 {dimension_numbers = #tpu.dot_dimension_numbers<[1], [0], [0], [1], [0, 0, 1, 1], [], []>} : vector<64x128xbf16>, vector<128x512xbf16>, vector<64x512xf32> -> vector<64x512xf32>
    %c1_191 = arith.constant 1 : index
    %c0_192 = arith.constant 0 : index
    %c0_193 = arith.constant 0 : index
    %372 = vector.load %arg3[%c1_191, %c0_192, %c0_193] : memref<3x1x512xf32, #tpu.memory_space<vmem>>, vector<1x1x512xf32>
    %373 = vector.shape_cast %372 : vector<1x1x512xf32> to vector<1x512xf32>
    %374 = vector.broadcast %373 : vector<1x512xf32> to vector<64x512xf32>
    %375 = arith.addf %371, %374 : vector<64x512xf32>
    %c0_194 = arith.constant 0 : index
    %c0_195 = arith.constant 0 : index
    %376 = vector.load %arg8[%c0_194, %c0_195] : memref<64x512xf32, #tpu.memory_space<vmem>>, vector<64x512xf32>
    tpu.vector_store %arg8[%c0_194, %c0_195], %375 {strides = array<i32>} : memref<64x512xf32, #tpu.memory_space<vmem>>, vector<64x512xf32>,
    %cst_196 = arith.constant 0.000000e+00 : f32
    %377 = vector.broadcast %cst_196 : f32 to vector<8x128xf32>
    %c0_197 = arith.constant 0 : index
    %c0_198 = arith.constant 0 : index
    %378 = vector.load %arg9[%c0_197, %c0_198] : memref<8x128xf32, #tpu.memory_space<vmem>>, vector<8x128xf32>
    tpu.vector_store %arg9[%c0_197, %c0_198], %377 {strides = array<i32>} : memref<8x128xf32, #tpu.memory_space<vmem>>, vector<8x128xf32>,
    %cst_199 = arith.constant 0.000000e+00 : f32
    %379 = vector.broadcast %cst_199 : f32 to vector<8x128xf32>
    %c0_200 = arith.constant 0 : index
    %c0_201 = arith.constant 0 : index
    %380 = vector.load %arg10[%c0_200, %c0_201] : memref<8x128xf32, #tpu.memory_space<vmem>>, vector<8x128xf32>
    tpu.vector_store %arg10[%c0_200, %c0_201], %379 {strides = array<i32>} : memref<8x128xf32, #tpu.memory_space<vmem>>, vector<8x128xf32>,
    %c1_202 = arith.constant 1 : index
    %c0_203 = arith.constant 0 : index
    %c0_204 = arith.constant 0 : index
    %381 = vector.load %arg2[%c1_202, %c0_203, %c0_204] : memref<3x128x512xbf16, #tpu.memory_space<vmem>>, vector<1x128x512xbf16>
    %382 = vector.shape_cast %381 : vector<1x128x512xbf16> to vector<128x512xbf16>
    %c0_i32_205 = arith.constant 0 : i32
    %c8_i32_206 = arith.constant 8 : i32
    %383 = arith.muli %c0_i32_205, %c8_i32_206 : i32
    %384 = tpu.assume_multiple %383, 8 : i32
    %385 = arith.index_cast %384 : i32 to index
    %c0_207 = arith.constant 0 : index
    %386 = vector.load %arg8[%385, %c0_207] : memref<64x512xf32, #tpu.memory_space<vmem>>, vector<8x512xf32>
    %c0_208 = arith.constant 0 : index
    %c0_209 = arith.constant 0 : index
    %387 = vector.load %arg9[%c0_208, %c0_209] : memref<8x128xf32, #tpu.memory_space<vmem>>, vector<8x128xf32>
    %388 = arith.truncf %387 : vector<8x128xf32> to vector<8x128xbf16>
    %cst_210 = arith.constant dense<0.000000e+00> : vector<8x512xf32>
    %389 = tpu.matmul %388, %382, %cst_210 {dimension_numbers = #tpu.dot_dimension_numbers<[1], [0], [0], [1], [0, 0, 1, 1], [], []>} : vector<8x128xbf16>, vector<128x512xbf16>, vector<8x512xf32> -> vector<8x512xf32>
    %390 = arith.addf %386, %389 : vector<8x512xf32>
    %391 = vector.extract_strided_slice %390 {offsets = [0, 0], sizes = [8, 128], strides = [1, 1]} : vector<8x512xf32> to vector<8x128xf32>
    %cst_211 = arith.constant 5.000000e-01 : f32
    %392 = vector.broadcast %cst_211 : f32 to vector<8x128xf32>
    %393 = arith.mulf %392, %391 : vector<8x128xf32>
    %394 = math.tanh %393 : vector<8x128xf32>
    %cst_212 = arith.constant 5.000000e-01 : f32
    %395 = vector.broadcast %cst_212 : f32 to vector<8x128xf32>
    %396 = arith.mulf %395, %394 : vector<8x128xf32>
    %cst_213 = arith.constant 5.000000e-01 : f32
    %397 = vector.broadcast %cst_213 : f32 to vector<8x128xf32>
    %398 = arith.addf %396, %397 : vector<8x128xf32>
    %399 = vector.extract_strided_slice %390 {offsets = [0, 128], sizes = [8, 128], strides = [1, 1]} : vector<8x512xf32> to vector<8x128xf32>
    %cst_214 = arith.constant 5.000000e-01 : f32
    %400 = vector.broadcast %cst_214 : f32 to vector<8x128xf32>
    %401 = arith.mulf %400, %399 : vector<8x128xf32>
    %402 = math.tanh %401 : vector<8x128xf32>
    %cst_215 = arith.constant 5.000000e-01 : f32
    %403 = vector.broadcast %cst_215 : f32 to vector<8x128xf32>
    %404 = arith.mulf %403, %402 : vector<8x128xf32>
    %cst_216 = arith.constant 5.000000e-01 : f32
    %405 = vector.broadcast %cst_216 : f32 to vector<8x128xf32>
    %406 = arith.addf %404, %405 : vector<8x128xf32>
    %407 = vector.extract_strided_slice %390 {offsets = [0, 256], sizes = [8, 128], strides = [1, 1]} : vector<8x512xf32> to vector<8x128xf32>
    %408 = math.tanh %407 : vector<8x128xf32>
    %409 = vector.extract_strided_slice %390 {offsets = [0, 384], sizes = [8, 128], strides = [1, 1]} : vector<8x512xf32> to vector<8x128xf32>
    %cst_217 = arith.constant 5.000000e-01 : f32
    %410 = vector.broadcast %cst_217 : f32 to vector<8x128xf32>
    %411 = arith.mulf %410, %409 : vector<8x128xf32>
    %412 = math.tanh %411 : vector<8x128xf32>
    %cst_218 = arith.constant 5.000000e-01 : f32
    %413 = vector.broadcast %cst_218 : f32 to vector<8x128xf32>
    %414 = arith.mulf %413, %412 : vector<8x128xf32>
    %cst_219 = arith.constant 5.000000e-01 : f32
    %415 = vector.broadcast %cst_219 : f32 to vector<8x128xf32>
    %416 = arith.addf %414, %415 : vector<8x128xf32>
    %c0_220 = arith.constant 0 : index
    %c0_221 = arith.constant 0 : index
    %417 = vector.load %arg10[%c0_220, %c0_221] : memref<8x128xf32, #tpu.memory_space<vmem>>, vector<8x128xf32>
    %418 = arith.mulf %406, %417 : vector<8x128xf32>
    %419 = arith.mulf %398, %408 : vector<8x128xf32>
    %420 = arith.addf %418, %419 : vector<8x128xf32>
    %421 = math.tanh %420 : vector<8x128xf32>
    %422 = arith.mulf %416, %421 : vector<8x128xf32>
    %c0_222 = arith.constant 0 : index
    %c0_223 = arith.constant 0 : index
    %423 = vector.load %arg10[%c0_222, %c0_223] : memref<8x128xf32, #tpu.memory_space<vmem>>, vector<8x128xf32>
    tpu.vector_store %arg10[%c0_222, %c0_223], %420 {strides = array<i32>} : memref<8x128xf32, #tpu.memory_space<vmem>>, vector<8x128xf32>,
    %c0_224 = arith.constant 0 : index
    %c0_225 = arith.constant 0 : index
    %424 = vector.load %arg9[%c0_224, %c0_225] : memref<8x128xf32, #tpu.memory_space<vmem>>, vector<8x128xf32>
    tpu.vector_store %arg9[%c0_224, %c0_225], %422 {strides = array<i32>} : memref<8x128xf32, #tpu.memory_space<vmem>>, vector<8x128xf32>,
    %425 = arith.index_cast %384 : i32 to index
    %c0_226 = arith.constant 0 : index
    %426 = vector.load %arg7[%425, %c0_226] : memref<64x128xf32, #tpu.memory_space<vmem>>, vector<8x128xf32>
    tpu.vector_store %arg7[%425, %c0_226], %422 {strides = array<i32>} : memref<64x128xf32, #tpu.memory_space<vmem>>, vector<8x128xf32>,
    %c1_i32_227 = arith.constant 1 : i32
    %c8_i32_228 = arith.constant 8 : i32
    %427 = arith.muli %c1_i32_227, %c8_i32_228 : i32
    %428 = tpu.assume_multiple %427, 8 : i32
    %429 = arith.index_cast %428 : i32 to index
    %c0_229 = arith.constant 0 : index
    %430 = vector.load %arg8[%429, %c0_229] : memref<64x512xf32, #tpu.memory_space<vmem>>, vector<8x512xf32>
    %c0_230 = arith.constant 0 : index
    %c0_231 = arith.constant 0 : index
    %431 = vector.load %arg9[%c0_230, %c0_231] : memref<8x128xf32, #tpu.memory_space<vmem>>, vector<8x128xf32>
    %432 = arith.truncf %431 : vector<8x128xf32> to vector<8x128xbf16>
    %cst_232 = arith.constant dense<0.000000e+00> : vector<8x512xf32>
    %433 = tpu.matmul %432, %382, %cst_232 {dimension_numbers = #tpu.dot_dimension_numbers<[1], [0], [0], [1], [0, 0, 1, 1], [], []>} : vector<8x128xbf16>, vector<128x512xbf16>, vector<8x512xf32> -> vector<8x512xf32>
    %434 = arith.addf %430, %433 : vector<8x512xf32>
    %435 = vector.extract_strided_slice %434 {offsets = [0, 0], sizes = [8, 128], strides = [1, 1]} : vector<8x512xf32> to vector<8x128xf32>
    %cst_233 = arith.constant 5.000000e-01 : f32
    %436 = vector.broadcast %cst_233 : f32 to vector<8x128xf32>
    %437 = arith.mulf %436, %435 : vector<8x128xf32>
    %438 = math.tanh %437 : vector<8x128xf32>
    %cst_234 = arith.constant 5.000000e-01 : f32
    %439 = vector.broadcast %cst_234 : f32 to vector<8x128xf32>
    %440 = arith.mulf %439, %438 : vector<8x128xf32>
    %cst_235 = arith.constant 5.000000e-01 : f32
    %441 = vector.broadcast %cst_235 : f32 to vector<8x128xf32>
    %442 = arith.addf %440, %441 : vector<8x128xf32>
    %443 = vector.extract_strided_slice %434 {offsets = [0, 128], sizes = [8, 128], strides = [1, 1]} : vector<8x512xf32> to vector<8x128xf32>
    %cst_236 = arith.constant 5.000000e-01 : f32
    %444 = vector.broadcast %cst_236 : f32 to vector<8x128xf32>
    %445 = arith.mulf %444, %443 : vector<8x128xf32>
    %446 = math.tanh %445 : vector<8x128xf32>
    %cst_237 = arith.constant 5.000000e-01 : f32
    %447 = vector.broadcast %cst_237 : f32 to vector<8x128xf32>
    %448 = arith.mulf %447, %446 : vector<8x128xf32>
    %cst_238 = arith.constant 5.000000e-01 : f32
    %449 = vector.broadcast %cst_238 : f32 to vector<8x128xf32>
    %450 = arith.addf %448, %449 : vector<8x128xf32>
    %451 = vector.extract_strided_slice %434 {offsets = [0, 256], sizes = [8, 128], strides = [1, 1]} : vector<8x512xf32> to vector<8x128xf32>
    %452 = math.tanh %451 : vector<8x128xf32>
    %453 = vector.extract_strided_slice %434 {offsets = [0, 384], sizes = [8, 128], strides = [1, 1]} : vector<8x512xf32> to vector<8x128xf32>
    %cst_239 = arith.constant 5.000000e-01 : f32
    %454 = vector.broadcast %cst_239 : f32 to vector<8x128xf32>
    %455 = arith.mulf %454, %453 : vector<8x128xf32>
    %456 = math.tanh %455 : vector<8x128xf32>
    %cst_240 = arith.constant 5.000000e-01 : f32
    %457 = vector.broadcast %cst_240 : f32 to vector<8x128xf32>
    %458 = arith.mulf %457, %456 : vector<8x128xf32>
    %cst_241 = arith.constant 5.000000e-01 : f32
    %459 = vector.broadcast %cst_241 : f32 to vector<8x128xf32>
    %460 = arith.addf %458, %459 : vector<8x128xf32>
    %c0_242 = arith.constant 0 : index
    %c0_243 = arith.constant 0 : index
    %461 = vector.load %arg10[%c0_242, %c0_243] : memref<8x128xf32, #tpu.memory_space<vmem>>, vector<8x128xf32>
    %462 = arith.mulf %450, %461 : vector<8x128xf32>
    %463 = arith.mulf %442, %452 : vector<8x128xf32>
    %464 = arith.addf %462, %463 : vector<8x128xf32>
    %465 = math.tanh %464 : vector<8x128xf32>
    %466 = arith.mulf %460, %465 : vector<8x128xf32>
    %c0_244 = arith.constant 0 : index
    %c0_245 = arith.constant 0 : index
    %467 = vector.load %arg10[%c0_244, %c0_245] : memref<8x128xf32, #tpu.memory_space<vmem>>, vector<8x128xf32>
    tpu.vector_store %arg10[%c0_244, %c0_245], %464 {strides = array<i32>} : memref<8x128xf32, #tpu.memory_space<vmem>>, vector<8x128xf32>,
    %c0_246 = arith.constant 0 : index
    %c0_247 = arith.constant 0 : index
    %468 = vector.load %arg9[%c0_246, %c0_247] : memref<8x128xf32, #tpu.memory_space<vmem>>, vector<8x128xf32>
    tpu.vector_store %arg9[%c0_246, %c0_247], %466 {strides = array<i32>} : memref<8x128xf32, #tpu.memory_space<vmem>>, vector<8x128xf32>,
    %469 = arith.index_cast %428 : i32 to index
    %c0_248 = arith.constant 0 : index
    %470 = vector.load %arg7[%469, %c0_248] : memref<64x128xf32, #tpu.memory_space<vmem>>, vector<8x128xf32>
    tpu.vector_store %arg7[%469, %c0_248], %466 {strides = array<i32>} : memref<64x128xf32, #tpu.memory_space<vmem>>, vector<8x128xf32>,
    %c2_i32_249 = arith.constant 2 : i32
    %c8_i32_250 = arith.constant 8 : i32
    %471 = arith.muli %c2_i32_249, %c8_i32_250 : i32
    %472 = tpu.assume_multiple %471, 8 : i32
    %473 = arith.index_cast %472 : i32 to index
    %c0_251 = arith.constant 0 : index
    %474 = vector.load %arg8[%473, %c0_251] : memref<64x512xf32, #tpu.memory_space<vmem>>, vector<8x512xf32>
    %c0_252 = arith.constant 0 : index
    %c0_253 = arith.constant 0 : index
    %475 = vector.load %arg9[%c0_252, %c0_253] : memref<8x128xf32, #tpu.memory_space<vmem>>, vector<8x128xf32>
    %476 = arith.truncf %475 : vector<8x128xf32> to vector<8x128xbf16>
    %cst_254 = arith.constant dense<0.000000e+00> : vector<8x512xf32>
    %477 = tpu.matmul %476, %382, %cst_254 {dimension_numbers = #tpu.dot_dimension_numbers<[1], [0], [0], [1], [0, 0, 1, 1], [], []>} : vector<8x128xbf16>, vector<128x512xbf16>, vector<8x512xf32> -> vector<8x512xf32>
    %478 = arith.addf %474, %477 : vector<8x512xf32>
    %479 = vector.extract_strided_slice %478 {offsets = [0, 0], sizes = [8, 128], strides = [1, 1]} : vector<8x512xf32> to vector<8x128xf32>
    %cst_255 = arith.constant 5.000000e-01 : f32
    %480 = vector.broadcast %cst_255 : f32 to vector<8x128xf32>
    %481 = arith.mulf %480, %479 : vector<8x128xf32>
    %482 = math.tanh %481 : vector<8x128xf32>
    %cst_256 = arith.constant 5.000000e-01 : f32
    %483 = vector.broadcast %cst_256 : f32 to vector<8x128xf32>
    %484 = arith.mulf %483, %482 : vector<8x128xf32>
    %cst_257 = arith.constant 5.000000e-01 : f32
    %485 = vector.broadcast %cst_257 : f32 to vector<8x128xf32>
    %486 = arith.addf %484, %485 : vector<8x128xf32>
    %487 = vector.extract_strided_slice %478 {offsets = [0, 128], sizes = [8, 128], strides = [1, 1]} : vector<8x512xf32> to vector<8x128xf32>
    %cst_258 = arith.constant 5.000000e-01 : f32
    %488 = vector.broadcast %cst_258 : f32 to vector<8x128xf32>
    %489 = arith.mulf %488, %487 : vector<8x128xf32>
    %490 = math.tanh %489 : vector<8x128xf32>
    %cst_259 = arith.constant 5.000000e-01 : f32
    %491 = vector.broadcast %cst_259 : f32 to vector<8x128xf32>
    %492 = arith.mulf %491, %490 : vector<8x128xf32>
    %cst_260 = arith.constant 5.000000e-01 : f32
    %493 = vector.broadcast %cst_260 : f32 to vector<8x128xf32>
    %494 = arith.addf %492, %493 : vector<8x128xf32>
    %495 = vector.extract_strided_slice %478 {offsets = [0, 256], sizes = [8, 128], strides = [1, 1]} : vector<8x512xf32> to vector<8x128xf32>
    %496 = math.tanh %495 : vector<8x128xf32>
    %497 = vector.extract_strided_slice %478 {offsets = [0, 384], sizes = [8, 128], strides = [1, 1]} : vector<8x512xf32> to vector<8x128xf32>
    %cst_261 = arith.constant 5.000000e-01 : f32
    %498 = vector.broadcast %cst_261 : f32 to vector<8x128xf32>
    %499 = arith.mulf %498, %497 : vector<8x128xf32>
    %500 = math.tanh %499 : vector<8x128xf32>
    %cst_262 = arith.constant 5.000000e-01 : f32
    %501 = vector.broadcast %cst_262 : f32 to vector<8x128xf32>
    %502 = arith.mulf %501, %500 : vector<8x128xf32>
    %cst_263 = arith.constant 5.000000e-01 : f32
    %503 = vector.broadcast %cst_263 : f32 to vector<8x128xf32>
    %504 = arith.addf %502, %503 : vector<8x128xf32>
    %c0_264 = arith.constant 0 : index
    %c0_265 = arith.constant 0 : index
    %505 = vector.load %arg10[%c0_264, %c0_265] : memref<8x128xf32, #tpu.memory_space<vmem>>, vector<8x128xf32>
    %506 = arith.mulf %494, %505 : vector<8x128xf32>
    %507 = arith.mulf %486, %496 : vector<8x128xf32>
    %508 = arith.addf %506, %507 : vector<8x128xf32>
    %509 = math.tanh %508 : vector<8x128xf32>
    %510 = arith.mulf %504, %509 : vector<8x128xf32>
    %c0_266 = arith.constant 0 : index
    %c0_267 = arith.constant 0 : index
    %511 = vector.load %arg10[%c0_266, %c0_267] : memref<8x128xf32, #tpu.memory_space<vmem>>, vector<8x128xf32>
    tpu.vector_store %arg10[%c0_266, %c0_267], %508 {strides = array<i32>} : memref<8x128xf32, #tpu.memory_space<vmem>>, vector<8x128xf32>,
    %c0_268 = arith.constant 0 : index
    %c0_269 = arith.constant 0 : index
    %512 = vector.load %arg9[%c0_268, %c0_269] : memref<8x128xf32, #tpu.memory_space<vmem>>, vector<8x128xf32>
    tpu.vector_store %arg9[%c0_268, %c0_269], %510 {strides = array<i32>} : memref<8x128xf32, #tpu.memory_space<vmem>>, vector<8x128xf32>,
    %513 = arith.index_cast %472 : i32 to index
    %c0_270 = arith.constant 0 : index
    %514 = vector.load %arg7[%513, %c0_270] : memref<64x128xf32, #tpu.memory_space<vmem>>, vector<8x128xf32>
    tpu.vector_store %arg7[%513, %c0_270], %510 {strides = array<i32>} : memref<64x128xf32, #tpu.memory_space<vmem>>, vector<8x128xf32>,
    %c3_i32_271 = arith.constant 3 : i32
    %c8_i32_272 = arith.constant 8 : i32
    %515 = arith.muli %c3_i32_271, %c8_i32_272 : i32
    %516 = tpu.assume_multiple %515, 8 : i32
    %517 = arith.index_cast %516 : i32 to index
    %c0_273 = arith.constant 0 : index
    %518 = vector.load %arg8[%517, %c0_273] : memref<64x512xf32, #tpu.memory_space<vmem>>, vector<8x512xf32>
    %c0_274 = arith.constant 0 : index
    %c0_275 = arith.constant 0 : index
    %519 = vector.load %arg9[%c0_274, %c0_275] : memref<8x128xf32, #tpu.memory_space<vmem>>, vector<8x128xf32>
    %520 = arith.truncf %519 : vector<8x128xf32> to vector<8x128xbf16>
    %cst_276 = arith.constant dense<0.000000e+00> : vector<8x512xf32>
    %521 = tpu.matmul %520, %382, %cst_276 {dimension_numbers = #tpu.dot_dimension_numbers<[1], [0], [0], [1], [0, 0, 1, 1], [], []>} : vector<8x128xbf16>, vector<128x512xbf16>, vector<8x512xf32> -> vector<8x512xf32>
    %522 = arith.addf %518, %521 : vector<8x512xf32>
    %523 = vector.extract_strided_slice %522 {offsets = [0, 0], sizes = [8, 128], strides = [1, 1]} : vector<8x512xf32> to vector<8x128xf32>
    %cst_277 = arith.constant 5.000000e-01 : f32
    %524 = vector.broadcast %cst_277 : f32 to vector<8x128xf32>
    %525 = arith.mulf %524, %523 : vector<8x128xf32>
    %526 = math.tanh %525 : vector<8x128xf32>
    %cst_278 = arith.constant 5.000000e-01 : f32
    %527 = vector.broadcast %cst_278 : f32 to vector<8x128xf32>
    %528 = arith.mulf %527, %526 : vector<8x128xf32>
    %cst_279 = arith.constant 5.000000e-01 : f32
    %529 = vector.broadcast %cst_279 : f32 to vector<8x128xf32>
    %530 = arith.addf %528, %529 : vector<8x128xf32>
    %531 = vector.extract_strided_slice %522 {offsets = [0, 128], sizes = [8, 128], strides = [1, 1]} : vector<8x512xf32> to vector<8x128xf32>
    %cst_280 = arith.constant 5.000000e-01 : f32
    %532 = vector.broadcast %cst_280 : f32 to vector<8x128xf32>
    %533 = arith.mulf %532, %531 : vector<8x128xf32>
    %534 = math.tanh %533 : vector<8x128xf32>
    %cst_281 = arith.constant 5.000000e-01 : f32
    %535 = vector.broadcast %cst_281 : f32 to vector<8x128xf32>
    %536 = arith.mulf %535, %534 : vector<8x128xf32>
    %cst_282 = arith.constant 5.000000e-01 : f32
    %537 = vector.broadcast %cst_282 : f32 to vector<8x128xf32>
    %538 = arith.addf %536, %537 : vector<8x128xf32>
    %539 = vector.extract_strided_slice %522 {offsets = [0, 256], sizes = [8, 128], strides = [1, 1]} : vector<8x512xf32> to vector<8x128xf32>
    %540 = math.tanh %539 : vector<8x128xf32>
    %541 = vector.extract_strided_slice %522 {offsets = [0, 384], sizes = [8, 128], strides = [1, 1]} : vector<8x512xf32> to vector<8x128xf32>
    %cst_283 = arith.constant 5.000000e-01 : f32
    %542 = vector.broadcast %cst_283 : f32 to vector<8x128xf32>
    %543 = arith.mulf %542, %541 : vector<8x128xf32>
    %544 = math.tanh %543 : vector<8x128xf32>
    %cst_284 = arith.constant 5.000000e-01 : f32
    %545 = vector.broadcast %cst_284 : f32 to vector<8x128xf32>
    %546 = arith.mulf %545, %544 : vector<8x128xf32>
    %cst_285 = arith.constant 5.000000e-01 : f32
    %547 = vector.broadcast %cst_285 : f32 to vector<8x128xf32>
    %548 = arith.addf %546, %547 : vector<8x128xf32>
    %c0_286 = arith.constant 0 : index
    %c0_287 = arith.constant 0 : index
    %549 = vector.load %arg10[%c0_286, %c0_287] : memref<8x128xf32, #tpu.memory_space<vmem>>, vector<8x128xf32>
    %550 = arith.mulf %538, %549 : vector<8x128xf32>
    %551 = arith.mulf %530, %540 : vector<8x128xf32>
    %552 = arith.addf %550, %551 : vector<8x128xf32>
    %553 = math.tanh %552 : vector<8x128xf32>
    %554 = arith.mulf %548, %553 : vector<8x128xf32>
    %c0_288 = arith.constant 0 : index
    %c0_289 = arith.constant 0 : index
    %555 = vector.load %arg10[%c0_288, %c0_289] : memref<8x128xf32, #tpu.memory_space<vmem>>, vector<8x128xf32>
    tpu.vector_store %arg10[%c0_288, %c0_289], %552 {strides = array<i32>} : memref<8x128xf32, #tpu.memory_space<vmem>>, vector<8x128xf32>,
    %c0_290 = arith.constant 0 : index
    %c0_291 = arith.constant 0 : index
    %556 = vector.load %arg9[%c0_290, %c0_291] : memref<8x128xf32, #tpu.memory_space<vmem>>, vector<8x128xf32>
    tpu.vector_store %arg9[%c0_290, %c0_291], %554 {strides = array<i32>} : memref<8x128xf32, #tpu.memory_space<vmem>>, vector<8x128xf32>,
    %557 = arith.index_cast %516 : i32 to index
    %c0_292 = arith.constant 0 : index
    %558 = vector.load %arg7[%557, %c0_292] : memref<64x128xf32, #tpu.memory_space<vmem>>, vector<8x128xf32>
    tpu.vector_store %arg7[%557, %c0_292], %554 {strides = array<i32>} : memref<64x128xf32, #tpu.memory_space<vmem>>, vector<8x128xf32>,
    %c4_i32_293 = arith.constant 4 : i32
    %c8_i32_294 = arith.constant 8 : i32
    %559 = arith.muli %c4_i32_293, %c8_i32_294 : i32
    %560 = tpu.assume_multiple %559, 8 : i32
    %561 = arith.index_cast %560 : i32 to index
    %c0_295 = arith.constant 0 : index
    %562 = vector.load %arg8[%561, %c0_295] : memref<64x512xf32, #tpu.memory_space<vmem>>, vector<8x512xf32>
    %c0_296 = arith.constant 0 : index
    %c0_297 = arith.constant 0 : index
    %563 = vector.load %arg9[%c0_296, %c0_297] : memref<8x128xf32, #tpu.memory_space<vmem>>, vector<8x128xf32>
    %564 = arith.truncf %563 : vector<8x128xf32> to vector<8x128xbf16>
    %cst_298 = arith.constant dense<0.000000e+00> : vector<8x512xf32>
    %565 = tpu.matmul %564, %382, %cst_298 {dimension_numbers = #tpu.dot_dimension_numbers<[1], [0], [0], [1], [0, 0, 1, 1], [], []>} : vector<8x128xbf16>, vector<128x512xbf16>, vector<8x512xf32> -> vector<8x512xf32>
    %566 = arith.addf %562, %565 : vector<8x512xf32>
    %567 = vector.extract_strided_slice %566 {offsets = [0, 0], sizes = [8, 128], strides = [1, 1]} : vector<8x512xf32> to vector<8x128xf32>
    %cst_299 = arith.constant 5.000000e-01 : f32
    %568 = vector.broadcast %cst_299 : f32 to vector<8x128xf32>
    %569 = arith.mulf %568, %567 : vector<8x128xf32>
    %570 = math.tanh %569 : vector<8x128xf32>
    %cst_300 = arith.constant 5.000000e-01 : f32
    %571 = vector.broadcast %cst_300 : f32 to vector<8x128xf32>
    %572 = arith.mulf %571, %570 : vector<8x128xf32>
    %cst_301 = arith.constant 5.000000e-01 : f32
    %573 = vector.broadcast %cst_301 : f32 to vector<8x128xf32>
    %574 = arith.addf %572, %573 : vector<8x128xf32>
    %575 = vector.extract_strided_slice %566 {offsets = [0, 128], sizes = [8, 128], strides = [1, 1]} : vector<8x512xf32> to vector<8x128xf32>
    %cst_302 = arith.constant 5.000000e-01 : f32
    %576 = vector.broadcast %cst_302 : f32 to vector<8x128xf32>
    %577 = arith.mulf %576, %575 : vector<8x128xf32>
    %578 = math.tanh %577 : vector<8x128xf32>
    %cst_303 = arith.constant 5.000000e-01 : f32
    %579 = vector.broadcast %cst_303 : f32 to vector<8x128xf32>
    %580 = arith.mulf %579, %578 : vector<8x128xf32>
    %cst_304 = arith.constant 5.000000e-01 : f32
    %581 = vector.broadcast %cst_304 : f32 to vector<8x128xf32>
    %582 = arith.addf %580, %581 : vector<8x128xf32>
    %583 = vector.extract_strided_slice %566 {offsets = [0, 256], sizes = [8, 128], strides = [1, 1]} : vector<8x512xf32> to vector<8x128xf32>
    %584 = math.tanh %583 : vector<8x128xf32>
    %585 = vector.extract_strided_slice %566 {offsets = [0, 384], sizes = [8, 128], strides = [1, 1]} : vector<8x512xf32> to vector<8x128xf32>
    %cst_305 = arith.constant 5.000000e-01 : f32
    %586 = vector.broadcast %cst_305 : f32 to vector<8x128xf32>
    %587 = arith.mulf %586, %585 : vector<8x128xf32>
    %588 = math.tanh %587 : vector<8x128xf32>
    %cst_306 = arith.constant 5.000000e-01 : f32
    %589 = vector.broadcast %cst_306 : f32 to vector<8x128xf32>
    %590 = arith.mulf %589, %588 : vector<8x128xf32>
    %cst_307 = arith.constant 5.000000e-01 : f32
    %591 = vector.broadcast %cst_307 : f32 to vector<8x128xf32>
    %592 = arith.addf %590, %591 : vector<8x128xf32>
    %c0_308 = arith.constant 0 : index
    %c0_309 = arith.constant 0 : index
    %593 = vector.load %arg10[%c0_308, %c0_309] : memref<8x128xf32, #tpu.memory_space<vmem>>, vector<8x128xf32>
    %594 = arith.mulf %582, %593 : vector<8x128xf32>
    %595 = arith.mulf %574, %584 : vector<8x128xf32>
    %596 = arith.addf %594, %595 : vector<8x128xf32>
    %597 = math.tanh %596 : vector<8x128xf32>
    %598 = arith.mulf %592, %597 : vector<8x128xf32>
    %c0_310 = arith.constant 0 : index
    %c0_311 = arith.constant 0 : index
    %599 = vector.load %arg10[%c0_310, %c0_311] : memref<8x128xf32, #tpu.memory_space<vmem>>, vector<8x128xf32>
    tpu.vector_store %arg10[%c0_310, %c0_311], %596 {strides = array<i32>} : memref<8x128xf32, #tpu.memory_space<vmem>>, vector<8x128xf32>,
    %c0_312 = arith.constant 0 : index
    %c0_313 = arith.constant 0 : index
    %600 = vector.load %arg9[%c0_312, %c0_313] : memref<8x128xf32, #tpu.memory_space<vmem>>, vector<8x128xf32>
    tpu.vector_store %arg9[%c0_312, %c0_313], %598 {strides = array<i32>} : memref<8x128xf32, #tpu.memory_space<vmem>>, vector<8x128xf32>,
    %601 = arith.index_cast %560 : i32 to index
    %c0_314 = arith.constant 0 : index
    %602 = vector.load %arg7[%601, %c0_314] : memref<64x128xf32, #tpu.memory_space<vmem>>, vector<8x128xf32>
    tpu.vector_store %arg7[%601, %c0_314], %598 {strides = array<i32>} : memref<64x128xf32, #tpu.memory_space<vmem>>, vector<8x128xf32>,
    %c5_i32_315 = arith.constant 5 : i32
    %c8_i32_316 = arith.constant 8 : i32
    %603 = arith.muli %c5_i32_315, %c8_i32_316 : i32
    %604 = tpu.assume_multiple %603, 8 : i32
    %605 = arith.index_cast %604 : i32 to index
    %c0_317 = arith.constant 0 : index
    %606 = vector.load %arg8[%605, %c0_317] : memref<64x512xf32, #tpu.memory_space<vmem>>, vector<8x512xf32>
    %c0_318 = arith.constant 0 : index
    %c0_319 = arith.constant 0 : index
    %607 = vector.load %arg9[%c0_318, %c0_319] : memref<8x128xf32, #tpu.memory_space<vmem>>, vector<8x128xf32>
    %608 = arith.truncf %607 : vector<8x128xf32> to vector<8x128xbf16>
    %cst_320 = arith.constant dense<0.000000e+00> : vector<8x512xf32>
    %609 = tpu.matmul %608, %382, %cst_320 {dimension_numbers = #tpu.dot_dimension_numbers<[1], [0], [0], [1], [0, 0, 1, 1], [], []>} : vector<8x128xbf16>, vector<128x512xbf16>, vector<8x512xf32> -> vector<8x512xf32>
    %610 = arith.addf %606, %609 : vector<8x512xf32>
    %611 = vector.extract_strided_slice %610 {offsets = [0, 0], sizes = [8, 128], strides = [1, 1]} : vector<8x512xf32> to vector<8x128xf32>
    %cst_321 = arith.constant 5.000000e-01 : f32
    %612 = vector.broadcast %cst_321 : f32 to vector<8x128xf32>
    %613 = arith.mulf %612, %611 : vector<8x128xf32>
    %614 = math.tanh %613 : vector<8x128xf32>
    %cst_322 = arith.constant 5.000000e-01 : f32
    %615 = vector.broadcast %cst_322 : f32 to vector<8x128xf32>
    %616 = arith.mulf %615, %614 : vector<8x128xf32>
    %cst_323 = arith.constant 5.000000e-01 : f32
    %617 = vector.broadcast %cst_323 : f32 to vector<8x128xf32>
    %618 = arith.addf %616, %617 : vector<8x128xf32>
    %619 = vector.extract_strided_slice %610 {offsets = [0, 128], sizes = [8, 128], strides = [1, 1]} : vector<8x512xf32> to vector<8x128xf32>
    %cst_324 = arith.constant 5.000000e-01 : f32
    %620 = vector.broadcast %cst_324 : f32 to vector<8x128xf32>
    %621 = arith.mulf %620, %619 : vector<8x128xf32>
    %622 = math.tanh %621 : vector<8x128xf32>
    %cst_325 = arith.constant 5.000000e-01 : f32
    %623 = vector.broadcast %cst_325 : f32 to vector<8x128xf32>
    %624 = arith.mulf %623, %622 : vector<8x128xf32>
    %cst_326 = arith.constant 5.000000e-01 : f32
    %625 = vector.broadcast %cst_326 : f32 to vector<8x128xf32>
    %626 = arith.addf %624, %625 : vector<8x128xf32>
    %627 = vector.extract_strided_slice %610 {offsets = [0, 256], sizes = [8, 128], strides = [1, 1]} : vector<8x512xf32> to vector<8x128xf32>
    %628 = math.tanh %627 : vector<8x128xf32>
    %629 = vector.extract_strided_slice %610 {offsets = [0, 384], sizes = [8, 128], strides = [1, 1]} : vector<8x512xf32> to vector<8x128xf32>
    %cst_327 = arith.constant 5.000000e-01 : f32
    %630 = vector.broadcast %cst_327 : f32 to vector<8x128xf32>
    %631 = arith.mulf %630, %629 : vector<8x128xf32>
    %632 = math.tanh %631 : vector<8x128xf32>
    %cst_328 = arith.constant 5.000000e-01 : f32
    %633 = vector.broadcast %cst_328 : f32 to vector<8x128xf32>
    %634 = arith.mulf %633, %632 : vector<8x128xf32>
    %cst_329 = arith.constant 5.000000e-01 : f32
    %635 = vector.broadcast %cst_329 : f32 to vector<8x128xf32>
    %636 = arith.addf %634, %635 : vector<8x128xf32>
    %c0_330 = arith.constant 0 : index
    %c0_331 = arith.constant 0 : index
    %637 = vector.load %arg10[%c0_330, %c0_331] : memref<8x128xf32, #tpu.memory_space<vmem>>, vector<8x128xf32>
    %638 = arith.mulf %626, %637 : vector<8x128xf32>
    %639 = arith.mulf %618, %628 : vector<8x128xf32>
    %640 = arith.addf %638, %639 : vector<8x128xf32>
    %641 = math.tanh %640 : vector<8x128xf32>
    %642 = arith.mulf %636, %641 : vector<8x128xf32>
    %c0_332 = arith.constant 0 : index
    %c0_333 = arith.constant 0 : index
    %643 = vector.load %arg10[%c0_332, %c0_333] : memref<8x128xf32, #tpu.memory_space<vmem>>, vector<8x128xf32>
    tpu.vector_store %arg10[%c0_332, %c0_333], %640 {strides = array<i32>} : memref<8x128xf32, #tpu.memory_space<vmem>>, vector<8x128xf32>,
    %c0_334 = arith.constant 0 : index
    %c0_335 = arith.constant 0 : index
    %644 = vector.load %arg9[%c0_334, %c0_335] : memref<8x128xf32, #tpu.memory_space<vmem>>, vector<8x128xf32>
    tpu.vector_store %arg9[%c0_334, %c0_335], %642 {strides = array<i32>} : memref<8x128xf32, #tpu.memory_space<vmem>>, vector<8x128xf32>,
    %645 = arith.index_cast %604 : i32 to index
    %c0_336 = arith.constant 0 : index
    %646 = vector.load %arg7[%645, %c0_336] : memref<64x128xf32, #tpu.memory_space<vmem>>, vector<8x128xf32>
    tpu.vector_store %arg7[%645, %c0_336], %642 {strides = array<i32>} : memref<64x128xf32, #tpu.memory_space<vmem>>, vector<8x128xf32>,
    %c6_i32_337 = arith.constant 6 : i32
    %c8_i32_338 = arith.constant 8 : i32
    %647 = arith.muli %c6_i32_337, %c8_i32_338 : i32
    %648 = tpu.assume_multiple %647, 8 : i32
    %649 = arith.index_cast %648 : i32 to index
    %c0_339 = arith.constant 0 : index
    %650 = vector.load %arg8[%649, %c0_339] : memref<64x512xf32, #tpu.memory_space<vmem>>, vector<8x512xf32>
    %c0_340 = arith.constant 0 : index
    %c0_341 = arith.constant 0 : index
    %651 = vector.load %arg9[%c0_340, %c0_341] : memref<8x128xf32, #tpu.memory_space<vmem>>, vector<8x128xf32>
    %652 = arith.truncf %651 : vector<8x128xf32> to vector<8x128xbf16>
    %cst_342 = arith.constant dense<0.000000e+00> : vector<8x512xf32>
    %653 = tpu.matmul %652, %382, %cst_342 {dimension_numbers = #tpu.dot_dimension_numbers<[1], [0], [0], [1], [0, 0, 1, 1], [], []>} : vector<8x128xbf16>, vector<128x512xbf16>, vector<8x512xf32> -> vector<8x512xf32>
    %654 = arith.addf %650, %653 : vector<8x512xf32>
    %655 = vector.extract_strided_slice %654 {offsets = [0, 0], sizes = [8, 128], strides = [1, 1]} : vector<8x512xf32> to vector<8x128xf32>
    %cst_343 = arith.constant 5.000000e-01 : f32
    %656 = vector.broadcast %cst_343 : f32 to vector<8x128xf32>
    %657 = arith.mulf %656, %655 : vector<8x128xf32>
    %658 = math.tanh %657 : vector<8x128xf32>
    %cst_344 = arith.constant 5.000000e-01 : f32
    %659 = vector.broadcast %cst_344 : f32 to vector<8x128xf32>
    %660 = arith.mulf %659, %658 : vector<8x128xf32>
    %cst_345 = arith.constant 5.000000e-01 : f32
    %661 = vector.broadcast %cst_345 : f32 to vector<8x128xf32>
    %662 = arith.addf %660, %661 : vector<8x128xf32>
    %663 = vector.extract_strided_slice %654 {offsets = [0, 128], sizes = [8, 128], strides = [1, 1]} : vector<8x512xf32> to vector<8x128xf32>
    %cst_346 = arith.constant 5.000000e-01 : f32
    %664 = vector.broadcast %cst_346 : f32 to vector<8x128xf32>
    %665 = arith.mulf %664, %663 : vector<8x128xf32>
    %666 = math.tanh %665 : vector<8x128xf32>
    %cst_347 = arith.constant 5.000000e-01 : f32
    %667 = vector.broadcast %cst_347 : f32 to vector<8x128xf32>
    %668 = arith.mulf %667, %666 : vector<8x128xf32>
    %cst_348 = arith.constant 5.000000e-01 : f32
    %669 = vector.broadcast %cst_348 : f32 to vector<8x128xf32>
    %670 = arith.addf %668, %669 : vector<8x128xf32>
    %671 = vector.extract_strided_slice %654 {offsets = [0, 256], sizes = [8, 128], strides = [1, 1]} : vector<8x512xf32> to vector<8x128xf32>
    %672 = math.tanh %671 : vector<8x128xf32>
    %673 = vector.extract_strided_slice %654 {offsets = [0, 384], sizes = [8, 128], strides = [1, 1]} : vector<8x512xf32> to vector<8x128xf32>
    %cst_349 = arith.constant 5.000000e-01 : f32
    %674 = vector.broadcast %cst_349 : f32 to vector<8x128xf32>
    %675 = arith.mulf %674, %673 : vector<8x128xf32>
    %676 = math.tanh %675 : vector<8x128xf32>
    %cst_350 = arith.constant 5.000000e-01 : f32
    %677 = vector.broadcast %cst_350 : f32 to vector<8x128xf32>
    %678 = arith.mulf %677, %676 : vector<8x128xf32>
    %cst_351 = arith.constant 5.000000e-01 : f32
    %679 = vector.broadcast %cst_351 : f32 to vector<8x128xf32>
    %680 = arith.addf %678, %679 : vector<8x128xf32>
    %c0_352 = arith.constant 0 : index
    %c0_353 = arith.constant 0 : index
    %681 = vector.load %arg10[%c0_352, %c0_353] : memref<8x128xf32, #tpu.memory_space<vmem>>, vector<8x128xf32>
    %682 = arith.mulf %670, %681 : vector<8x128xf32>
    %683 = arith.mulf %662, %672 : vector<8x128xf32>
    %684 = arith.addf %682, %683 : vector<8x128xf32>
    %685 = math.tanh %684 : vector<8x128xf32>
    %686 = arith.mulf %680, %685 : vector<8x128xf32>
    %c0_354 = arith.constant 0 : index
    %c0_355 = arith.constant 0 : index
    %687 = vector.load %arg10[%c0_354, %c0_355] : memref<8x128xf32, #tpu.memory_space<vmem>>, vector<8x128xf32>
    tpu.vector_store %arg10[%c0_354, %c0_355], %684 {strides = array<i32>} : memref<8x128xf32, #tpu.memory_space<vmem>>, vector<8x128xf32>,
    %c0_356 = arith.constant 0 : index
    %c0_357 = arith.constant 0 : index
    %688 = vector.load %arg9[%c0_356, %c0_357] : memref<8x128xf32, #tpu.memory_space<vmem>>, vector<8x128xf32>
    tpu.vector_store %arg9[%c0_356, %c0_357], %686 {strides = array<i32>} : memref<8x128xf32, #tpu.memory_space<vmem>>, vector<8x128xf32>,
    %689 = arith.index_cast %648 : i32 to index
    %c0_358 = arith.constant 0 : index
    %690 = vector.load %arg7[%689, %c0_358] : memref<64x128xf32, #tpu.memory_space<vmem>>, vector<8x128xf32>
    tpu.vector_store %arg7[%689, %c0_358], %686 {strides = array<i32>} : memref<64x128xf32, #tpu.memory_space<vmem>>, vector<8x128xf32>,
    %c7_i32_359 = arith.constant 7 : i32
    %c8_i32_360 = arith.constant 8 : i32
    %691 = arith.muli %c7_i32_359, %c8_i32_360 : i32
    %692 = tpu.assume_multiple %691, 8 : i32
    %693 = arith.index_cast %692 : i32 to index
    %c0_361 = arith.constant 0 : index
    %694 = vector.load %arg8[%693, %c0_361] : memref<64x512xf32, #tpu.memory_space<vmem>>, vector<8x512xf32>
    %c0_362 = arith.constant 0 : index
    %c0_363 = arith.constant 0 : index
    %695 = vector.load %arg9[%c0_362, %c0_363] : memref<8x128xf32, #tpu.memory_space<vmem>>, vector<8x128xf32>
    %696 = arith.truncf %695 : vector<8x128xf32> to vector<8x128xbf16>
    %cst_364 = arith.constant dense<0.000000e+00> : vector<8x512xf32>
    %697 = tpu.matmul %696, %382, %cst_364 {dimension_numbers = #tpu.dot_dimension_numbers<[1], [0], [0], [1], [0, 0, 1, 1], [], []>} : vector<8x128xbf16>, vector<128x512xbf16>, vector<8x512xf32> -> vector<8x512xf32>
    %698 = arith.addf %694, %697 : vector<8x512xf32>
    %699 = vector.extract_strided_slice %698 {offsets = [0, 0], sizes = [8, 128], strides = [1, 1]} : vector<8x512xf32> to vector<8x128xf32>
    %cst_365 = arith.constant 5.000000e-01 : f32
    %700 = vector.broadcast %cst_365 : f32 to vector<8x128xf32>
    %701 = arith.mulf %700, %699 : vector<8x128xf32>
    %702 = math.tanh %701 : vector<8x128xf32>
    %cst_366 = arith.constant 5.000000e-01 : f32
    %703 = vector.broadcast %cst_366 : f32 to vector<8x128xf32>
    %704 = arith.mulf %703, %702 : vector<8x128xf32>
    %cst_367 = arith.constant 5.000000e-01 : f32
    %705 = vector.broadcast %cst_367 : f32 to vector<8x128xf32>
    %706 = arith.addf %704, %705 : vector<8x128xf32>
    %707 = vector.extract_strided_slice %698 {offsets = [0, 128], sizes = [8, 128], strides = [1, 1]} : vector<8x512xf32> to vector<8x128xf32>
    %cst_368 = arith.constant 5.000000e-01 : f32
    %708 = vector.broadcast %cst_368 : f32 to vector<8x128xf32>
    %709 = arith.mulf %708, %707 : vector<8x128xf32>
    %710 = math.tanh %709 : vector<8x128xf32>
    %cst_369 = arith.constant 5.000000e-01 : f32
    %711 = vector.broadcast %cst_369 : f32 to vector<8x128xf32>
    %712 = arith.mulf %711, %710 : vector<8x128xf32>
    %cst_370 = arith.constant 5.000000e-01 : f32
    %713 = vector.broadcast %cst_370 : f32 to vector<8x128xf32>
    %714 = arith.addf %712, %713 : vector<8x128xf32>
    %715 = vector.extract_strided_slice %698 {offsets = [0, 256], sizes = [8, 128], strides = [1, 1]} : vector<8x512xf32> to vector<8x128xf32>
    %716 = math.tanh %715 : vector<8x128xf32>
    %717 = vector.extract_strided_slice %698 {offsets = [0, 384], sizes = [8, 128], strides = [1, 1]} : vector<8x512xf32> to vector<8x128xf32>
    %cst_371 = arith.constant 5.000000e-01 : f32
    %718 = vector.broadcast %cst_371 : f32 to vector<8x128xf32>
    %719 = arith.mulf %718, %717 : vector<8x128xf32>
    %720 = math.tanh %719 : vector<8x128xf32>
    %cst_372 = arith.constant 5.000000e-01 : f32
    %721 = vector.broadcast %cst_372 : f32 to vector<8x128xf32>
    %722 = arith.mulf %721, %720 : vector<8x128xf32>
    %cst_373 = arith.constant 5.000000e-01 : f32
    %723 = vector.broadcast %cst_373 : f32 to vector<8x128xf32>
    %724 = arith.addf %722, %723 : vector<8x128xf32>
    %c0_374 = arith.constant 0 : index
    %c0_375 = arith.constant 0 : index
    %725 = vector.load %arg10[%c0_374, %c0_375] : memref<8x128xf32, #tpu.memory_space<vmem>>, vector<8x128xf32>
    %726 = arith.mulf %714, %725 : vector<8x128xf32>
    %727 = arith.mulf %706, %716 : vector<8x128xf32>
    %728 = arith.addf %726, %727 : vector<8x128xf32>
    %729 = math.tanh %728 : vector<8x128xf32>
    %730 = arith.mulf %724, %729 : vector<8x128xf32>
    %c0_376 = arith.constant 0 : index
    %c0_377 = arith.constant 0 : index
    %731 = vector.load %arg10[%c0_376, %c0_377] : memref<8x128xf32, #tpu.memory_space<vmem>>, vector<8x128xf32>
    tpu.vector_store %arg10[%c0_376, %c0_377], %728 {strides = array<i32>} : memref<8x128xf32, #tpu.memory_space<vmem>>, vector<8x128xf32>,
    %c0_378 = arith.constant 0 : index
    %c0_379 = arith.constant 0 : index
    %732 = vector.load %arg9[%c0_378, %c0_379] : memref<8x128xf32, #tpu.memory_space<vmem>>, vector<8x128xf32>
    tpu.vector_store %arg9[%c0_378, %c0_379], %730 {strides = array<i32>} : memref<8x128xf32, #tpu.memory_space<vmem>>, vector<8x128xf32>,
    %733 = arith.index_cast %692 : i32 to index
    %c0_380 = arith.constant 0 : index
    %734 = vector.load %arg7[%733, %c0_380] : memref<64x128xf32, #tpu.memory_space<vmem>>, vector<8x128xf32>
    tpu.vector_store %arg7[%733, %c0_380], %730 {strides = array<i32>} : memref<64x128xf32, #tpu.memory_space<vmem>>, vector<8x128xf32>,
    %c8_i32_381 = arith.constant 8 : i32
    %c0_382 = arith.constant 0 : index
    %c0_383 = arith.constant 0 : index
    %735 = vector.load %arg7[%c0_382, %c0_383] : memref<64x128xf32, #tpu.memory_space<vmem>>, vector<64x128xf32>
    %736 = arith.truncf %735 : vector<64x128xf32> to vector<64x128xbf16>
    %c2 = arith.constant 2 : index
    %c0_384 = arith.constant 0 : index
    %c0_385 = arith.constant 0 : index
    %737 = vector.load %arg1[%c2, %c0_384, %c0_385] : memref<3x128x512xbf16, #tpu.memory_space<vmem>>, vector<1x128x512xbf16>
    %738 = vector.shape_cast %737 : vector<1x128x512xbf16> to vector<128x512xbf16>
    %cst_386 = arith.constant dense<0.000000e+00> : vector<64x512xf32>
    %739 = tpu.matmul %736, %738, %cst_386 {dimension_numbers = #tpu.dot_dimension_numbers<[1], [0], [0], [1], [0, 0, 1, 1], [], []>} : vector<64x128xbf16>, vector<128x512xbf16>, vector<64x512xf32> -> vector<64x512xf32>
    %c2_387 = arith.constant 2 : index
    %c0_388 = arith.constant 0 : index
    %c0_389 = arith.constant 0 : index
    %740 = vector.load %arg3[%c2_387, %c0_388, %c0_389] : memref<3x1x512xf32, #tpu.memory_space<vmem>>, vector<1x1x512xf32>
    %741 = vector.shape_cast %740 : vector<1x1x512xf32> to vector<1x512xf32>
    %742 = vector.broadcast %741 : vector<1x512xf32> to vector<64x512xf32>
    %743 = arith.addf %739, %742 : vector<64x512xf32>
    %c0_390 = arith.constant 0 : index
    %c0_391 = arith.constant 0 : index
    %744 = vector.load %arg8[%c0_390, %c0_391] : memref<64x512xf32, #tpu.memory_space<vmem>>, vector<64x512xf32>
    tpu.vector_store %arg8[%c0_390, %c0_391], %743 {strides = array<i32>} : memref<64x512xf32, #tpu.memory_space<vmem>>, vector<64x512xf32>,
    %cst_392 = arith.constant 0.000000e+00 : f32
    %745 = vector.broadcast %cst_392 : f32 to vector<8x128xf32>
    %c0_393 = arith.constant 0 : index
    %c0_394 = arith.constant 0 : index
    %746 = vector.load %arg9[%c0_393, %c0_394] : memref<8x128xf32, #tpu.memory_space<vmem>>, vector<8x128xf32>
    tpu.vector_store %arg9[%c0_393, %c0_394], %745 {strides = array<i32>} : memref<8x128xf32, #tpu.memory_space<vmem>>, vector<8x128xf32>,
    %cst_395 = arith.constant 0.000000e+00 : f32
    %747 = vector.broadcast %cst_395 : f32 to vector<8x128xf32>
    %c0_396 = arith.constant 0 : index
    %c0_397 = arith.constant 0 : index
    %748 = vector.load %arg10[%c0_396, %c0_397] : memref<8x128xf32, #tpu.memory_space<vmem>>, vector<8x128xf32>
    tpu.vector_store %arg10[%c0_396, %c0_397], %747 {strides = array<i32>} : memref<8x128xf32, #tpu.memory_space<vmem>>, vector<8x128xf32>,
    %c2_398 = arith.constant 2 : index
    %c0_399 = arith.constant 0 : index
    %c0_400 = arith.constant 0 : index
    %749 = vector.load %arg2[%c2_398, %c0_399, %c0_400] : memref<3x128x512xbf16, #tpu.memory_space<vmem>>, vector<1x128x512xbf16>
    %750 = vector.shape_cast %749 : vector<1x128x512xbf16> to vector<128x512xbf16>
    %c0_i32_401 = arith.constant 0 : i32
    %c8_i32_402 = arith.constant 8 : i32
    %751 = arith.muli %c0_i32_401, %c8_i32_402 : i32
    %752 = tpu.assume_multiple %751, 8 : i32
    %753 = arith.index_cast %752 : i32 to index
    %c0_403 = arith.constant 0 : index
    %754 = vector.load %arg8[%753, %c0_403] : memref<64x512xf32, #tpu.memory_space<vmem>>, vector<8x512xf32>
    %c0_404 = arith.constant 0 : index
    %c0_405 = arith.constant 0 : index
    %755 = vector.load %arg9[%c0_404, %c0_405] : memref<8x128xf32, #tpu.memory_space<vmem>>, vector<8x128xf32>
    %756 = arith.truncf %755 : vector<8x128xf32> to vector<8x128xbf16>
    %cst_406 = arith.constant dense<0.000000e+00> : vector<8x512xf32>
    %757 = tpu.matmul %756, %750, %cst_406 {dimension_numbers = #tpu.dot_dimension_numbers<[1], [0], [0], [1], [0, 0, 1, 1], [], []>} : vector<8x128xbf16>, vector<128x512xbf16>, vector<8x512xf32> -> vector<8x512xf32>
    %758 = arith.addf %754, %757 : vector<8x512xf32>
    %759 = vector.extract_strided_slice %758 {offsets = [0, 0], sizes = [8, 128], strides = [1, 1]} : vector<8x512xf32> to vector<8x128xf32>
    %cst_407 = arith.constant 5.000000e-01 : f32
    %760 = vector.broadcast %cst_407 : f32 to vector<8x128xf32>
    %761 = arith.mulf %760, %759 : vector<8x128xf32>
    %762 = math.tanh %761 : vector<8x128xf32>
    %cst_408 = arith.constant 5.000000e-01 : f32
    %763 = vector.broadcast %cst_408 : f32 to vector<8x128xf32>
    %764 = arith.mulf %763, %762 : vector<8x128xf32>
    %cst_409 = arith.constant 5.000000e-01 : f32
    %765 = vector.broadcast %cst_409 : f32 to vector<8x128xf32>
    %766 = arith.addf %764, %765 : vector<8x128xf32>
    %767 = vector.extract_strided_slice %758 {offsets = [0, 128], sizes = [8, 128], strides = [1, 1]} : vector<8x512xf32> to vector<8x128xf32>
    %cst_410 = arith.constant 5.000000e-01 : f32
    %768 = vector.broadcast %cst_410 : f32 to vector<8x128xf32>
    %769 = arith.mulf %768, %767 : vector<8x128xf32>
    %770 = math.tanh %769 : vector<8x128xf32>
    %cst_411 = arith.constant 5.000000e-01 : f32
    %771 = vector.broadcast %cst_411 : f32 to vector<8x128xf32>
    %772 = arith.mulf %771, %770 : vector<8x128xf32>
    %cst_412 = arith.constant 5.000000e-01 : f32
    %773 = vector.broadcast %cst_412 : f32 to vector<8x128xf32>
    %774 = arith.addf %772, %773 : vector<8x128xf32>
    %775 = vector.extract_strided_slice %758 {offsets = [0, 256], sizes = [8, 128], strides = [1, 1]} : vector<8x512xf32> to vector<8x128xf32>
    %776 = math.tanh %775 : vector<8x128xf32>
    %777 = vector.extract_strided_slice %758 {offsets = [0, 384], sizes = [8, 128], strides = [1, 1]} : vector<8x512xf32> to vector<8x128xf32>
    %cst_413 = arith.constant 5.000000e-01 : f32
    %778 = vector.broadcast %cst_413 : f32 to vector<8x128xf32>
    %779 = arith.mulf %778, %777 : vector<8x128xf32>
    %780 = math.tanh %779 : vector<8x128xf32>
    %cst_414 = arith.constant 5.000000e-01 : f32
    %781 = vector.broadcast %cst_414 : f32 to vector<8x128xf32>
    %782 = arith.mulf %781, %780 : vector<8x128xf32>
    %cst_415 = arith.constant 5.000000e-01 : f32
    %783 = vector.broadcast %cst_415 : f32 to vector<8x128xf32>
    %784 = arith.addf %782, %783 : vector<8x128xf32>
    %c0_416 = arith.constant 0 : index
    %c0_417 = arith.constant 0 : index
    %785 = vector.load %arg10[%c0_416, %c0_417] : memref<8x128xf32, #tpu.memory_space<vmem>>, vector<8x128xf32>
    %786 = arith.mulf %774, %785 : vector<8x128xf32>
    %787 = arith.mulf %766, %776 : vector<8x128xf32>
    %788 = arith.addf %786, %787 : vector<8x128xf32>
    %789 = math.tanh %788 : vector<8x128xf32>
    %790 = arith.mulf %784, %789 : vector<8x128xf32>
    %c0_418 = arith.constant 0 : index
    %c0_419 = arith.constant 0 : index
    %791 = vector.load %arg10[%c0_418, %c0_419] : memref<8x128xf32, #tpu.memory_space<vmem>>, vector<8x128xf32>
    tpu.vector_store %arg10[%c0_418, %c0_419], %788 {strides = array<i32>} : memref<8x128xf32, #tpu.memory_space<vmem>>, vector<8x128xf32>,
    %c0_420 = arith.constant 0 : index
    %c0_421 = arith.constant 0 : index
    %792 = vector.load %arg9[%c0_420, %c0_421] : memref<8x128xf32, #tpu.memory_space<vmem>>, vector<8x128xf32>
    tpu.vector_store %arg9[%c0_420, %c0_421], %790 {strides = array<i32>} : memref<8x128xf32, #tpu.memory_space<vmem>>, vector<8x128xf32>,
    %c1_i32_422 = arith.constant 1 : i32
    %c8_i32_423 = arith.constant 8 : i32
    %793 = arith.muli %c1_i32_422, %c8_i32_423 : i32
    %794 = tpu.assume_multiple %793, 8 : i32
    %795 = arith.index_cast %794 : i32 to index
    %c0_424 = arith.constant 0 : index
    %796 = vector.load %arg8[%795, %c0_424] : memref<64x512xf32, #tpu.memory_space<vmem>>, vector<8x512xf32>
    %c0_425 = arith.constant 0 : index
    %c0_426 = arith.constant 0 : index
    %797 = vector.load %arg9[%c0_425, %c0_426] : memref<8x128xf32, #tpu.memory_space<vmem>>, vector<8x128xf32>
    %798 = arith.truncf %797 : vector<8x128xf32> to vector<8x128xbf16>
    %cst_427 = arith.constant dense<0.000000e+00> : vector<8x512xf32>
    %799 = tpu.matmul %798, %750, %cst_427 {dimension_numbers = #tpu.dot_dimension_numbers<[1], [0], [0], [1], [0, 0, 1, 1], [], []>} : vector<8x128xbf16>, vector<128x512xbf16>, vector<8x512xf32> -> vector<8x512xf32>
    %800 = arith.addf %796, %799 : vector<8x512xf32>
    %801 = vector.extract_strided_slice %800 {offsets = [0, 0], sizes = [8, 128], strides = [1, 1]} : vector<8x512xf32> to vector<8x128xf32>
    %cst_428 = arith.constant 5.000000e-01 : f32
    %802 = vector.broadcast %cst_428 : f32 to vector<8x128xf32>
    %803 = arith.mulf %802, %801 : vector<8x128xf32>
    %804 = math.tanh %803 : vector<8x128xf32>
    %cst_429 = arith.constant 5.000000e-01 : f32
    %805 = vector.broadcast %cst_429 : f32 to vector<8x128xf32>
    %806 = arith.mulf %805, %804 : vector<8x128xf32>
    %cst_430 = arith.constant 5.000000e-01 : f32
    %807 = vector.broadcast %cst_430 : f32 to vector<8x128xf32>
    %808 = arith.addf %806, %807 : vector<8x128xf32>
    %809 = vector.extract_strided_slice %800 {offsets = [0, 128], sizes = [8, 128], strides = [1, 1]} : vector<8x512xf32> to vector<8x128xf32>
    %cst_431 = arith.constant 5.000000e-01 : f32
    %810 = vector.broadcast %cst_431 : f32 to vector<8x128xf32>
    %811 = arith.mulf %810, %809 : vector<8x128xf32>
    %812 = math.tanh %811 : vector<8x128xf32>
    %cst_432 = arith.constant 5.000000e-01 : f32
    %813 = vector.broadcast %cst_432 : f32 to vector<8x128xf32>
    %814 = arith.mulf %813, %812 : vector<8x128xf32>
    %cst_433 = arith.constant 5.000000e-01 : f32
    %815 = vector.broadcast %cst_433 : f32 to vector<8x128xf32>
    %816 = arith.addf %814, %815 : vector<8x128xf32>
    %817 = vector.extract_strided_slice %800 {offsets = [0, 256], sizes = [8, 128], strides = [1, 1]} : vector<8x512xf32> to vector<8x128xf32>
    %818 = math.tanh %817 : vector<8x128xf32>
    %819 = vector.extract_strided_slice %800 {offsets = [0, 384], sizes = [8, 128], strides = [1, 1]} : vector<8x512xf32> to vector<8x128xf32>
    %cst_434 = arith.constant 5.000000e-01 : f32
    %820 = vector.broadcast %cst_434 : f32 to vector<8x128xf32>
    %821 = arith.mulf %820, %819 : vector<8x128xf32>
    %822 = math.tanh %821 : vector<8x128xf32>
    %cst_435 = arith.constant 5.000000e-01 : f32
    %823 = vector.broadcast %cst_435 : f32 to vector<8x128xf32>
    %824 = arith.mulf %823, %822 : vector<8x128xf32>
    %cst_436 = arith.constant 5.000000e-01 : f32
    %825 = vector.broadcast %cst_436 : f32 to vector<8x128xf32>
    %826 = arith.addf %824, %825 : vector<8x128xf32>
    %c0_437 = arith.constant 0 : index
    %c0_438 = arith.constant 0 : index
    %827 = vector.load %arg10[%c0_437, %c0_438] : memref<8x128xf32, #tpu.memory_space<vmem>>, vector<8x128xf32>
    %828 = arith.mulf %816, %827 : vector<8x128xf32>
    %829 = arith.mulf %808, %818 : vector<8x128xf32>
    %830 = arith.addf %828, %829 : vector<8x128xf32>
    %831 = math.tanh %830 : vector<8x128xf32>
    %832 = arith.mulf %826, %831 : vector<8x128xf32>
    %c0_439 = arith.constant 0 : index
    %c0_440 = arith.constant 0 : index
    %833 = vector.load %arg10[%c0_439, %c0_440] : memref<8x128xf32, #tpu.memory_space<vmem>>, vector<8x128xf32>
    tpu.vector_store %arg10[%c0_439, %c0_440], %830 {strides = array<i32>} : memref<8x128xf32, #tpu.memory_space<vmem>>, vector<8x128xf32>,
    %c0_441 = arith.constant 0 : index
    %c0_442 = arith.constant 0 : index
    %834 = vector.load %arg9[%c0_441, %c0_442] : memref<8x128xf32, #tpu.memory_space<vmem>>, vector<8x128xf32>
    tpu.vector_store %arg9[%c0_441, %c0_442], %832 {strides = array<i32>} : memref<8x128xf32, #tpu.memory_space<vmem>>, vector<8x128xf32>,
    %c2_i32_443 = arith.constant 2 : i32
    %c8_i32_444 = arith.constant 8 : i32
    %835 = arith.muli %c2_i32_443, %c8_i32_444 : i32
    %836 = tpu.assume_multiple %835, 8 : i32
    %837 = arith.index_cast %836 : i32 to index
    %c0_445 = arith.constant 0 : index
    %838 = vector.load %arg8[%837, %c0_445] : memref<64x512xf32, #tpu.memory_space<vmem>>, vector<8x512xf32>
    %c0_446 = arith.constant 0 : index
    %c0_447 = arith.constant 0 : index
    %839 = vector.load %arg9[%c0_446, %c0_447] : memref<8x128xf32, #tpu.memory_space<vmem>>, vector<8x128xf32>
    %840 = arith.truncf %839 : vector<8x128xf32> to vector<8x128xbf16>
    %cst_448 = arith.constant dense<0.000000e+00> : vector<8x512xf32>
    %841 = tpu.matmul %840, %750, %cst_448 {dimension_numbers = #tpu.dot_dimension_numbers<[1], [0], [0], [1], [0, 0, 1, 1], [], []>} : vector<8x128xbf16>, vector<128x512xbf16>, vector<8x512xf32> -> vector<8x512xf32>
    %842 = arith.addf %838, %841 : vector<8x512xf32>
    %843 = vector.extract_strided_slice %842 {offsets = [0, 0], sizes = [8, 128], strides = [1, 1]} : vector<8x512xf32> to vector<8x128xf32>
    %cst_449 = arith.constant 5.000000e-01 : f32
    %844 = vector.broadcast %cst_449 : f32 to vector<8x128xf32>
    %845 = arith.mulf %844, %843 : vector<8x128xf32>
    %846 = math.tanh %845 : vector<8x128xf32>
    %cst_450 = arith.constant 5.000000e-01 : f32
    %847 = vector.broadcast %cst_450 : f32 to vector<8x128xf32>
    %848 = arith.mulf %847, %846 : vector<8x128xf32>
    %cst_451 = arith.constant 5.000000e-01 : f32
    %849 = vector.broadcast %cst_451 : f32 to vector<8x128xf32>
    %850 = arith.addf %848, %849 : vector<8x128xf32>
    %851 = vector.extract_strided_slice %842 {offsets = [0, 128], sizes = [8, 128], strides = [1, 1]} : vector<8x512xf32> to vector<8x128xf32>
    %cst_452 = arith.constant 5.000000e-01 : f32
    %852 = vector.broadcast %cst_452 : f32 to vector<8x128xf32>
    %853 = arith.mulf %852, %851 : vector<8x128xf32>
    %854 = math.tanh %853 : vector<8x128xf32>
    %cst_453 = arith.constant 5.000000e-01 : f32
    %855 = vector.broadcast %cst_453 : f32 to vector<8x128xf32>
    %856 = arith.mulf %855, %854 : vector<8x128xf32>
    %cst_454 = arith.constant 5.000000e-01 : f32
    %857 = vector.broadcast %cst_454 : f32 to vector<8x128xf32>
    %858 = arith.addf %856, %857 : vector<8x128xf32>
    %859 = vector.extract_strided_slice %842 {offsets = [0, 256], sizes = [8, 128], strides = [1, 1]} : vector<8x512xf32> to vector<8x128xf32>
    %860 = math.tanh %859 : vector<8x128xf32>
    %861 = vector.extract_strided_slice %842 {offsets = [0, 384], sizes = [8, 128], strides = [1, 1]} : vector<8x512xf32> to vector<8x128xf32>
    %cst_455 = arith.constant 5.000000e-01 : f32
    %862 = vector.broadcast %cst_455 : f32 to vector<8x128xf32>
    %863 = arith.mulf %862, %861 : vector<8x128xf32>
    %864 = math.tanh %863 : vector<8x128xf32>
    %cst_456 = arith.constant 5.000000e-01 : f32
    %865 = vector.broadcast %cst_456 : f32 to vector<8x128xf32>
    %866 = arith.mulf %865, %864 : vector<8x128xf32>
    %cst_457 = arith.constant 5.000000e-01 : f32
    %867 = vector.broadcast %cst_457 : f32 to vector<8x128xf32>
    %868 = arith.addf %866, %867 : vector<8x128xf32>
    %c0_458 = arith.constant 0 : index
    %c0_459 = arith.constant 0 : index
    %869 = vector.load %arg10[%c0_458, %c0_459] : memref<8x128xf32, #tpu.memory_space<vmem>>, vector<8x128xf32>
    %870 = arith.mulf %858, %869 : vector<8x128xf32>
    %871 = arith.mulf %850, %860 : vector<8x128xf32>
    %872 = arith.addf %870, %871 : vector<8x128xf32>
    %873 = math.tanh %872 : vector<8x128xf32>
    %874 = arith.mulf %868, %873 : vector<8x128xf32>
    %c0_460 = arith.constant 0 : index
    %c0_461 = arith.constant 0 : index
    %875 = vector.load %arg10[%c0_460, %c0_461] : memref<8x128xf32, #tpu.memory_space<vmem>>, vector<8x128xf32>
    tpu.vector_store %arg10[%c0_460, %c0_461], %872 {strides = array<i32>} : memref<8x128xf32, #tpu.memory_space<vmem>>, vector<8x128xf32>,
    %c0_462 = arith.constant 0 : index
    %c0_463 = arith.constant 0 : index
    %876 = vector.load %arg9[%c0_462, %c0_463] : memref<8x128xf32, #tpu.memory_space<vmem>>, vector<8x128xf32>
    tpu.vector_store %arg9[%c0_462, %c0_463], %874 {strides = array<i32>} : memref<8x128xf32, #tpu.memory_space<vmem>>, vector<8x128xf32>,
    %c3_i32_464 = arith.constant 3 : i32
    %c8_i32_465 = arith.constant 8 : i32
    %877 = arith.muli %c3_i32_464, %c8_i32_465 : i32
    %878 = tpu.assume_multiple %877, 8 : i32
    %879 = arith.index_cast %878 : i32 to index
    %c0_466 = arith.constant 0 : index
    %880 = vector.load %arg8[%879, %c0_466] : memref<64x512xf32, #tpu.memory_space<vmem>>, vector<8x512xf32>
    %c0_467 = arith.constant 0 : index
    %c0_468 = arith.constant 0 : index
    %881 = vector.load %arg9[%c0_467, %c0_468] : memref<8x128xf32, #tpu.memory_space<vmem>>, vector<8x128xf32>
    %882 = arith.truncf %881 : vector<8x128xf32> to vector<8x128xbf16>
    %cst_469 = arith.constant dense<0.000000e+00> : vector<8x512xf32>
    %883 = tpu.matmul %882, %750, %cst_469 {dimension_numbers = #tpu.dot_dimension_numbers<[1], [0], [0], [1], [0, 0, 1, 1], [], []>} : vector<8x128xbf16>, vector<128x512xbf16>, vector<8x512xf32> -> vector<8x512xf32>
    %884 = arith.addf %880, %883 : vector<8x512xf32>
    %885 = vector.extract_strided_slice %884 {offsets = [0, 0], sizes = [8, 128], strides = [1, 1]} : vector<8x512xf32> to vector<8x128xf32>
    %cst_470 = arith.constant 5.000000e-01 : f32
    %886 = vector.broadcast %cst_470 : f32 to vector<8x128xf32>
    %887 = arith.mulf %886, %885 : vector<8x128xf32>
    %888 = math.tanh %887 : vector<8x128xf32>
    %cst_471 = arith.constant 5.000000e-01 : f32
    %889 = vector.broadcast %cst_471 : f32 to vector<8x128xf32>
    %890 = arith.mulf %889, %888 : vector<8x128xf32>
    %cst_472 = arith.constant 5.000000e-01 : f32
    %891 = vector.broadcast %cst_472 : f32 to vector<8x128xf32>
    %892 = arith.addf %890, %891 : vector<8x128xf32>
    %893 = vector.extract_strided_slice %884 {offsets = [0, 128], sizes = [8, 128], strides = [1, 1]} : vector<8x512xf32> to vector<8x128xf32>
    %cst_473 = arith.constant 5.000000e-01 : f32
    %894 = vector.broadcast %cst_473 : f32 to vector<8x128xf32>
    %895 = arith.mulf %894, %893 : vector<8x128xf32>
    %896 = math.tanh %895 : vector<8x128xf32>
    %cst_474 = arith.constant 5.000000e-01 : f32
    %897 = vector.broadcast %cst_474 : f32 to vector<8x128xf32>
    %898 = arith.mulf %897, %896 : vector<8x128xf32>
    %cst_475 = arith.constant 5.000000e-01 : f32
    %899 = vector.broadcast %cst_475 : f32 to vector<8x128xf32>
    %900 = arith.addf %898, %899 : vector<8x128xf32>
    %901 = vector.extract_strided_slice %884 {offsets = [0, 256], sizes = [8, 128], strides = [1, 1]} : vector<8x512xf32> to vector<8x128xf32>
    %902 = math.tanh %901 : vector<8x128xf32>
    %903 = vector.extract_strided_slice %884 {offsets = [0, 384], sizes = [8, 128], strides = [1, 1]} : vector<8x512xf32> to vector<8x128xf32>
    %cst_476 = arith.constant 5.000000e-01 : f32
    %904 = vector.broadcast %cst_476 : f32 to vector<8x128xf32>
    %905 = arith.mulf %904, %903 : vector<8x128xf32>
    %906 = math.tanh %905 : vector<8x128xf32>
    %cst_477 = arith.constant 5.000000e-01 : f32
    %907 = vector.broadcast %cst_477 : f32 to vector<8x128xf32>
    %908 = arith.mulf %907, %906 : vector<8x128xf32>
    %cst_478 = arith.constant 5.000000e-01 : f32
    %909 = vector.broadcast %cst_478 : f32 to vector<8x128xf32>
    %910 = arith.addf %908, %909 : vector<8x128xf32>
    %c0_479 = arith.constant 0 : index
    %c0_480 = arith.constant 0 : index
    %911 = vector.load %arg10[%c0_479, %c0_480] : memref<8x128xf32, #tpu.memory_space<vmem>>, vector<8x128xf32>
    %912 = arith.mulf %900, %911 : vector<8x128xf32>
    %913 = arith.mulf %892, %902 : vector<8x128xf32>
    %914 = arith.addf %912, %913 : vector<8x128xf32>
    %915 = math.tanh %914 : vector<8x128xf32>
    %916 = arith.mulf %910, %915 : vector<8x128xf32>
    %c0_481 = arith.constant 0 : index
    %c0_482 = arith.constant 0 : index
    %917 = vector.load %arg10[%c0_481, %c0_482] : memref<8x128xf32, #tpu.memory_space<vmem>>, vector<8x128xf32>
    tpu.vector_store %arg10[%c0_481, %c0_482], %914 {strides = array<i32>} : memref<8x128xf32, #tpu.memory_space<vmem>>, vector<8x128xf32>,
    %c0_483 = arith.constant 0 : index
    %c0_484 = arith.constant 0 : index
    %918 = vector.load %arg9[%c0_483, %c0_484] : memref<8x128xf32, #tpu.memory_space<vmem>>, vector<8x128xf32>
    tpu.vector_store %arg9[%c0_483, %c0_484], %916 {strides = array<i32>} : memref<8x128xf32, #tpu.memory_space<vmem>>, vector<8x128xf32>,
    %c4_i32_485 = arith.constant 4 : i32
    %c8_i32_486 = arith.constant 8 : i32
    %919 = arith.muli %c4_i32_485, %c8_i32_486 : i32
    %920 = tpu.assume_multiple %919, 8 : i32
    %921 = arith.index_cast %920 : i32 to index
    %c0_487 = arith.constant 0 : index
    %922 = vector.load %arg8[%921, %c0_487] : memref<64x512xf32, #tpu.memory_space<vmem>>, vector<8x512xf32>
    %c0_488 = arith.constant 0 : index
    %c0_489 = arith.constant 0 : index
    %923 = vector.load %arg9[%c0_488, %c0_489] : memref<8x128xf32, #tpu.memory_space<vmem>>, vector<8x128xf32>
    %924 = arith.truncf %923 : vector<8x128xf32> to vector<8x128xbf16>
    %cst_490 = arith.constant dense<0.000000e+00> : vector<8x512xf32>
    %925 = tpu.matmul %924, %750, %cst_490 {dimension_numbers = #tpu.dot_dimension_numbers<[1], [0], [0], [1], [0, 0, 1, 1], [], []>} : vector<8x128xbf16>, vector<128x512xbf16>, vector<8x512xf32> -> vector<8x512xf32>
    %926 = arith.addf %922, %925 : vector<8x512xf32>
    %927 = vector.extract_strided_slice %926 {offsets = [0, 0], sizes = [8, 128], strides = [1, 1]} : vector<8x512xf32> to vector<8x128xf32>
    %cst_491 = arith.constant 5.000000e-01 : f32
    %928 = vector.broadcast %cst_491 : f32 to vector<8x128xf32>
    %929 = arith.mulf %928, %927 : vector<8x128xf32>
    %930 = math.tanh %929 : vector<8x128xf32>
    %cst_492 = arith.constant 5.000000e-01 : f32
    %931 = vector.broadcast %cst_492 : f32 to vector<8x128xf32>
    %932 = arith.mulf %931, %930 : vector<8x128xf32>
    %cst_493 = arith.constant 5.000000e-01 : f32
    %933 = vector.broadcast %cst_493 : f32 to vector<8x128xf32>
    %934 = arith.addf %932, %933 : vector<8x128xf32>
    %935 = vector.extract_strided_slice %926 {offsets = [0, 128], sizes = [8, 128], strides = [1, 1]} : vector<8x512xf32> to vector<8x128xf32>
    %cst_494 = arith.constant 5.000000e-01 : f32
    %936 = vector.broadcast %cst_494 : f32 to vector<8x128xf32>
    %937 = arith.mulf %936, %935 : vector<8x128xf32>
    %938 = math.tanh %937 : vector<8x128xf32>
    %cst_495 = arith.constant 5.000000e-01 : f32
    %939 = vector.broadcast %cst_495 : f32 to vector<8x128xf32>
    %940 = arith.mulf %939, %938 : vector<8x128xf32>
    %cst_496 = arith.constant 5.000000e-01 : f32
    %941 = vector.broadcast %cst_496 : f32 to vector<8x128xf32>
    %942 = arith.addf %940, %941 : vector<8x128xf32>
    %943 = vector.extract_strided_slice %926 {offsets = [0, 256], sizes = [8, 128], strides = [1, 1]} : vector<8x512xf32> to vector<8x128xf32>
    %944 = math.tanh %943 : vector<8x128xf32>
    %945 = vector.extract_strided_slice %926 {offsets = [0, 384], sizes = [8, 128], strides = [1, 1]} : vector<8x512xf32> to vector<8x128xf32>
    %cst_497 = arith.constant 5.000000e-01 : f32
    %946 = vector.broadcast %cst_497 : f32 to vector<8x128xf32>
    %947 = arith.mulf %946, %945 : vector<8x128xf32>
    %948 = math.tanh %947 : vector<8x128xf32>
    %cst_498 = arith.constant 5.000000e-01 : f32
    %949 = vector.broadcast %cst_498 : f32 to vector<8x128xf32>
    %950 = arith.mulf %949, %948 : vector<8x128xf32>
    %cst_499 = arith.constant 5.000000e-01 : f32
    %951 = vector.broadcast %cst_499 : f32 to vector<8x128xf32>
    %952 = arith.addf %950, %951 : vector<8x128xf32>
    %c0_500 = arith.constant 0 : index
    %c0_501 = arith.constant 0 : index
    %953 = vector.load %arg10[%c0_500, %c0_501] : memref<8x128xf32, #tpu.memory_space<vmem>>, vector<8x128xf32>
    %954 = arith.mulf %942, %953 : vector<8x128xf32>
    %955 = arith.mulf %934, %944 : vector<8x128xf32>
    %956 = arith.addf %954, %955 : vector<8x128xf32>
    %957 = math.tanh %956 : vector<8x128xf32>
    %958 = arith.mulf %952, %957 : vector<8x128xf32>
    %c0_502 = arith.constant 0 : index
    %c0_503 = arith.constant 0 : index
    %959 = vector.load %arg10[%c0_502, %c0_503] : memref<8x128xf32, #tpu.memory_space<vmem>>, vector<8x128xf32>
    tpu.vector_store %arg10[%c0_502, %c0_503], %956 {strides = array<i32>} : memref<8x128xf32, #tpu.memory_space<vmem>>, vector<8x128xf32>,
    %c0_504 = arith.constant 0 : index
    %c0_505 = arith.constant 0 : index
    %960 = vector.load %arg9[%c0_504, %c0_505] : memref<8x128xf32, #tpu.memory_space<vmem>>, vector<8x128xf32>
    tpu.vector_store %arg9[%c0_504, %c0_505], %958 {strides = array<i32>} : memref<8x128xf32, #tpu.memory_space<vmem>>, vector<8x128xf32>,
    %c5_i32_506 = arith.constant 5 : i32
    %c8_i32_507 = arith.constant 8 : i32
    %961 = arith.muli %c5_i32_506, %c8_i32_507 : i32
    %962 = tpu.assume_multiple %961, 8 : i32
    %963 = arith.index_cast %962 : i32 to index
    %c0_508 = arith.constant 0 : index
    %964 = vector.load %arg8[%963, %c0_508] : memref<64x512xf32, #tpu.memory_space<vmem>>, vector<8x512xf32>
    %c0_509 = arith.constant 0 : index
    %c0_510 = arith.constant 0 : index
    %965 = vector.load %arg9[%c0_509, %c0_510] : memref<8x128xf32, #tpu.memory_space<vmem>>, vector<8x128xf32>
    %966 = arith.truncf %965 : vector<8x128xf32> to vector<8x128xbf16>
    %cst_511 = arith.constant dense<0.000000e+00> : vector<8x512xf32>
    %967 = tpu.matmul %966, %750, %cst_511 {dimension_numbers = #tpu.dot_dimension_numbers<[1], [0], [0], [1], [0, 0, 1, 1], [], []>} : vector<8x128xbf16>, vector<128x512xbf16>, vector<8x512xf32> -> vector<8x512xf32>
    %968 = arith.addf %964, %967 : vector<8x512xf32>
    %969 = vector.extract_strided_slice %968 {offsets = [0, 0], sizes = [8, 128], strides = [1, 1]} : vector<8x512xf32> to vector<8x128xf32>
    %cst_512 = arith.constant 5.000000e-01 : f32
    %970 = vector.broadcast %cst_512 : f32 to vector<8x128xf32>
    %971 = arith.mulf %970, %969 : vector<8x128xf32>
    %972 = math.tanh %971 : vector<8x128xf32>
    %cst_513 = arith.constant 5.000000e-01 : f32
    %973 = vector.broadcast %cst_513 : f32 to vector<8x128xf32>
    %974 = arith.mulf %973, %972 : vector<8x128xf32>
    %cst_514 = arith.constant 5.000000e-01 : f32
    %975 = vector.broadcast %cst_514 : f32 to vector<8x128xf32>
    %976 = arith.addf %974, %975 : vector<8x128xf32>
    %977 = vector.extract_strided_slice %968 {offsets = [0, 128], sizes = [8, 128], strides = [1, 1]} : vector<8x512xf32> to vector<8x128xf32>
    %cst_515 = arith.constant 5.000000e-01 : f32
    %978 = vector.broadcast %cst_515 : f32 to vector<8x128xf32>
    %979 = arith.mulf %978, %977 : vector<8x128xf32>
    %980 = math.tanh %979 : vector<8x128xf32>
    %cst_516 = arith.constant 5.000000e-01 : f32
    %981 = vector.broadcast %cst_516 : f32 to vector<8x128xf32>
    %982 = arith.mulf %981, %980 : vector<8x128xf32>
    %cst_517 = arith.constant 5.000000e-01 : f32
    %983 = vector.broadcast %cst_517 : f32 to vector<8x128xf32>
    %984 = arith.addf %982, %983 : vector<8x128xf32>
    %985 = vector.extract_strided_slice %968 {offsets = [0, 256], sizes = [8, 128], strides = [1, 1]} : vector<8x512xf32> to vector<8x128xf32>
    %986 = math.tanh %985 : vector<8x128xf32>
    %987 = vector.extract_strided_slice %968 {offsets = [0, 384], sizes = [8, 128], strides = [1, 1]} : vector<8x512xf32> to vector<8x128xf32>
    %cst_518 = arith.constant 5.000000e-01 : f32
    %988 = vector.broadcast %cst_518 : f32 to vector<8x128xf32>
    %989 = arith.mulf %988, %987 : vector<8x128xf32>
    %990 = math.tanh %989 : vector<8x128xf32>
    %cst_519 = arith.constant 5.000000e-01 : f32
    %991 = vector.broadcast %cst_519 : f32 to vector<8x128xf32>
    %992 = arith.mulf %991, %990 : vector<8x128xf32>
    %cst_520 = arith.constant 5.000000e-01 : f32
    %993 = vector.broadcast %cst_520 : f32 to vector<8x128xf32>
    %994 = arith.addf %992, %993 : vector<8x128xf32>
    %c0_521 = arith.constant 0 : index
    %c0_522 = arith.constant 0 : index
    %995 = vector.load %arg10[%c0_521, %c0_522] : memref<8x128xf32, #tpu.memory_space<vmem>>, vector<8x128xf32>
    %996 = arith.mulf %984, %995 : vector<8x128xf32>
    %997 = arith.mulf %976, %986 : vector<8x128xf32>
    %998 = arith.addf %996, %997 : vector<8x128xf32>
    %999 = math.tanh %998 : vector<8x128xf32>
    %1000 = arith.mulf %994, %999 : vector<8x128xf32>
    %c0_523 = arith.constant 0 : index
    %c0_524 = arith.constant 0 : index
    %1001 = vector.load %arg10[%c0_523, %c0_524] : memref<8x128xf32, #tpu.memory_space<vmem>>, vector<8x128xf32>
    tpu.vector_store %arg10[%c0_523, %c0_524], %998 {strides = array<i32>} : memref<8x128xf32, #tpu.memory_space<vmem>>, vector<8x128xf32>,
    %c0_525 = arith.constant 0 : index
    %c0_526 = arith.constant 0 : index
    %1002 = vector.load %arg9[%c0_525, %c0_526] : memref<8x128xf32, #tpu.memory_space<vmem>>, vector<8x128xf32>
    tpu.vector_store %arg9[%c0_525, %c0_526], %1000 {strides = array<i32>} : memref<8x128xf32, #tpu.memory_space<vmem>>, vector<8x128xf32>,
    %c6_i32_527 = arith.constant 6 : i32
    %c8_i32_528 = arith.constant 8 : i32
    %1003 = arith.muli %c6_i32_527, %c8_i32_528 : i32
    %1004 = tpu.assume_multiple %1003, 8 : i32
    %1005 = arith.index_cast %1004 : i32 to index
    %c0_529 = arith.constant 0 : index
    %1006 = vector.load %arg8[%1005, %c0_529] : memref<64x512xf32, #tpu.memory_space<vmem>>, vector<8x512xf32>
    %c0_530 = arith.constant 0 : index
    %c0_531 = arith.constant 0 : index
    %1007 = vector.load %arg9[%c0_530, %c0_531] : memref<8x128xf32, #tpu.memory_space<vmem>>, vector<8x128xf32>
    %1008 = arith.truncf %1007 : vector<8x128xf32> to vector<8x128xbf16>
    %cst_532 = arith.constant dense<0.000000e+00> : vector<8x512xf32>
    %1009 = tpu.matmul %1008, %750, %cst_532 {dimension_numbers = #tpu.dot_dimension_numbers<[1], [0], [0], [1], [0, 0, 1, 1], [], []>} : vector<8x128xbf16>, vector<128x512xbf16>, vector<8x512xf32> -> vector<8x512xf32>
    %1010 = arith.addf %1006, %1009 : vector<8x512xf32>
    %1011 = vector.extract_strided_slice %1010 {offsets = [0, 0], sizes = [8, 128], strides = [1, 1]} : vector<8x512xf32> to vector<8x128xf32>
    %cst_533 = arith.constant 5.000000e-01 : f32
    %1012 = vector.broadcast %cst_533 : f32 to vector<8x128xf32>
    %1013 = arith.mulf %1012, %1011 : vector<8x128xf32>
    %1014 = math.tanh %1013 : vector<8x128xf32>
    %cst_534 = arith.constant 5.000000e-01 : f32
    %1015 = vector.broadcast %cst_534 : f32 to vector<8x128xf32>
    %1016 = arith.mulf %1015, %1014 : vector<8x128xf32>
    %cst_535 = arith.constant 5.000000e-01 : f32
    %1017 = vector.broadcast %cst_535 : f32 to vector<8x128xf32>
    %1018 = arith.addf %1016, %1017 : vector<8x128xf32>
    %1019 = vector.extract_strided_slice %1010 {offsets = [0, 128], sizes = [8, 128], strides = [1, 1]} : vector<8x512xf32> to vector<8x128xf32>
    %cst_536 = arith.constant 5.000000e-01 : f32
    %1020 = vector.broadcast %cst_536 : f32 to vector<8x128xf32>
    %1021 = arith.mulf %1020, %1019 : vector<8x128xf32>
    %1022 = math.tanh %1021 : vector<8x128xf32>
    %cst_537 = arith.constant 5.000000e-01 : f32
    %1023 = vector.broadcast %cst_537 : f32 to vector<8x128xf32>
    %1024 = arith.mulf %1023, %1022 : vector<8x128xf32>
    %cst_538 = arith.constant 5.000000e-01 : f32
    %1025 = vector.broadcast %cst_538 : f32 to vector<8x128xf32>
    %1026 = arith.addf %1024, %1025 : vector<8x128xf32>
    %1027 = vector.extract_strided_slice %1010 {offsets = [0, 256], sizes = [8, 128], strides = [1, 1]} : vector<8x512xf32> to vector<8x128xf32>
    %1028 = math.tanh %1027 : vector<8x128xf32>
    %1029 = vector.extract_strided_slice %1010 {offsets = [0, 384], sizes = [8, 128], strides = [1, 1]} : vector<8x512xf32> to vector<8x128xf32>
    %cst_539 = arith.constant 5.000000e-01 : f32
    %1030 = vector.broadcast %cst_539 : f32 to vector<8x128xf32>
    %1031 = arith.mulf %1030, %1029 : vector<8x128xf32>
    %1032 = math.tanh %1031 : vector<8x128xf32>
    %cst_540 = arith.constant 5.000000e-01 : f32
    %1033 = vector.broadcast %cst_540 : f32 to vector<8x128xf32>
    %1034 = arith.mulf %1033, %1032 : vector<8x128xf32>
    %cst_541 = arith.constant 5.000000e-01 : f32
    %1035 = vector.broadcast %cst_541 : f32 to vector<8x128xf32>
    %1036 = arith.addf %1034, %1035 : vector<8x128xf32>
    %c0_542 = arith.constant 0 : index
    %c0_543 = arith.constant 0 : index
    %1037 = vector.load %arg10[%c0_542, %c0_543] : memref<8x128xf32, #tpu.memory_space<vmem>>, vector<8x128xf32>
    %1038 = arith.mulf %1026, %1037 : vector<8x128xf32>
    %1039 = arith.mulf %1018, %1028 : vector<8x128xf32>
    %1040 = arith.addf %1038, %1039 : vector<8x128xf32>
    %1041 = math.tanh %1040 : vector<8x128xf32>
    %1042 = arith.mulf %1036, %1041 : vector<8x128xf32>
    %c0_544 = arith.constant 0 : index
    %c0_545 = arith.constant 0 : index
    %1043 = vector.load %arg10[%c0_544, %c0_545] : memref<8x128xf32, #tpu.memory_space<vmem>>, vector<8x128xf32>
    tpu.vector_store %arg10[%c0_544, %c0_545], %1040 {strides = array<i32>} : memref<8x128xf32, #tpu.memory_space<vmem>>, vector<8x128xf32>,
    %c0_546 = arith.constant 0 : index
    %c0_547 = arith.constant 0 : index
    %1044 = vector.load %arg9[%c0_546, %c0_547] : memref<8x128xf32, #tpu.memory_space<vmem>>, vector<8x128xf32>
    tpu.vector_store %arg9[%c0_546, %c0_547], %1042 {strides = array<i32>} : memref<8x128xf32, #tpu.memory_space<vmem>>, vector<8x128xf32>,
    %c7_i32_548 = arith.constant 7 : i32
    %c8_i32_549 = arith.constant 8 : i32
    %1045 = arith.muli %c7_i32_548, %c8_i32_549 : i32
    %1046 = tpu.assume_multiple %1045, 8 : i32
    %1047 = arith.index_cast %1046 : i32 to index
    %c0_550 = arith.constant 0 : index
    %1048 = vector.load %arg8[%1047, %c0_550] : memref<64x512xf32, #tpu.memory_space<vmem>>, vector<8x512xf32>
    %c0_551 = arith.constant 0 : index
    %c0_552 = arith.constant 0 : index
    %1049 = vector.load %arg9[%c0_551, %c0_552] : memref<8x128xf32, #tpu.memory_space<vmem>>, vector<8x128xf32>
    %1050 = arith.truncf %1049 : vector<8x128xf32> to vector<8x128xbf16>
    %cst_553 = arith.constant dense<0.000000e+00> : vector<8x512xf32>
    %1051 = tpu.matmul %1050, %750, %cst_553 {dimension_numbers = #tpu.dot_dimension_numbers<[1], [0], [0], [1], [0, 0, 1, 1], [], []>} : vector<8x128xbf16>, vector<128x512xbf16>, vector<8x512xf32> -> vector<8x512xf32>
    %1052 = arith.addf %1048, %1051 : vector<8x512xf32>
    %1053 = vector.extract_strided_slice %1052 {offsets = [0, 0], sizes = [8, 128], strides = [1, 1]} : vector<8x512xf32> to vector<8x128xf32>
    %cst_554 = arith.constant 5.000000e-01 : f32
    %1054 = vector.broadcast %cst_554 : f32 to vector<8x128xf32>
    %1055 = arith.mulf %1054, %1053 : vector<8x128xf32>
    %1056 = math.tanh %1055 : vector<8x128xf32>
    %cst_555 = arith.constant 5.000000e-01 : f32
    %1057 = vector.broadcast %cst_555 : f32 to vector<8x128xf32>
    %1058 = arith.mulf %1057, %1056 : vector<8x128xf32>
    %cst_556 = arith.constant 5.000000e-01 : f32
    %1059 = vector.broadcast %cst_556 : f32 to vector<8x128xf32>
    %1060 = arith.addf %1058, %1059 : vector<8x128xf32>
    %1061 = vector.extract_strided_slice %1052 {offsets = [0, 128], sizes = [8, 128], strides = [1, 1]} : vector<8x512xf32> to vector<8x128xf32>
    %cst_557 = arith.constant 5.000000e-01 : f32
    %1062 = vector.broadcast %cst_557 : f32 to vector<8x128xf32>
    %1063 = arith.mulf %1062, %1061 : vector<8x128xf32>
    %1064 = math.tanh %1063 : vector<8x128xf32>
    %cst_558 = arith.constant 5.000000e-01 : f32
    %1065 = vector.broadcast %cst_558 : f32 to vector<8x128xf32>
    %1066 = arith.mulf %1065, %1064 : vector<8x128xf32>
    %cst_559 = arith.constant 5.000000e-01 : f32
    %1067 = vector.broadcast %cst_559 : f32 to vector<8x128xf32>
    %1068 = arith.addf %1066, %1067 : vector<8x128xf32>
    %1069 = vector.extract_strided_slice %1052 {offsets = [0, 256], sizes = [8, 128], strides = [1, 1]} : vector<8x512xf32> to vector<8x128xf32>
    %1070 = math.tanh %1069 : vector<8x128xf32>
    %1071 = vector.extract_strided_slice %1052 {offsets = [0, 384], sizes = [8, 128], strides = [1, 1]} : vector<8x512xf32> to vector<8x128xf32>
    %cst_560 = arith.constant 5.000000e-01 : f32
    %1072 = vector.broadcast %cst_560 : f32 to vector<8x128xf32>
    %1073 = arith.mulf %1072, %1071 : vector<8x128xf32>
    %1074 = math.tanh %1073 : vector<8x128xf32>
    %cst_561 = arith.constant 5.000000e-01 : f32
    %1075 = vector.broadcast %cst_561 : f32 to vector<8x128xf32>
    %1076 = arith.mulf %1075, %1074 : vector<8x128xf32>
    %cst_562 = arith.constant 5.000000e-01 : f32
    %1077 = vector.broadcast %cst_562 : f32 to vector<8x128xf32>
    %1078 = arith.addf %1076, %1077 : vector<8x128xf32>
    %c0_563 = arith.constant 0 : index
    %c0_564 = arith.constant 0 : index
    %1079 = vector.load %arg10[%c0_563, %c0_564] : memref<8x128xf32, #tpu.memory_space<vmem>>, vector<8x128xf32>
    %1080 = arith.mulf %1068, %1079 : vector<8x128xf32>
    %1081 = arith.mulf %1060, %1070 : vector<8x128xf32>
    %1082 = arith.addf %1080, %1081 : vector<8x128xf32>
    %1083 = math.tanh %1082 : vector<8x128xf32>
    %1084 = arith.mulf %1078, %1083 : vector<8x128xf32>
    %c0_565 = arith.constant 0 : index
    %c0_566 = arith.constant 0 : index
    %1085 = vector.load %arg10[%c0_565, %c0_566] : memref<8x128xf32, #tpu.memory_space<vmem>>, vector<8x128xf32>
    tpu.vector_store %arg10[%c0_565, %c0_566], %1082 {strides = array<i32>} : memref<8x128xf32, #tpu.memory_space<vmem>>, vector<8x128xf32>,
    %c0_567 = arith.constant 0 : index
    %c0_568 = arith.constant 0 : index
    %1086 = vector.load %arg9[%c0_567, %c0_568] : memref<8x128xf32, #tpu.memory_space<vmem>>, vector<8x128xf32>
    tpu.vector_store %arg9[%c0_567, %c0_568], %1084 {strides = array<i32>} : memref<8x128xf32, #tpu.memory_space<vmem>>, vector<8x128xf32>,
    %c8_i32_569 = arith.constant 8 : i32
    %c0_570 = arith.constant 0 : index
    %c0_571 = arith.constant 0 : index
    %1087 = vector.load %arg9[%c0_570, %c0_571] : memref<8x128xf32, #tpu.memory_space<vmem>>, vector<8x128xf32>
    %1088 = arith.truncf %1087 : vector<8x128xf32> to vector<8x128xbf16>
    %c0_572 = arith.constant 0 : index
    %c0_573 = arith.constant 0 : index
    %1089 = vector.load %arg4[%c0_572, %c0_573] : memref<128x128xbf16, #tpu.memory_space<vmem>>, vector<128x128xbf16>
    %cst_574 = arith.constant dense<0.000000e+00> : vector<8x128xf32>
    %1090 = tpu.matmul %1088, %1089, %cst_574 {dimension_numbers = #tpu.dot_dimension_numbers<[1], [0], [0], [1], [0, 0, 1, 1], [], []>} : vector<8x128xbf16>, vector<128x128xbf16>, vector<8x128xf32> -> vector<8x128xf32>
    %c0_575 = arith.constant 0 : index
    %c0_576 = arith.constant 0 : index
    %1091 = vector.load %arg5[%c0_575, %c0_576] : memref<1x128xf32, #tpu.memory_space<vmem>>, vector<1x128xf32>
    %1092 = vector.broadcast %1091 : vector<1x128xf32> to vector<8x128xf32>
    %1093 = arith.addf %1090, %1092 : vector<8x128xf32>
    %cst_577 = arith.constant dense<0xFF800000> : vector<8xf32>
    %1094 = vector.multi_reduction <maximumf>, %1093, %cst_577 [1] : vector<8x128xf32> to vector<8xf32>
    %1095 = vector.shape_cast %1094 : vector<8xf32> to vector<8x1xf32>
    %1096 = vector.broadcast %1095 : vector<8x1xf32> to vector<8x128xf32>
    %1097 = arith.subf %1093, %1096 : vector<8x128xf32>
    %1098 = math.exp %1097 : vector<8x128xf32>
    %cst_578 = arith.constant dense<0.000000e+00> : vector<8xf32>
    %1099 = vector.multi_reduction <add>, %1098, %cst_578 [1] : vector<8x128xf32> to vector<8xf32>
    %1100 = vector.shape_cast %1099 : vector<8xf32> to vector<8x1xf32>
    %1101 = math.log %1100 : vector<8x1xf32>
    %1102 = vector.broadcast %1101 : vector<8x1xf32> to vector<8x128xf32>
    %1103 = arith.subf %1097, %1102 : vector<8x128xf32>
    %c0_579 = arith.constant 0 : index
    %c0_580 = arith.constant 0 : index
    %1104 = vector.load %arg6[%c0_579, %c0_580] : memref<8x128xf32, #tpu.memory_space<vmem>>, vector<8x128xf32>
    tpu.vector_store %arg6[%c0_579, %c0_580], %1103 {strides = array<i32>} : memref<8x128xf32, #tpu.memory_space<vmem>>, vector<8x128xf32>,
    return
  }
}

</mosaic_0001>

<bundles_post_ra>
// kernel: lstm_classifier_forward.1
= control target key start
LH: loop header
LB: loop body
LE: loop exit
PB: predicated region body
PF: predicated region fallthrough
CT: control target
= control target key end

     0   :  { %11 = vsyncpa [#allocation7], 0  ;;  %s6806_s0 = inlined_call_operand.vmem [shape: bf16[64,128], index: 0, kind: input, shape index: {}]   ;;  %s6807_s1 = inlined_call_operand.hbm [shape: bf16[3,128,512], index: 1, kind: input, shape index: {}]   ;;  %s6808_s2 = inlined_call_operand.hbm [shape: bf16[3,128,512], index: 2, kind: input, shape index: {}]   ;;  %s6809_s3 = inlined_call_operand.vmem [shape: f32[3,1,512], index: 3, kind: input, shape index: {}]   ;;  %s6810_s4 = inlined_call_operand.vmem [shape: bf16[128,128], index: 4, kind: input, shape index: {}]   ;;  %s6811_s5 = inlined_call_operand.vmem [shape: f32[1,128], index: 5, kind: input, shape index: {}]   ;;  %s6812_s6 = inlined_call_operand.vmem [shape: f32[8,128], index: 6, kind: output, shape index: {}]  }
   0x1   :  { %s19_s23 = sshll.u32 %s6807_s1, 4  ;;  %s20_s23 = int_to_ptr.hbm [resolvable:$true] %s19_s23 }
   0x2   :  { %12 = vsyncpa [#allocation9], 0  ;;  %s5219_s24 = smov [#allocation6]   ;;  %s32_s28 = sshll.u32 %s6808_s2, 4  ;;  %s33_s28 = int_to_ptr.hbm [resolvable:$true] %s32_s28 }
   0x3   :  { %s21_s25 = sshll.u32 %s5219_s24, 4  ;;  %s5220_s29 = smov 256   ;;  %s22_s25 = int_to_ptr.vmem [resolvable:$true] %s21_s25 }
   0x4   :  { %s5221_s30 = smov 16   ;;  %s5222_s7 = smov [#allocation8]  }
   0x5   :  { %27 = dma.hbm_to_vmem [thread:$0]  %s20_s23, 12288, %s22_s25, [#allocation7], %s5220_s29, %s5220_s29, %s5221_s30  }
   0x6   :  { %s34_s8 = sshll.u32 %s5222_s7, 4  ;;  %s35_s8 = int_to_ptr.vmem [resolvable:$true] %s34_s8 }
   0x7   :  { %40 = dma.hbm_to_vmem [thread:$0]  %s33_s28, 12288, %s35_s8, [#allocation9], %s5220_s29, %s5220_s29, %s5221_s30  }
   0x8   :  { %5215 = dma.done.wait [#allocation7], 12288  }
   0x9   :  { %5216 = vsyncadd [#allocation7], 4294955008 }
   0xa   :  { %5217 = dma.done.wait [#allocation9], 12288  }
   0xb   :  { %5218 = vsyncadd [#allocation9], 4294955008  ;;  %v4025_v0 = vld [vmem:[#allocation6 + $0xe0] sm:$0xf]  ;;  %v4747_v1 = vld [vmem:[#allocation6 + $0xec] sm:$0xf0] }
   0xc   :  { %v4745_v2 = vld [vmem:[#allocation6 + $0xe4] sm:$0xf]  ;;  %v4026_v3 = vor.u32 %v4747_v1, %v4025_v0  ;;  %v4027_v4 = vld [vmem:[#allocation6 + $0xf0] sm:$0xf0]  ;;  %v4033_v5 = vld [vmem:[#allocation6 + $0xe8] sm:$0xf] }
   0xd   :  { %v4748_v6 = vld [vmem:[#allocation6 + $0xf4] sm:$0xf0]  ;;  %v4030_v7 = vor.u32 %v4745_v2, %v4027_v4  ;;  %v4746_v9 = vld [vmem:[#allocation6 + $0xec] sm:$0xf]  ;;  %v4035_v10 = vld [vmem:[#allocation6 + $0xf8] sm:$0xf0] }
   0xe   :  { %v4034_v8 = vor.u32 %v4748_v6, %v4033_v5  ;;  %v4009_v11 = vld [vmem:[#allocation6 + $0xc0] sm:$0xf]  ;;  %289 = vmatpush.bf16.msra.mxu0 %v4026_v3  ;;  %v4038_v12 = vor.u32 %v4746_v9, %v4035_v10  ;;  %v4743_v13 = vld [vmem:[#allocation6 + $0xcc] sm:$0xf0]  ;;  %v4741_v14 = vld [vmem:[#allocation6 + $0xc4] sm:$0xf] }
   0xf   :  { %v4011_v15 = vld [vmem:[#allocation6 + $0xd0] sm:$0xf0]  ;;  %318 = vmatpush.bf16.msra.mxu1 %v4030_v7  ;;  %v4010_v16 = vor.u32 %v4743_v13, %v4009_v11  ;;  %v4017_v18 = vld [vmem:[#allocation6 + $0xc8] sm:$0xf]  ;;  %v4744_v19 = vld [vmem:[#allocation6 + $0xd4] sm:$0xf0] }
  0x10   :  { %347 = vmatpush.bf16.msra.mxu2 %v4034_v8  ;;  %v4014_v17 = vor.u32 %v4741_v14, %v4011_v15  ;;  %v4742_v20 = vld [vmem:[#allocation6 + $0xcc] sm:$0xf]  ;;  %376 = vmatpush.bf16.msra.mxu3 %v4038_v12  ;;  %v4018_v21 = vor.u32 %v4744_v19, %v4017_v18  ;;  %v4019_v22 = vld [vmem:[#allocation6 + $0xd8] sm:$0xf0]  ;;  %v3993_v23 = vld [vmem:[#allocation6 + $0xa0] sm:$0xf] }
  0x11   :  { %v4739_v24 = vld [vmem:[#allocation6 + $0xac] sm:$0xf0]  ;;  %v4022_v25 = vor.u32 %v4742_v20, %v4019_v22  ;;  %v4737_v26 = vld [vmem:[#allocation6 + $0xa4] sm:$0xf]  ;;  %v3995_v27 = vld [vmem:[#allocation6 + $0xb0] sm:$0xf0] }
  0x12   :  { %v4001_v28 = vld [vmem:[#allocation6 + $0xa8] sm:$0xf]  ;;  %290 = vmatpush.bf16.msra.mxu0 %v4010_v16  ;;  %v3994_v29 = vor.u32 %v4739_v24, %v3993_v23  ;;  %v4740_v30 = vld [vmem:[#allocation6 + $0xb4] sm:$0xf0]  ;;  %v4738_v31 = vld [vmem:[#allocation6 + $0xac] sm:$0xf]  ;;  %v3998_v33 = vor.u32 %v4737_v26, %v3995_v27 }
  0x13   :  { %v4003_v32 = vld [vmem:[#allocation6 + $0xb8] sm:$0xf0]  ;;  %319 = vmatpush.bf16.msra.mxu1 %v4014_v17  ;;  %v4002_v34 = vor.u32 %v4740_v30, %v4001_v28  ;;  %v3977_v35 = vld [vmem:[#allocation6 + $0x80] sm:$0xf]  ;;  %v4735_v36 = vld [vmem:[#allocation6 + $0x8c] sm:$0xf0] }
  0x14   :  { %348 = vmatpush.bf16.msra.mxu2 %v4018_v21  ;;  %v4733_v37 = vld [vmem:[#allocation6 + $0x84] sm:$0xf]  ;;  %377 = vmatpush.bf16.msra.mxu3 %v4022_v25  ;;  %v4006_v38 = vor.u32 %v4738_v31, %v4003_v32  ;;  %v3979_v39 = vld [vmem:[#allocation6 + $0x90] sm:$0xf0]  ;;  %v3985_v40 = vld [vmem:[#allocation6 + $0x88] sm:$0xf]  ;;  %v3978_v44 = vor.u32 %v4735_v36, %v3977_v35 }
  0x15   :  { %v4736_v41 = vld [vmem:[#allocation6 + $0x94] sm:$0xf0]  ;;  %v4734_v42 = vld [vmem:[#allocation6 + $0x8c] sm:$0xf]  ;;  %v3987_v43 = vld [vmem:[#allocation6 + $0x98] sm:$0xf0]  ;;  %v3982_v45 = vor.u32 %v4733_v37, %v3979_v39 }
  0x16   :  { %291 = vmatpush.bf16.msra.mxu0 %v3994_v29  ;;  %v3986_v46 = vor.u32 %v4736_v41, %v3985_v40  ;;  %v3961_v47 = vld [vmem:[#allocation6 + $0x60] sm:$0xf]  ;;  %v4731_v48 = vld [vmem:[#allocation6 + $0x6c] sm:$0xf0]  ;;  %v4729_v49 = vld [vmem:[#allocation6 + $0x64] sm:$0xf]  ;;  %v3990_v50 = vor.u32 %v4734_v42, %v3987_v43 }
  0x17   :  { %320 = vmatpush.bf16.msra.mxu1 %v3998_v33  ;;  %v3963_v51 = vld [vmem:[#allocation6 + $0x70] sm:$0xf0]  ;;  %v3969_v52 = vld [vmem:[#allocation6 + $0x68] sm:$0xf]  ;;  %v4732_v53 = vld [vmem:[#allocation6 + $0x74] sm:$0xf0]  ;;  %v3962_v56 = vor.u32 %v4731_v48, %v3961_v47 }
  0x18   :  { %349 = vmatpush.bf16.msra.mxu2 %v4002_v34  ;;  %378 = vmatpush.bf16.msra.mxu3 %v4006_v38  ;;  %v4730_v54 = vld [vmem:[#allocation6 + $0x6c] sm:$0xf]  ;;  %v3971_v55 = vld [vmem:[#allocation6 + $0x78] sm:$0xf0]  ;;  %v3966_v57 = vor.u32 %v4729_v49, %v3963_v51  ;;  %v3970_v58 = vor.u32 %v4732_v53, %v3969_v52  ;;  %v3945_v59 = vld [vmem:[#allocation6 + $0x40] sm:$0xf] }
  0x19   :  { %v4727_v60 = vld [vmem:[#allocation6 + $0x4c] sm:$0xf0]  ;;  %v4725_v61 = vld [vmem:[#allocation6 + $0x44] sm:$0xf]  ;;  %v3974_v62 = vor.u32 %v4730_v54, %v3971_v55  ;;  %v3947_v63 = vld [vmem:[#allocation6 + $0x50] sm:$0xf0] }
  0x1a   :  { %292 = vmatpush.bf16.msra.mxu0 %v3978_v44  ;;  %v3953_v0 = vld [vmem:[#allocation6 + $0x48] sm:$0xf]  ;;  %v4728_v1 = vld [vmem:[#allocation6 + $0x54] sm:$0xf0]  ;;  %v4726_v2 = vld [vmem:[#allocation6 + $0x4c] sm:$0xf]  ;;  %v3946_v4 = vor.u32 %v4727_v60, %v3945_v59  ;;  %v3950_v5 = vor.u32 %v4725_v61, %v3947_v63 }
  0x1b   :  { %321 = vmatpush.bf16.msra.mxu1 %v3982_v45  ;;  %v3955_v3 = vld [vmem:[#allocation6 + $0x58] sm:$0xf0]  ;;  %v3954_v6 = vor.u32 %v4728_v1, %v3953_v0  ;;  %v3929_v7 = vld [vmem:[#allocation6 + $0x20] sm:$0xf]  ;;  %v4723_v8 = vld [vmem:[#allocation6 + $0x2c] sm:$0xf0] }
  0x1c   :  { %350 = vmatpush.bf16.msra.mxu2 %v3986_v46  ;;  %379 = vmatpush.bf16.msra.mxu3 %v3990_v50  ;;  %v4721_v9 = vld [vmem:[#allocation6 + $0x24] sm:$0xf]  ;;  %v3958_v10 = vor.u32 %v4726_v2, %v3955_v3  ;;  %v3931_v11 = vld [vmem:[#allocation6 + $0x30] sm:$0xf0]  ;;  %v3937_v12 = vld [vmem:[#allocation6 + $0x28] sm:$0xf]  ;;  %v3930_v16 = vor.u32 %v4723_v8, %v3929_v7 }
  0x1d   :  { %v4724_v13 = vld [vmem:[#allocation6 + $0x34] sm:$0xf0]  ;;  %v4722_v14 = vld [vmem:[#allocation6 + $0x2c] sm:$0xf]  ;;  %v3939_v15 = vld [vmem:[#allocation6 + $0x38] sm:$0xf0]  ;;  %v3934_v18 = vor.u32 %v4721_v9, %v3931_v11 }
  0x1e   :  { %293 = vmatpush.bf16.msra.mxu0 %v3962_v56  ;;  %v3913_v17 = vld [vmem:[#allocation6] sm:$0xf]  ;;  %v3938_v19 = vor.u32 %v4724_v13, %v3937_v12  ;;  %v4719_v20 = vld [vmem:[#allocation6 + $0xc] sm:$0xf0]  ;;  %v4717_v21 = vld [vmem:[#allocation6 + $0x4] sm:$0xf]  ;;  %v3942_v23 = vor.u32 %v4722_v14, %v3939_v15 }
  0x1f   :  { %322 = vmatpush.bf16.msra.mxu1 %v3966_v57  ;;  %v3915_v22 = vld [vmem:[#allocation6 + $0x10] sm:$0xf0]  ;;  %v3921_v24 = vld [vmem:[#allocation6 + $0x8] sm:$0xf]  ;;  %v4720_v25 = vld [vmem:[#allocation6 + $0x14] sm:$0xf0]  ;;  %v3914_v30 = vor.u32 %v4719_v20, %v3913_v17 }
  0x20   :  { %351 = vmatpush.bf16.msra.mxu2 %v3970_v58  ;;  %380 = vmatpush.bf16.msra.mxu3 %v3974_v62  ;;  %v4718_v26 = vld [vmem:[#allocation6 + $0xc] sm:$0xf]  ;;  %v3923_v27 = vld [vmem:[#allocation6 + $0x18] sm:$0xf0]  ;;  %v4153_v28 = vld [vmem:[#allocation8 + $0xe0] sm:$0xf]  ;;  %v3918_v33 = vor.u32 %v4717_v21, %v3915_v22  ;;  %v3922_v34 = vor.u32 %v4720_v25, %v3921_v24 }
  0x21   :  { %v4779_v29 = vld [vmem:[#allocation8 + $0xec] sm:$0xf0]  ;;  %v4777_v31 = vld [vmem:[#allocation8 + $0xe4] sm:$0xf]  ;;  %v4155_v32 = vld [vmem:[#allocation8 + $0xf0] sm:$0xf0]  ;;  %v3926_v36 = vor.u32 %v4718_v26, %v3923_v27 }
  0x22   :  { %294 = vmatpush.bf16.msra.mxu0 %v3946_v4  ;;  %v4713_v35 = vld [vmem:[%s6806_s0] sm:$0xff]  ;;  %v5268_v37 = vor.u32 %v4779_v29, %v4153_v28  ;;  %v4161_v38 = vld [vmem:[#allocation8 + $0xe8] sm:$0xf]  ;;  %v4780_v39 = vld [vmem:[#allocation8 + $0xf4] sm:$0xf0]  ;;  %v5270_v41 = vor.u32 %v4777_v31, %v4155_v32 }
  0x23   :  { %323 = vmatpush.bf16.msra.mxu1 %v3950_v5  ;;  %v4778_v40 = vld [vmem:[#allocation8 + $0xec] sm:$0xf]  ;;  %v4163_v42 = vld [vmem:[#allocation8 + $0xf8] sm:$0xf0]  ;;  %v4137_v43 = vld [vmem:[#allocation8 + $0xc0] sm:$0xf]  ;;  %v5272_v47 = vor.u32 %v4780_v39, %v4161_v38 }
  0x24   :  { %352 = vmatpush.bf16.msra.mxu2 %v3954_v6  ;;  %381 = vmatpush.bf16.msra.mxu3 %v3958_v10  ;;  %v4775_v44 = vld [vmem:[#allocation8 + $0xcc] sm:$0xf0]  ;;  %v4773_v45 = vld [vmem:[#allocation8 + $0xc4] sm:$0xf]  ;;  %v4139_v46 = vld [vmem:[#allocation8 + $0xd0] sm:$0xf0]  ;;  %v5275_v49 = vor.u32 %v4778_v40, %v4163_v42 }
  0x25   :  { %v4145_v48 = vld [vmem:[#allocation8 + $0xc8] sm:$0xf]  ;;  %v5277_v50 = vor.u32 %v4775_v44, %v4137_v43  ;;  %v4776_v51 = vld [vmem:[#allocation8 + $0xd4] sm:$0xf0]  ;;  %v4774_v52 = vld [vmem:[#allocation8 + $0xcc] sm:$0xf]  ;;  %v5280_v53 = vor.u32 %v4773_v45, %v4139_v46 }
  0x26   :  { %295 = vmatpush.bf16.msra.mxu0 %v3930_v16  ;;  %v4147_v54 = vld [vmem:[#allocation8 + $0xd8] sm:$0xf0]  ;;  %v4121_v55 = vld [vmem:[#allocation8 + $0xa0] sm:$0xf]  ;;  %v4771_v56 = vld [vmem:[#allocation8 + $0xac] sm:$0xf0]  ;;  %v5283_v59 = vor.u32 %v4776_v51, %v4145_v48 }
  0x27   :  { %324 = vmatpush.bf16.msra.mxu1 %v3934_v18  ;;  %v4769_v57 = vld [vmem:[#allocation8 + $0xa4] sm:$0xf]  ;;  %v4123_v58 = vld [vmem:[#allocation8 + $0xb0] sm:$0xf0]  ;;  %v5287_v60 = vor.u32 %v4774_v52, %v4147_v54  ;;  %v5289_v61 = vor.u32 %v4771_v56, %v4121_v55  ;;  %v4129_v62 = vld [vmem:[#allocation8 + $0xa8] sm:$0xf] }
  0x28   :  { %353 = vmatpush.bf16.msra.mxu2 %v3938_v19  ;;  %382 = vmatpush.bf16.msra.mxu3 %v3942_v23  ;;  %v4772_v63 = vld [vmem:[#allocation8 + $0xb4] sm:$0xf0]  ;;  %v4770_v0 = vld [vmem:[#allocation8 + $0xac] sm:$0xf]  ;;  %v5292_v1 = vor.u32 %v4769_v57, %v4123_v58  ;;  %v4131_v2 = vld [vmem:[#allocation8 + $0xb8] sm:$0xf0] }
  0x29   :  { %v4105_v3 = vld [vmem:[#allocation8 + $0x80] sm:$0xf]  ;;  %v4767_v4 = vld [vmem:[#allocation8 + $0x8c] sm:$0xf0]  ;;  %v4765_v5 = vld [vmem:[#allocation8 + $0x84] sm:$0xf]  ;;  %v5295_v7 = vor.u32 %v4772_v63, %v4129_v62  ;;  %v5299_v8 = vor.u32 %v4770_v0, %v4131_v2 }
  0x2a   :  { %296 = vmatpush.bf16.msra.mxu0 %v3914_v30  ;;  %v4107_v6 = vld [vmem:[#allocation8 + $0x90] sm:$0xf0]  ;;  %v5301_v9 = vor.u32 %v4767_v4, %v4105_v3  ;;  %v4113_v10 = vld [vmem:[#allocation8 + $0x88] sm:$0xf]  ;;  %v4768_v11 = vld [vmem:[#allocation8 + $0x94] sm:$0xf0] }
  0x2b   :  { %325 = vmatpush.bf16.msra.mxu1 %v3918_v33  ;;  %v4766_v12 = vld [vmem:[#allocation8 + $0x8c] sm:$0xf]  ;;  %v5304_v13 = vor.u32 %v4765_v5, %v4107_v6  ;;  %v4115_v14 = vld [vmem:[#allocation8 + $0x98] sm:$0xf0]  ;;  %v4089_v15 = vld [vmem:[#allocation8 + $0x60] sm:$0xf]  ;;  %v5310_v20 = vor.u32 %v4768_v11, %v4113_v10 }
  0x2c   :  { %354 = vmatpush.bf16.msra.mxu2 %v3922_v34  ;;  %383 = vmatpush.bf16.msra.mxu3 %v3926_v36  ;;  %v4763_v16 = vld [vmem:[#allocation8 + $0x6c] sm:$0xf0]  ;;  %v4761_v17 = vld [vmem:[#allocation8 + $0x64] sm:$0xf]  ;;  %v4091_v18 = vld [vmem:[#allocation8 + $0x70] sm:$0xf0]  ;;  %v5314_v21 = vor.u32 %v4766_v12, %v4115_v14 }
  0x2d   :  { %297 = vmatmul.bf16.vlgmr.msra.gmra.mxu0 %v4713_v35  ;;  %v4714_v19 = vld [vmem:[%s6806_s0 + $0x8] sm:$0xff]  ;;  %v5316_v22 = vor.u32 %v4763_v16, %v4089_v15  ;;  %v4764_v24 = vld [vmem:[#allocation8 + $0x74] sm:$0xf0]  ;;  %v5319_v26 = vor.u32 %v4761_v17, %v4091_v18  ;;  %v4099_v27 = vld [vmem:[#allocation8 + $0x78] sm:$0xf0]  ;;  %v6813_v18 = vmov 0.0|0.0  }
  0x2e   :  { %640 = vmatpush.bf16.msrb.mxu0 %v5268_v37  ;;  %326 = vmatmul.bf16.vlgmr.msra.gmra.mxu1 %v4713_v35  ;;  %v4097_v23 = vld [vmem:[#allocation8 + $0x68] sm:$0xf]  ;;  %v4762_v25 = vld [vmem:[#allocation8 + $0x6c] sm:$0xf]  ;;  %v4073_v28 = vld [vmem:[#allocation8 + $0x40] sm:$0xf] }
  0x2f   :  { %653 = vmatpush.bf16.msrb.mxu1 %v5270_v41  ;;  %355 = vmatmul.bf16.vlgmr.msra.gmra.mxu2 %v4713_v35  ;;  %v4759_v29 = vld [vmem:[#allocation8 + $0x4c] sm:$0xf0]  ;;  %v4757_v30 = vld [vmem:[#allocation8 + $0x44] sm:$0xf]  ;;  %v4075_v31 = vld [vmem:[#allocation8 + $0x50] sm:$0xf0]  ;;  %v5322_v32 = vor.u32 %v4764_v24, %v4097_v23  ;;  %v5326_v33 = vor.u32 %v4762_v25, %v4099_v27 }
  0x30   :  { %384 = vmatmul.bf16.vlgmr.msra.gmra.mxu3 %v4713_v35  ;;  %666 = vmatpush.bf16.msrb.mxu2 %v5272_v47  ;;  %v5328_v34 = vor.u32 %v4759_v29, %v4073_v28  ;;  %v4081_v35 = vld [vmem:[#allocation8 + $0x48] sm:$0xf]  ;;  %v4760_v36 = vld [vmem:[#allocation8 + $0x54] sm:$0xf0]  ;;  %v5331_v38 = vor.u32 %v4757_v30, %v4075_v31  ;;  %v4758_v39 = vld [vmem:[#allocation8 + $0x4c] sm:$0xf] }
  0x31   :  { %679 = vmatpush.bf16.msrb.mxu3 %v5275_v49  ;;  %v4083_v40 = vld [vmem:[#allocation8 + $0x58] sm:$0xf0]  ;;  %v5334_v42 = vor.u32 %v4760_v36, %v4081_v35  ;;  %v4057_v43 = vld [vmem:[#allocation8 + $0x20] sm:$0xf]  ;;  %v4755_v44 = vld [vmem:[#allocation8 + $0x2c] sm:$0xf0] }
  0x32   :  { %641 = vmatpush.bf16.msrb.mxu0 %v5277_v50  ;;  %v4753_v45 = vld [vmem:[#allocation8 + $0x24] sm:$0xf]  ;;  %v5338_v46 = vor.u32 %v4758_v39, %v4083_v40  ;;  %v5340_v48 = vor.u32 %v4755_v44, %v4057_v43  ;;  %v4059_v51 = vld [vmem:[#allocation8 + $0x30] sm:$0xf0]  ;;  %v4065_v52 = vld [vmem:[#allocation8 + $0x28] sm:$0xf] }
  0x33   :  { %654 = vmatpush.bf16.msrb.mxu1 %v5280_v53  ;;  %v4756_v54 = vld [vmem:[#allocation8 + $0x34] sm:$0xf0]  ;;  %v5343_v55 = vor.u32 %v4753_v45, %v4059_v51  ;;  %v4754_v56 = vld [vmem:[#allocation8 + $0x2c] sm:$0xf]  ;;  %v4067_v57 = vld [vmem:[#allocation8 + $0x38] sm:$0xf0] }
  0x34   :  { %667 = vmatpush.bf16.msrb.mxu2 %v5283_v59  ;;  %v4041_v58 = vld [vmem:[#allocation8] sm:$0xf]  ;;  %v4751_v62 = vld [vmem:[#allocation8 + $0xc] sm:$0xf0]  ;;  %v4749_v63 = vld [vmem:[#allocation8 + $0x4] sm:$0xf]  ;;  %v5346_v2 = vor.u32 %v4756_v54, %v4065_v52  ;;  %v5350_v3 = vor.u32 %v4754_v56, %v4067_v57 }
  0x35   :  { %680 = vmatpush.bf16.msrb.mxu3 %v5287_v60  ;;  %v4043_v0 = vld [vmem:[#allocation8 + $0x10] sm:$0xf0]  ;;  %v5352_v4 = vor.u32 %v4751_v62, %v4041_v58  ;;  %v4049_v5 = vld [vmem:[#allocation8 + $0x8] sm:$0xf]  ;;  %v4752_v6 = vld [vmem:[#allocation8 + $0x14] sm:$0xf0] }
  0x36   :  { %642 = vmatpush.bf16.msrb.mxu0 %v5289_v61  ;;  %v5355_v10 = vor.u32 %v4749_v63, %v4043_v0  ;;  %v4750_v11 = vld [vmem:[#allocation8 + $0xc] sm:$0xf]  ;;  %v4051_v12 = vld [vmem:[#allocation8 + $0x18] sm:$0xf0]  ;;  %v5358_v14 = vor.u32 %v4752_v6, %v4049_v5  ;;  %v4715_v16 = vld [vmem:[%s6806_s0 + $0x10] sm:$0xff] }
  0x37   :  { %655 = vmatpush.bf16.msrb.mxu1 %v5292_v1  ;;  %v5362_v15 = vor.u32 %v4750_v11, %v4051_v12  ;;  %v4716_v17 = vld [vmem:[%s6806_s0 + $0x18] sm:$0xff]  ;;  %v95_v29 = vld [vmem:[%s6809_s3] sm:$0xf] }
  0x38   :  { %668 = vmatpush.bf16.msrb.mxu2 %v5295_v7  ;;  %v5448_v30 = vperm.slane %v95_v29, 0  ;;  %v5452_v35 = vperm.slane %v95_v29, 1  ;;  %v5462_v45 = vperm.slane %v95_v29, 2  ;;  %v5464_v51 = vperm.slane %v95_v29, 3 }
  0x39   :  { %681 = vmatpush.bf16.msrb.mxu3 %v5299_v8 }
  0x3a   :  { %643 = vmatpush.bf16.msrb.mxu0 %v5301_v9 }
  0x3b   :  { %656 = vmatpush.bf16.msrb.mxu1 %v5304_v13 }
  0x3c   :  { %669 = vmatpush.bf16.msrb.mxu2 %v5310_v20 }
  0x3d   :  { %682 = vmatpush.bf16.msrb.mxu3 %v5314_v21  ;;  %302 = vmatmul.bf16.gmra.mxu0 %v4714_v19 }
  0x3e   :  { %644 = vmatpush.bf16.msrb.mxu0 %v5316_v22  ;;  %331 = vmatmul.bf16.gmra.mxu1 %v4714_v19 }
  0x3f   :  { %657 = vmatpush.bf16.msrb.mxu1 %v5319_v26  ;;  %360 = vmatmul.bf16.gmra.mxu2 %v4714_v19 }
  0x40   :  { %389 = vmatmul.bf16.gmra.mxu3 %v4714_v19  ;;  %670 = vmatpush.bf16.msrb.mxu2 %v5322_v32 }
  0x41   :  { %683 = vmatpush.bf16.msrb.mxu3 %v5326_v33 }
  0x42   :  { %645 = vmatpush.bf16.msrb.mxu0 %v5328_v34 }
  0x43   :  { %658 = vmatpush.bf16.msrb.mxu1 %v5331_v38 }
  0x44   :  { %671 = vmatpush.bf16.msrb.mxu2 %v5334_v42 }
  0x45   :  { %684 = vmatpush.bf16.msrb.mxu3 %v5338_v46 }
  0x46   :  { %646 = vmatpush.bf16.msrb.mxu0 %v5340_v48 }
  0x47   :  { %659 = vmatpush.bf16.msrb.mxu1 %v5343_v55 }
  0x48   :  { %672 = vmatpush.bf16.msrb.mxu2 %v5346_v2 }
  0x49   :  { %685 = vmatpush.bf16.msrb.mxu3 %v5350_v3 }
  0x4a   :  { %647 = vmatpush.bf16.msrb.mxu0 %v5352_v4 }
  0x4b   :  { %660 = vmatpush.bf16.msrb.mxu1 %v5355_v10 }
  0x4c   :  { %673 = vmatpush.bf16.msrb.mxu2 %v5358_v14 }
  0x4d   :  { %686 = vmatpush.bf16.msrb.mxu3 %v5362_v15  ;;  %307 = vmatmul.bf16.gmra.mxu0 %v4715_v16 }
  0x4e   :  { %727 = vmatpush.bf16.msra.mxu0 %v5268_v37  ;;  %336 = vmatmul.bf16.gmra.mxu1 %v4715_v16 }
  0x4f   :  { %740 = vmatpush.bf16.msra.mxu1 %v5270_v41  ;;  %365 = vmatmul.bf16.gmra.mxu2 %v4715_v16 }
  0x50   :  { %753 = vmatpush.bf16.msra.mxu2 %v5272_v47  ;;  %394 = vmatmul.bf16.gmra.mxu3 %v4715_v16 }
  0x51   :  { %766 = vmatpush.bf16.msra.mxu3 %v5275_v49 }
  0x52   :  { %728 = vmatpush.bf16.msra.mxu0 %v5277_v50 }
  0x53   :  { %741 = vmatpush.bf16.msra.mxu1 %v5280_v53 }
  0x54   :  { %754 = vmatpush.bf16.msra.mxu2 %v5283_v59 }
  0x55   :  { %767 = vmatpush.bf16.msra.mxu3 %v5287_v60 }
  0x56   :  { %729 = vmatpush.bf16.msra.mxu0 %v5289_v61 }
  0x57   :  { %742 = vmatpush.bf16.msra.mxu1 %v5292_v1 }
  0x58   :  { %755 = vmatpush.bf16.msra.mxu2 %v5295_v7 }
  0x59   :  { %768 = vmatpush.bf16.msra.mxu3 %v5299_v8 }
  0x5a   :  { %730 = vmatpush.bf16.msra.mxu0 %v5301_v9 }
  0x5b   :  { %743 = vmatpush.bf16.msra.mxu1 %v5304_v13 }
  0x5c   :  { %756 = vmatpush.bf16.msra.mxu2 %v5310_v20 }
  0x5d   :  { %769 = vmatpush.bf16.msra.mxu3 %v5314_v21  ;;  %312 = vmatmul.bf16.gmra.mxu0 %v4716_v17 }
  0x5e   :  { %731 = vmatpush.bf16.msra.mxu0 %v5316_v22  ;;  %341 = vmatmul.bf16.gmra.mxu1 %v4716_v17 }
  0x5f   :  { %744 = vmatpush.bf16.msra.mxu1 %v5319_v26  ;;  %370 = vmatmul.bf16.gmra.mxu2 %v4716_v17 }
  0x60   :  { %757 = vmatpush.bf16.msra.mxu2 %v5322_v32  ;;  %399 = vmatmul.bf16.gmra.mxu3 %v4716_v17 }
  0x61   :  { %770 = vmatpush.bf16.msra.mxu3 %v5326_v33 }
  0x62   :  { %732 = vmatpush.bf16.msra.mxu0 %v5328_v34 }
  0x63   :  { %745 = vmatpush.bf16.msra.mxu1 %v5331_v38 }
  0x64   :  { %758 = vmatpush.bf16.msra.mxu2 %v5334_v42 }
  0x65   :  { %771 = vmatpush.bf16.msra.mxu3 %v5338_v46 }
  0x66   :  { %733 = vmatpush.bf16.msra.mxu0 %v5340_v48 }
  0x67   :  { %746 = vmatpush.bf16.msra.mxu1 %v5343_v55 }
  0x68   :  { %759 = vmatpush.bf16.msra.mxu2 %v5346_v2 }
  0x69   :  { %772 = vmatpush.bf16.msra.mxu3 %v5350_v3 }
  0x6a   :  { %734 = vmatpush.bf16.msra.mxu0 %v5352_v4 }
  0x6b   :  { %747 = vmatpush.bf16.msra.mxu1 %v5355_v10 }
  0x6c   :  { %760 = vmatpush.bf16.msra.mxu2 %v5358_v14 }
  0x6d   :  { %773 = vmatpush.bf16.msra.mxu3 %v5362_v15  ;;  %648 = vmatmul.bf16.vlgmr.msrb.gmra.mxu0 %v6813_v18 }
  0x6e   :  { %661 = vmatmul.bf16.vlgmr.msrb.gmra.mxu1 %v6813_v18  ;;  %815 = vmatpush.bf16.msrb.mxu0 %v5268_v37 }
  0x6f   :  { %674 = vmatmul.bf16.vlgmr.msrb.gmra.mxu2 %v6813_v18  ;;  %828 = vmatpush.bf16.msrb.mxu1 %v5270_v41 }
  0x70   :  { %687 = vmatmul.bf16.vlgmr.msrb.gmra.mxu3 %v6813_v18  ;;  %841 = vmatpush.bf16.msrb.mxu2 %v5272_v47 }
  0x71   :  { %854 = vmatpush.bf16.msrb.mxu3 %v5275_v49 }
  0x72   :  { %816 = vmatpush.bf16.msrb.mxu0 %v5277_v50 }
  0x73   :  { %829 = vmatpush.bf16.msrb.mxu1 %v5280_v53 }
  0x74   :  { %842 = vmatpush.bf16.msrb.mxu2 %v5283_v59 }
  0x75   :  { %855 = vmatpush.bf16.msrb.mxu3 %v5287_v60 }
  0x76   :  { %817 = vmatpush.bf16.msrb.mxu0 %v5289_v61 }
  0x77   :  { %830 = vmatpush.bf16.msrb.mxu1 %v5292_v1 }
  0x78   :  { %843 = vmatpush.bf16.msrb.mxu2 %v5295_v7 }
  0x79   :  { %856 = vmatpush.bf16.msrb.mxu3 %v5299_v8 }
  0x7a   :  { %818 = vmatpush.bf16.msrb.mxu0 %v5301_v9 }
  0x7b   :  { %831 = vmatpush.bf16.msrb.mxu1 %v5304_v13 }
  0x7c   :  { %844 = vmatpush.bf16.msrb.mxu2 %v5310_v20 }
  0x7d   :  { %857 = vmatpush.bf16.msrb.mxu3 %v5314_v21 }
  0x7e   :  { %819 = vmatpush.bf16.msrb.mxu0 %v5316_v22 }
  0x7f   :  { %832 = vmatpush.bf16.msrb.mxu1 %v5319_v26 }
  0x80   :  { %845 = vmatpush.bf16.msrb.mxu2 %v5322_v32 }
  0x81   :  { %858 = vmatpush.bf16.msrb.mxu3 %v5326_v33 }
  0x82   :  { %820 = vmatpush.bf16.msrb.mxu0 %v5328_v34 }
  0x83   :  { %833 = vmatpush.bf16.msrb.mxu1 %v5331_v38 }
  0x84   :  { %846 = vmatpush.bf16.msrb.mxu2 %v5334_v42 }
  0x85   :  { %859 = vmatpush.bf16.msrb.mxu3 %v5338_v46 }
  0x86   :  { %821 = vmatpush.bf16.msrb.mxu0 %v5340_v48 }
  0x87   :  { %834 = vmatpush.bf16.msrb.mxu1 %v5343_v55 }
  0x88   :  { %847 = vmatpush.bf16.msrb.mxu2 %v5346_v2 }
  0x89   :  { %860 = vmatpush.bf16.msrb.mxu3 %v5350_v3 }
  0x8a   :  { %822 = vmatpush.bf16.msrb.mxu0 %v5352_v4 }
  0x8b   :  { %835 = vmatpush.bf16.msrb.mxu1 %v5355_v10 }
  0x8c   :  { %848 = vmatpush.bf16.msrb.mxu2 %v5358_v14 }
  0x8d   :  { %861 = vmatpush.bf16.msrb.mxu3 %v5362_v15 }
  0xaa   :  { %v298_v19 = vpop.f32.mrf.mxu0 }
  0xab   :  { %v327_v23 = vpop.f32.mrf.mxu1 }
  0xb2   :  { %v356_v24 = vpop.f32.mrf.mxu2  ;;  %v5441_v27 = vpop.f32.mrf.mxu0 }
  0xb3   :  { %v385_v25 = vpop.f32.mrf.mxu3  ;;  %v5443_v28 = vpop.f32.mrf.mxu1 }
  0xba   :  { %v5450_v31 = vpop.f32.mrf.mxu2  ;;  %v303_v39 = vpop.f32.mrf.mxu0 }
  0xbb   :  { %v5454_v36 = vpop.f32.mrf.mxu3  ;;  %v5457_v40 = vadd.f32 %v303_v39, %v5448_v30  ;;  %v332_v43 = vpop.f32.mrf.mxu1 }
  0xbc   :  { %v5460_v44 = vadd.f32 %v332_v43, %v5452_v35 }
  0xc2   :  { %v361_v52 = vpop.f32.mrf.mxu2  ;;  %v5469_v57 = vpop.f32.mrf.mxu0 }
  0xc3   :  { %v5467_v54 = vadd.f32 %v361_v52, %v5462_v45  ;;  %v390_v56 = vpop.f32.mrf.mxu3  ;;  %6816 = vst [vmem:[#allocation12_spill] sm:$0xff] %v5469_v57  ;;  %v5474_v62 = vpop.f32.mrf.mxu1 }
  0xc4   :  { %v5472_v58 = vadd.f32 %v390_v56, %v5464_v51  ;;  %6818 = vst [vmem:[#allocation14_spill] sm:$0xff] %v5474_v62 }
  0xc6   :  { %6817 = vst [vmem:[#allocation13_spill] sm:$0xff] %v5472_v58 }
  0xca   :  { %v5476_v63 = vpop.f32.mrf.mxu2  ;;  %v308_v5 = vpop.f32.mrf.mxu0 }
  0xcb   :  { %6819 = vst [vmem:[#allocation15_spill] sm:$0xff] %v5476_v63  ;;  %v5478_v0 = vpop.f32.mrf.mxu3  ;;  %v5481_v6 = vadd.f32 %v308_v5, %v5448_v30  ;;  %v337_v11 = vpop.f32.mrf.mxu1 }
  0xcc   :  { %6820 = vst [vmem:[#allocation16_spill] sm:$0xff] %v5478_v0  ;;  %v5484_v12 = vadd.f32 %v337_v11, %v5452_v35 }
  0xcd   :  { %6821 = vst [vmem:[#allocation17_spill] sm:$0xff] %v5481_v6 }
  0xce   :  { %6822 = vst [vmem:[#allocation18_spill] sm:$0xff] %v5484_v12 }
  0xd2   :  { %v366_v16 = vpop.f32.mrf.mxu2  ;;  %v5489_v39 = vpop.f32.mrf.mxu0 }
  0xd3   :  { %v5487_v17 = vadd.f32 %v366_v16, %v5462_v45  ;;  %v395_v29 = vpop.f32.mrf.mxu3  ;;  %6824 = vst [vmem:[#allocation20_spill] sm:$0xff] %v5489_v39  ;;  %v5494_v52 = vpop.f32.mrf.mxu1 }
  0xd4   :  { %v5492_v43 = vadd.f32 %v395_v29, %v5464_v51  ;;  %6826 = vst [vmem:[#allocation22_spill] sm:$0xff] %v5494_v52 }
  0xd5   :  { %6823 = vst [vmem:[#allocation19_spill] sm:$0xff] %v5487_v17 }
  0xd6   :  { %6825 = vst [vmem:[#allocation21_spill] sm:$0xff] %v5492_v43 }
  0xda   :  { %v5496_v56 = vpop.f32.mrf.mxu2  ;;  %v313_v18 = vpop.f32.mrf.mxu0 }
  0xdb   :  { %6827 = vst [vmem:[#allocation23_spill] sm:$0xff] %v5496_v56  ;;  %v5498_v5 = vpop.f32.mrf.mxu3  ;;  %v5501_v11 = vadd.f32 %v313_v18, %v5448_v30  ;;  %v342_v12 = vpop.f32.mrf.mxu1 }
  0xdc   :  { %6828 = vst [vmem:[#allocation24_spill] sm:$0xff] %v5498_v5  ;;  %v5504_v16 = vadd.f32 %v342_v12, %v5452_v35  ;;  %v299_v5 = vadd.f32 %v298_v19, %v5448_v30 }
  0xdd   :  { %6829 = vst [vmem:[#allocation25_spill] sm:$0xff] %v5501_v11  ;;  %v328_v11 = vadd.f32 %v327_v23, %v5452_v35 }
  0xde   :  { %6830 = vst [vmem:[#allocation26_spill] sm:$0xff] %v5504_v16 }
  0xe2   :  { %v371_v17 = vpop.f32.mrf.mxu2  ;;  %v5509_v43 = vpop.f32.mrf.mxu0 }
  0xe3   :  { %v5507_v39 = vadd.f32 %v371_v17, %v5462_v45  ;;  %v400_v29 = vpop.f32.mrf.mxu3  ;;  %6832 = vst [vmem:[#allocation28_spill] sm:$0xff] %v5509_v43  ;;  %v5514_v56 = vpop.f32.mrf.mxu1 }
  0xe4   :  { %v5512_v52 = vadd.f32 %v400_v29, %v5464_v51  ;;  %6834 = vst [vmem:[#allocation30_spill] sm:$0xff] %v5514_v56  ;;  %v357_v29 = vadd.f32 %v356_v24, %v5462_v45  ;;  %v386_v56 = vadd.f32 %v385_v25, %v5464_v51 }
  0xe5   :  { %6831 = vst [vmem:[#allocation27_spill] sm:$0xff] %v5507_v39 }
  0xe6   :  { %6833 = vst [vmem:[#allocation29_spill] sm:$0xff] %v5512_v52 }
  0xea   :  { %v5517_v18 = vpop.f32.mrf.mxu2  ;;  %v649_v16 = vpop.f32.mrf.mxu0 }
  0xeb   :  { %6835 = vst [vmem:[#allocation31_spill] sm:$0xff] %v5517_v18  ;;  %v5520_v12 = vpop.f32.mrf.mxu3  ;;  %v692_v6 = vadd.f32 %v649_v16, %v299_v5  ;;  %v662_v17 = vpop.f32.mrf.mxu1 }
  0xec   :  { %6836 = vst [vmem:[#allocation32_spill] sm:$0xff] %v5520_v12  ;;  %v693_v39 = vadd.f32 %v662_v17, %v328_v11 }
  0xed   :  { %v696_v0 = vmul.f32 0.5, %v692_v6 }
  0xee   :  { %v700_v63 = vmul.f32 0.5, %v693_v39 }
  0xef   :  { %4923 = vtanh.f32 %v696_v0 }
  0xf0   :  { %4925 = vtanh.f32 %v700_v63 }
  0xf2   :  { %v675_v43 = vpop.f32.mrf.mxu2  ;;  %v651_v18 = vpop.f32.mrf.mxu0 }
  0xf3   :  { %v694_v19 = vadd.f32 %v675_v43, %v357_v29  ;;  %v688_v52 = vpop.f32.mrf.mxu3  ;;  %v664_v23 = vpop.f32.mrf.mxu1 }
  0xf4   :  { %v695_v62 = vadd.f32 %v688_v52, %v386_v56 }
  0xf5   :  { %4927 = vtanh.f32 %v694_v19  ;;  %v4924_v12 = vpop.eup %4923 }
  0xf6   :  { %v705_v57 = vmul.f32 0.5, %v695_v62  ;;  %v4926_v5 = vpop.eup %4925  ;;  %v698_v16 = vmul.f32 0.5, %v4924_v12  ;;  %v330_v12 = vadd.f32 %v5443_v28, %v5452_v35 }
  0xf7   :  { %v702_v11 = vmul.f32 0.5, %v4926_v5 }
  0xf8   :  { %4929 = vtanh.f32 %v705_v57  ;;  %v699_v6 = vadd.f32 0.5, %v698_v16 }
  0xf9   :  { %v703_v0 = vadd.f32 0.5, %v702_v11 }
  0xfa   :  { %v677_v39 = vpop.f32.mrf.mxu2 }
  0xfb   :  { %v4928_v24 = vpop.eup %4927  ;;  %v690_v63 = vpop.f32.mrf.mxu3  ;;  %v710_v17 = vmul.f32 0.0, %v703_v0  ;;  %v388_v0 = vadd.f32 %v5454_v36, %v5464_v51 }
  0xfc   :  { %v711_v25 = vmul.f32 %v4928_v24, %v699_v6  ;;  %v359_v6 = vadd.f32 %v5450_v31, %v5462_v45 }
  0xfe   :  { %v4930_v58 = vpop.eup %4929  ;;  %v5524_v43 = vadd.f32 %v711_v25, %v710_v17 }
  0xff   :  { %v707_v52 = vmul.f32 0.5, %v4930_v58  ;;  %v301_v58 = vadd.f32 %v5441_v27, %v5448_v30 }
 0x100   :  { %4931 = vtanh.f32 %v5524_v43 }
 0x101   :  { %v708_v56 = vadd.f32 0.5, %v707_v52 }
 0x106   :  { %v4932_v18 = vpop.eup %4931 }
 0x107   :  { %v5527_v62 = vmul.f32 %v4932_v18, %v708_v56 }
 0x109   :  { %v726_v57 = vpack.c.bf16 %v5527_v62, %v5527_v62 }
 0x10b   :  { %735 = vmatmul.bf16.vlgmr.msra.gmra.mxu0 %v726_v57  ;;  %748 = vmatmul.bf16.vlgmr.msra.gmra.mxu1 %v726_v57 }
 0x10c   :  { %761 = vmatmul.bf16.vlgmr.msra.gmra.mxu2 %v726_v57  ;;  %774 = vmatmul.bf16.vlgmr.msra.gmra.mxu3 %v726_v57 }
 0x10d   :  { %903 = vmatpush.bf16.msra.mxu0 %v5268_v37  ;;  %916 = vmatpush.bf16.msra.mxu1 %v5270_v41 }
 0x10e   :  { %929 = vmatpush.bf16.msra.mxu2 %v5272_v47  ;;  %942 = vmatpush.bf16.msra.mxu3 %v5275_v49 }
 0x111   :  { %904 = vmatpush.bf16.msra.mxu0 %v5277_v50  ;;  %917 = vmatpush.bf16.msra.mxu1 %v5280_v53 }
 0x112   :  { %930 = vmatpush.bf16.msra.mxu2 %v5283_v59  ;;  %943 = vmatpush.bf16.msra.mxu3 %v5287_v60 }
 0x115   :  { %905 = vmatpush.bf16.msra.mxu0 %v5289_v61  ;;  %918 = vmatpush.bf16.msra.mxu1 %v5292_v1 }
 0x116   :  { %931 = vmatpush.bf16.msra.mxu2 %v5295_v7  ;;  %944 = vmatpush.bf16.msra.mxu3 %v5299_v8 }
 0x119   :  { %906 = vmatpush.bf16.msra.mxu0 %v5301_v9  ;;  %919 = vmatpush.bf16.msra.mxu1 %v5304_v13 }
 0x11a   :  { %932 = vmatpush.bf16.msra.mxu2 %v5310_v20  ;;  %945 = vmatpush.bf16.msra.mxu3 %v5314_v21 }
 0x11d   :  { %907 = vmatpush.bf16.msra.mxu0 %v5316_v22  ;;  %920 = vmatpush.bf16.msra.mxu1 %v5319_v26 }
 0x11e   :  { %933 = vmatpush.bf16.msra.mxu2 %v5322_v32  ;;  %946 = vmatpush.bf16.msra.mxu3 %v5326_v33 }
 0x121   :  { %908 = vmatpush.bf16.msra.mxu0 %v5328_v34  ;;  %921 = vmatpush.bf16.msra.mxu1 %v5331_v38 }
 0x122   :  { %934 = vmatpush.bf16.msra.mxu2 %v5334_v42  ;;  %947 = vmatpush.bf16.msra.mxu3 %v5338_v46 }
 0x125   :  { %909 = vmatpush.bf16.msra.mxu0 %v5340_v48  ;;  %922 = vmatpush.bf16.msra.mxu1 %v5343_v55 }
 0x126   :  { %935 = vmatpush.bf16.msra.mxu2 %v5346_v2  ;;  %948 = vmatpush.bf16.msra.mxu3 %v5350_v3 }
 0x129   :  { %910 = vmatpush.bf16.msra.mxu0 %v5352_v4  ;;  %923 = vmatpush.bf16.msra.mxu1 %v5355_v10 }
 0x12a   :  { %936 = vmatpush.bf16.msra.mxu2 %v5358_v14  ;;  %949 = vmatpush.bf16.msra.mxu3 %v5362_v15 }
 0x188   :  { %v736_v29 = vpop.f32.mrf.mxu0  ;;  %v749_v19 = vpop.f32.mrf.mxu1 }
 0x189   :  { %v779_v23 = vadd.f32 %v736_v29, %v301_v58  ;;  %v780_v5 = vadd.f32 %v749_v19, %v330_v12 }
 0x18b   :  { %v783_v16 = vmul.f32 0.5, %v779_v23  ;;  %v787_v11 = vmul.f32 0.5, %v780_v5 }
 0x18d   :  { %4933 = vtanh.f32 %v783_v16 }
 0x18e   :  { %4935 = vtanh.f32 %v787_v11 }
 0x18f   :  { %v762_v39 = vpop.f32.mrf.mxu2  ;;  %v775_v24 = vpop.f32.mrf.mxu3 }
 0x190   :  { %v781_v27 = vadd.f32 %v762_v39, %v359_v6  ;;  %v782_v63 = vadd.f32 %v775_v24, %v388_v0  ;;  %v738_v17 = vpop.f32.mrf.mxu0  ;;  %v751_v28 = vpop.f32.mrf.mxu1 }
 0x192   :  { %4937 = vtanh.f32 %v781_v27  ;;  %v792_v25 = vmul.f32 0.5, %v782_v63 }
 0x193   :  { %v4934_v52 = vpop.eup %4933 }
 0x194   :  { %v4936_v56 = vpop.eup %4935  ;;  %v785_v18 = vmul.f32 0.5, %v4934_v52  ;;  %4939 = vtanh.f32 %v792_v25 }
 0x195   :  { %v789_v57 = vmul.f32 0.5, %v4936_v56 }
 0x196   :  { %v786_v58 = vadd.f32 0.5, %v785_v18 }
 0x197   :  { %v790_v12 = vadd.f32 0.5, %v789_v57  ;;  %v764_v31 = vpop.f32.mrf.mxu2  ;;  %v777_v29 = vpop.f32.mrf.mxu3  ;;  %v6837_v57 = vld [vmem:[#allocation13_spill] sm:$0xff] }
 0x198   :  { %v4938_v19 = vpop.eup %4937 }
 0x199   :  { %v797_v36 = vmul.f32 %v790_v12, %v5524_v43  ;;  %v798_v23 = vmul.f32 %v4938_v19, %v786_v58 }
 0x19a   :  { %v4940_v5 = vpop.eup %4939 }
 0x19b   :  { %v5572_v16 = vadd.f32 %v798_v23, %v797_v36  ;;  %v794_v11 = vmul.f32 0.5, %v4940_v5 }
 0x19d   :  { %4941 = vtanh.f32 %v5572_v16  ;;  %v795_v6 = vadd.f32 0.5, %v794_v11 }
 0x1a3   :  { %v4942_v0 = vpop.eup %4941 }
 0x1a4   :  { %v5575_v39 = vmul.f32 %v4942_v0, %v795_v6 }
 0x1a6   :  { %v814_v24 = vpack.c.bf16 %v5575_v39, %v5575_v39 }
 0x1a8   :  { %823 = vmatmul.bf16.vlgmr.msrb.gmra.mxu0 %v814_v24  ;;  %836 = vmatmul.bf16.vlgmr.msrb.gmra.mxu1 %v814_v24 }
 0x1a9   :  { %849 = vmatmul.bf16.vlgmr.msrb.gmra.mxu2 %v814_v24  ;;  %862 = vmatmul.bf16.vlgmr.msrb.gmra.mxu3 %v814_v24 }
 0x1aa   :  { %991 = vmatpush.bf16.msrb.mxu0 %v5268_v37  ;;  %1004 = vmatpush.bf16.msrb.mxu1 %v5270_v41 }
 0x1ab   :  { %1017 = vmatpush.bf16.msrb.mxu2 %v5272_v47  ;;  %1030 = vmatpush.bf16.msrb.mxu3 %v5275_v49 }
 0x1ae   :  { %992 = vmatpush.bf16.msrb.mxu0 %v5277_v50  ;;  %1005 = vmatpush.bf16.msrb.mxu1 %v5280_v53 }
 0x1af   :  { %1018 = vmatpush.bf16.msrb.mxu2 %v5283_v59  ;;  %1031 = vmatpush.bf16.msrb.mxu3 %v5287_v60 }
 0x1b2   :  { %993 = vmatpush.bf16.msrb.mxu0 %v5289_v61  ;;  %1006 = vmatpush.bf16.msrb.mxu1 %v5292_v1 }
 0x1b3   :  { %1019 = vmatpush.bf16.msrb.mxu2 %v5295_v7  ;;  %1032 = vmatpush.bf16.msrb.mxu3 %v5299_v8 }
 0x1b6   :  { %994 = vmatpush.bf16.msrb.mxu0 %v5301_v9  ;;  %1007 = vmatpush.bf16.msrb.mxu1 %v5304_v13 }
 0x1b7   :  { %1020 = vmatpush.bf16.msrb.mxu2 %v5310_v20  ;;  %1033 = vmatpush.bf16.msrb.mxu3 %v5314_v21 }
 0x1ba   :  { %995 = vmatpush.bf16.msrb.mxu0 %v5316_v22  ;;  %1008 = vmatpush.bf16.msrb.mxu1 %v5319_v26 }
 0x1bb   :  { %1021 = vmatpush.bf16.msrb.mxu2 %v5322_v32  ;;  %1034 = vmatpush.bf16.msrb.mxu3 %v5326_v33 }
 0x1be   :  { %996 = vmatpush.bf16.msrb.mxu0 %v5328_v34  ;;  %1009 = vmatpush.bf16.msrb.mxu1 %v5331_v38 }
 0x1bf   :  { %1022 = vmatpush.bf16.msrb.mxu2 %v5334_v42  ;;  %1035 = vmatpush.bf16.msrb.mxu3 %v5338_v46 }
 0x1c2   :  { %997 = vmatpush.bf16.msrb.mxu0 %v5340_v48  ;;  %1010 = vmatpush.bf16.msrb.mxu1 %v5343_v55 }
 0x1c3   :  { %1023 = vmatpush.bf16.msrb.mxu2 %v5346_v2  ;;  %1036 = vmatpush.bf16.msrb.mxu3 %v5350_v3 }
 0x1c6   :  { %998 = vmatpush.bf16.msrb.mxu0 %v5352_v4  ;;  %1011 = vmatpush.bf16.msrb.mxu1 %v5355_v10 }
 0x1c7   :  { %1024 = vmatpush.bf16.msrb.mxu2 %v5358_v14  ;;  %1037 = vmatpush.bf16.msrb.mxu3 %v5362_v15 }
 0x225   :  { %v824_v43 = vpop.f32.mrf.mxu0  ;;  %v837_v27 = vpop.f32.mrf.mxu1 }
 0x226   :  { %v867_v63 = vadd.f32 %v824_v43, %v5457_v40  ;;  %v868_v17 = vadd.f32 %v837_v27, %v5460_v44 }
 0x228   :  { %v871_v28 = vmul.f32 0.5, %v867_v63  ;;  %v875_v25 = vmul.f32 0.5, %v868_v17 }
 0x22a   :  { %4943 = vtanh.f32 %v871_v28 }
 0x22b   :  { %4945 = vtanh.f32 %v875_v25 }
 0x22c   :  { %v850_v52 = vpop.f32.mrf.mxu2  ;;  %v863_v56 = vpop.f32.mrf.mxu3 }
 0x22d   :  { %v869_v18 = vadd.f32 %v850_v52, %v5467_v54  ;;  %v870_v58 = vadd.f32 %v863_v56, %v6837_v57  ;;  %v826_v12 = vpop.f32.mrf.mxu0  ;;  %v839_v31 = vpop.f32.mrf.mxu1 }
 0x22f   :  { %4947 = vtanh.f32 %v869_v18  ;;  %v880_v29 = vmul.f32 0.5, %v870_v58  ;;  %v6839_v18 = vld [vmem:[#allocation14_spill] sm:$0xff] }
 0x230   :  { %v4944_v19 = vpop.eup %4943  ;;  %v335_v57 = vadd.f32 %v6839_v18, %v5452_v35 }
 0x231   :  { %v4946_v36 = vpop.eup %4945  ;;  %v873_v23 = vmul.f32 0.5, %v4944_v19  ;;  %4949 = vtanh.f32 %v880_v29 }
 0x232   :  { %v877_v40 = vmul.f32 0.5, %v4946_v36 }
 0x233   :  { %v874_v44 = vadd.f32 0.5, %v873_v23  ;;  %v6840_v23 = vld [vmem:[#allocation15_spill] sm:$0xff] }
 0x234   :  { %v878_v5 = vadd.f32 0.5, %v877_v40  ;;  %v852_v11 = vpop.f32.mrf.mxu2  ;;  %v865_v6 = vpop.f32.mrf.mxu3  ;;  %v364_v40 = vadd.f32 %v6840_v23, %v5462_v45 }
 0x235   :  { %v4948_v0 = vpop.eup %4947 }
 0x236   :  { %v885_v24 = vmul.f32 %v878_v5, %v5572_v16  ;;  %v886_v43 = vmul.f32 %v4948_v0, %v874_v44  ;;  %v6838_v16 = vld [vmem:[#allocation12_spill] sm:$0xff] }
 0x237   :  { %v4950_v54 = vpop.eup %4949  ;;  %v306_v56 = vadd.f32 %v6838_v16, %v5448_v30  ;;  %v6841_v44 = vld [vmem:[#allocation16_spill] sm:$0xff] }
 0x238   :  { %v5616_v27 = vadd.f32 %v886_v43, %v885_v24  ;;  %v882_v63 = vmul.f32 0.5, %v4950_v54  ;;  %v393_v5 = vadd.f32 %v6841_v44, %v5464_v51 }
 0x23a   :  { %4951 = vtanh.f32 %v5616_v27  ;;  %v883_v17 = vadd.f32 0.5, %v882_v63 }
 0x240   :  { %v4952_v28 = vpop.eup %4951 }
 0x241   :  { %v5619_v25 = vmul.f32 %v4952_v28, %v883_v17 }
 0x243   :  { %v902_v52 = vpack.c.bf16 %v5619_v25, %v5619_v25 }
 0x245   :  { %911 = vmatmul.bf16.vlgmr.msra.gmra.mxu0 %v902_v52  ;;  %924 = vmatmul.bf16.vlgmr.msra.gmra.mxu1 %v902_v52 }
 0x246   :  { %937 = vmatmul.bf16.vlgmr.msra.gmra.mxu2 %v902_v52  ;;  %950 = vmatmul.bf16.vlgmr.msra.gmra.mxu3 %v902_v52 }
 0x247   :  { %1079 = vmatpush.bf16.msra.mxu0 %v5268_v37  ;;  %1092 = vmatpush.bf16.msra.mxu1 %v5270_v41 }
 0x248   :  { %1105 = vmatpush.bf16.msra.mxu2 %v5272_v47  ;;  %1118 = vmatpush.bf16.msra.mxu3 %v5275_v49 }
 0x24b   :  { %1080 = vmatpush.bf16.msra.mxu0 %v5277_v50  ;;  %1093 = vmatpush.bf16.msra.mxu1 %v5280_v53 }
 0x24c   :  { %1106 = vmatpush.bf16.msra.mxu2 %v5283_v59  ;;  %1119 = vmatpush.bf16.msra.mxu3 %v5287_v60 }
 0x24f   :  { %1081 = vmatpush.bf16.msra.mxu0 %v5289_v61  ;;  %1094 = vmatpush.bf16.msra.mxu1 %v5292_v1 }
 0x250   :  { %1107 = vmatpush.bf16.msra.mxu2 %v5295_v7  ;;  %1120 = vmatpush.bf16.msra.mxu3 %v5299_v8 }
 0x253   :  { %1082 = vmatpush.bf16.msra.mxu0 %v5301_v9  ;;  %1095 = vmatpush.bf16.msra.mxu1 %v5304_v13 }
 0x254   :  { %1108 = vmatpush.bf16.msra.mxu2 %v5310_v20  ;;  %1121 = vmatpush.bf16.msra.mxu3 %v5314_v21 }
 0x257   :  { %1083 = vmatpush.bf16.msra.mxu0 %v5316_v22  ;;  %1096 = vmatpush.bf16.msra.mxu1 %v5319_v26 }
 0x258   :  { %1109 = vmatpush.bf16.msra.mxu2 %v5322_v32  ;;  %1122 = vmatpush.bf16.msra.mxu3 %v5326_v33 }
 0x25b   :  { %1084 = vmatpush.bf16.msra.mxu0 %v5328_v34  ;;  %1097 = vmatpush.bf16.msra.mxu1 %v5331_v38 }
 0x25c   :  { %1110 = vmatpush.bf16.msra.mxu2 %v5334_v42  ;;  %1123 = vmatpush.bf16.msra.mxu3 %v5338_v46 }
 0x25f   :  { %1085 = vmatpush.bf16.msra.mxu0 %v5340_v48  ;;  %1098 = vmatpush.bf16.msra.mxu1 %v5343_v55 }
 0x260   :  { %1111 = vmatpush.bf16.msra.mxu2 %v5346_v2  ;;  %1124 = vmatpush.bf16.msra.mxu3 %v5350_v3 }
 0x263   :  { %1086 = vmatpush.bf16.msra.mxu0 %v5352_v4  ;;  %1099 = vmatpush.bf16.msra.mxu1 %v5355_v10 }
 0x264   :  { %1112 = vmatpush.bf16.msra.mxu2 %v5358_v14  ;;  %1125 = vmatpush.bf16.msra.mxu3 %v5362_v15 }
 0x2c2   :  { %v912_v58 = vpop.f32.mrf.mxu0  ;;  %v925_v12 = vpop.f32.mrf.mxu1 }
 0x2c3   :  { %v955_v31 = vadd.f32 %v912_v58, %v306_v56  ;;  %v956_v29 = vadd.f32 %v925_v12, %v335_v57 }
 0x2c5   :  { %v959_v19 = vmul.f32 0.5, %v955_v31  ;;  %v963_v36 = vmul.f32 0.5, %v956_v29 }
 0x2c7   :  { %4953 = vtanh.f32 %v959_v19 }
 0x2c8   :  { %4955 = vtanh.f32 %v963_v36 }
 0x2c9   :  { %v938_v11 = vpop.f32.mrf.mxu2  ;;  %v951_v6 = vpop.f32.mrf.mxu3 }
 0x2ca   :  { %v957_v0 = vadd.f32 %v938_v11, %v364_v40  ;;  %v958_v24 = vadd.f32 %v951_v6, %v393_v5  ;;  %v914_v43 = vpop.f32.mrf.mxu0  ;;  %v927_v54 = vpop.f32.mrf.mxu1 }
 0x2cb   :  { %v6843_v43 = vld [vmem:[#allocation18_spill] sm:$0xff] }
 0x2cc   :  { %4957 = vtanh.f32 %v957_v0  ;;  %v968_v63 = vmul.f32 0.5, %v958_v24  ;;  %v6842_v0 = vld [vmem:[#allocation17_spill] sm:$0xff] }
 0x2cd   :  { %v4954_v17 = vpop.eup %4953 }
 0x2ce   :  { %v4956_v28 = vpop.eup %4955  ;;  %v961_v52 = vmul.f32 0.5, %v4954_v17  ;;  %4959 = vtanh.f32 %v968_v63 }
 0x2cf   :  { %v965_v16 = vmul.f32 0.5, %v4956_v28 }
 0x2d0   :  { %v962_v56 = vadd.f32 0.5, %v961_v52 }
 0x2d1   :  { %v966_v18 = vadd.f32 0.5, %v965_v16  ;;  %v940_v57 = vpop.f32.mrf.mxu2  ;;  %v953_v58 = vpop.f32.mrf.mxu3  ;;  %v6844_v16 = vld [vmem:[#allocation19_spill] sm:$0xff] }
 0x2d2   :  { %v4958_v12 = vpop.eup %4957 }
 0x2d3   :  { %v973_v31 = vmul.f32 %v966_v18, %v5616_v27  ;;  %v974_v29 = vmul.f32 %v4958_v12, %v962_v56  ;;  %v6845_v18 = vld [vmem:[#allocation21_spill] sm:$0xff] }
 0x2d4   :  { %v4960_v19 = vpop.eup %4959 }
 0x2d5   :  { %v5664_v36 = vadd.f32 %v974_v29, %v973_v31  ;;  %v970_v23 = vmul.f32 0.5, %v4960_v19 }
 0x2d7   :  { %4961 = vtanh.f32 %v5664_v36  ;;  %v971_v40 = vadd.f32 0.5, %v970_v23 }
 0x2dd   :  { %v4962_v44 = vpop.eup %4961 }
 0x2de   :  { %v5667_v5 = vmul.f32 %v4962_v44, %v971_v40 }
 0x2e0   :  { %v990_v11 = vpack.c.bf16 %v5667_v5, %v5667_v5 }
 0x2e2   :  { %999 = vmatmul.bf16.vlgmr.msrb.gmra.mxu0 %v990_v11  ;;  %1012 = vmatmul.bf16.vlgmr.msrb.gmra.mxu1 %v990_v11 }
 0x2e3   :  { %1025 = vmatmul.bf16.vlgmr.msrb.gmra.mxu2 %v990_v11  ;;  %1038 = vmatmul.bf16.vlgmr.msrb.gmra.mxu3 %v990_v11 }
 0x2e4   :  { %1167 = vmatpush.bf16.msrb.mxu0 %v5268_v37  ;;  %1180 = vmatpush.bf16.msrb.mxu1 %v5270_v41 }
 0x2e5   :  { %1193 = vmatpush.bf16.msrb.mxu2 %v5272_v47  ;;  %1206 = vmatpush.bf16.msrb.mxu3 %v5275_v49 }
 0x2e8   :  { %1168 = vmatpush.bf16.msrb.mxu0 %v5277_v50  ;;  %1181 = vmatpush.bf16.msrb.mxu1 %v5280_v53 }
 0x2e9   :  { %1194 = vmatpush.bf16.msrb.mxu2 %v5283_v59  ;;  %1207 = vmatpush.bf16.msrb.mxu3 %v5287_v60 }
 0x2ec   :  { %1169 = vmatpush.bf16.msrb.mxu0 %v5289_v61  ;;  %1182 = vmatpush.bf16.msrb.mxu1 %v5292_v1 }
 0x2ed   :  { %1195 = vmatpush.bf16.msrb.mxu2 %v5295_v7  ;;  %1208 = vmatpush.bf16.msrb.mxu3 %v5299_v8 }
 0x2f0   :  { %1170 = vmatpush.bf16.msrb.mxu0 %v5301_v9  ;;  %1183 = vmatpush.bf16.msrb.mxu1 %v5304_v13 }
 0x2f1   :  { %1196 = vmatpush.bf16.msrb.mxu2 %v5310_v20  ;;  %1209 = vmatpush.bf16.msrb.mxu3 %v5314_v21 }
 0x2f4   :  { %1171 = vmatpush.bf16.msrb.mxu0 %v5316_v22  ;;  %1184 = vmatpush.bf16.msrb.mxu1 %v5319_v26 }
 0x2f5   :  { %1197 = vmatpush.bf16.msrb.mxu2 %v5322_v32  ;;  %1210 = vmatpush.bf16.msrb.mxu3 %v5326_v33 }
 0x2f8   :  { %1172 = vmatpush.bf16.msrb.mxu0 %v5328_v34  ;;  %1185 = vmatpush.bf16.msrb.mxu1 %v5331_v38 }
 0x2f9   :  { %1198 = vmatpush.bf16.msrb.mxu2 %v5334_v42  ;;  %1211 = vmatpush.bf16.msrb.mxu3 %v5338_v46 }
 0x2fc   :  { %1173 = vmatpush.bf16.msrb.mxu0 %v5340_v48  ;;  %1186 = vmatpush.bf16.msrb.mxu1 %v5343_v55 }
 0x2fd   :  { %1199 = vmatpush.bf16.msrb.mxu2 %v5346_v2  ;;  %1212 = vmatpush.bf16.msrb.mxu3 %v5350_v3 }
 0x300   :  { %1174 = vmatpush.bf16.msrb.mxu0 %v5352_v4  ;;  %1187 = vmatpush.bf16.msrb.mxu1 %v5355_v10 }
 0x301   :  { %1200 = vmatpush.bf16.msrb.mxu2 %v5358_v14  ;;  %1213 = vmatpush.bf16.msrb.mxu3 %v5362_v15 }
 0x35f   :  { %v1000_v27 = vpop.f32.mrf.mxu0  ;;  %v1013_v6 = vpop.f32.mrf.mxu1 }
 0x360   :  { %v1043_v24 = vadd.f32 %v1000_v27, %v6842_v0  ;;  %v1044_v54 = vadd.f32 %v1013_v6, %v6843_v43 }
 0x362   :  { %v1047_v63 = vmul.f32 0.5, %v1043_v24  ;;  %v1051_v17 = vmul.f32 0.5, %v1044_v54 }
 0x364   :  { %4963 = vtanh.f32 %v1047_v63 }
 0x365   :  { %4965 = vtanh.f32 %v1051_v17 }
 0x366   :  { %v1026_v28 = vpop.f32.mrf.mxu2  ;;  %v1039_v52 = vpop.f32.mrf.mxu3 }
 0x367   :  { %v1045_v56 = vadd.f32 %v1026_v28, %v6844_v16  ;;  %v1046_v57 = vadd.f32 %v1039_v52, %v6845_v18  ;;  %v1002_v58 = vpop.f32.mrf.mxu0  ;;  %v1015_v12 = vpop.f32.mrf.mxu1 }
 0x369   :  { %4967 = vtanh.f32 %v1045_v56  ;;  %v1056_v31 = vmul.f32 0.5, %v1046_v57 }
 0x36a   :  { %v4964_v29 = vpop.eup %4963 }
 0x36b   :  { %v4966_v19 = vpop.eup %4965  ;;  %v1049_v23 = vmul.f32 0.5, %v4964_v29  ;;  %4969 = vtanh.f32 %v1056_v31 }
 0x36c   :  { %v1053_v40 = vmul.f32 0.5, %v4966_v19  ;;  %v4282_v19 = vld [vmem:[#allocation6 + $0x1e0] sm:$0xf] }
 0x36d   :  { %v1050_v44 = vadd.f32 0.5, %v1049_v23  ;;  %v4811_v23 = vld [vmem:[#allocation6 + $0x1ec] sm:$0xf0] }
 0x36e   :  { %v1054_v11 = vadd.f32 0.5, %v1053_v40  ;;  %v1028_v27 = vpop.f32.mrf.mxu2  ;;  %v1041_v6 = vpop.f32.mrf.mxu3  ;;  %v4809_v40 = vld [vmem:[#allocation6 + $0x1e4] sm:$0xf] }
 0x36f   :  { %v4968_v0 = vpop.eup %4967  ;;  %v4290_v27 = vld [vmem:[#allocation6 + $0x1e8] sm:$0xf]  ;;  %v4812_v6 = vld [vmem:[#allocation6 + $0x1f4] sm:$0xf0] }
 0x370   :  { %v1061_v24 = vmul.f32 %v1054_v11, %v5664_v36  ;;  %v1062_v43 = vmul.f32 %v4968_v0, %v1050_v44  ;;  %v4283_v44 = vor.u32 %v4811_v23, %v4282_v19  ;;  %v4284_v11 = vld [vmem:[#allocation6 + $0x1f0] sm:$0xf0] }
 0x371   :  { %v4970_v54 = vpop.eup %4969  ;;  %v4287_v0 = vor.u32 %v4809_v40, %v4284_v11  ;;  %v4220_v23 = vld [vmem:[#allocation6 + $0x170] sm:$0xf0]  ;;  %v4226_v40 = vld [vmem:[#allocation6 + $0x168] sm:$0xf] }
 0x372   :  { %v5708_v63 = vadd.f32 %v1062_v43, %v1061_v24  ;;  %v1058_v17 = vmul.f32 0.5, %v4970_v54  ;;  %v4291_v24 = vor.u32 %v4812_v6, %v4290_v27  ;;  %v4810_v43 = vld [vmem:[#allocation6 + $0x1ec] sm:$0xf]  ;;  %v4292_v54 = vld [vmem:[#allocation6 + $0x1f8] sm:$0xf0]  ;;  %v6851_v6 = vld [vmem:[#allocation26_spill] sm:$0xff] }
 0x373   :  { %v6850_v11 = vld [vmem:[#allocation25_spill] sm:$0xff] }
 0x374   :  { %4971 = vtanh.f32 %v5708_v63  ;;  %v1059_v28 = vadd.f32 0.5, %v1058_v17  ;;  %v4266_v17 = vld [vmem:[#allocation6 + $0x1c0] sm:$0xf] }
 0x37a   :  { %v4972_v52 = vpop.eup %4971 }
 0x37b   :  { %v5711_v16 = vmul.f32 %v4972_v52, %v1059_v28  ;;  %v4807_v28 = vld [vmem:[#allocation6 + $0x1cc] sm:$0xf0]  ;;  %v4805_v52 = vld [vmem:[#allocation6 + $0x1c4] sm:$0xf] }
 0x37d   :  { %v1078_v56 = vpack.c.bf16 %v5711_v16, %v5711_v16 }
 0x37f   :  { %1087 = vmatmul.bf16.vlgmr.msra.gmra.mxu0 %v1078_v56  ;;  %1100 = vmatmul.bf16.vlgmr.msra.gmra.mxu1 %v1078_v56 }
 0x380   :  { %1113 = vmatmul.bf16.vlgmr.msra.gmra.mxu2 %v1078_v56  ;;  %1126 = vmatmul.bf16.vlgmr.msra.gmra.mxu3 %v1078_v56  ;;  %v4267_v56 = vor.u32 %v4807_v28, %v4266_v17  ;;  %v4202_v17 = vld [vmem:[#allocation6 + $0x140] sm:$0xf] }
 0x381   :  { %1255 = vmatpush.bf16.msra.mxu0 %v5268_v37  ;;  %1268 = vmatpush.bf16.msra.mxu1 %v5270_v41  ;;  %v6846_v37 = vld [vmem:[#allocation20_spill] sm:$0xff] }
 0x382   :  { %1281 = vmatpush.bf16.msra.mxu2 %v5272_v47  ;;  %1294 = vmatpush.bf16.msra.mxu3 %v5275_v49  ;;  %v311_v41 = vadd.f32 %v6846_v37, %v5448_v30  ;;  %v6847_v47 = vld [vmem:[#allocation22_spill] sm:$0xff] }
 0x383   :  { %v340_v49 = vadd.f32 %v6847_v47, %v5452_v35  ;;  %v4268_v37 = vld [vmem:[#allocation6 + $0x1d0] sm:$0xf0]  ;;  %v4808_v47 = vld [vmem:[#allocation6 + $0x1d4] sm:$0xf0] }
 0x385   :  { %1256 = vmatpush.bf16.msra.mxu0 %v5277_v50  ;;  %1269 = vmatpush.bf16.msra.mxu1 %v5280_v53 }
 0x386   :  { %1282 = vmatpush.bf16.msra.mxu2 %v5283_v59  ;;  %1295 = vmatpush.bf16.msra.mxu3 %v5287_v60 }
 0x389   :  { %1257 = vmatpush.bf16.msra.mxu0 %v5289_v61  ;;  %1270 = vmatpush.bf16.msra.mxu1 %v5292_v1 }
 0x38a   :  { %1283 = vmatpush.bf16.msra.mxu2 %v5295_v7  ;;  %1296 = vmatpush.bf16.msra.mxu3 %v5299_v8  ;;  %v6848_v7 = vld [vmem:[#allocation23_spill] sm:$0xff] }
 0x38b   :  { %v369_v8 = vadd.f32 %v6848_v7, %v5462_v45  ;;  %v4801_v7 = vld [vmem:[#allocation6 + $0x1a4] sm:$0xf] }
 0x38d   :  { %1258 = vmatpush.bf16.msra.mxu0 %v5301_v9  ;;  %1271 = vmatpush.bf16.msra.mxu1 %v5304_v13  ;;  %v6849_v9 = vld [vmem:[#allocation24_spill] sm:$0xff] }
 0x38e   :  { %1284 = vmatpush.bf16.msra.mxu2 %v5310_v20  ;;  %1297 = vmatpush.bf16.msra.mxu3 %v5314_v21  ;;  %v398_v13 = vadd.f32 %v6849_v9, %v5464_v51  ;;  %v4252_v9 = vld [vmem:[#allocation6 + $0x1b0] sm:$0xf0] }
 0x391   :  { %1259 = vmatpush.bf16.msra.mxu0 %v5316_v22  ;;  %1272 = vmatpush.bf16.msra.mxu1 %v5319_v26 }
 0x392   :  { %1285 = vmatpush.bf16.msra.mxu2 %v5322_v32  ;;  %1298 = vmatpush.bf16.msra.mxu3 %v5326_v33 }
 0x395   :  { %1260 = vmatpush.bf16.msra.mxu0 %v5328_v34  ;;  %1273 = vmatpush.bf16.msra.mxu1 %v5331_v38 }
 0x396   :  { %1286 = vmatpush.bf16.msra.mxu2 %v5334_v42  ;;  %1299 = vmatpush.bf16.msra.mxu3 %v5338_v46 }
 0x399   :  { %1261 = vmatpush.bf16.msra.mxu0 %v5340_v48  ;;  %1274 = vmatpush.bf16.msra.mxu1 %v5343_v55 }
 0x39a   :  { %1287 = vmatpush.bf16.msra.mxu2 %v5346_v2  ;;  %1300 = vmatpush.bf16.msra.mxu3 %v5350_v3 }
 0x39d   :  { %1262 = vmatpush.bf16.msra.mxu0 %v5352_v4  ;;  %1275 = vmatpush.bf16.msra.mxu1 %v5355_v10 }
 0x39e   :  { %1288 = vmatpush.bf16.msra.mxu2 %v5358_v14  ;;  %1301 = vmatpush.bf16.msra.mxu3 %v5362_v15 }
 0x3fc   :  { %v1088_v50 = vpop.f32.mrf.mxu0  ;;  %v1101_v53 = vpop.f32.mrf.mxu1 }
 0x3fd   :  { %v1131_v59 = vadd.f32 %v1088_v50, %v311_v41  ;;  %v1132_v60 = vadd.f32 %v1101_v53, %v340_v49  ;;  %v4274_v41 = vld [vmem:[#allocation6 + $0x1c8] sm:$0xf]  ;;  %v4271_v49 = vor.u32 %v4805_v52, %v4268_v37  ;;  %v4806_v53 = vld [vmem:[#allocation6 + $0x1cc] sm:$0xf]  ;;  %v4791_v52 = vld [vmem:[#allocation6 + $0x14c] sm:$0xf0] }
 0x3fe   :  { %v4275_v50 = vor.u32 %v4808_v47, %v4274_v41  ;;  %v4204_v37 = vld [vmem:[#allocation6 + $0x150] sm:$0xf0] }
 0x3ff   :  { %v1135_v61 = vmul.f32 0.5, %v1131_v59  ;;  %v1139_v1 = vmul.f32 0.5, %v1132_v60  ;;  %v4276_v59 = vld [vmem:[#allocation6 + $0x1d8] sm:$0xf0] }
 0x400   :  { %v4279_v60 = vor.u32 %v4806_v53, %v4276_v59  ;;  %v4210_v53 = vld [vmem:[#allocation6 + $0x148] sm:$0xf]  ;;  %v4792_v59 = vld [vmem:[#allocation6 + $0x154] sm:$0xf0] }
 0x401   :  { %4973 = vtanh.f32 %v1135_v61  ;;  %v4250_v61 = vld [vmem:[#allocation6 + $0x1a0] sm:$0xf] }
 0x402   :  { %4975 = vtanh.f32 %v1139_v1  ;;  %v4803_v1 = vld [vmem:[#allocation6 + $0x1ac] sm:$0xf0] }
 0x403   :  { %v1114_v20 = vpop.f32.mrf.mxu2  ;;  %v1127_v21 = vpop.f32.mrf.mxu3 }
 0x404   :  { %v1133_v22 = vadd.f32 %v1114_v20, %v369_v8  ;;  %v1134_v26 = vadd.f32 %v1127_v21, %v398_v13  ;;  %v1090_v32 = vpop.f32.mrf.mxu0  ;;  %v1103_v33 = vpop.f32.mrf.mxu1  ;;  %v4251_v8 = vor.u32 %v4803_v1, %v4250_v61  ;;  %v4258_v13 = vld [vmem:[#allocation6 + $0x1a8] sm:$0xf]  ;;  %v4804_v20 = vld [vmem:[#allocation6 + $0x1b4] sm:$0xf0]  ;;  %v4255_v21 = vor.u32 %v4801_v7, %v4252_v9  ;;  %v4790_v61 = vld [vmem:[#allocation6 + $0x14c] sm:$0xf] }
 0x405   :  { %v4260_v32 = vld [vmem:[#allocation6 + $0x1b8] sm:$0xf0]  ;;  %v4186_v7 = vld [vmem:[#allocation6 + $0x120] sm:$0xf]  ;;  %v4787_v9 = vld [vmem:[#allocation6 + $0x12c] sm:$0xf0] }
 0x406   :  { %4977 = vtanh.f32 %v1133_v22  ;;  %v1144_v34 = vmul.f32 0.5, %v1134_v26  ;;  %v4259_v22 = vor.u32 %v4804_v20, %v4258_v13  ;;  %v4802_v26 = vld [vmem:[#allocation6 + $0x1ac] sm:$0xf]  ;;  %v4212_v1 = vld [vmem:[#allocation6 + $0x158] sm:$0xf0] }
 0x407   :  { %v4974_v38 = vpop.eup %4973  ;;  %v4263_v33 = vor.u32 %v4802_v26, %v4260_v32  ;;  %v4785_v13 = vld [vmem:[#allocation6 + $0x124] sm:$0xf]  ;;  %v4188_v20 = vld [vmem:[#allocation6 + $0x130] sm:$0xf0]  ;;  %v4788_v26 = vld [vmem:[#allocation6 + $0x134] sm:$0xf0] }
 0x408   :  { %v4976_v42 = vpop.eup %4975  ;;  %v1137_v46 = vmul.f32 0.5, %v4974_v38  ;;  %4979 = vtanh.f32 %v1144_v34  ;;  %v4234_v34 = vld [vmem:[#allocation6 + $0x180] sm:$0xf]  ;;  %v4799_v38 = vld [vmem:[#allocation6 + $0x18c] sm:$0xf0] }
 0x409   :  { %v1141_v48 = vmul.f32 0.5, %v4976_v42  ;;  %v4797_v42 = vld [vmem:[#allocation6 + $0x184] sm:$0xf]  ;;  %v4786_v32 = vld [vmem:[#allocation6 + $0x12c] sm:$0xf] }
 0x40a   :  { %v1138_v55 = vadd.f32 0.5, %v1137_v46  ;;  %v4235_v46 = vor.u32 %v4799_v38, %v4234_v34  ;;  %v4191_v38 = vor.u32 %v4785_v13, %v4188_v20  ;;  %v4412_v13 = vld [vmem:[#allocation8 + $0x1f0] sm:$0xf0]  ;;  %v4418_v20 = vld [vmem:[#allocation8 + $0x1e8] sm:$0xf] }
 0x40b   :  { %v1142_v2 = vadd.f32 0.5, %v1141_v48  ;;  %v1116_v3 = vpop.f32.mrf.mxu2  ;;  %v1129_v4 = vpop.f32.mrf.mxu3  ;;  %v4236_v48 = vld [vmem:[#allocation6 + $0x190] sm:$0xf0] }
 0x40c   :  { %v4978_v10 = vpop.eup %4977  ;;  %v4239_v3 = vor.u32 %v4797_v42, %v4236_v48  ;;  %v4170_v48 = vld [vmem:[#allocation6 + $0x100] sm:$0xf] }
 0x40d   :  { %v1149_v14 = vmul.f32 %v1142_v2, %v5708_v63  ;;  %v1150_v15 = vmul.f32 %v4978_v10, %v1138_v55  ;;  %v4295_v63 = vor.u32 %v4810_v43, %v4292_v54  ;;  %v4242_v55 = vld [vmem:[#allocation6 + $0x188] sm:$0xf]  ;;  %v4800_v2 = vld [vmem:[#allocation6 + $0x194] sm:$0xf0]  ;;  %v4798_v10 = vld [vmem:[#allocation6 + $0x18c] sm:$0xf] }
 0x40e   :  { %v4980_v36 = vpop.eup %4979  ;;  %v4243_v4 = vor.u32 %v4800_v2, %v4242_v55  ;;  %v4794_v54 = vld [vmem:[#allocation6 + $0x16c] sm:$0xf]  ;;  %v4783_v55 = vld [vmem:[#allocation6 + $0x10c] sm:$0xf0]  ;;  %v6852_v2 = vld [vmem:[#allocation27_spill] sm:$0xff] }
 0x40f   :  { %v5756_v18 = vadd.f32 %v1150_v15, %v1149_v14  ;;  %v1146_v57 = vmul.f32 0.5, %v4980_v36  ;;  %v4244_v14 = vld [vmem:[#allocation6 + $0x198] sm:$0xf0]  ;;  %v4218_v36 = vld [vmem:[#allocation6 + $0x160] sm:$0xf] }
 0x410   :  { %v4247_v15 = vor.u32 %v4798_v10, %v4244_v14 }
 0x411   :  { %4981 = vtanh.f32 %v5756_v18  ;;  %v1147_v58 = vadd.f32 0.5, %v1146_v57  ;;  %v4795_v57 = vld [vmem:[#allocation6 + $0x16c] sm:$0xf0] }
 0x412   :  { %v4219_v19 = vor.u32 %v4795_v57, %v4218_v36  ;;  %v4781_v57 = vld [vmem:[#allocation6 + $0x104] sm:$0xf] }
 0x417   :  { %v4982_v12 = vpop.eup %4981 }
 0x418   :  { %v5759_v31 = vmul.f32 %v4982_v12, %v1147_v58  ;;  %v4793_v58 = vld [vmem:[#allocation6 + $0x164] sm:$0xf] }
 0x41a   :  { %v1166_v29 = vpack.c.bf16 %v5759_v31, %v5759_v31 }
 0x41c   :  { %1175 = vmatmul.bf16.vlgmr.msrb.gmra.mxu0 %v1166_v29  ;;  %1188 = vmatmul.bf16.vlgmr.msrb.gmra.mxu1 %v1166_v29 }
 0x41d   :  { %1201 = vmatmul.bf16.vlgmr.msrb.gmra.mxu2 %v1166_v29  ;;  %1214 = vmatmul.bf16.vlgmr.msrb.gmra.mxu3 %v1166_v29 }
 0x41e   :  { %1550 = vmatpush.bf16.msrb.mxu0 %v4283_v44  ;;  %1579 = vmatpush.bf16.msrb.mxu1 %v4287_v0  ;;  %v4796_v44 = vld [vmem:[#allocation6 + $0x174] sm:$0xf0] }
 0x41f   :  { %1608 = vmatpush.bf16.msrb.mxu2 %v4291_v24  ;;  %1637 = vmatpush.bf16.msrb.mxu3 %v4295_v63  ;;  %v4223_v24 = vor.u32 %v4793_v58, %v4220_v23  ;;  %v4227_v43 = vor.u32 %v4796_v44, %v4226_v40  ;;  %v4228_v63 = vld [vmem:[#allocation6 + $0x178] sm:$0xf0]  ;;  %v4172_v58 = vld [vmem:[#allocation6 + $0x110] sm:$0xf0]  ;;  %v4171_v44 = vor.u32 %v4783_v55, %v4170_v48  ;;  %v4402_v55 = vld [vmem:[#allocation8 + $0x1c8] sm:$0xf] }
 0x420   :  { %v4231_v28 = vor.u32 %v4794_v54, %v4228_v63  ;;  %v4180_v23 = vld [vmem:[#allocation6 + $0x118] sm:$0xf0] }
 0x422   :  { %1551 = vmatpush.bf16.msrb.mxu0 %v4267_v56  ;;  %1580 = vmatpush.bf16.msrb.mxu1 %v4271_v49  ;;  %v4789_v56 = vld [vmem:[#allocation6 + $0x144] sm:$0xf]  ;;  %v4203_v49 = vor.u32 %v4791_v52, %v4202_v17 }
 0x423   :  { %1609 = vmatpush.bf16.msrb.mxu2 %v4275_v50  ;;  %1638 = vmatpush.bf16.msrb.mxu3 %v4279_v60  ;;  %v4207_v50 = vor.u32 %v4789_v56, %v4204_v37  ;;  %v4211_v60 = vor.u32 %v4792_v59, %v4210_v53 }
 0x426   :  { %1552 = vmatpush.bf16.msrb.mxu0 %v4251_v8  ;;  %1581 = vmatpush.bf16.msrb.mxu1 %v4255_v21  ;;  %v4215_v8 = vor.u32 %v4790_v61, %v4212_v1  ;;  %v4187_v21 = vor.u32 %v4787_v9, %v4186_v7  ;;  %v4410_v1 = vld [vmem:[#allocation8 + $0x1e0] sm:$0xf]  ;;  %v4843_v7 = vld [vmem:[#allocation8 + $0x1ec] sm:$0xf0] }
 0x427   :  { %1610 = vmatpush.bf16.msrb.mxu2 %v4259_v22  ;;  %1639 = vmatpush.bf16.msrb.mxu3 %v4263_v33  ;;  %v4194_v22 = vld [vmem:[#allocation6 + $0x128] sm:$0xf]  ;;  %v5777_v9 = vor.u32 %v4843_v7, %v4410_v1  ;;  %v4826_v1 = vld [vmem:[#allocation8 + $0x16c] sm:$0xf]  ;;  %v6854_v7 = vld [vmem:[#allocation28_spill] sm:$0xff] }
 0x428   :  { %v4195_v42 = vor.u32 %v4788_v26, %v4194_v22 }
 0x42a   :  { %1553 = vmatpush.bf16.msrb.mxu0 %v4235_v46  ;;  %1582 = vmatpush.bf16.msrb.mxu1 %v4239_v3  ;;  %v4196_v46 = vld [vmem:[#allocation6 + $0x138] sm:$0xf0] }
 0x42b   :  { %1611 = vmatpush.bf16.msrb.mxu2 %v4243_v4  ;;  %1640 = vmatpush.bf16.msrb.mxu3 %v4247_v15  ;;  %v6853_v4 = vld [vmem:[#allocation29_spill] sm:$0xff]  ;;  %v4199_v36 = vor.u32 %v4786_v32, %v4196_v46 }
 0x42c   :  { %v4842_v32 = vld [vmem:[#allocation8 + $0x1ec] sm:$0xf] }
 0x42e   :  { %1554 = vmatpush.bf16.msrb.mxu0 %v4219_v19  ;;  %1583 = vmatpush.bf16.msrb.mxu1 %v4223_v24  ;;  %v4782_v19 = vld [vmem:[#allocation6 + $0x10c] sm:$0xf] }
 0x42f   :  { %1612 = vmatpush.bf16.msrb.mxu2 %v4227_v43  ;;  %1641 = vmatpush.bf16.msrb.mxu3 %v4231_v28  ;;  %v4183_v43 = vor.u32 %v4782_v19, %v4180_v23  ;;  %v4836_v19 = vld [vmem:[#allocation8 + $0x1b4] sm:$0xf0] }
 0x432   :  { %1555 = vmatpush.bf16.msrb.mxu0 %v4203_v49  ;;  %1584 = vmatpush.bf16.msrb.mxu1 %v4207_v50 }
 0x433   :  { %1613 = vmatpush.bf16.msrb.mxu2 %v4211_v60  ;;  %1642 = vmatpush.bf16.msrb.mxu3 %v4215_v8  ;;  %v4841_v8 = vld [vmem:[#allocation8 + $0x1e4] sm:$0xf] }
 0x434   :  { %v5779_v22 = vor.u32 %v4841_v8, %v4412_v13  ;;  %v316_v8 = vadd.f32 %v6854_v7, %v5448_v30  ;;  %v6855_v13 = vld [vmem:[#allocation30_spill] sm:$0xff] }
 0x436   :  { %1556 = vmatpush.bf16.msrb.mxu0 %v4187_v21  ;;  %1585 = vmatpush.bf16.msrb.mxu1 %v4191_v38  ;;  %v4844_v21 = vld [vmem:[#allocation8 + $0x1f4] sm:$0xf0]  ;;  %v4837_v38 = vld [vmem:[#allocation8 + $0x1c4] sm:$0xf] }
 0x437   :  { %1614 = vmatpush.bf16.msrb.mxu2 %v4195_v42  ;;  %1643 = vmatpush.bf16.msrb.mxu3 %v4199_v36  ;;  %v5781_v26 = vor.u32 %v4844_v21, %v4418_v20  ;;  %v4396_v42 = vld [vmem:[#allocation8 + $0x1d0] sm:$0xf0]  ;;  %v345_v20 = vadd.f32 %v6855_v13, %v5452_v35  ;;  %v4824_v35 = vld [vmem:[#allocation8 + $0x154] sm:$0xf0] }
 0x438   :  { %v5790_v48 = vor.u32 %v4837_v38, %v4396_v42 }
 0x43a   :  { %1557 = vmatpush.bf16.msrb.mxu0 %v4171_v44  ;;  %v1343_v44 = vpack.c.bf16 %v5667_v5, %v5619_v25  ;;  %v4829_v25 = vld [vmem:[#allocation8 + $0x184] sm:$0xf] }
 0x43b   :  { %1644 = vmatpush.bf16.msrb.mxu3 %v4183_v43  ;;  %v4831_v43 = vld [vmem:[#allocation8 + $0x18c] sm:$0xf0] }
 0x499   :  { %v1176_v12 = vpop.f32.mrf.mxu0  ;;  %v1189_v29 = vpop.f32.mrf.mxu1 }
 0x49a   :  { %v1219_v27 = vadd.f32 %v1176_v12, %v6850_v11  ;;  %v1220_v0 = vadd.f32 %v1189_v29, %v6851_v6  ;;  %v4178_v12 = vld [vmem:[#allocation6 + $0x108] sm:$0xf]  ;;  %v4784_v29 = vld [vmem:[#allocation6 + $0x114] sm:$0xf0] }
 0x49b   :  { %v4179_v6 = vor.u32 %v4784_v29, %v4178_v12  ;;  %v4386_v12 = vld [vmem:[#allocation8 + $0x1a8] sm:$0xf] }
 0x49c   :  { %v1223_v41 = vmul.f32 0.5, %v1219_v27  ;;  %v1227_v47 = vmul.f32 0.5, %v1220_v0  ;;  %v4175_v27 = vor.u32 %v4781_v57, %v4172_v58  ;;  %v4833_v57 = vld [vmem:[#allocation8 + $0x1a4] sm:$0xf]  ;;  %v4380_v58 = vld [vmem:[#allocation8 + $0x1b0] sm:$0xf0] }
 0x49d   :  { %1615 = vmatpush.bf16.msrb.mxu2 %v4179_v6  ;;  %v5802_v23 = vor.u32 %v4833_v57, %v4380_v58  ;;  %v4388_v6 = vld [vmem:[#allocation8 + $0x1b8] sm:$0xf0] }
 0x49e   :  { %4983 = vtanh.f32 %v1223_v41  ;;  %1586 = vmatpush.bf16.msrb.mxu1 %v4175_v27  ;;  %v4834_v27 = vld [vmem:[#allocation8 + $0x1ac] sm:$0xf]  ;;  %v4340_v57 = vld [vmem:[#allocation8 + $0x158] sm:$0xf0] }
 0x49f   :  { %4985 = vtanh.f32 %v1227_v47 }
 0x4a0   :  { %v1202_v33 = vpop.f32.mrf.mxu2  ;;  %v1215_v34 = vpop.f32.mrf.mxu3 }
 0x4a1   :  { %v1221_v3 = vadd.f32 %v1202_v33, %v6852_v2  ;;  %v1222_v10 = vadd.f32 %v1215_v34, %v6853_v4  ;;  %v1178_v14 = vpop.f32.mrf.mxu0  ;;  %v1191_v15 = vpop.f32.mrf.mxu1  ;;  %v4420_v33 = vld [vmem:[#allocation8 + $0x1f8] sm:$0xf0]  ;;  %v4394_v34 = vld [vmem:[#allocation8 + $0x1c0] sm:$0xf]  ;;  %v4840_v2 = vld [vmem:[#allocation8 + $0x1d4] sm:$0xf0] }
 0x4a2   :  { %v5793_v4 = vor.u32 %v4840_v2, %v4402_v55  ;;  %v4378_v14 = vld [vmem:[#allocation8 + $0x1a0] sm:$0xf]  ;;  %v4835_v15 = vld [vmem:[#allocation8 + $0x1ac] sm:$0xf0]  ;;  %v4821_v55 = vld [vmem:[#allocation8 + $0x144] sm:$0xf] }
 0x4a3   :  { %4987 = vtanh.f32 %v1221_v3  ;;  %v1232_v40 = vmul.f32 0.5, %v1222_v10  ;;  %v4838_v3 = vld [vmem:[#allocation8 + $0x1cc] sm:$0xf]  ;;  %v4404_v10 = vld [vmem:[#allocation8 + $0x1d8] sm:$0xf0]  ;;  %v5798_v29 = vor.u32 %v4835_v15, %v4378_v14 }
 0x4a4   :  { %v4984_v11 = vpop.eup %4983  ;;  %v5795_v36 = vor.u32 %v4838_v3, %v4404_v10  ;;  %v4332_v2 = vld [vmem:[#allocation8 + $0x150] sm:$0xf0]  ;;  %v4338_v3 = vld [vmem:[#allocation8 + $0x148] sm:$0xf]  ;;  %v4822_v15 = vld [vmem:[#allocation8 + $0x14c] sm:$0xf] }
 0x4a5   :  { %v4986_v0 = vpop.eup %4985  ;;  %v1225_v24 = vmul.f32 0.5, %v4984_v11  ;;  %4989 = vtanh.f32 %v1232_v40  ;;  %v5804_v40 = vor.u32 %v4836_v19, %v4386_v12  ;;  %v1344_v11 = vpack.c.bf16 %v5759_v31, %v5711_v16  ;;  %v4830_v31 = vld [vmem:[#allocation8 + $0x18c] sm:$0xf]  ;;  %v4314_v19 = vld [vmem:[#allocation8 + $0x120] sm:$0xf] }
 0x4a6   :  { %v1229_v54 = vmul.f32 0.5, %v4986_v0  ;;  %v5814_v0 = vor.u32 %v4834_v27, %v4388_v6  ;;  %v5846_v58 = vor.u32 %v4821_v55, %v4332_v2  ;;  %v5848_v12 = vor.u32 %v4824_v35, %v4338_v3  ;;  %v4816_v55 = vld [vmem:[#allocation8 + $0x114] sm:$0xf0]  ;;  %v4308_v35 = vld [vmem:[#allocation8 + $0x118] sm:$0xf0] }
 0x4a7   :  { %v1226_v63 = vadd.f32 0.5, %v1225_v24  ;;  %v4362_v24 = vld [vmem:[#allocation8 + $0x180] sm:$0xf] }
 0x4a8   :  { %v1230_v17 = vadd.f32 0.5, %v1229_v54  ;;  %v1204_v28 = vpop.f32.mrf.mxu2  ;;  %v1217_v52 = vpop.f32.mrf.mxu3  ;;  %v5817_v5 = vor.u32 %v4831_v43, %v4362_v24  ;;  %v4364_v54 = vld [vmem:[#allocation8 + $0x190] sm:$0xf0]  ;;  %v5851_v24 = vor.u32 %v4822_v15, %v4340_v57 }
 0x4a9   :  { %v4988_v56 = vpop.eup %4987  ;;  %v5819_v28 = vor.u32 %v4829_v25, %v4364_v54  ;;  %v4372_v52 = vld [vmem:[#allocation8 + $0x198] sm:$0xf0]  ;;  %v4316_v43 = vld [vmem:[#allocation8 + $0x130] sm:$0xf0]  ;;  %v4322_v25 = vld [vmem:[#allocation8 + $0x128] sm:$0xf] }
 0x4aa   :  { %v1237_v37 = vmul.f32 %v1230_v17, %v5756_v18  ;;  %v1238_v41 = vmul.f32 %v4988_v56, %v1226_v63  ;;  %v1342_v18 = vpack.c.bf16 %v5575_v39, %v5527_v62  ;;  %v5784_v62 = vor.u32 %v4842_v32, %v4420_v33  ;;  %v4839_v39 = vld [vmem:[#allocation8 + $0x1cc] sm:$0xf0]  ;;  %v4370_v63 = vld [vmem:[#allocation8 + $0x188] sm:$0xf]  ;;  %v4832_v17 = vld [vmem:[#allocation8 + $0x194] sm:$0xf0] }
 0x4ab   :  { %v4990_v47 = vpop.eup %4989  ;;  %v5788_v46 = vor.u32 %v4839_v39, %v4394_v34  ;;  %v5821_v16 = vor.u32 %v4832_v17, %v4370_v63  ;;  %v4346_v56 = vld [vmem:[#allocation8 + $0x160] sm:$0xf]  ;;  %v4356_v32 = vld [vmem:[#allocation8 + $0x178] sm:$0xf0]  ;;  %v4823_v34 = vld [vmem:[#allocation8 + $0x14c] sm:$0xf0] }
 0x4ac   :  { %v5768_v49 = vadd.f32 %v1238_v41, %v1237_v37  ;;  %v1234_v50 = vmul.f32 0.5, %v4990_v47  ;;  %v5824_v37 = vor.u32 %v4830_v31, %v4372_v52  ;;  %v4827_v41 = vld [vmem:[#allocation8 + $0x16c] sm:$0xf0]  ;;  %v4825_v47 = vld [vmem:[#allocation8 + $0x164] sm:$0xf]  ;;  %v5839_v42 = vor.u32 %v4826_v1, %v4356_v32  ;;  %v6856_v31 = vld [vmem:[#allocation31_spill] sm:$0xff] }
 0x4ad   :  { %v4330_v33 = vld [vmem:[#allocation8 + $0x140] sm:$0xf]  ;;  %v4820_v54 = vld [vmem:[#allocation8 + $0x134] sm:$0xf0]  ;;  %v4818_v63 = vld [vmem:[#allocation8 + $0x12c] sm:$0xf]  ;;  %v374_v52 = vadd.f32 %v6856_v31, %v5462_v45 }
 0x4ae   :  { %4991 = vtanh.f32 %v5768_v49  ;;  %v1235_v53 = vadd.f32 0.5, %v1234_v50  ;;  %v4348_v50 = vld [vmem:[#allocation8 + $0x170] sm:$0xf0]  ;;  %v5842_v30 = vor.u32 %v4823_v34, %v4330_v33  ;;  %v4324_v17 = vld [vmem:[#allocation8 + $0x138] sm:$0xf0] }
 0x4af   :  { %v5867_v45 = vor.u32 %v4818_v63, %v4324_v17  ;;  %v4815_v32 = vld [vmem:[#allocation8 + $0x10c] sm:$0xf0]  ;;  %v4813_v33 = vld [vmem:[#allocation8 + $0x104] sm:$0xf] }
 0x4b4   :  { %v4992_v59 = vpop.eup %4991 }
 0x4b5   :  { %v5771_v60 = vmul.f32 %v4992_v59, %v1235_v53  ;;  %v5828_v53 = vor.u32 %v4827_v41, %v4346_v56  ;;  %v5830_v59 = vor.u32 %v4825_v47, %v4348_v50  ;;  %v6857_v41 = vld [vmem:[#allocation32_spill] sm:$0xff] }
 0x4b6   :  { %v403_v47 = vadd.f32 %v6857_v41, %v5464_v51  ;;  %v4298_v51 = vld [vmem:[#allocation8 + $0x100] sm:$0xf] }
 0x4b7   :  { %v1254_v61 = vpack.c.bf16 %v5771_v60, %v5771_v60  ;;  %v5870_v34 = vor.u32 %v4815_v32, %v4298_v51 }
 0x4b9   :  { %1263 = vmatmul.bf16.vlgmr.msra.gmra.mxu0 %v1254_v61  ;;  %1276 = vmatmul.bf16.vlgmr.msra.gmra.mxu1 %v1254_v61 }
 0x4ba   :  { %1289 = vmatmul.bf16.vlgmr.msra.gmra.mxu2 %v1254_v61  ;;  %1302 = vmatmul.bf16.vlgmr.msra.gmra.mxu3 %v1254_v61  ;;  %v4354_v61 = vld [vmem:[#allocation8 + $0x168] sm:$0xf] }
 0x4bb   :  { %1899 = vmatpush.bf16.msra.mxu0 %v5777_v9  ;;  %1912 = vmatpush.bf16.msra.mxu1 %v5779_v22 }
 0x4bc   :  { %1925 = vmatpush.bf16.msra.mxu2 %v5781_v26  ;;  %1938 = vmatpush.bf16.msra.mxu3 %v5784_v62 }
 0x4bf   :  { %1900 = vmatpush.bf16.msra.mxu0 %v5788_v46  ;;  %1913 = vmatpush.bf16.msra.mxu1 %v5790_v48 }
 0x4c0   :  { %1926 = vmatpush.bf16.msra.mxu2 %v5793_v4  ;;  %1939 = vmatpush.bf16.msra.mxu3 %v5795_v36 }
 0x4c3   :  { %1901 = vmatpush.bf16.msra.mxu0 %v5798_v29  ;;  %1914 = vmatpush.bf16.msra.mxu1 %v5802_v23 }
 0x4c4   :  { %1927 = vmatpush.bf16.msra.mxu2 %v5804_v40  ;;  %1940 = vmatpush.bf16.msra.mxu3 %v5814_v0 }
 0x4c7   :  { %1902 = vmatpush.bf16.msra.mxu0 %v5817_v5  ;;  %1915 = vmatpush.bf16.msra.mxu1 %v5819_v28 }
 0x4c8   :  { %1928 = vmatpush.bf16.msra.mxu2 %v5821_v16  ;;  %1941 = vmatpush.bf16.msra.mxu3 %v5824_v37 }
 0x4c9   :  { %1558 = vmatmul.bf16.vlgmr.msrb.gmra.mxu0 %v1342_v18  ;;  %1587 = vmatmul.bf16.vlgmr.msrb.gmra.mxu1 %v1342_v18 }
 0x4ca   :  { %1616 = vmatmul.bf16.vlgmr.msrb.gmra.mxu2 %v1342_v18  ;;  %1645 = vmatmul.bf16.vlgmr.msrb.gmra.mxu3 %v1342_v18  ;;  %v4828_v18 = vld [vmem:[#allocation8 + $0x174] sm:$0xf0] }
 0x4cb   :  { %v5837_v21 = vor.u32 %v4828_v18, %v4354_v61  ;;  %1903 = vmatpush.bf16.msra.mxu0 %v5828_v53  ;;  %1916 = vmatpush.bf16.msra.mxu1 %v5830_v59  ;;  %v5864_v61 = vor.u32 %v4820_v54, %v4322_v25 }
 0x4cc   :  { %1942 = vmatpush.bf16.msra.mxu3 %v5839_v42 }
 0x4cd   :  { %1929 = vmatpush.bf16.msra.mxu2 %v5837_v21 }
 0x4cf   :  { %1904 = vmatpush.bf16.msra.mxu0 %v5842_v30  ;;  %1917 = vmatpush.bf16.msra.mxu1 %v5846_v58 }
 0x4d0   :  { %1943 = vmatpush.bf16.msra.mxu3 %v5851_v24 }
 0x4d1   :  { %1930 = vmatpush.bf16.msra.mxu2 %v5848_v12 }
 0x4d4   :  { %1944 = vmatpush.bf16.msra.mxu3 %v5867_v45 }
 0x4d5   :  { %1931 = vmatpush.bf16.msra.mxu2 %v5864_v61 }
 0x4d9   :  { %1563 = vmatmul.bf16.gmra.mxu0 %v1343_v44  ;;  %1592 = vmatmul.bf16.gmra.mxu1 %v1343_v44 }
 0x4da   :  { %1621 = vmatmul.bf16.gmra.mxu2 %v1343_v44  ;;  %1650 = vmatmul.bf16.gmra.mxu3 %v1343_v44  ;;  %v4819_v44 = vld [vmem:[#allocation8 + $0x12c] sm:$0xf0] }
 0x4db   :  { %v5856_v56 = vor.u32 %v4819_v44, %v4314_v19 }
 0x4dd   :  { %1905 = vmatpush.bf16.msra.mxu0 %v5856_v56 }
 0x4e1   :  { %1906 = vmatpush.bf16.msra.mxu0 %v5870_v34 }
 0x4e5   :  { %1983 = vmatpush.bf16.msrb.mxu0 %v5777_v9 }
 0x4e9   :  { %1568 = vmatmul.bf16.gmra.mxu0 %v1344_v11  ;;  %1597 = vmatmul.bf16.gmra.mxu1 %v1344_v11 }
 0x4ea   :  { %1626 = vmatmul.bf16.gmra.mxu2 %v1344_v11  ;;  %1655 = vmatmul.bf16.gmra.mxu3 %v1344_v11  ;;  %v4817_v11 = vld [vmem:[#allocation8 + $0x124] sm:$0xf] }
 0x4eb   :  { %v5862_v50 = vor.u32 %v4817_v11, %v4316_v43  ;;  %1984 = vmatpush.bf16.msrb.mxu0 %v5788_v46 }
 0x4ed   :  { %1918 = vmatpush.bf16.msra.mxu1 %v5862_v50 }
 0x4ef   :  { %1985 = vmatpush.bf16.msrb.mxu0 %v5798_v29 }
 0x4f3   :  { %1986 = vmatpush.bf16.msrb.mxu0 %v5817_v5 }
 0x4f7   :  { %1987 = vmatpush.bf16.msrb.mxu0 %v5828_v53 }
 0x4fb   :  { %1988 = vmatpush.bf16.msrb.mxu0 %v5842_v30 }
 0x4ff   :  { %1989 = vmatpush.bf16.msrb.mxu0 %v5856_v56 }
 0x503   :  { %1990 = vmatpush.bf16.msrb.mxu0 %v5870_v34 }
 0x536   :  { %v1264_v39 = vpop.f32.mrf.mxu0  ;;  %v1277_v38 = vpop.f32.mrf.mxu1 }
 0x537   :  { %v1307_v10 = vadd.f32 %v1264_v39, %v316_v8  ;;  %v1308_v14 = vadd.f32 %v1277_v38, %v345_v20  ;;  %v4300_v39 = vld [vmem:[#allocation8 + $0x110] sm:$0xf0]  ;;  %v4306_v38 = vld [vmem:[#allocation8 + $0x108] sm:$0xf] }
 0x538   :  { %v5874_v3 = vor.u32 %v4813_v33, %v4300_v39 }
 0x539   :  { %v1311_v27 = vmul.f32 0.5, %v1307_v10  ;;  %v1315_v6 = vmul.f32 0.5, %v1308_v14  ;;  %v5876_v10 = vor.u32 %v4816_v55, %v4306_v38  ;;  %v4814_v14 = vld [vmem:[#allocation8 + $0x10c] sm:$0xf] }
 0x53a   :  { %v5879_v57 = vor.u32 %v4814_v14, %v4308_v35  ;;  %1919 = vmatpush.bf16.msra.mxu1 %v5874_v3 }
 0x53b   :  { %4993 = vtanh.f32 %v1311_v27  ;;  %1932 = vmatpush.bf16.msra.mxu2 %v5876_v10 }
 0x53c   :  { %4995 = vtanh.f32 %v1315_v6  ;;  %1945 = vmatpush.bf16.msra.mxu3 %v5879_v57 }
 0x53d   :  { %v1290_v18 = vpop.f32.mrf.mxu2  ;;  %v1303_v1 = vpop.f32.mrf.mxu3 }
 0x53e   :  { %v1309_v7 = vadd.f32 %v1290_v18, %v374_v52  ;;  %v1310_v8 = vadd.f32 %v1303_v1, %v403_v47  ;;  %v1266_v13 = vpop.f32.mrf.mxu0  ;;  %v1279_v20 = vpop.f32.mrf.mxu1  ;;  %1996 = vmatpush.bf16.msrb.mxu1 %v5779_v22 }
 0x53f   :  { %2009 = vmatpush.bf16.msrb.mxu2 %v5781_v26 }
 0x540   :  { %4997 = vtanh.f32 %v1309_v7  ;;  %v1320_v2 = vmul.f32 0.5, %v1310_v8  ;;  %2022 = vmatpush.bf16.msrb.mxu3 %v5784_v62 }
 0x541   :  { %v4994_v15 = vpop.eup %4993 }
 0x542   :  { %v4996_v19 = vpop.eup %4995  ;;  %v1313_v44 = vmul.f32 0.5, %v4994_v15  ;;  %4999 = vtanh.f32 %v1320_v2  ;;  %1997 = vmatpush.bf16.msrb.mxu1 %v5790_v48 }
 0x543   :  { %v1317_v11 = vmul.f32 0.5, %v4996_v19  ;;  %2010 = vmatpush.bf16.msrb.mxu2 %v5793_v4 }
 0x544   :  { %v1314_v27 = vadd.f32 0.5, %v1313_v44  ;;  %2023 = vmatpush.bf16.msrb.mxu3 %v5795_v36 }
 0x545   :  { %v1318_v6 = vadd.f32 0.5, %v1317_v11  ;;  %v1292_v43 = vpop.f32.mrf.mxu2  ;;  %v1305_v25 = vpop.f32.mrf.mxu3 }
 0x546   :  { %v4998_v54 = vpop.eup %4997  ;;  %1998 = vmatpush.bf16.msrb.mxu1 %v5802_v23  ;;  %v1559_v7 = vpop.f32.mrf.mxu0 }
 0x547   :  { %v1325_v63 = vmul.f32 %v1318_v6, %v5768_v49  ;;  %v1326_v17 = vmul.f32 %v4998_v54, %v1314_v27  ;;  %2011 = vmatpush.bf16.msrb.mxu2 %v5804_v40  ;;  %v1588_v8 = vpop.f32.mrf.mxu1 }
 0x548   :  { %v5000_v31 = vpop.eup %4999  ;;  %2024 = vmatpush.bf16.msrb.mxu3 %v5814_v0 }
 0x549   :  { %v1327_v52 = vadd.f32 %v1326_v17, %v1325_v63  ;;  %v1322_v41 = vmul.f32 0.5, %v5000_v31 }
 0x54a   :  { %1999 = vmatpush.bf16.msrb.mxu1 %v5819_v28 }
 0x54b   :  { %5001 = vtanh.f32 %v1327_v52  ;;  %v1323_v49 = vadd.f32 0.5, %v1322_v41  ;;  %2012 = vmatpush.bf16.msrb.mxu2 %v5821_v16 }
 0x54c   :  { %2025 = vmatpush.bf16.msrb.mxu3 %v5824_v37 }
 0x54d   :  { %v1617_v13 = vpop.f32.mrf.mxu2  ;;  %v1646_v20 = vpop.f32.mrf.mxu3 }
 0x54e   :  { %2000 = vmatpush.bf16.msrb.mxu1 %v5830_v59  ;;  %v5955_v51 = vpop.f32.mrf.mxu0 }
 0x54f   :  { %2013 = vmatpush.bf16.msrb.mxu2 %v5837_v21  ;;  %v5957_v32 = vpop.f32.mrf.mxu1 }
 0x550   :  { %2026 = vmatpush.bf16.msrb.mxu3 %v5839_v42 }
 0x551   :  { %v5002_v47 = vpop.eup %5001 }
 0x552   :  { %v1329_v18 = vmul.f32 %v5002_v47, %v1323_v49  ;;  %2001 = vmatpush.bf16.msrb.mxu1 %v5846_v58  ;;  %v4167_v47 = vld [vmem:[%s6809_s3 + $0x4] sm:$0xf] }
 0x553   :  { %2014 = vmatpush.bf16.msrb.mxu2 %v5848_v12 }
 0x554   :  { %v1345_v1 = vpack.c.bf16 %v1329_v18, %v5771_v60  ;;  %2027 = vmatpush.bf16.msrb.mxu3 %v5851_v24  ;;  %v6858_v60 = vmov 0.0|0.0  }
 0x555   :  { %v5959_v33 = vpop.f32.mrf.mxu2  ;;  %v5961_v39 = vpop.f32.mrf.mxu3 }
 0x556   :  { %1573 = vmatmul.bf16.gmra.mxu0 %v1345_v1  ;;  %1602 = vmatmul.bf16.gmra.mxu1 %v1345_v1  ;;  %v5963_v38 = vpop.f32.mrf.mxu0 }
 0x557   :  { %1631 = vmatmul.bf16.gmra.mxu2 %v1345_v1  ;;  %1660 = vmatmul.bf16.gmra.mxu3 %v1345_v1  ;;  %v5965_v55 = vpop.f32.mrf.mxu1 }
 0x558   :  { %2002 = vmatpush.bf16.msrb.mxu1 %v5862_v50  ;;  %2015 = vmatpush.bf16.msrb.mxu2 %v5864_v61 }
 0x559   :  { %2028 = vmatpush.bf16.msrb.mxu3 %v5867_v45 }
 0x55c   :  { %2003 = vmatpush.bf16.msrb.mxu1 %v5874_v3  ;;  %2016 = vmatpush.bf16.msrb.mxu2 %v5876_v10 }
 0x55d   :  { %2029 = vmatpush.bf16.msrb.mxu3 %v5879_v57  ;;  %v5967_v2 = vpop.f32.mrf.mxu2  ;;  %v5969_v14 = vpop.f32.mrf.mxu3 }
 0x55e   :  { %6859 = vst [vmem:[#allocation13_spill] sm:$0xff] %v5967_v2  ;;  %v5971_v35 = vpop.f32.mrf.mxu0 }
 0x55f   :  { %6860 = vst [vmem:[#allocation12_spill] sm:$0xff] %v5969_v14  ;;  %v5973_v15 = vpop.f32.mrf.mxu1 }
 0x560   :  { %6861 = vst [vmem:[#allocation14_spill] sm:$0xff] %v5971_v35 }
 0x561   :  { %6862 = vst [vmem:[#allocation15_spill] sm:$0xff] %v5973_v15 }
 0x565   :  { %v5975_v19 = vpop.f32.mrf.mxu2  ;;  %v5977_v44 = vpop.f32.mrf.mxu3 }
 0x566   :  { %1907 = vmatmul.bf16.vlgmr.msra.gmra.mxu0 %v6858_v60  ;;  %1920 = vmatmul.bf16.vlgmr.msra.gmra.mxu1 %v6858_v60  ;;  %6863 = vst [vmem:[#allocation16_spill] sm:$0xff] %v5975_v19  ;;  %v5979_v11 = vpop.f32.mrf.mxu0 }
 0x567   :  { %1933 = vmatmul.bf16.vlgmr.msra.gmra.mxu2 %v6858_v60  ;;  %1946 = vmatmul.bf16.vlgmr.msra.gmra.mxu3 %v6858_v60  ;;  %6864 = vst [vmem:[#allocation17_spill] sm:$0xff] %v5977_v44  ;;  %v5981_v27 = vpop.f32.mrf.mxu1  ;;  %v6010_v60 = vperm.slane %v4167_v47, 0 }
 0x568   :  { %2067 = vmatpush.bf16.msra.mxu0 %v5777_v9  ;;  %2080 = vmatpush.bf16.msra.mxu1 %v5779_v22  ;;  %6865 = vst [vmem:[#allocation18_spill] sm:$0xff] %v5979_v11 }
 0x569   :  { %2093 = vmatpush.bf16.msra.mxu2 %v5781_v26  ;;  %2106 = vmatpush.bf16.msra.mxu3 %v5784_v62  ;;  %6866 = vst [vmem:[#allocation19_spill] sm:$0xff] %v5981_v27 }
 0x56c   :  { %2068 = vmatpush.bf16.msra.mxu0 %v5788_v46  ;;  %2081 = vmatpush.bf16.msra.mxu1 %v5790_v48 }
 0x56d   :  { %2094 = vmatpush.bf16.msra.mxu2 %v5793_v4  ;;  %2107 = vmatpush.bf16.msra.mxu3 %v5795_v36  ;;  %v5983_v6 = vpop.f32.mrf.mxu2  ;;  %v5985_v43 = vpop.f32.mrf.mxu3 }
 0x56e   :  { %6867 = vst [vmem:[#allocation21_spill] sm:$0xff] %v5983_v6  ;;  %v5987_v25 = vpop.f32.mrf.mxu0  ;;  %v6020_v6 = vperm.slane %v4167_v47, 2 }
 0x56f   :  { %6868 = vst [vmem:[#allocation20_spill] sm:$0xff] %v5985_v43  ;;  %v5989_v54 = vpop.f32.mrf.mxu1 }
 0x570   :  { %2069 = vmatpush.bf16.msra.mxu0 %v5798_v29  ;;  %2082 = vmatpush.bf16.msra.mxu1 %v5802_v23  ;;  %6869 = vst [vmem:[#allocation22_spill] sm:$0xff] %v5987_v25  ;;  %v1618_v11 = vadd.f32 %v1617_v13, %v6020_v6 }
 0x571   :  { %2095 = vmatpush.bf16.msra.mxu2 %v5804_v40  ;;  %2108 = vmatpush.bf16.msra.mxu3 %v5814_v0  ;;  %6870 = vst [vmem:[#allocation23_spill] sm:$0xff] %v5989_v54 }
 0x574   :  { %2070 = vmatpush.bf16.msra.mxu0 %v5817_v5  ;;  %2083 = vmatpush.bf16.msra.mxu1 %v5819_v28 }
 0x575   :  { %2096 = vmatpush.bf16.msra.mxu2 %v5821_v16  ;;  %2109 = vmatpush.bf16.msra.mxu3 %v5824_v37  ;;  %v5991_v63 = vpop.f32.mrf.mxu2  ;;  %v5993_v17 = vpop.f32.mrf.mxu3 }
 0x576   :  { %6871 = vst [vmem:[#allocation24_spill] sm:$0xff] %v5991_v63  ;;  %v6012_v63 = vperm.slane %v4167_v47, 1 }
 0x577   :  { %6872 = vst [vmem:[#allocation25_spill] sm:$0xff] %v5993_v17 }
 0x578   :  { %2071 = vmatpush.bf16.msra.mxu0 %v5828_v53  ;;  %2084 = vmatpush.bf16.msra.mxu1 %v5830_v59 }
 0x579   :  { %2097 = vmatpush.bf16.msra.mxu2 %v5837_v21  ;;  %2110 = vmatpush.bf16.msra.mxu3 %v5839_v42 }
 0x57c   :  { %2072 = vmatpush.bf16.msra.mxu0 %v5842_v30  ;;  %2085 = vmatpush.bf16.msra.mxu1 %v5846_v58 }
 0x57d   :  { %2098 = vmatpush.bf16.msra.mxu2 %v5848_v12  ;;  %2111 = vmatpush.bf16.msra.mxu3 %v5851_v24 }
 0x580   :  { %2073 = vmatpush.bf16.msra.mxu0 %v5856_v56  ;;  %2086 = vmatpush.bf16.msra.mxu1 %v5862_v50 }
 0x581   :  { %2099 = vmatpush.bf16.msra.mxu2 %v5864_v61  ;;  %2112 = vmatpush.bf16.msra.mxu3 %v5867_v45 }
 0x584   :  { %2074 = vmatpush.bf16.msra.mxu0 %v5870_v34  ;;  %2087 = vmatpush.bf16.msra.mxu1 %v5874_v3 }
 0x585   :  { %2100 = vmatpush.bf16.msra.mxu2 %v5876_v10  ;;  %2113 = vmatpush.bf16.msra.mxu3 %v5879_v57 }
 0x5d3   :  { %v5995_v31 = vpop.f32.mrf.mxu0  ;;  %v5997_v52 = vpop.f32.mrf.mxu1 }
 0x5d4   :  { %6873 = vst [vmem:[#allocation26_spill] sm:$0xff] %v5995_v31  ;;  %v1560_v31 = vadd.f32 %v1559_v7, %v6010_v60 }
 0x5d5   :  { %6874 = vst [vmem:[#allocation27_spill] sm:$0xff] %v5997_v52  ;;  %v1589_v52 = vadd.f32 %v1588_v8, %v6012_v63 }
 0x5da   :  { %v5999_v41 = vpop.f32.mrf.mxu2  ;;  %v6001_v49 = vpop.f32.mrf.mxu3 }
 0x5db   :  { %6875 = vst [vmem:[#allocation29_spill] sm:$0xff] %v5999_v41  ;;  %v6006_v18 = vpop.f32.mrf.mxu0  ;;  %v6008_v1 = vpop.f32.mrf.mxu1 }
 0x5dc   :  { %6876 = vst [vmem:[#allocation28_spill] sm:$0xff] %v6001_v49 }
 0x5dd   :  { %6877 = vst [vmem:[#allocation30_spill] sm:$0xff] %v6006_v18  ;;  %v6022_v18 = vperm.slane %v4167_v47, 3 }
 0x5de   :  { %6878 = vst [vmem:[#allocation31_spill] sm:$0xff] %v6008_v1 }
 0x5df   :  { %v1647_v7 = vadd.f32 %v1646_v20, %v6022_v18 }
 0x5e2   :  { %v6016_v17 = vpop.f32.mrf.mxu2  ;;  %v6018_v41 = vpop.f32.mrf.mxu3 }
 0x5e3   :  { %6879 = vst [vmem:[#allocation32_spill] sm:$0xff] %v6016_v17  ;;  %v1908_v49 = vpop.f32.mrf.mxu0  ;;  %v1921_v54 = vpop.f32.mrf.mxu1 }
 0x5e4   :  { %6880 = vst [vmem:[#allocation33_spill] sm:$0xff] %v6018_v41  ;;  %v1951_v25 = vadd.f32 %v1908_v49, %v1560_v31  ;;  %v1952_v43 = vadd.f32 %v1921_v54, %v1589_v52 }
 0x5e6   :  { %v1955_v1 = vmul.f32 0.5, %v1951_v25  ;;  %v1959_v27 = vmul.f32 0.5, %v1952_v43 }
 0x5e8   :  { %5003 = vtanh.f32 %v1955_v1 }
 0x5e9   :  { %5005 = vtanh.f32 %v1959_v27 }
 0x5ea   :  { %v1934_v8 = vpop.f32.mrf.mxu2  ;;  %v1947_v17 = vpop.f32.mrf.mxu3 }
 0x5eb   :  { %v1953_v44 = vadd.f32 %v1934_v8, %v1618_v11  ;;  %v1954_v41 = vadd.f32 %v1947_v17, %v1647_v7  ;;  %v1910_v19 = vpop.f32.mrf.mxu0  ;;  %v1923_v15 = vpop.f32.mrf.mxu1 }
 0x5ed   :  { %5007 = vtanh.f32 %v1953_v44  ;;  %v1964_v54 = vmul.f32 0.5, %v1954_v41 }
 0x5ee   :  { %v5004_v31 = vpop.eup %5003 }
 0x5ef   :  { %v5006_v52 = vpop.eup %5005  ;;  %v1957_v49 = vmul.f32 0.5, %v5004_v31  ;;  %5009 = vtanh.f32 %v1964_v54 }
 0x5f0   :  { %v1961_v47 = vmul.f32 0.5, %v5006_v52 }
 0x5f1   :  { %v1958_v43 = vadd.f32 0.5, %v1957_v49  ;;  %v1620_v49 = vadd.f32 %v5959_v33, %v6020_v6 }
 0x5f2   :  { %v1962_v25 = vadd.f32 0.5, %v1961_v47  ;;  %v1936_v1 = vpop.f32.mrf.mxu2  ;;  %v1949_v13 = vpop.f32.mrf.mxu3  ;;  %v1649_v47 = vadd.f32 %v5961_v39, %v6022_v18 }
 0x5f3   :  { %v5008_v35 = vpop.eup %5007 }
 0x5f4   :  { %v1969_v20 = vmul.f32 0.0, %v1962_v25  ;;  %v1970_v27 = vmul.f32 %v5008_v35, %v1958_v43  ;;  %v1591_v35 = vadd.f32 %v5957_v32, %v6012_v63 }
 0x5f5   :  { %v5010_v14 = vpop.eup %5009 }
 0x5f6   :  { %v6026_v2 = vadd.f32 %v1970_v27, %v1969_v20  ;;  %v1966_v15 = vmul.f32 0.5, %v5010_v14  ;;  %v1562_v14 = vadd.f32 %v5955_v51, %v6010_v60 }
 0x5f8   :  { %5011 = vtanh.f32 %v6026_v2  ;;  %v1967_v19 = vadd.f32 0.5, %v1966_v15 }
 0x5fe   :  { %v5012_v44 = vpop.eup %5011 }
 0x5ff   :  { %v6029_v11 = vmul.f32 %v5012_v44, %v1967_v19 }
 0x601   :  { %v1982_v17 = vpack.c.bf16 %v6029_v11, %v6029_v11 }
 0x603   :  { %1991 = vmatmul.bf16.vlgmr.msrb.gmra.mxu0 %v1982_v17  ;;  %2004 = vmatmul.bf16.vlgmr.msrb.gmra.mxu1 %v1982_v17 }
 0x604   :  { %2017 = vmatmul.bf16.vlgmr.msrb.gmra.mxu2 %v1982_v17  ;;  %2030 = vmatmul.bf16.vlgmr.msrb.gmra.mxu3 %v1982_v17 }
 0x605   :  { %2151 = vmatpush.bf16.msrb.mxu0 %v5777_v9  ;;  %2164 = vmatpush.bf16.msrb.mxu1 %v5779_v22 }
 0x606   :  { %2177 = vmatpush.bf16.msrb.mxu2 %v5781_v26  ;;  %2190 = vmatpush.bf16.msrb.mxu3 %v5784_v62 }
 0x609   :  { %2152 = vmatpush.bf16.msrb.mxu0 %v5788_v46  ;;  %2165 = vmatpush.bf16.msrb.mxu1 %v5790_v48 }
 0x60a   :  { %2178 = vmatpush.bf16.msrb.mxu2 %v5793_v4  ;;  %2191 = vmatpush.bf16.msrb.mxu3 %v5795_v36 }
 0x60d   :  { %2153 = vmatpush.bf16.msrb.mxu0 %v5798_v29  ;;  %2166 = vmatpush.bf16.msrb.mxu1 %v5802_v23 }
 0x60e   :  { %2179 = vmatpush.bf16.msrb.mxu2 %v5804_v40  ;;  %2192 = vmatpush.bf16.msrb.mxu3 %v5814_v0 }
 0x611   :  { %2154 = vmatpush.bf16.msrb.mxu0 %v5817_v5  ;;  %2167 = vmatpush.bf16.msrb.mxu1 %v5819_v28 }
 0x612   :  { %2180 = vmatpush.bf16.msrb.mxu2 %v5821_v16  ;;  %2193 = vmatpush.bf16.msrb.mxu3 %v5824_v37 }
 0x615   :  { %2155 = vmatpush.bf16.msrb.mxu0 %v5828_v53  ;;  %2168 = vmatpush.bf16.msrb.mxu1 %v5830_v59 }
 0x616   :  { %2181 = vmatpush.bf16.msrb.mxu2 %v5837_v21  ;;  %2194 = vmatpush.bf16.msrb.mxu3 %v5839_v42 }
 0x619   :  { %2156 = vmatpush.bf16.msrb.mxu0 %v5842_v30  ;;  %2169 = vmatpush.bf16.msrb.mxu1 %v5846_v58 }
 0x61a   :  { %2182 = vmatpush.bf16.msrb.mxu2 %v5848_v12  ;;  %2195 = vmatpush.bf16.msrb.mxu3 %v5851_v24 }
 0x61d   :  { %2157 = vmatpush.bf16.msrb.mxu0 %v5856_v56  ;;  %2170 = vmatpush.bf16.msrb.mxu1 %v5862_v50 }
 0x61e   :  { %2183 = vmatpush.bf16.msrb.mxu2 %v5864_v61  ;;  %2196 = vmatpush.bf16.msrb.mxu3 %v5867_v45 }
 0x621   :  { %2158 = vmatpush.bf16.msrb.mxu0 %v5870_v34  ;;  %2171 = vmatpush.bf16.msrb.mxu1 %v5874_v3 }
 0x622   :  { %2184 = vmatpush.bf16.msrb.mxu2 %v5876_v10  ;;  %2197 = vmatpush.bf16.msrb.mxu3 %v5879_v57 }
 0x680   :  { %v1992_v41 = vpop.f32.mrf.mxu0  ;;  %v2005_v7 = vpop.f32.mrf.mxu1 }
 0x681   :  { %v2035_v8 = vadd.f32 %v1992_v41, %v1562_v14  ;;  %v2036_v54 = vadd.f32 %v2005_v7, %v1591_v35 }
 0x683   :  { %v2039_v31 = vmul.f32 0.5, %v2035_v8  ;;  %v2043_v52 = vmul.f32 0.5, %v2036_v54 }
 0x685   :  { %5013 = vtanh.f32 %v2039_v31 }
 0x686   :  { %5015 = vtanh.f32 %v2043_v52 }
 0x687   :  { %v2018_v43 = vpop.f32.mrf.mxu2  ;;  %v2031_v25 = vpop.f32.mrf.mxu3 }
 0x688   :  { %v2037_v51 = vadd.f32 %v2018_v43, %v1620_v49  ;;  %v2038_v1 = vadd.f32 %v2031_v25, %v1649_v47  ;;  %v1994_v13 = vpop.f32.mrf.mxu0  ;;  %v2007_v32 = vpop.f32.mrf.mxu1  ;;  %v1594_v25 = vadd.f32 %v5965_v55, %v6012_v63 }
 0x68a   :  { %5017 = vtanh.f32 %v2037_v51  ;;  %v2048_v20 = vmul.f32 0.5, %v2038_v1 }
 0x68b   :  { %v5014_v27 = vpop.eup %5013 }
 0x68c   :  { %v5016_v15 = vpop.eup %5015  ;;  %v2041_v19 = vmul.f32 0.5, %v5014_v27  ;;  %5019 = vtanh.f32 %v2048_v20 }
 0x68d   :  { %v2045_v44 = vmul.f32 0.5, %v5016_v15  ;;  %v6881_v15 = vld [vmem:[#allocation13_spill] sm:$0xff] }
 0x68e   :  { %v2042_v17 = vadd.f32 0.5, %v2041_v19  ;;  %v1623_v19 = vadd.f32 %v6881_v15, %v6020_v6 }
 0x68f   :  { %v2046_v14 = vadd.f32 0.5, %v2045_v44  ;;  %v2020_v33 = vpop.f32.mrf.mxu2  ;;  %v2033_v35 = vpop.f32.mrf.mxu3  ;;  %v6882_v44 = vld [vmem:[#allocation12_spill] sm:$0xff] }
 0x690   :  { %v5018_v41 = vpop.eup %5017 }
 0x691   :  { %v2053_v39 = vmul.f32 %v2046_v14, %v6026_v2  ;;  %v2054_v7 = vmul.f32 %v5018_v41, %v2042_v17  ;;  %v1565_v2 = vadd.f32 %v5963_v38, %v6010_v60  ;;  %v1652_v17 = vadd.f32 %v6882_v44, %v6022_v18 }
 0x692   :  { %v5020_v8 = vpop.eup %5019 }
 0x693   :  { %v6074_v54 = vadd.f32 %v2054_v7, %v2053_v39  ;;  %v2050_v31 = vmul.f32 0.5, %v5020_v8 }
 0x695   :  { %5021 = vtanh.f32 %v6074_v54  ;;  %v2051_v52 = vadd.f32 0.5, %v2050_v31 }
 0x69b   :  { %v5022_v49 = vpop.eup %5021 }
 0x69c   :  { %v6077_v47 = vmul.f32 %v5022_v49, %v2051_v52 }
 0x69e   :  { %v2066_v43 = vpack.c.bf16 %v6077_v47, %v6077_v47 }
 0x6a0   :  { %2075 = vmatmul.bf16.vlgmr.msra.gmra.mxu0 %v2066_v43  ;;  %2088 = vmatmul.bf16.vlgmr.msra.gmra.mxu1 %v2066_v43 }
 0x6a1   :  { %2101 = vmatmul.bf16.vlgmr.msra.gmra.mxu2 %v2066_v43  ;;  %2114 = vmatmul.bf16.vlgmr.msra.gmra.mxu3 %v2066_v43 }
 0x6a2   :  { %2235 = vmatpush.bf16.msra.mxu0 %v5777_v9  ;;  %2248 = vmatpush.bf16.msra.mxu1 %v5779_v22 }
 0x6a3   :  { %2261 = vmatpush.bf16.msra.mxu2 %v5781_v26  ;;  %2274 = vmatpush.bf16.msra.mxu3 %v5784_v62 }
 0x6a6   :  { %2236 = vmatpush.bf16.msra.mxu0 %v5788_v46  ;;  %2249 = vmatpush.bf16.msra.mxu1 %v5790_v48 }
 0x6a7   :  { %2262 = vmatpush.bf16.msra.mxu2 %v5793_v4  ;;  %2275 = vmatpush.bf16.msra.mxu3 %v5795_v36 }
 0x6aa   :  { %2237 = vmatpush.bf16.msra.mxu0 %v5798_v29  ;;  %2250 = vmatpush.bf16.msra.mxu1 %v5802_v23 }
 0x6ab   :  { %2263 = vmatpush.bf16.msra.mxu2 %v5804_v40  ;;  %2276 = vmatpush.bf16.msra.mxu3 %v5814_v0 }
 0x6ae   :  { %2238 = vmatpush.bf16.msra.mxu0 %v5817_v5  ;;  %2251 = vmatpush.bf16.msra.mxu1 %v5819_v28 }
 0x6af   :  { %2264 = vmatpush.bf16.msra.mxu2 %v5821_v16  ;;  %2277 = vmatpush.bf16.msra.mxu3 %v5824_v37 }
 0x6b2   :  { %2239 = vmatpush.bf16.msra.mxu0 %v5828_v53  ;;  %2252 = vmatpush.bf16.msra.mxu1 %v5830_v59 }
 0x6b3   :  { %2265 = vmatpush.bf16.msra.mxu2 %v5837_v21  ;;  %2278 = vmatpush.bf16.msra.mxu3 %v5839_v42 }
 0x6b6   :  { %2240 = vmatpush.bf16.msra.mxu0 %v5842_v30  ;;  %2253 = vmatpush.bf16.msra.mxu1 %v5846_v58 }
 0x6b7   :  { %2266 = vmatpush.bf16.msra.mxu2 %v5848_v12  ;;  %2279 = vmatpush.bf16.msra.mxu3 %v5851_v24 }
 0x6ba   :  { %2241 = vmatpush.bf16.msra.mxu0 %v5856_v56  ;;  %2254 = vmatpush.bf16.msra.mxu1 %v5862_v50 }
 0x6bb   :  { %2267 = vmatpush.bf16.msra.mxu2 %v5864_v61  ;;  %2280 = vmatpush.bf16.msra.mxu3 %v5867_v45 }
 0x6be   :  { %2242 = vmatpush.bf16.msra.mxu0 %v5870_v34  ;;  %2255 = vmatpush.bf16.msra.mxu1 %v5874_v3 }
 0x6bf   :  { %2268 = vmatpush.bf16.msra.mxu2 %v5876_v10  ;;  %2281 = vmatpush.bf16.msra.mxu3 %v5879_v57 }
 0x71d   :  { %v2076_v51 = vpop.f32.mrf.mxu0  ;;  %v2089_v1 = vpop.f32.mrf.mxu1 }
 0x71e   :  { %v2119_v13 = vadd.f32 %v2076_v51, %v1565_v2  ;;  %v2120_v32 = vadd.f32 %v2089_v1, %v1594_v25 }
 0x720   :  { %v2123_v20 = vmul.f32 0.5, %v2119_v13  ;;  %v2127_v27 = vmul.f32 0.5, %v2120_v32 }
 0x722   :  { %5023 = vtanh.f32 %v2123_v20 }
 0x723   :  { %5025 = vtanh.f32 %v2127_v27 }
 0x724   :  { %v2102_v14 = vpop.f32.mrf.mxu2  ;;  %v2115_v33 = vpop.f32.mrf.mxu3 }
 0x725   :  { %v2121_v38 = vadd.f32 %v2102_v14, %v1623_v19  ;;  %v2122_v35 = vadd.f32 %v2115_v33, %v1652_v17  ;;  %v2078_v41 = vpop.f32.mrf.mxu0  ;;  %v2091_v55 = vpop.f32.mrf.mxu1  ;;  %v6884_v33 = vld [vmem:[#allocation15_spill] sm:$0xff] }
 0x727   :  { %5027 = vtanh.f32 %v2121_v38  ;;  %v2132_v39 = vmul.f32 0.5, %v2122_v35  ;;  %v1596_v38 = vadd.f32 %v6884_v33, %v6012_v63 }
 0x728   :  { %v5024_v7 = vpop.eup %5023 }
 0x729   :  { %v5026_v8 = vpop.eup %5025  ;;  %v2125_v31 = vmul.f32 0.5, %v5024_v7  ;;  %5029 = vtanh.f32 %v2132_v39 }
 0x72a   :  { %v2129_v52 = vmul.f32 0.5, %v5026_v8 }
 0x72b   :  { %v2126_v49 = vadd.f32 0.5, %v2125_v31  ;;  %v6885_v31 = vld [vmem:[#allocation16_spill] sm:$0xff] }
 0x72c   :  { %v2130_v43 = vadd.f32 0.5, %v2129_v52  ;;  %v2104_v2 = vpop.f32.mrf.mxu2  ;;  %v2117_v25 = vpop.f32.mrf.mxu3  ;;  %v1625_v52 = vadd.f32 %v6885_v31, %v6020_v6 }
 0x72d   :  { %v5028_v51 = vpop.eup %5027 }
 0x72e   :  { %v2137_v1 = vmul.f32 %v2130_v43, %v6074_v54  ;;  %v2138_v13 = vmul.f32 %v5028_v51, %v2126_v49  ;;  %v6883_v54 = vld [vmem:[#allocation14_spill] sm:$0xff]  ;;  %v6886_v49 = vld [vmem:[#allocation17_spill] sm:$0xff] }
 0x72f   :  { %v5030_v32 = vpop.eup %5029  ;;  %v1567_v14 = vadd.f32 %v6883_v54, %v6010_v60  ;;  %v1654_v43 = vadd.f32 %v6886_v49, %v6022_v18 }
 0x730   :  { %v6122_v20 = vadd.f32 %v2138_v13, %v2137_v1  ;;  %v2134_v27 = vmul.f32 0.5, %v5030_v32 }
 0x732   :  { %5031 = vtanh.f32 %v6122_v20  ;;  %v2135_v15 = vadd.f32 0.5, %v2134_v27 }
 0x738   :  { %v5032_v19 = vpop.eup %5031 }
 0x739   :  { %v6125_v44 = vmul.f32 %v5032_v19, %v2135_v15 }
 0x73b   :  { %v2150_v17 = vpack.c.bf16 %v6125_v44, %v6125_v44 }
 0x73d   :  { %2159 = vmatmul.bf16.vlgmr.msrb.gmra.mxu0 %v2150_v17  ;;  %2172 = vmatmul.bf16.vlgmr.msrb.gmra.mxu1 %v2150_v17 }
 0x73e   :  { %2185 = vmatmul.bf16.vlgmr.msrb.gmra.mxu2 %v2150_v17  ;;  %2198 = vmatmul.bf16.vlgmr.msrb.gmra.mxu3 %v2150_v17 }
 0x73f   :  { %2319 = vmatpush.bf16.msrb.mxu0 %v5777_v9  ;;  %2332 = vmatpush.bf16.msrb.mxu1 %v5779_v22 }
 0x740   :  { %2345 = vmatpush.bf16.msrb.mxu2 %v5781_v26  ;;  %2358 = vmatpush.bf16.msrb.mxu3 %v5784_v62 }
 0x743   :  { %2320 = vmatpush.bf16.msrb.mxu0 %v5788_v46  ;;  %2333 = vmatpush.bf16.msrb.mxu1 %v5790_v48 }
 0x744   :  { %2346 = vmatpush.bf16.msrb.mxu2 %v5793_v4  ;;  %2359 = vmatpush.bf16.msrb.mxu3 %v5795_v36 }
 0x747   :  { %2321 = vmatpush.bf16.msrb.mxu0 %v5798_v29  ;;  %2334 = vmatpush.bf16.msrb.mxu1 %v5802_v23 }
 0x748   :  { %2347 = vmatpush.bf16.msrb.mxu2 %v5804_v40  ;;  %2360 = vmatpush.bf16.msrb.mxu3 %v5814_v0 }
 0x74b   :  { %2322 = vmatpush.bf16.msrb.mxu0 %v5817_v5  ;;  %2335 = vmatpush.bf16.msrb.mxu1 %v5819_v28 }
 0x74c   :  { %2348 = vmatpush.bf16.msrb.mxu2 %v5821_v16  ;;  %2361 = vmatpush.bf16.msrb.mxu3 %v5824_v37 }
 0x74f   :  { %2323 = vmatpush.bf16.msrb.mxu0 %v5828_v53  ;;  %2336 = vmatpush.bf16.msrb.mxu1 %v5830_v59 }
 0x750   :  { %2349 = vmatpush.bf16.msrb.mxu2 %v5837_v21  ;;  %2362 = vmatpush.bf16.msrb.mxu3 %v5839_v42 }
 0x753   :  { %2324 = vmatpush.bf16.msrb.mxu0 %v5842_v30  ;;  %2337 = vmatpush.bf16.msrb.mxu1 %v5846_v58 }
 0x754   :  { %2350 = vmatpush.bf16.msrb.mxu2 %v5848_v12  ;;  %2363 = vmatpush.bf16.msrb.mxu3 %v5851_v24 }
 0x757   :  { %2325 = vmatpush.bf16.msrb.mxu0 %v5856_v56  ;;  %2338 = vmatpush.bf16.msrb.mxu1 %v5862_v50 }
 0x758   :  { %2351 = vmatpush.bf16.msrb.mxu2 %v5864_v61  ;;  %2364 = vmatpush.bf16.msrb.mxu3 %v5867_v45 }
 0x75b   :  { %2326 = vmatpush.bf16.msrb.mxu0 %v5870_v34  ;;  %2339 = vmatpush.bf16.msrb.mxu1 %v5874_v3 }
 0x75c   :  { %2352 = vmatpush.bf16.msrb.mxu2 %v5876_v10  ;;  %2365 = vmatpush.bf16.msrb.mxu3 %v5879_v57 }
 0x7ba   :  { %v2160_v35 = vpop.f32.mrf.mxu0  ;;  %v2173_v41 = vpop.f32.mrf.mxu1 }
 0x7bb   :  { %v2203_v55 = vadd.f32 %v2160_v35, %v1567_v14  ;;  %v2204_v39 = vadd.f32 %v2173_v41, %v1596_v38 }
 0x7bd   :  { %v2207_v7 = vmul.f32 0.5, %v2203_v55  ;;  %v2211_v8 = vmul.f32 0.5, %v2204_v39 }
 0x7bf   :  { %5033 = vtanh.f32 %v2207_v7 }
 0x7c0   :  { %5035 = vtanh.f32 %v2211_v8 }
 0x7c1   :  { %v2186_v2 = vpop.f32.mrf.mxu2  ;;  %v2199_v25 = vpop.f32.mrf.mxu3 }
 0x7c2   :  { %v2205_v51 = vadd.f32 %v2186_v2, %v1625_v52  ;;  %v2206_v1 = vadd.f32 %v2199_v25, %v1654_v43  ;;  %v2162_v13 = vpop.f32.mrf.mxu0  ;;  %v2175_v32 = vpop.f32.mrf.mxu1 }
 0x7c4   :  { %5037 = vtanh.f32 %v2205_v51  ;;  %v2216_v27 = vmul.f32 0.5, %v2206_v1  ;;  %v6888_v51 = vld [vmem:[#allocation19_spill] sm:$0xff] }
 0x7c5   :  { %v5034_v15 = vpop.eup %5033  ;;  %v1599_v1 = vadd.f32 %v6888_v51, %v6012_v63 }
 0x7c6   :  { %v5036_v19 = vpop.eup %5035  ;;  %v2209_v17 = vmul.f32 0.5, %v5034_v15  ;;  %5039 = vtanh.f32 %v2216_v27 }
 0x7c7   :  { %v2213_v54 = vmul.f32 0.5, %v5036_v19 }
 0x7c8   :  { %v2210_v14 = vadd.f32 0.5, %v2209_v17 }
 0x7c9   :  { %v2214_v33 = vadd.f32 0.5, %v2213_v54  ;;  %v2188_v38 = vpop.f32.mrf.mxu2  ;;  %v2201_v35 = vpop.f32.mrf.mxu3  ;;  %v6889_v54 = vld [vmem:[#allocation21_spill] sm:$0xff] }
 0x7ca   :  { %v5038_v41 = vpop.eup %5037 }
 0x7cb   :  { %v2221_v55 = vmul.f32 %v2214_v33, %v6122_v20  ;;  %v2222_v39 = vmul.f32 %v5038_v41, %v2210_v14  ;;  %v6887_v20 = vld [vmem:[#allocation18_spill] sm:$0xff]  ;;  %v1628_v14 = vadd.f32 %v6889_v54, %v6020_v6  ;;  %v6890_v33 = vld [vmem:[#allocation20_spill] sm:$0xff] }
 0x7cc   :  { %v5040_v7 = vpop.eup %5039  ;;  %v1570_v25 = vadd.f32 %v6887_v20, %v6010_v60  ;;  %v1657_v38 = vadd.f32 %v6890_v33, %v6022_v18 }
 0x7cd   :  { %v6170_v8 = vadd.f32 %v2222_v39, %v2221_v55  ;;  %v2218_v31 = vmul.f32 0.5, %v5040_v7 }
 0x7cf   :  { %5041 = vtanh.f32 %v6170_v8  ;;  %v2219_v52 = vadd.f32 0.5, %v2218_v31 }
 0x7d5   :  { %v5042_v49 = vpop.eup %5041 }
 0x7d6   :  { %v6173_v43 = vmul.f32 %v5042_v49, %v2219_v52 }
 0x7d8   :  { %v2234_v2 = vpack.c.bf16 %v6173_v43, %v6173_v43 }
 0x7da   :  { %2243 = vmatmul.bf16.vlgmr.msra.gmra.mxu0 %v2234_v2  ;;  %2256 = vmatmul.bf16.vlgmr.msra.gmra.mxu1 %v2234_v2 }
 0x7db   :  { %2269 = vmatmul.bf16.vlgmr.msra.gmra.mxu2 %v2234_v2  ;;  %2282 = vmatmul.bf16.vlgmr.msra.gmra.mxu3 %v2234_v2 }
 0x7dc   :  { %2403 = vmatpush.bf16.msra.mxu0 %v5777_v9  ;;  %2416 = vmatpush.bf16.msra.mxu1 %v5779_v22 }
 0x7dd   :  { %2429 = vmatpush.bf16.msra.mxu2 %v5781_v26  ;;  %2442 = vmatpush.bf16.msra.mxu3 %v5784_v62 }
 0x7e0   :  { %2404 = vmatpush.bf16.msra.mxu0 %v5788_v46  ;;  %2417 = vmatpush.bf16.msra.mxu1 %v5790_v48 }
 0x7e1   :  { %2430 = vmatpush.bf16.msra.mxu2 %v5793_v4  ;;  %2443 = vmatpush.bf16.msra.mxu3 %v5795_v36 }
 0x7e4   :  { %2405 = vmatpush.bf16.msra.mxu0 %v5798_v29  ;;  %2418 = vmatpush.bf16.msra.mxu1 %v5802_v23 }
 0x7e5   :  { %2431 = vmatpush.bf16.msra.mxu2 %v5804_v40  ;;  %2444 = vmatpush.bf16.msra.mxu3 %v5814_v0 }
 0x7e8   :  { %2406 = vmatpush.bf16.msra.mxu0 %v5817_v5  ;;  %2419 = vmatpush.bf16.msra.mxu1 %v5819_v28 }
 0x7e9   :  { %2432 = vmatpush.bf16.msra.mxu2 %v5821_v16  ;;  %2445 = vmatpush.bf16.msra.mxu3 %v5824_v37 }
 0x7ec   :  { %2407 = vmatpush.bf16.msra.mxu0 %v5828_v53  ;;  %2420 = vmatpush.bf16.msra.mxu1 %v5830_v59 }
 0x7ed   :  { %2433 = vmatpush.bf16.msra.mxu2 %v5837_v21  ;;  %2446 = vmatpush.bf16.msra.mxu3 %v5839_v42 }
 0x7f0   :  { %2408 = vmatpush.bf16.msra.mxu0 %v5842_v30  ;;  %2421 = vmatpush.bf16.msra.mxu1 %v5846_v58 }
 0x7f1   :  { %2434 = vmatpush.bf16.msra.mxu2 %v5848_v12  ;;  %2447 = vmatpush.bf16.msra.mxu3 %v5851_v24 }
 0x7f4   :  { %2409 = vmatpush.bf16.msra.mxu0 %v5856_v56  ;;  %2422 = vmatpush.bf16.msra.mxu1 %v5862_v50 }
 0x7f5   :  { %2435 = vmatpush.bf16.msra.mxu2 %v5864_v61  ;;  %2448 = vmatpush.bf16.msra.mxu3 %v5867_v45 }
 0x7f8   :  { %2410 = vmatpush.bf16.msra.mxu0 %v5870_v34  ;;  %2423 = vmatpush.bf16.msra.mxu1 %v5874_v3 }
 0x7f9   :  { %2436 = vmatpush.bf16.msra.mxu2 %v5876_v10  ;;  %2449 = vmatpush.bf16.msra.mxu3 %v5879_v57 }
 0x857   :  { %v2244_v13 = vpop.f32.mrf.mxu0  ;;  %v2257_v32 = vpop.f32.mrf.mxu1 }
 0x858   :  { %v2287_v27 = vadd.f32 %v2244_v13, %v1570_v25  ;;  %v2288_v15 = vadd.f32 %v2257_v32, %v1599_v1 }
 0x85a   :  { %v2291_v19 = vmul.f32 0.5, %v2287_v27  ;;  %v2295_v17 = vmul.f32 0.5, %v2288_v15 }
 0x85c   :  { %5043 = vtanh.f32 %v2291_v19 }
 0x85d   :  { %5045 = vtanh.f32 %v2295_v17 }
 0x85e   :  { %v2270_v35 = vpop.f32.mrf.mxu2  ;;  %v2283_v41 = vpop.f32.mrf.mxu3 }
 0x85f   :  { %v2289_v55 = vadd.f32 %v2270_v35, %v1628_v14  ;;  %v2290_v39 = vadd.f32 %v2283_v41, %v1657_v38  ;;  %v2246_v7 = vpop.f32.mrf.mxu0  ;;  %v2259_v31 = vpop.f32.mrf.mxu1 }
 0x861   :  { %5047 = vtanh.f32 %v2289_v55  ;;  %v2300_v52 = vmul.f32 0.5, %v2290_v39 }
 0x862   :  { %v5044_v49 = vpop.eup %5043 }
 0x863   :  { %v5046_v2 = vpop.eup %5045  ;;  %v2293_v20 = vmul.f32 0.5, %v5044_v49  ;;  %5049 = vtanh.f32 %v2300_v52 }
 0x864   :  { %v2297_v25 = vmul.f32 0.5, %v5046_v2  ;;  %v4539_v2 = vld [vmem:[#allocation6 + $0x2e0] sm:$0xf] }
 0x865   :  { %v2294_v51 = vadd.f32 0.5, %v2293_v20  ;;  %v4875_v20 = vld [vmem:[#allocation6 + $0x2ec] sm:$0xf0] }
 0x866   :  { %v2298_v1 = vadd.f32 0.5, %v2297_v25  ;;  %v2272_v13 = vpop.f32.mrf.mxu2  ;;  %v2285_v32 = vpop.f32.mrf.mxu3  ;;  %v4873_v25 = vld [vmem:[#allocation6 + $0x2e4] sm:$0xf] }
 0x867   :  { %v5048_v27 = vpop.eup %5047  ;;  %v4547_v13 = vld [vmem:[#allocation6 + $0x2e8] sm:$0xf]  ;;  %v4876_v32 = vld [vmem:[#allocation6 + $0x2f4] sm:$0xf0] }
 0x868   :  { %v2305_v15 = vmul.f32 %v2298_v1, %v6170_v8  ;;  %v2306_v19 = vmul.f32 %v5048_v27, %v2294_v51  ;;  %v4540_v51 = vor.u32 %v4875_v20, %v4539_v2  ;;  %v4541_v1 = vld [vmem:[#allocation6 + $0x2f0] sm:$0xf0]  ;;  %v4859_v2 = vld [vmem:[#allocation6 + $0x26c] sm:$0xf0]  ;;  %v4857_v20 = vld [vmem:[#allocation6 + $0x264] sm:$0xf] }
 0x869   :  { %v5050_v17 = vpop.eup %5049  ;;  %v4544_v27 = vor.u32 %v4873_v25, %v4541_v1 }
 0x86a   :  { %v6218_v54 = vadd.f32 %v2306_v19, %v2305_v15  ;;  %v2302_v14 = vmul.f32 0.5, %v5050_v17  ;;  %v4548_v15 = vor.u32 %v4876_v32, %v4547_v13  ;;  %v4874_v19 = vld [vmem:[#allocation6 + $0x2ec] sm:$0xf]  ;;  %v4549_v17 = vld [vmem:[#allocation6 + $0x2f8] sm:$0xf0] }
 0x86b   :  { %v4477_v13 = vld [vmem:[#allocation6 + $0x270] sm:$0xf0]  ;;  %v4483_v32 = vld [vmem:[#allocation6 + $0x268] sm:$0xf] }
 0x86c   :  { %5051 = vtanh.f32 %v6218_v54  ;;  %v2303_v33 = vadd.f32 0.5, %v2302_v14  ;;  %v4523_v14 = vld [vmem:[#allocation6 + $0x2c0] sm:$0xf] }
 0x872   :  { %v5052_v38 = vpop.eup %5051 }
 0x873   :  { %v6221_v35 = vmul.f32 %v5052_v38, %v2303_v33  ;;  %v4871_v33 = vld [vmem:[#allocation6 + $0x2cc] sm:$0xf0]  ;;  %v4869_v38 = vld [vmem:[#allocation6 + $0x2c4] sm:$0xf] }
 0x875   :  { %v2318_v41 = vpack.c.bf16 %v6221_v35, %v6221_v35 }
 0x877   :  { %2327 = vmatmul.bf16.vlgmr.msrb.gmra.mxu0 %v2318_v41  ;;  %2340 = vmatmul.bf16.vlgmr.msrb.gmra.mxu1 %v2318_v41 }
 0x878   :  { %2353 = vmatmul.bf16.vlgmr.msrb.gmra.mxu2 %v2318_v41  ;;  %2366 = vmatmul.bf16.vlgmr.msrb.gmra.mxu3 %v2318_v41  ;;  %v4524_v41 = vor.u32 %v4871_v33, %v4523_v14  ;;  %v4858_v14 = vld [vmem:[#allocation6 + $0x26c] sm:$0xf]  ;;  %v4485_v33 = vld [vmem:[#allocation6 + $0x278] sm:$0xf0] }
 0x879   :  { %2487 = vmatpush.bf16.msrb.mxu0 %v5777_v9  ;;  %2500 = vmatpush.bf16.msrb.mxu1 %v5779_v22  ;;  %v6891_v9 = vld [vmem:[#allocation22_spill] sm:$0xff] }
 0x87a   :  { %2513 = vmatpush.bf16.msrb.mxu2 %v5781_v26  ;;  %2526 = vmatpush.bf16.msrb.mxu3 %v5784_v62  ;;  %v1572_v22 = vadd.f32 %v6891_v9, %v6010_v60  ;;  %v6892_v26 = vld [vmem:[#allocation23_spill] sm:$0xff]  ;;  %v4525_v9 = vld [vmem:[#allocation6 + $0x2d0] sm:$0xf0] }
 0x87b   :  { %v1601_v62 = vadd.f32 %v6892_v26, %v6012_v63  ;;  %v4872_v26 = vld [vmem:[#allocation6 + $0x2d4] sm:$0xf0] }
 0x87d   :  { %2488 = vmatpush.bf16.msrb.mxu0 %v5788_v46  ;;  %2501 = vmatpush.bf16.msrb.mxu1 %v5790_v48 }
 0x87e   :  { %2514 = vmatpush.bf16.msrb.mxu2 %v5793_v4  ;;  %2527 = vmatpush.bf16.msrb.mxu3 %v5795_v36 }
 0x881   :  { %2489 = vmatpush.bf16.msrb.mxu0 %v5798_v29  ;;  %2502 = vmatpush.bf16.msrb.mxu1 %v5802_v23 }
 0x882   :  { %2515 = vmatpush.bf16.msrb.mxu2 %v5804_v40  ;;  %2528 = vmatpush.bf16.msrb.mxu3 %v5814_v0  ;;  %v6893_v40 = vld [vmem:[#allocation24_spill] sm:$0xff] }
 0x883   :  { %v1630_v0 = vadd.f32 %v6893_v40, %v6020_v6  ;;  %v4865_v40 = vld [vmem:[#allocation6 + $0x2a4] sm:$0xf] }
 0x885   :  { %2490 = vmatpush.bf16.msrb.mxu0 %v5817_v5  ;;  %2503 = vmatpush.bf16.msrb.mxu1 %v5819_v28  ;;  %v6894_v5 = vld [vmem:[#allocation25_spill] sm:$0xff] }
 0x886   :  { %2516 = vmatpush.bf16.msrb.mxu2 %v5821_v16  ;;  %2529 = vmatpush.bf16.msrb.mxu3 %v5824_v37  ;;  %v1659_v28 = vadd.f32 %v6894_v5, %v6022_v18  ;;  %v4509_v5 = vld [vmem:[#allocation6 + $0x2b0] sm:$0xf0] }
 0x889   :  { %2491 = vmatpush.bf16.msrb.mxu0 %v5828_v53  ;;  %2504 = vmatpush.bf16.msrb.mxu1 %v5830_v59 }
 0x88a   :  { %2517 = vmatpush.bf16.msrb.mxu2 %v5837_v21  ;;  %2530 = vmatpush.bf16.msrb.mxu3 %v5839_v42 }
 0x88d   :  { %2492 = vmatpush.bf16.msrb.mxu0 %v5842_v30  ;;  %2505 = vmatpush.bf16.msrb.mxu1 %v5846_v58 }
 0x88e   :  { %2518 = vmatpush.bf16.msrb.mxu2 %v5848_v12  ;;  %2531 = vmatpush.bf16.msrb.mxu3 %v5851_v24 }
 0x891   :  { %2493 = vmatpush.bf16.msrb.mxu0 %v5856_v56  ;;  %2506 = vmatpush.bf16.msrb.mxu1 %v5862_v50 }
 0x892   :  { %2519 = vmatpush.bf16.msrb.mxu2 %v5864_v61  ;;  %2532 = vmatpush.bf16.msrb.mxu3 %v5867_v45 }
 0x895   :  { %2494 = vmatpush.bf16.msrb.mxu0 %v5870_v34  ;;  %2507 = vmatpush.bf16.msrb.mxu1 %v5874_v3 }
 0x896   :  { %2520 = vmatpush.bf16.msrb.mxu2 %v5876_v10  ;;  %2533 = vmatpush.bf16.msrb.mxu3 %v5879_v57 }
 0x8f4   :  { %v2328_v46 = vpop.f32.mrf.mxu0  ;;  %v2341_v48 = vpop.f32.mrf.mxu1 }
 0x8f5   :  { %v2371_v4 = vadd.f32 %v2328_v46, %v1572_v22  ;;  %v2372_v36 = vadd.f32 %v2341_v48, %v1601_v62  ;;  %v4531_v22 = vld [vmem:[#allocation6 + $0x2c8] sm:$0xf]  ;;  %v4528_v62 = vor.u32 %v4869_v38, %v4525_v9  ;;  %v4870_v48 = vld [vmem:[#allocation6 + $0x2cc] sm:$0xf]  ;;  %v4459_v38 = vld [vmem:[#allocation6 + $0x240] sm:$0xf] }
 0x8f6   :  { %v4532_v46 = vor.u32 %v4872_v26, %v4531_v22  ;;  %v4855_v9 = vld [vmem:[#allocation6 + $0x24c] sm:$0xf0]  ;;  %v4853_v22 = vld [vmem:[#allocation6 + $0x244] sm:$0xf]  ;;  %v4461_v26 = vld [vmem:[#allocation6 + $0x250] sm:$0xf0] }
 0x8f7   :  { %v2375_v29 = vmul.f32 0.5, %v2371_v4  ;;  %v2379_v23 = vmul.f32 0.5, %v2372_v36  ;;  %v4533_v4 = vld [vmem:[#allocation6 + $0x2d8] sm:$0xf0] }
 0x8f8   :  { %v4536_v36 = vor.u32 %v4870_v48, %v4533_v4  ;;  %v4460_v48 = vor.u32 %v4855_v9, %v4459_v38  ;;  %v4464_v4 = vor.u32 %v4853_v22, %v4461_v26 }
 0x8f9   :  { %5053 = vtanh.f32 %v2375_v29  ;;  %v4507_v29 = vld [vmem:[#allocation6 + $0x2a0] sm:$0xf] }
 0x8fa   :  { %5055 = vtanh.f32 %v2379_v23  ;;  %v4867_v23 = vld [vmem:[#allocation6 + $0x2ac] sm:$0xf0] }
 0x8fb   :  { %v2354_v16 = vpop.f32.mrf.mxu2  ;;  %v2367_v37 = vpop.f32.mrf.mxu3 }
 0x8fc   :  { %v2373_v53 = vadd.f32 %v2354_v16, %v1630_v0  ;;  %v2374_v59 = vadd.f32 %v2367_v37, %v1659_v28  ;;  %v2330_v21 = vpop.f32.mrf.mxu0  ;;  %v2343_v42 = vpop.f32.mrf.mxu1  ;;  %v4508_v0 = vor.u32 %v4867_v23, %v4507_v29  ;;  %v4515_v28 = vld [vmem:[#allocation6 + $0x2a8] sm:$0xf]  ;;  %v4868_v16 = vld [vmem:[#allocation6 + $0x2b4] sm:$0xf0]  ;;  %v4512_v37 = vor.u32 %v4865_v40, %v4509_v5  ;;  %v4854_v40 = vld [vmem:[#allocation6 + $0x24c] sm:$0xf] }
 0x8fd   :  { %v4517_v21 = vld [vmem:[#allocation6 + $0x2b8] sm:$0xf0]  ;;  %v4856_v29 = vld [vmem:[#allocation6 + $0x254] sm:$0xf0]  ;;  %v4443_v5 = vld [vmem:[#allocation6 + $0x220] sm:$0xf] }
 0x8fe   :  { %5057 = vtanh.f32 %v2373_v53  ;;  %v2384_v30 = vmul.f32 0.5, %v2374_v59  ;;  %v4516_v53 = vor.u32 %v4868_v16, %v4515_v28  ;;  %v4866_v59 = vld [vmem:[#allocation6 + $0x2ac] sm:$0xf]  ;;  %v4851_v16 = vld [vmem:[#allocation6 + $0x22c] sm:$0xf0] }
 0x8ff   :  { %v5054_v58 = vpop.eup %5053  ;;  %v4520_v42 = vor.u32 %v4866_v59, %v4517_v21  ;;  %v6897_v59 = vld [vmem:[#allocation29_spill] sm:$0xff] }
 0x900   :  { %v5056_v12 = vpop.eup %5055  ;;  %v2377_v24 = vmul.f32 0.5, %v5054_v58  ;;  %5059 = vtanh.f32 %v2384_v30  ;;  %v4491_v30 = vld [vmem:[#allocation6 + $0x280] sm:$0xf]  ;;  %v4863_v58 = vld [vmem:[#allocation6 + $0x28c] sm:$0xf0]  ;;  %v1633_v21 = vadd.f32 %v6897_v59, %v6020_v6 }
 0x901   :  { %v2381_v56 = vmul.f32 0.5, %v5056_v12  ;;  %v4861_v12 = vld [vmem:[#allocation6 + $0x284] sm:$0xf]  ;;  %v4669_v59 = vld [vmem:[#allocation8 + $0x2f0] sm:$0xf0] }
 0x902   :  { %v2378_v50 = vadd.f32 0.5, %v2377_v24  ;;  %v4492_v24 = vor.u32 %v4863_v58, %v4491_v30  ;;  %v4444_v58 = vor.u32 %v4851_v16, %v4443_v5  ;;  %v4907_v16 = vld [vmem:[#allocation8 + $0x2ec] sm:$0xf0] }
 0x903   :  { %v2382_v61 = vadd.f32 0.5, %v2381_v56  ;;  %v2356_v45 = vpop.f32.mrf.mxu2  ;;  %v2369_v34 = vpop.f32.mrf.mxu3  ;;  %v4493_v56 = vld [vmem:[#allocation6 + $0x290] sm:$0xf0] }
 0x904   :  { %v5058_v3 = vpop.eup %5057  ;;  %v4496_v45 = vor.u32 %v4861_v12, %v4493_v56  ;;  %v4451_v12 = vld [vmem:[#allocation6 + $0x228] sm:$0xf]  ;;  %v4850_v56 = vld [vmem:[#allocation6 + $0x22c] sm:$0xf] }
 0x905   :  { %v2389_v10 = vmul.f32 %v2382_v61, %v6218_v54  ;;  %v2390_v57 = vmul.f32 %v5058_v3, %v2378_v50  ;;  %v4552_v54 = vor.u32 %v4874_v19, %v4549_v17  ;;  %v4499_v50 = vld [vmem:[#allocation6 + $0x288] sm:$0xf]  ;;  %v4864_v61 = vld [vmem:[#allocation6 + $0x294] sm:$0xf0]  ;;  %v4862_v3 = vld [vmem:[#allocation6 + $0x28c] sm:$0xf]  ;;  %v4480_v17 = vor.u32 %v4857_v20, %v4477_v13 }
 0x906   :  { %v5060_v8 = vpop.eup %5059  ;;  %v4500_v34 = vor.u32 %v4864_v61, %v4499_v50  ;;  %v4429_v20 = vld [vmem:[#allocation6 + $0x210] sm:$0xf0]  ;;  %v4437_v13 = vld [vmem:[#allocation6 + $0x218] sm:$0xf0] }
 0x907   :  { %v6266_v55 = vadd.f32 %v2390_v57, %v2389_v10  ;;  %v2386_v39 = vmul.f32 0.5, %v5060_v8  ;;  %v4501_v10 = vld [vmem:[#allocation6 + $0x298] sm:$0xf0]  ;;  %v6895_v8 = vld [vmem:[#allocation26_spill] sm:$0xff] }
 0x908   :  { %v4504_v57 = vor.u32 %v4862_v3, %v4501_v10  ;;  %v4453_v3 = vld [vmem:[#allocation6 + $0x238] sm:$0xf0]  ;;  %v4427_v10 = vld [vmem:[#allocation6 + $0x200] sm:$0xf] }
 0x909   :  { %5061 = vtanh.f32 %v6266_v55  ;;  %v2387_v7 = vadd.f32 0.5, %v2386_v39  ;;  %v1575_v39 = vadd.f32 %v6895_v8, %v6010_v60 }
 0x90f   :  { %v5062_v31 = vpop.eup %5061 }
 0x910   :  { %v6269_v52 = vmul.f32 %v5062_v31, %v2387_v7  ;;  %v6896_v7 = vld [vmem:[#allocation27_spill] sm:$0xff] }
 0x911   :  { %v1604_v31 = vadd.f32 %v6896_v7, %v6012_v63 }
 0x912   :  { %v2402_v49 = vpack.c.bf16 %v6269_v52, %v6269_v52 }
 0x914   :  { %2411 = vmatmul.bf16.vlgmr.msra.gmra.mxu0 %v2402_v49  ;;  %2424 = vmatmul.bf16.vlgmr.msra.gmra.mxu1 %v2402_v49 }
 0x915   :  { %2437 = vmatmul.bf16.vlgmr.msra.gmra.mxu2 %v2402_v49  ;;  %2450 = vmatmul.bf16.vlgmr.msra.gmra.mxu3 %v2402_v49  ;;  %v4475_v49 = vld [vmem:[#allocation6 + $0x260] sm:$0xf] }
 0x916   :  { %2781 = vmatpush.bf16.msra.mxu0 %v4540_v51  ;;  %2810 = vmatpush.bf16.msra.mxu1 %v4544_v27  ;;  %v4476_v1 = vor.u32 %v4859_v2, %v4475_v49  ;;  %v4860_v27 = vld [vmem:[#allocation6 + $0x274] sm:$0xf0]  ;;  %v4456_v49 = vor.u32 %v4850_v56, %v4453_v3  ;;  %v4845_v2 = vld [vmem:[#allocation6 + $0x204] sm:$0xf]  ;;  %v4651_v56 = vld [vmem:[#allocation8 + $0x2c0] sm:$0xf] }
 0x917   :  { %2839 = vmatpush.bf16.msra.mxu2 %v4548_v15  ;;  %2868 = vmatpush.bf16.msra.mxu3 %v4552_v54  ;;  %v4484_v54 = vor.u32 %v4860_v27, %v4483_v32  ;;  %v4659_v3 = vld [vmem:[#allocation8 + $0x2c8] sm:$0xf] }
 0x91a   :  { %2782 = vmatpush.bf16.msra.mxu0 %v4524_v41  ;;  %2811 = vmatpush.bf16.msra.mxu1 %v4528_v62  ;;  %v4488_v41 = vor.u32 %v4858_v14, %v4485_v33 }
 0x91b   :  { %2840 = vmatpush.bf16.msra.mxu2 %v4532_v46  ;;  %2869 = vmatpush.bf16.msra.mxu3 %v4536_v36  ;;  %v4467_v36 = vld [vmem:[#allocation6 + $0x248] sm:$0xf] }
 0x91c   :  { %v4468_v23 = vor.u32 %v4856_v29, %v4467_v36 }
 0x91e   :  { %2783 = vmatpush.bf16.msra.mxu0 %v4508_v0  ;;  %2812 = vmatpush.bf16.msra.mxu1 %v4512_v37  ;;  %v4469_v0 = vld [vmem:[#allocation6 + $0x258] sm:$0xf0]  ;;  %v4849_v37 = vld [vmem:[#allocation6 + $0x224] sm:$0xf] }
 0x91f   :  { %2841 = vmatpush.bf16.msra.mxu2 %v4516_v53  ;;  %2870 = vmatpush.bf16.msra.mxu3 %v4520_v42  ;;  %v4472_v28 = vor.u32 %v4854_v40, %v4469_v0  ;;  %v4445_v53 = vld [vmem:[#allocation6 + $0x230] sm:$0xf0]  ;;  %v6898_v42 = vld [vmem:[#allocation28_spill] sm:$0xff] }
 0x920   :  { %v1662_v30 = vadd.f32 %v6898_v42, %v6022_v18  ;;  %v4908_v42 = vld [vmem:[#allocation8 + $0x2f4] sm:$0xf0] }
 0x922   :  { %2784 = vmatpush.bf16.msra.mxu0 %v4492_v24  ;;  %2813 = vmatpush.bf16.msra.mxu1 %v4496_v45  ;;  %v4852_v24 = vld [vmem:[#allocation6 + $0x234] sm:$0xf0]  ;;  %v4448_v45 = vor.u32 %v4849_v37, %v4445_v53  ;;  %v4905_v37 = vld [vmem:[#allocation8 + $0x2e4] sm:$0xf] }
 0x923   :  { %2842 = vmatpush.bf16.msra.mxu2 %v4500_v34  ;;  %2871 = vmatpush.bf16.msra.mxu3 %v4504_v57  ;;  %v4452_v34 = vor.u32 %v4852_v24, %v4451_v12  ;;  %v4847_v57 = vld [vmem:[#allocation6 + $0x20c] sm:$0xf0]  ;;  %v4906_v12 = vld [vmem:[#allocation8 + $0x2ec] sm:$0xf]  ;;  %v4677_v24 = vld [vmem:[#allocation8 + $0x2f8] sm:$0xf0] }
 0x924   :  { %v4428_v27 = vor.u32 %v4847_v57, %v4427_v10  ;;  %v4904_v10 = vld [vmem:[#allocation8 + $0x2d4] sm:$0xf0]  ;;  %v4902_v57 = vld [vmem:[#allocation8 + $0x2cc] sm:$0xf] }
 0x926   :  { %2785 = vmatpush.bf16.msra.mxu0 %v4476_v1  ;;  %2814 = vmatpush.bf16.msra.mxu1 %v4480_v17  ;;  %v4846_v1 = vld [vmem:[#allocation6 + $0x20c] sm:$0xf] }
 0x927   :  { %2843 = vmatpush.bf16.msra.mxu2 %v4484_v54  ;;  %2872 = vmatpush.bf16.msra.mxu3 %v4488_v41  ;;  %v4440_v33 = vor.u32 %v4846_v1, %v4437_v13  ;;  %v4900_v1 = vld [vmem:[#allocation8 + $0x2b4] sm:$0xf0] }
 0x92a   :  { %2786 = vmatpush.bf16.msra.mxu0 %v4460_v48  ;;  %2815 = vmatpush.bf16.msra.mxu1 %v4464_v4 }
 0x92b   :  { %2844 = vmatpush.bf16.msra.mxu2 %v4468_v23  ;;  %2873 = vmatpush.bf16.msra.mxu3 %v4472_v28  ;;  %v4667_v28 = vld [vmem:[#allocation8 + $0x2e0] sm:$0xf] }
 0x92c   :  { %v6291_v53 = vor.u32 %v4907_v16, %v4667_v28  ;;  %v4890_v28 = vld [vmem:[#allocation8 + $0x26c] sm:$0xf]  ;;  %v6899_v16 = vld [vmem:[#allocation30_spill] sm:$0xff] }
 0x92e   :  { %2787 = vmatpush.bf16.msra.mxu0 %v4444_v58  ;;  %2816 = vmatpush.bf16.msra.mxu1 %v4448_v45 }
 0x92f   :  { %2845 = vmatpush.bf16.msra.mxu2 %v4452_v34  ;;  %2874 = vmatpush.bf16.msra.mxu3 %v4456_v49 }
 0x932   :  { %2788 = vmatpush.bf16.msra.mxu0 %v4428_v27  ;;  %v2574_v27 = vpack.c.bf16 %v6173_v43, %v6125_v44  ;;  %v4893_v44 = vld [vmem:[#allocation8 + $0x284] sm:$0xf] }
 0x933   :  { %2875 = vmatpush.bf16.msra.mxu3 %v4440_v33  ;;  %v4895_v33 = vld [vmem:[#allocation8 + $0x28c] sm:$0xf0] }
 0x991   :  { %v2412_v25 = vpop.f32.mrf.mxu0  ;;  %v2425_v51 = vpop.f32.mrf.mxu1 }
 0x992   :  { %v2455_v15 = vadd.f32 %v2412_v25, %v1575_v39  ;;  %v2456_v19 = vadd.f32 %v2425_v51, %v1604_v31  ;;  %v4435_v25 = vld [vmem:[#allocation6 + $0x208] sm:$0xf]  ;;  %v4848_v51 = vld [vmem:[#allocation6 + $0x214] sm:$0xf0] }
 0x993   :  { %v4436_v17 = vor.u32 %v4848_v51, %v4435_v25  ;;  %v4643_v25 = vld [vmem:[#allocation8 + $0x2a8] sm:$0xf] }
 0x994   :  { %v2459_v62 = vmul.f32 0.5, %v2455_v15  ;;  %v2463_v46 = vmul.f32 0.5, %v2456_v19  ;;  %v4432_v19 = vor.u32 %v4845_v2, %v4429_v20  ;;  %v4897_v2 = vld [vmem:[#allocation8 + $0x2a4] sm:$0xf]  ;;  %v4637_v20 = vld [vmem:[#allocation8 + $0x2b0] sm:$0xf0] }
 0x995   :  { %2846 = vmatpush.bf16.msra.mxu2 %v4436_v17  ;;  %v6316_v13 = vor.u32 %v4897_v2, %v4637_v20  ;;  %v4645_v17 = vld [vmem:[#allocation8 + $0x2b8] sm:$0xf0] }
 0x996   :  { %5063 = vtanh.f32 %v2459_v62  ;;  %2817 = vmatpush.bf16.msra.mxu1 %v4432_v19  ;;  %v4898_v19 = vld [vmem:[#allocation8 + $0x2ac] sm:$0xf]  ;;  %v4597_v2 = vld [vmem:[#allocation8 + $0x258] sm:$0xf0] }
 0x997   :  { %5065 = vtanh.f32 %v2463_v46 }
 0x998   :  { %v2438_v50 = vpop.f32.mrf.mxu2  ;;  %v2451_v61 = vpop.f32.mrf.mxu3 }
 0x999   :  { %v2457_v8 = vadd.f32 %v2438_v50, %v1633_v21  ;;  %v2458_v39 = vadd.f32 %v2451_v61, %v1662_v30  ;;  %v2414_v7 = vpop.f32.mrf.mxu0  ;;  %v2427_v31 = vpop.f32.mrf.mxu1  ;;  %v4675_v21 = vld [vmem:[#allocation8 + $0x2e8] sm:$0xf]  ;;  %v6293_v30 = vor.u32 %v4905_v37, %v4669_v59  ;;  %v4901_v50 = vld [vmem:[#allocation8 + $0x2c4] sm:$0xf]  ;;  %v4653_v61 = vld [vmem:[#allocation8 + $0x2d0] sm:$0xf0]  ;;  %v1577_v37 = vadd.f32 %v6899_v16, %v6010_v60 }
 0x99a   :  { %v6295_v58 = vor.u32 %v4908_v42, %v4675_v21  ;;  %v6304_v34 = vor.u32 %v4901_v50, %v4653_v61  ;;  %v4635_v7 = vld [vmem:[#allocation8 + $0x2a0] sm:$0xf]  ;;  %v4899_v31 = vld [vmem:[#allocation8 + $0x2ac] sm:$0xf0]  ;;  %v6900_v59 = vld [vmem:[#allocation31_spill] sm:$0xff] }
 0x99b   :  { %5067 = vtanh.f32 %v2457_v8  ;;  %v2468_v32 = vmul.f32 0.5, %v2458_v39  ;;  %v6307_v8 = vor.u32 %v4904_v10, %v4659_v3  ;;  %v4661_v39 = vld [vmem:[#allocation8 + $0x2d8] sm:$0xf0]  ;;  %v6312_v51 = vor.u32 %v4899_v31, %v4635_v7  ;;  %v4885_v3 = vld [vmem:[#allocation8 + $0x244] sm:$0xf] }
 0x99c   :  { %v5064_v15 = vpop.eup %5063  ;;  %v6309_v49 = vor.u32 %v4902_v57, %v4661_v39  ;;  %v1606_v21 = vadd.f32 %v6900_v59, %v6012_v63  ;;  %v4589_v10 = vld [vmem:[#allocation8 + $0x250] sm:$0xf0]  ;;  %v4595_v57 = vld [vmem:[#allocation8 + $0x248] sm:$0xf]  ;;  %v4888_v63 = vld [vmem:[#allocation8 + $0x254] sm:$0xf0] }
 0x99d   :  { %v5066_v54 = vpop.eup %5065  ;;  %v2461_v14 = vmul.f32 0.5, %v5064_v15  ;;  %5069 = vtanh.f32 %v2468_v32  ;;  %v6318_v32 = vor.u32 %v4900_v1, %v4643_v25  ;;  %v2575_v15 = vpack.c.bf16 %v6269_v52, %v6221_v35  ;;  %v4894_v52 = vld [vmem:[#allocation8 + $0x28c] sm:$0xf]  ;;  %v4571_v1 = vld [vmem:[#allocation8 + $0x220] sm:$0xf] }
 0x99e   :  { %v2465_v38 = vmul.f32 0.5, %v5066_v54  ;;  %v6328_v54 = vor.u32 %v4898_v19, %v4645_v17  ;;  %v4886_v31 = vld [vmem:[#allocation8 + $0x24c] sm:$0xf]  ;;  %v6360_v20 = vor.u32 %v4885_v3, %v4589_v10  ;;  %v6362_v25 = vor.u32 %v4888_v63, %v4595_v57  ;;  %v4880_v3 = vld [vmem:[#allocation8 + $0x214] sm:$0xf0] }
 0x99f   :  { %v2462_v41 = vadd.f32 0.5, %v2461_v14  ;;  %v4619_v14 = vld [vmem:[#allocation8 + $0x280] sm:$0xf]  ;;  %v4565_v63 = vld [vmem:[#allocation8 + $0x218] sm:$0xf0] }
 0x9a0   :  { %v2466_v9 = vadd.f32 0.5, %v2465_v38  ;;  %v2440_v22 = vpop.f32.mrf.mxu2  ;;  %v2453_v26 = vpop.f32.mrf.mxu3  ;;  %v6331_v43 = vor.u32 %v4895_v33, %v4619_v14  ;;  %v4621_v38 = vld [vmem:[#allocation8 + $0x290] sm:$0xf0]  ;;  %v6365_v14 = vor.u32 %v4886_v31, %v4597_v2 }
 0x9a1   :  { %v5068_v62 = vpop.eup %5067  ;;  %v6333_v22 = vor.u32 %v4893_v44, %v4621_v38  ;;  %v4629_v26 = vld [vmem:[#allocation8 + $0x298] sm:$0xf0]  ;;  %v4573_v33 = vld [vmem:[#allocation8 + $0x230] sm:$0xf0]  ;;  %v4579_v44 = vld [vmem:[#allocation8 + $0x228] sm:$0xf] }
 0x9a2   :  { %v2473_v46 = vmul.f32 %v2466_v9, %v6266_v55  ;;  %v2474_v48 = vmul.f32 %v5068_v62, %v2462_v41  ;;  %v2573_v55 = vpack.c.bf16 %v6077_v47, %v6029_v11  ;;  %v6298_v11 = vor.u32 %v4906_v12, %v4677_v24  ;;  %v4903_v47 = vld [vmem:[#allocation8 + $0x2cc] sm:$0xf0]  ;;  %v4627_v41 = vld [vmem:[#allocation8 + $0x288] sm:$0xf]  ;;  %v4896_v9 = vld [vmem:[#allocation8 + $0x294] sm:$0xf0] }
 0x9a3   :  { %v5070_v4 = vpop.eup %5069  ;;  %v6302_v45 = vor.u32 %v4903_v47, %v4651_v56  ;;  %v6335_v35 = vor.u32 %v4896_v9, %v4627_v41  ;;  %v4603_v62 = vld [vmem:[#allocation8 + $0x260] sm:$0xf]  ;;  %v4613_v12 = vld [vmem:[#allocation8 + $0x278] sm:$0xf0]  ;;  %v4887_v56 = vld [vmem:[#allocation8 + $0x24c] sm:$0xf0] }
 0x9a4   :  { %v6282_v36 = vadd.f32 %v2474_v48, %v2473_v46  ;;  %v2470_v29 = vmul.f32 0.5, %v5070_v4  ;;  %v6338_v46 = vor.u32 %v4894_v52, %v4629_v26  ;;  %v4891_v48 = vld [vmem:[#allocation8 + $0x26c] sm:$0xf0]  ;;  %v4889_v4 = vld [vmem:[#allocation8 + $0x264] sm:$0xf]  ;;  %v6353_v61 = vor.u32 %v4890_v28, %v4613_v12 }
 0x9a5   :  { %v4587_v24 = vld [vmem:[#allocation8 + $0x240] sm:$0xf]  ;;  %v4884_v38 = vld [vmem:[#allocation8 + $0x234] sm:$0xf0]  ;;  %v4882_v41 = vld [vmem:[#allocation8 + $0x22c] sm:$0xf] }
 0x9a6   :  { %5071 = vtanh.f32 %v6282_v36  ;;  %v2471_v23 = vadd.f32 0.5, %v2470_v29  ;;  %v4605_v29 = vld [vmem:[#allocation8 + $0x270] sm:$0xf0]  ;;  %v6356_v60 = vor.u32 %v4887_v56, %v4587_v24  ;;  %v4581_v9 = vld [vmem:[#allocation8 + $0x238] sm:$0xf0]  ;;  %v6901_v52 = vld [vmem:[#allocation32_spill] sm:$0xff] }
 0x9a7   :  { %v1635_v26 = vadd.f32 %v6901_v52, %v6020_v6  ;;  %v6381_v6 = vor.u32 %v4882_v41, %v4581_v9  ;;  %v4879_v12 = vld [vmem:[#allocation8 + $0x20c] sm:$0xf0]  ;;  %v4877_v24 = vld [vmem:[#allocation8 + $0x204] sm:$0xf] }
 0x9ac   :  { %v5072_v40 = vpop.eup %5071 }
 0x9ad   :  { %v6285_v0 = vmul.f32 %v5072_v40, %v2471_v23  ;;  %v6342_v23 = vor.u32 %v4891_v48, %v4603_v62  ;;  %v6344_v40 = vor.u32 %v4889_v4, %v4605_v29  ;;  %v6902_v48 = vld [vmem:[#allocation33_spill] sm:$0xff] }
 0x9ae   :  { %v1664_v4 = vadd.f32 %v6902_v48, %v6022_v18  ;;  %v4555_v18 = vld [vmem:[#allocation8 + $0x200] sm:$0xf] }
 0x9af   :  { %v2486_v5 = vpack.c.bf16 %v6285_v0, %v6285_v0  ;;  %v6384_v56 = vor.u32 %v4879_v12, %v4555_v18 }
 0x9b1   :  { %2495 = vmatmul.bf16.vlgmr.msrb.gmra.mxu0 %v2486_v5  ;;  %2508 = vmatmul.bf16.vlgmr.msrb.gmra.mxu1 %v2486_v5 }
 0x9b2   :  { %2521 = vmatmul.bf16.vlgmr.msrb.gmra.mxu2 %v2486_v5  ;;  %2534 = vmatmul.bf16.vlgmr.msrb.gmra.mxu3 %v2486_v5  ;;  %v4611_v5 = vld [vmem:[#allocation8 + $0x268] sm:$0xf] }
 0x9b3   :  { %3130 = vmatpush.bf16.msrb.mxu0 %v6291_v53  ;;  %3143 = vmatpush.bf16.msrb.mxu1 %v6293_v30 }
 0x9b4   :  { %3156 = vmatpush.bf16.msrb.mxu2 %v6295_v58  ;;  %3169 = vmatpush.bf16.msrb.mxu3 %v6298_v11 }
 0x9b7   :  { %3131 = vmatpush.bf16.msrb.mxu0 %v6302_v45  ;;  %3144 = vmatpush.bf16.msrb.mxu1 %v6304_v34 }
 0x9b8   :  { %3157 = vmatpush.bf16.msrb.mxu2 %v6307_v8  ;;  %3170 = vmatpush.bf16.msrb.mxu3 %v6309_v49 }
 0x9bb   :  { %3132 = vmatpush.bf16.msrb.mxu0 %v6312_v51  ;;  %3145 = vmatpush.bf16.msrb.mxu1 %v6316_v13 }
 0x9bc   :  { %3158 = vmatpush.bf16.msrb.mxu2 %v6318_v32  ;;  %3171 = vmatpush.bf16.msrb.mxu3 %v6328_v54 }
 0x9bf   :  { %3133 = vmatpush.bf16.msrb.mxu0 %v6331_v43  ;;  %3146 = vmatpush.bf16.msrb.mxu1 %v6333_v22 }
 0x9c0   :  { %3159 = vmatpush.bf16.msrb.mxu2 %v6335_v35  ;;  %3172 = vmatpush.bf16.msrb.mxu3 %v6338_v46 }
 0x9c1   :  { %2789 = vmatmul.bf16.vlgmr.msra.gmra.mxu0 %v2573_v55  ;;  %2818 = vmatmul.bf16.vlgmr.msra.gmra.mxu1 %v2573_v55 }
 0x9c2   :  { %2847 = vmatmul.bf16.vlgmr.msra.gmra.mxu2 %v2573_v55  ;;  %2876 = vmatmul.bf16.vlgmr.msra.gmra.mxu3 %v2573_v55  ;;  %v4892_v55 = vld [vmem:[#allocation8 + $0x274] sm:$0xf0] }
 0x9c3   :  { %v6351_v42 = vor.u32 %v4892_v55, %v4611_v5  ;;  %3134 = vmatpush.bf16.msrb.mxu0 %v6342_v23  ;;  %3147 = vmatpush.bf16.msrb.mxu1 %v6344_v40  ;;  %v6378_v5 = vor.u32 %v4884_v38, %v4579_v44 }
 0x9c4   :  { %3173 = vmatpush.bf16.msrb.mxu3 %v6353_v61 }
 0x9c5   :  { %3160 = vmatpush.bf16.msrb.mxu2 %v6351_v42 }
 0x9c7   :  { %3135 = vmatpush.bf16.msrb.mxu0 %v6356_v60  ;;  %3148 = vmatpush.bf16.msrb.mxu1 %v6360_v20 }
 0x9c8   :  { %3174 = vmatpush.bf16.msrb.mxu3 %v6365_v14 }
 0x9c9   :  { %3161 = vmatpush.bf16.msrb.mxu2 %v6362_v25 }
 0x9cc   :  { %3175 = vmatpush.bf16.msrb.mxu3 %v6381_v6 }
 0x9cd   :  { %3162 = vmatpush.bf16.msrb.mxu2 %v6378_v5 }
 0x9d1   :  { %2794 = vmatmul.bf16.gmra.mxu0 %v2574_v27  ;;  %2823 = vmatmul.bf16.gmra.mxu1 %v2574_v27 }
 0x9d2   :  { %2852 = vmatmul.bf16.gmra.mxu2 %v2574_v27  ;;  %2881 = vmatmul.bf16.gmra.mxu3 %v2574_v27  ;;  %v4883_v27 = vld [vmem:[#allocation8 + $0x22c] sm:$0xf0] }
 0x9d3   :  { %v6370_v62 = vor.u32 %v4883_v27, %v4571_v1 }
 0x9d5   :  { %3136 = vmatpush.bf16.msrb.mxu0 %v6370_v62 }
 0x9d9   :  { %3137 = vmatpush.bf16.msrb.mxu0 %v6384_v56 }
 0x9dd   :  { %3213 = vmatpush.bf16.msra.mxu0 %v6291_v53 }
 0x9e1   :  { %2799 = vmatmul.bf16.gmra.mxu0 %v2575_v15  ;;  %2828 = vmatmul.bf16.gmra.mxu1 %v2575_v15 }
 0x9e2   :  { %2857 = vmatmul.bf16.gmra.mxu2 %v2575_v15  ;;  %2886 = vmatmul.bf16.gmra.mxu3 %v2575_v15  ;;  %v4881_v15 = vld [vmem:[#allocation8 + $0x224] sm:$0xf] }
 0x9e3   :  { %v6376_v29 = vor.u32 %v4881_v15, %v4573_v33  ;;  %3214 = vmatpush.bf16.msra.mxu0 %v6302_v45 }
 0x9e5   :  { %3149 = vmatpush.bf16.msrb.mxu1 %v6376_v29 }
 0x9e7   :  { %3215 = vmatpush.bf16.msra.mxu0 %v6312_v51 }
 0x9eb   :  { %3216 = vmatpush.bf16.msra.mxu0 %v6331_v43 }
 0x9ef   :  { %3217 = vmatpush.bf16.msra.mxu0 %v6342_v23 }
 0x9f3   :  { %3218 = vmatpush.bf16.msra.mxu0 %v6356_v60 }
 0x9f7   :  { %3219 = vmatpush.bf16.msra.mxu0 %v6370_v62 }
 0x9fb   :  { %3220 = vmatpush.bf16.msra.mxu0 %v6384_v56 }
 0xa2e   :  { %v2496_v47 = vpop.f32.mrf.mxu0  ;;  %v2509_v50 = vpop.f32.mrf.mxu1 }
 0xa2f   :  { %v2539_v39 = vadd.f32 %v2496_v47, %v1577_v37  ;;  %v2540_v7 = vadd.f32 %v2509_v50, %v1606_v21  ;;  %v4557_v47 = vld [vmem:[#allocation8 + $0x210] sm:$0xf0]  ;;  %v4563_v50 = vld [vmem:[#allocation8 + $0x208] sm:$0xf] }
 0xa30   :  { %v6388_v57 = vor.u32 %v4877_v24, %v4557_v47 }
 0xa31   :  { %v2543_v19 = vmul.f32 0.5, %v2539_v39  ;;  %v2547_v17 = vmul.f32 0.5, %v2540_v7  ;;  %v6390_v39 = vor.u32 %v4880_v3, %v4563_v50  ;;  %v4878_v7 = vld [vmem:[#allocation8 + $0x20c] sm:$0xf] }
 0xa32   :  { %v6393_v2 = vor.u32 %v4878_v7, %v4565_v63  ;;  %3150 = vmatpush.bf16.msrb.mxu1 %v6388_v57 }
 0xa33   :  { %5073 = vtanh.f32 %v2543_v19  ;;  %3163 = vmatpush.bf16.msrb.mxu2 %v6390_v39 }
 0xa34   :  { %5075 = vtanh.f32 %v2547_v17  ;;  %3176 = vmatpush.bf16.msrb.mxu3 %v6393_v2 }
 0xa35   :  { %v2522_v55 = vpop.f32.mrf.mxu2  ;;  %v2535_v28 = vpop.f32.mrf.mxu3 }
 0xa36   :  { %v2541_v16 = vadd.f32 %v2522_v55, %v1635_v26  ;;  %v2542_v37 = vadd.f32 %v2535_v28, %v1664_v4  ;;  %v2498_v59 = vpop.f32.mrf.mxu0  ;;  %v2511_v21 = vpop.f32.mrf.mxu1  ;;  %3226 = vmatpush.bf16.msra.mxu1 %v6293_v30 }
 0xa37   :  { %3239 = vmatpush.bf16.msra.mxu2 %v6295_v58 }
 0xa38   :  { %5077 = vtanh.f32 %v2541_v16  ;;  %v2552_v10 = vmul.f32 0.5, %v2542_v37  ;;  %3252 = vmatpush.bf16.msra.mxu3 %v6298_v11 }
 0xa39   :  { %v5074_v31 = vpop.eup %5073 }
 0xa3a   :  { %v5076_v1 = vpop.eup %5075  ;;  %v2545_v27 = vmul.f32 0.5, %v5074_v31  ;;  %5079 = vtanh.f32 %v2552_v10  ;;  %3227 = vmatpush.bf16.msra.mxu1 %v6304_v34 }
 0xa3b   :  { %v2549_v15 = vmul.f32 0.5, %v5076_v1  ;;  %3240 = vmatpush.bf16.msra.mxu2 %v6307_v8 }
 0xa3c   :  { %v2546_v19 = vadd.f32 0.5, %v2545_v27  ;;  %3253 = vmatpush.bf16.msra.mxu3 %v6309_v49 }
 0xa3d   :  { %v2550_v17 = vadd.f32 0.5, %v2549_v15  ;;  %v2524_v33 = vpop.f32.mrf.mxu2  ;;  %v2537_v44 = vpop.f32.mrf.mxu3 }
 0xa3e   :  { %v5078_v38 = vpop.eup %5077  ;;  %3228 = vmatpush.bf16.msra.mxu1 %v6316_v13  ;;  %v2790_v16 = vpop.f32.mrf.mxu0 }
 0xa3f   :  { %v2557_v41 = vmul.f32 %v2550_v17, %v6282_v36  ;;  %v2558_v9 = vmul.f32 %v5078_v38, %v2546_v19  ;;  %3241 = vmatpush.bf16.msra.mxu2 %v6318_v32  ;;  %v2819_v37 = vpop.f32.mrf.mxu1 }
 0xa40   :  { %v5080_v52 = vpop.eup %5079  ;;  %3254 = vmatpush.bf16.msra.mxu3 %v6328_v54 }
 0xa41   :  { %v2559_v26 = vadd.f32 %v2558_v9, %v2557_v41  ;;  %v2554_v48 = vmul.f32 0.5, %v5080_v52 }
 0xa42   :  { %3229 = vmatpush.bf16.msra.mxu1 %v6333_v22 }
 0xa43   :  { %5081 = vtanh.f32 %v2559_v26  ;;  %v2555_v36 = vadd.f32 0.5, %v2554_v48  ;;  %3242 = vmatpush.bf16.msra.mxu2 %v6335_v35 }
 0xa44   :  { %3255 = vmatpush.bf16.msra.mxu3 %v6338_v46 }
 0xa45   :  { %v2848_v59 = vpop.f32.mrf.mxu2  ;;  %v2877_v21 = vpop.f32.mrf.mxu3 }
 0xa46   :  { %3230 = vmatpush.bf16.msra.mxu1 %v6344_v40  ;;  %v6469_v18 = vpop.f32.mrf.mxu0 }
 0xa47   :  { %3243 = vmatpush.bf16.msra.mxu2 %v6351_v42  ;;  %v6471_v12 = vpop.f32.mrf.mxu1 }
 0xa48   :  { %3256 = vmatpush.bf16.msra.mxu3 %v6353_v61 }
 0xa49   :  { %v5082_v4 = vpop.eup %5081 }
 0xa4a   :  { %v2561_v55 = vmul.f32 %v5082_v4, %v2555_v36  ;;  %3231 = vmatpush.bf16.msra.mxu1 %v6360_v20  ;;  %v4424_v4 = vld [vmem:[%s6809_s3 + $0x8] sm:$0xf] }
 0xa4b   :  { %3244 = vmatpush.bf16.msra.mxu2 %v6362_v25 }
 0xa4c   :  { %v2576_v28 = vpack.c.bf16 %v2561_v55, %v6285_v0  ;;  %3257 = vmatpush.bf16.msra.mxu3 %v6365_v14  ;;  %v6903_v0 = vmov 0.0|0.0  }
 0xa4d   :  { %v6473_v24 = vpop.f32.mrf.mxu2  ;;  %v6475_v47 = vpop.f32.mrf.mxu3 }
 0xa4e   :  { %2804 = vmatmul.bf16.gmra.mxu0 %v2576_v28  ;;  %2833 = vmatmul.bf16.gmra.mxu1 %v2576_v28  ;;  %v6477_v50 = vpop.f32.mrf.mxu0 }
 0xa4f   :  { %2862 = vmatmul.bf16.gmra.mxu2 %v2576_v28  ;;  %2891 = vmatmul.bf16.gmra.mxu3 %v2576_v28  ;;  %v6479_v3 = vpop.f32.mrf.mxu1 }
 0xa50   :  { %3232 = vmatpush.bf16.msra.mxu1 %v6376_v29  ;;  %3245 = vmatpush.bf16.msra.mxu2 %v6378_v5 }
 0xa51   :  { %3258 = vmatpush.bf16.msra.mxu3 %v6381_v6 }
 0xa54   :  { %3233 = vmatpush.bf16.msra.mxu1 %v6388_v57  ;;  %3246 = vmatpush.bf16.msra.mxu2 %v6390_v39 }
 0xa55   :  { %3259 = vmatpush.bf16.msra.mxu3 %v6393_v2  ;;  %v6481_v10 = vpop.f32.mrf.mxu2  ;;  %v6483_v7 = vpop.f32.mrf.mxu3 }
 0xa56   :  { %6904 = vst [vmem:[#allocation13_spill] sm:$0xff] %v6481_v10  ;;  %v6485_v63 = vpop.f32.mrf.mxu0 }
 0xa57   :  { %6905 = vst [vmem:[#allocation12_spill] sm:$0xff] %v6483_v7  ;;  %v6487_v31 = vpop.f32.mrf.mxu1 }
 0xa58   :  { %6906 = vst [vmem:[#allocation14_spill] sm:$0xff] %v6485_v63 }
 0xa59   :  { %6907 = vst [vmem:[#allocation15_spill] sm:$0xff] %v6487_v31 }
 0xa5d   :  { %v6489_v1 = vpop.f32.mrf.mxu2  ;;  %v6491_v27 = vpop.f32.mrf.mxu3 }
 0xa5e   :  { %3138 = vmatmul.bf16.vlgmr.msrb.gmra.mxu0 %v6903_v0  ;;  %3151 = vmatmul.bf16.vlgmr.msrb.gmra.mxu1 %v6903_v0  ;;  %6908 = vst [vmem:[#allocation16_spill] sm:$0xff] %v6489_v1  ;;  %v6493_v15 = vpop.f32.mrf.mxu0 }
 0xa5f   :  { %3164 = vmatmul.bf16.vlgmr.msrb.gmra.mxu2 %v6903_v0  ;;  %3177 = vmatmul.bf16.vlgmr.msrb.gmra.mxu3 %v6903_v0  ;;  %6909 = vst [vmem:[#allocation17_spill] sm:$0xff] %v6491_v27  ;;  %v6495_v19 = vpop.f32.mrf.mxu1  ;;  %v6524_v0 = vperm.slane %v4424_v4, 0 }
 0xa60   :  { %3296 = vmatpush.bf16.msrb.mxu0 %v6291_v53  ;;  %3309 = vmatpush.bf16.msrb.mxu1 %v6293_v30  ;;  %6910 = vst [vmem:[#allocation18_spill] sm:$0xff] %v6493_v15 }
 0xa61   :  { %3322 = vmatpush.bf16.msrb.mxu2 %v6295_v58  ;;  %3335 = vmatpush.bf16.msrb.mxu3 %v6298_v11  ;;  %6911 = vst [vmem:[#allocation19_spill] sm:$0xff] %v6495_v19 }
 0xa64   :  { %3297 = vmatpush.bf16.msrb.mxu0 %v6302_v45  ;;  %3310 = vmatpush.bf16.msrb.mxu1 %v6304_v34 }
 0xa65   :  { %3323 = vmatpush.bf16.msrb.mxu2 %v6307_v8  ;;  %3336 = vmatpush.bf16.msrb.mxu3 %v6309_v49  ;;  %v6497_v17 = vpop.f32.mrf.mxu2  ;;  %v6499_v33 = vpop.f32.mrf.mxu3 }
 0xa66   :  { %6912 = vst [vmem:[#allocation21_spill] sm:$0xff] %v6497_v17  ;;  %v6501_v44 = vpop.f32.mrf.mxu0  ;;  %v6534_v17 = vperm.slane %v4424_v4, 2 }
 0xa67   :  { %6913 = vst [vmem:[#allocation20_spill] sm:$0xff] %v6499_v33  ;;  %v6503_v38 = vpop.f32.mrf.mxu1 }
 0xa68   :  { %3298 = vmatpush.bf16.msrb.mxu0 %v6312_v51  ;;  %3311 = vmatpush.bf16.msrb.mxu1 %v6316_v13  ;;  %6914 = vst [vmem:[#allocation22_spill] sm:$0xff] %v6501_v44  ;;  %v2849_v15 = vadd.f32 %v2848_v59, %v6534_v17 }
 0xa69   :  { %3324 = vmatpush.bf16.msrb.mxu2 %v6318_v32  ;;  %3337 = vmatpush.bf16.msrb.mxu3 %v6328_v54  ;;  %6915 = vst [vmem:[#allocation23_spill] sm:$0xff] %v6503_v38 }
 0xa6c   :  { %3299 = vmatpush.bf16.msrb.mxu0 %v6331_v43  ;;  %3312 = vmatpush.bf16.msrb.mxu1 %v6333_v22 }
 0xa6d   :  { %3325 = vmatpush.bf16.msrb.mxu2 %v6335_v35  ;;  %3338 = vmatpush.bf16.msrb.mxu3 %v6338_v46  ;;  %v6505_v41 = vpop.f32.mrf.mxu2  ;;  %v6507_v9 = vpop.f32.mrf.mxu3 }
 0xa6e   :  { %6916 = vst [vmem:[#allocation24_spill] sm:$0xff] %v6505_v41  ;;  %v6526_v41 = vperm.slane %v4424_v4, 1 }
 0xa6f   :  { %6917 = vst [vmem:[#allocation25_spill] sm:$0xff] %v6507_v9 }
 0xa70   :  { %3300 = vmatpush.bf16.msrb.mxu0 %v6342_v23  ;;  %3313 = vmatpush.bf16.msrb.mxu1 %v6344_v40 }
 0xa71   :  { %3326 = vmatpush.bf16.msrb.mxu2 %v6351_v42  ;;  %3339 = vmatpush.bf16.msrb.mxu3 %v6353_v61 }
 0xa74   :  { %3301 = vmatpush.bf16.msrb.mxu0 %v6356_v60  ;;  %3314 = vmatpush.bf16.msrb.mxu1 %v6360_v20 }
 0xa75   :  { %3327 = vmatpush.bf16.msrb.mxu2 %v6362_v25  ;;  %3340 = vmatpush.bf16.msrb.mxu3 %v6365_v14 }
 0xa78   :  { %3302 = vmatpush.bf16.msrb.mxu0 %v6370_v62  ;;  %3315 = vmatpush.bf16.msrb.mxu1 %v6376_v29 }
 0xa79   :  { %3328 = vmatpush.bf16.msrb.mxu2 %v6378_v5  ;;  %3341 = vmatpush.bf16.msrb.mxu3 %v6381_v6 }
 0xa7c   :  { %3303 = vmatpush.bf16.msrb.mxu0 %v6384_v56  ;;  %3316 = vmatpush.bf16.msrb.mxu1 %v6388_v57 }
 0xa7d   :  { %3329 = vmatpush.bf16.msrb.mxu2 %v6390_v39  ;;  %3342 = vmatpush.bf16.msrb.mxu3 %v6393_v2 }
 0xacb   :  { %v6509_v52 = vpop.f32.mrf.mxu0  ;;  %v6511_v26 = vpop.f32.mrf.mxu1 }
 0xacc   :  { %6918 = vst [vmem:[#allocation26_spill] sm:$0xff] %v6509_v52  ;;  %v2791_v52 = vadd.f32 %v2790_v16, %v6524_v0 }
 0xacd   :  { %6919 = vst [vmem:[#allocation27_spill] sm:$0xff] %v6511_v26  ;;  %v2820_v26 = vadd.f32 %v2819_v37, %v6526_v41 }
 0xad2   :  { %v6513_v48 = vpop.f32.mrf.mxu2  ;;  %v6515_v36 = vpop.f32.mrf.mxu3 }
 0xad3   :  { %6920 = vst [vmem:[#allocation29_spill] sm:$0xff] %v6513_v48  ;;  %v6520_v55 = vpop.f32.mrf.mxu0  ;;  %v6522_v28 = vpop.f32.mrf.mxu1 }
 0xad4   :  { %6921 = vst [vmem:[#allocation28_spill] sm:$0xff] %v6515_v36 }
 0xad5   :  { %6922 = vst [vmem:[#allocation30_spill] sm:$0xff] %v6520_v55  ;;  %v6536_v55 = vperm.slane %v4424_v4, 3 }
 0xad6   :  { %6923 = vst [vmem:[#allocation31_spill] sm:$0xff] %v6522_v28 }
 0xad7   :  { %v2878_v16 = vadd.f32 %v2877_v21, %v6536_v55 }
 0xada   :  { %v6530_v9 = vpop.f32.mrf.mxu2  ;;  %v6532_v48 = vpop.f32.mrf.mxu3 }
 0xadb   :  { %6924 = vst [vmem:[#allocation32_spill] sm:$0xff] %v6530_v9  ;;  %v3139_v36 = vpop.f32.mrf.mxu0  ;;  %v3152_v38 = vpop.f32.mrf.mxu1 }
 0xadc   :  { %6925 = vst [vmem:[#allocation33_spill] sm:$0xff] %v6532_v48  ;;  %v3182_v44 = vadd.f32 %v3139_v36, %v2791_v52  ;;  %v3183_v33 = vadd.f32 %v3152_v38, %v2820_v26 }
 0xade   :  { %v3186_v28 = vmul.f32 0.5, %v3182_v44  ;;  %v3190_v19 = vmul.f32 0.5, %v3183_v33 }
 0xae0   :  { %5083 = vtanh.f32 %v3186_v28 }
 0xae1   :  { %5085 = vtanh.f32 %v3190_v19 }
 0xae2   :  { %v3165_v37 = vpop.f32.mrf.mxu2  ;;  %v3178_v9 = vpop.f32.mrf.mxu3 }
 0xae3   :  { %v3184_v27 = vadd.f32 %v3165_v37, %v2849_v15  ;;  %v3185_v48 = vadd.f32 %v3178_v9, %v2878_v16  ;;  %v3141_v1 = vpop.f32.mrf.mxu0  ;;  %v3154_v31 = vpop.f32.mrf.mxu1 }
 0xae5   :  { %5087 = vtanh.f32 %v3184_v27  ;;  %v3195_v38 = vmul.f32 0.5, %v3185_v48 }
 0xae6   :  { %v5084_v52 = vpop.eup %5083 }
 0xae7   :  { %v5086_v26 = vpop.eup %5085  ;;  %v3188_v36 = vmul.f32 0.5, %v5084_v52  ;;  %5089 = vtanh.f32 %v3195_v38 }
 0xae8   :  { %v3192_v4 = vmul.f32 0.5, %v5086_v26 }
 0xae9   :  { %v3189_v33 = vadd.f32 0.5, %v3188_v36  ;;  %v2851_v36 = vadd.f32 %v6473_v24, %v6534_v17 }
 0xaea   :  { %v3193_v44 = vadd.f32 0.5, %v3192_v4  ;;  %v3167_v28 = vpop.f32.mrf.mxu2  ;;  %v3180_v59 = vpop.f32.mrf.mxu3  ;;  %v2880_v4 = vadd.f32 %v6475_v47, %v6536_v55 }
 0xaeb   :  { %v5088_v63 = vpop.eup %5087 }
 0xaec   :  { %v3200_v21 = vmul.f32 0.0, %v3193_v44  ;;  %v3201_v19 = vmul.f32 %v5088_v63, %v3189_v33  ;;  %v2822_v63 = vadd.f32 %v6471_v12, %v6526_v41 }
 0xaed   :  { %v5090_v7 = vpop.eup %5089 }
 0xaee   :  { %v6540_v10 = vadd.f32 %v3201_v19, %v3200_v21  ;;  %v3197_v31 = vmul.f32 0.5, %v5090_v7  ;;  %v2793_v7 = vadd.f32 %v6469_v18, %v6524_v0 }
 0xaf0   :  { %5091 = vtanh.f32 %v6540_v10  ;;  %v3198_v1 = vadd.f32 0.5, %v3197_v31 }
 0xaf6   :  { %v5092_v27 = vpop.eup %5091 }
 0xaf7   :  { %v3204_v15 = vmul.f32 %v5092_v27, %v3198_v1 }
 0xaf9   :  { %v3212_v9 = vpack.c.bf16 %v3204_v15, %v3204_v15 }
 0xafb   :  { %3221 = vmatmul.bf16.vlgmr.msra.gmra.mxu0 %v3212_v9  ;;  %3234 = vmatmul.bf16.vlgmr.msra.gmra.mxu1 %v3212_v9 }
 0xafc   :  { %3247 = vmatmul.bf16.vlgmr.msra.gmra.mxu2 %v3212_v9  ;;  %3260 = vmatmul.bf16.vlgmr.msra.gmra.mxu3 %v3212_v9 }
 0xafd   :  { %3379 = vmatpush.bf16.msra.mxu0 %v6291_v53  ;;  %3392 = vmatpush.bf16.msra.mxu1 %v6293_v30 }
 0xafe   :  { %3405 = vmatpush.bf16.msra.mxu2 %v6295_v58  ;;  %3418 = vmatpush.bf16.msra.mxu3 %v6298_v11 }
 0xb01   :  { %3380 = vmatpush.bf16.msra.mxu0 %v6302_v45  ;;  %3393 = vmatpush.bf16.msra.mxu1 %v6304_v34 }
 0xb02   :  { %3406 = vmatpush.bf16.msra.mxu2 %v6307_v8  ;;  %3419 = vmatpush.bf16.msra.mxu3 %v6309_v49 }
 0xb05   :  { %3381 = vmatpush.bf16.msra.mxu0 %v6312_v51  ;;  %3394 = vmatpush.bf16.msra.mxu1 %v6316_v13 }
 0xb06   :  { %3407 = vmatpush.bf16.msra.mxu2 %v6318_v32  ;;  %3420 = vmatpush.bf16.msra.mxu3 %v6328_v54 }
 0xb09   :  { %3382 = vmatpush.bf16.msra.mxu0 %v6331_v43  ;;  %3395 = vmatpush.bf16.msra.mxu1 %v6333_v22 }
 0xb0a   :  { %3408 = vmatpush.bf16.msra.mxu2 %v6335_v35  ;;  %3421 = vmatpush.bf16.msra.mxu3 %v6338_v46 }
 0xb0d   :  { %3383 = vmatpush.bf16.msra.mxu0 %v6342_v23  ;;  %3396 = vmatpush.bf16.msra.mxu1 %v6344_v40 }
 0xb0e   :  { %3409 = vmatpush.bf16.msra.mxu2 %v6351_v42  ;;  %3422 = vmatpush.bf16.msra.mxu3 %v6353_v61 }
 0xb11   :  { %3384 = vmatpush.bf16.msra.mxu0 %v6356_v60  ;;  %3397 = vmatpush.bf16.msra.mxu1 %v6360_v20 }
 0xb12   :  { %3410 = vmatpush.bf16.msra.mxu2 %v6362_v25  ;;  %3423 = vmatpush.bf16.msra.mxu3 %v6365_v14 }
 0xb15   :  { %3385 = vmatpush.bf16.msra.mxu0 %v6370_v62  ;;  %3398 = vmatpush.bf16.msra.mxu1 %v6376_v29 }
 0xb16   :  { %3411 = vmatpush.bf16.msra.mxu2 %v6378_v5  ;;  %3424 = vmatpush.bf16.msra.mxu3 %v6381_v6 }
 0xb19   :  { %3386 = vmatpush.bf16.msra.mxu0 %v6384_v56  ;;  %3399 = vmatpush.bf16.msra.mxu1 %v6388_v57 }
 0xb1a   :  { %3412 = vmatpush.bf16.msra.mxu2 %v6390_v39  ;;  %3425 = vmatpush.bf16.msra.mxu3 %v6393_v2 }
 0xb78   :  { %v3222_v48 = vpop.f32.mrf.mxu0  ;;  %v3235_v16 = vpop.f32.mrf.mxu1 }
 0xb79   :  { %v3265_v37 = vadd.f32 %v3222_v48, %v2793_v7  ;;  %v3266_v38 = vadd.f32 %v3235_v16, %v2822_v63 }
 0xb7b   :  { %v3269_v52 = vmul.f32 0.5, %v3265_v37  ;;  %v3273_v26 = vmul.f32 0.5, %v3266_v38 }
 0xb7d   :  { %5093 = vtanh.f32 %v3269_v52 }
 0xb7e   :  { %5095 = vtanh.f32 %v3273_v26 }
 0xb7f   :  { %v3248_v33 = vpop.f32.mrf.mxu2  ;;  %v3261_v44 = vpop.f32.mrf.mxu3 }
 0xb80   :  { %v3267_v18 = vadd.f32 %v3248_v33, %v2851_v36  ;;  %v3268_v28 = vadd.f32 %v3261_v44, %v2880_v4  ;;  %v3224_v59 = vpop.f32.mrf.mxu0  ;;  %v3237_v12 = vpop.f32.mrf.mxu1  ;;  %v2825_v33 = vadd.f32 %v6479_v3, %v6526_v41 }
 0xb82   :  { %5097 = vtanh.f32 %v3267_v18  ;;  %v3278_v21 = vmul.f32 0.5, %v3268_v28 }
 0xb83   :  { %v5094_v19 = vpop.eup %5093 }
 0xb84   :  { %v5096_v31 = vpop.eup %5095  ;;  %v3271_v1 = vmul.f32 0.5, %v5094_v19  ;;  %5099 = vtanh.f32 %v3278_v21  ;;  %v6926_v19 = vld [vmem:[#allocation13_spill] sm:$0xff] }
 0xb85   :  { %v3275_v27 = vmul.f32 0.5, %v5096_v31  ;;  %v2854_v31 = vadd.f32 %v6926_v19, %v6534_v17 }
 0xb86   :  { %v3272_v15 = vadd.f32 0.5, %v3271_v1  ;;  %v6927_v1 = vld [vmem:[#allocation12_spill] sm:$0xff] }
 0xb87   :  { %v3276_v9 = vadd.f32 0.5, %v3275_v27  ;;  %v3250_v24 = vpop.f32.mrf.mxu2  ;;  %v3263_v7 = vpop.f32.mrf.mxu3  ;;  %v2883_v27 = vadd.f32 %v6927_v1, %v6536_v55 }
 0xb88   :  { %v5098_v63 = vpop.eup %5097 }
 0xb89   :  { %v3283_v47 = vmul.f32 %v3276_v9, %v6540_v10  ;;  %v3284_v48 = vmul.f32 %v5098_v63, %v3272_v15  ;;  %v2796_v10 = vadd.f32 %v6477_v50, %v6524_v0 }
 0xb8a   :  { %v5100_v16 = vpop.eup %5099 }
 0xb8b   :  { %v6584_v37 = vadd.f32 %v3284_v48, %v3283_v47  ;;  %v3280_v38 = vmul.f32 0.5, %v5100_v16 }
 0xb8d   :  { %5101 = vtanh.f32 %v6584_v37  ;;  %v3281_v52 = vadd.f32 0.5, %v3280_v38 }
 0xb93   :  { %v5102_v26 = vpop.eup %5101 }
 0xb94   :  { %v3287_v36 = vmul.f32 %v5102_v26, %v3281_v52 }
 0xb96   :  { %v3295_v4 = vpack.c.bf16 %v3287_v36, %v3287_v36 }
 0xb98   :  { %3304 = vmatmul.bf16.vlgmr.msrb.gmra.mxu0 %v3295_v4  ;;  %3317 = vmatmul.bf16.vlgmr.msrb.gmra.mxu1 %v3295_v4 }
 0xb99   :  { %3330 = vmatmul.bf16.vlgmr.msrb.gmra.mxu2 %v3295_v4  ;;  %3343 = vmatmul.bf16.vlgmr.msrb.gmra.mxu3 %v3295_v4 }
 0xb9a   :  { %3462 = vmatpush.bf16.msrb.mxu0 %v6291_v53  ;;  %3475 = vmatpush.bf16.msrb.mxu1 %v6293_v30 }
 0xb9b   :  { %3488 = vmatpush.bf16.msrb.mxu2 %v6295_v58  ;;  %3501 = vmatpush.bf16.msrb.mxu3 %v6298_v11 }
 0xb9e   :  { %3463 = vmatpush.bf16.msrb.mxu0 %v6302_v45  ;;  %3476 = vmatpush.bf16.msrb.mxu1 %v6304_v34 }
 0xb9f   :  { %3489 = vmatpush.bf16.msrb.mxu2 %v6307_v8  ;;  %3502 = vmatpush.bf16.msrb.mxu3 %v6309_v49 }
 0xba2   :  { %3464 = vmatpush.bf16.msrb.mxu0 %v6312_v51  ;;  %3477 = vmatpush.bf16.msrb.mxu1 %v6316_v13 }
 0xba3   :  { %3490 = vmatpush.bf16.msrb.mxu2 %v6318_v32  ;;  %3503 = vmatpush.bf16.msrb.mxu3 %v6328_v54 }
 0xba6   :  { %3465 = vmatpush.bf16.msrb.mxu0 %v6331_v43  ;;  %3478 = vmatpush.bf16.msrb.mxu1 %v6333_v22 }
 0xba7   :  { %3491 = vmatpush.bf16.msrb.mxu2 %v6335_v35  ;;  %3504 = vmatpush.bf16.msrb.mxu3 %v6338_v46 }
 0xbaa   :  { %3466 = vmatpush.bf16.msrb.mxu0 %v6342_v23  ;;  %3479 = vmatpush.bf16.msrb.mxu1 %v6344_v40 }
 0xbab   :  { %3492 = vmatpush.bf16.msrb.mxu2 %v6351_v42  ;;  %3505 = vmatpush.bf16.msrb.mxu3 %v6353_v61 }
 0xbae   :  { %3467 = vmatpush.bf16.msrb.mxu0 %v6356_v60  ;;  %3480 = vmatpush.bf16.msrb.mxu1 %v6360_v20 }
 0xbaf   :  { %3493 = vmatpush.bf16.msrb.mxu2 %v6362_v25  ;;  %3506 = vmatpush.bf16.msrb.mxu3 %v6365_v14 }
 0xbb2   :  { %3468 = vmatpush.bf16.msrb.mxu0 %v6370_v62  ;;  %3481 = vmatpush.bf16.msrb.mxu1 %v6376_v29 }
 0xbb3   :  { %3494 = vmatpush.bf16.msrb.mxu2 %v6378_v5  ;;  %3507 = vmatpush.bf16.msrb.mxu3 %v6381_v6 }
 0xbb6   :  { %3469 = vmatpush.bf16.msrb.mxu0 %v6384_v56  ;;  %3482 = vmatpush.bf16.msrb.mxu1 %v6388_v57 }
 0xbb7   :  { %3495 = vmatpush.bf16.msrb.mxu2 %v6390_v39  ;;  %3508 = vmatpush.bf16.msrb.mxu3 %v6393_v2 }
 0xc15   :  { %v3305_v44 = vpop.f32.mrf.mxu0  ;;  %v3318_v18 = vpop.f32.mrf.mxu1 }
 0xc16   :  { %v3348_v28 = vadd.f32 %v3305_v44, %v2796_v10  ;;  %v3349_v59 = vadd.f32 %v3318_v18, %v2825_v33 }
 0xc18   :  { %v3352_v12 = vmul.f32 0.5, %v3348_v28  ;;  %v3356_v21 = vmul.f32 0.5, %v3349_v59 }
 0xc1a   :  { %5103 = vtanh.f32 %v3352_v12 }
 0xc1b   :  { %5105 = vtanh.f32 %v3356_v21 }
 0xc1c   :  { %v3331_v15 = vpop.f32.mrf.mxu2  ;;  %v3344_v9 = vpop.f32.mrf.mxu3 }
 0xc1d   :  { %v3350_v50 = vadd.f32 %v3331_v15, %v2854_v31  ;;  %v3351_v24 = vadd.f32 %v3344_v9, %v2883_v27  ;;  %v3307_v7 = vpop.f32.mrf.mxu0  ;;  %v3320_v3 = vpop.f32.mrf.mxu1  ;;  %v6929_v27 = vld [vmem:[#allocation15_spill] sm:$0xff] }
 0xc1e   :  { %v2827_v15 = vadd.f32 %v6929_v27, %v6526_v41 }
 0xc1f   :  { %5107 = vtanh.f32 %v3350_v50  ;;  %v3361_v63 = vmul.f32 0.5, %v3351_v24 }
 0xc20   :  { %v5104_v47 = vpop.eup %5103 }
 0xc21   :  { %v5106_v48 = vpop.eup %5105  ;;  %v3354_v16 = vmul.f32 0.5, %v5104_v47  ;;  %5109 = vtanh.f32 %v3361_v63  ;;  %v6930_v47 = vld [vmem:[#allocation16_spill] sm:$0xff] }
 0xc22   :  { %v3358_v38 = vmul.f32 0.5, %v5106_v48  ;;  %v2856_v48 = vadd.f32 %v6930_v47, %v6534_v17 }
 0xc23   :  { %v3355_v52 = vadd.f32 0.5, %v3354_v16  ;;  %v6931_v16 = vld [vmem:[#allocation17_spill] sm:$0xff] }
 0xc24   :  { %v3359_v26 = vadd.f32 0.5, %v3358_v38  ;;  %v3333_v36 = vpop.f32.mrf.mxu2  ;;  %v3346_v4 = vpop.f32.mrf.mxu3  ;;  %v2885_v38 = vadd.f32 %v6931_v16, %v6536_v55 }
 0xc25   :  { %v5108_v10 = vpop.eup %5107 }
 0xc26   :  { %v3366_v33 = vmul.f32 %v3359_v26, %v6584_v37  ;;  %v3367_v44 = vmul.f32 %v5108_v10, %v3355_v52  ;;  %v6928_v37 = vld [vmem:[#allocation14_spill] sm:$0xff] }
 0xc27   :  { %v5110_v18 = vpop.eup %5109  ;;  %v2798_v1 = vadd.f32 %v6928_v37, %v6524_v0 }
 0xc28   :  { %v6628_v28 = vadd.f32 %v3367_v44, %v3366_v33  ;;  %v3363_v59 = vmul.f32 0.5, %v5110_v18 }
 0xc2a   :  { %5111 = vtanh.f32 %v6628_v28  ;;  %v3364_v12 = vadd.f32 0.5, %v3363_v59 }
 0xc30   :  { %v5112_v21 = vpop.eup %5111 }
 0xc31   :  { %v3370_v19 = vmul.f32 %v5112_v21, %v3364_v12 }
 0xc33   :  { %v3378_v31 = vpack.c.bf16 %v3370_v19, %v3370_v19 }
 0xc35   :  { %3387 = vmatmul.bf16.vlgmr.msra.gmra.mxu0 %v3378_v31  ;;  %3400 = vmatmul.bf16.vlgmr.msra.gmra.mxu1 %v3378_v31 }
 0xc36   :  { %3413 = vmatmul.bf16.vlgmr.msra.gmra.mxu2 %v3378_v31  ;;  %3426 = vmatmul.bf16.vlgmr.msra.gmra.mxu3 %v3378_v31 }
 0xc37   :  { %3545 = vmatpush.bf16.msra.mxu0 %v6291_v53  ;;  %3558 = vmatpush.bf16.msra.mxu1 %v6293_v30 }
 0xc38   :  { %3571 = vmatpush.bf16.msra.mxu2 %v6295_v58  ;;  %3584 = vmatpush.bf16.msra.mxu3 %v6298_v11 }
 0xc3b   :  { %3546 = vmatpush.bf16.msra.mxu0 %v6302_v45  ;;  %3559 = vmatpush.bf16.msra.mxu1 %v6304_v34 }
 0xc3c   :  { %3572 = vmatpush.bf16.msra.mxu2 %v6307_v8  ;;  %3585 = vmatpush.bf16.msra.mxu3 %v6309_v49 }
 0xc3f   :  { %3547 = vmatpush.bf16.msra.mxu0 %v6312_v51  ;;  %3560 = vmatpush.bf16.msra.mxu1 %v6316_v13 }
 0xc40   :  { %3573 = vmatpush.bf16.msra.mxu2 %v6318_v32  ;;  %3586 = vmatpush.bf16.msra.mxu3 %v6328_v54 }
 0xc43   :  { %3548 = vmatpush.bf16.msra.mxu0 %v6331_v43  ;;  %3561 = vmatpush.bf16.msra.mxu1 %v6333_v22 }
 0xc44   :  { %3574 = vmatpush.bf16.msra.mxu2 %v6335_v35  ;;  %3587 = vmatpush.bf16.msra.mxu3 %v6338_v46 }
 0xc47   :  { %3549 = vmatpush.bf16.msra.mxu0 %v6342_v23  ;;  %3562 = vmatpush.bf16.msra.mxu1 %v6344_v40 }
 0xc48   :  { %3575 = vmatpush.bf16.msra.mxu2 %v6351_v42  ;;  %3588 = vmatpush.bf16.msra.mxu3 %v6353_v61 }
 0xc4b   :  { %3550 = vmatpush.bf16.msra.mxu0 %v6356_v60  ;;  %3563 = vmatpush.bf16.msra.mxu1 %v6360_v20 }
 0xc4c   :  { %3576 = vmatpush.bf16.msra.mxu2 %v6362_v25  ;;  %3589 = vmatpush.bf16.msra.mxu3 %v6365_v14 }
 0xc4f   :  { %3551 = vmatpush.bf16.msra.mxu0 %v6370_v62  ;;  %3564 = vmatpush.bf16.msra.mxu1 %v6376_v29 }
 0xc50   :  { %3577 = vmatpush.bf16.msra.mxu2 %v6378_v5  ;;  %3590 = vmatpush.bf16.msra.mxu3 %v6381_v6 }
 0xc53   :  { %3552 = vmatpush.bf16.msra.mxu0 %v6384_v56  ;;  %3565 = vmatpush.bf16.msra.mxu1 %v6388_v57 }
 0xc54   :  { %3578 = vmatpush.bf16.msra.mxu2 %v6390_v39  ;;  %3591 = vmatpush.bf16.msra.mxu3 %v6393_v2 }
 0xcb2   :  { %v3388_v9 = vpop.f32.mrf.mxu0  ;;  %v3401_v50 = vpop.f32.mrf.mxu1 }
 0xcb3   :  { %v3431_v24 = vadd.f32 %v3388_v9, %v2798_v1  ;;  %v3432_v7 = vadd.f32 %v3401_v50, %v2827_v15 }
 0xcb5   :  { %v3435_v3 = vmul.f32 0.5, %v3431_v24  ;;  %v3439_v63 = vmul.f32 0.5, %v3432_v7 }
 0xcb7   :  { %5113 = vtanh.f32 %v3435_v3 }
 0xcb8   :  { %5115 = vtanh.f32 %v3439_v63 }
 0xcb9   :  { %v3414_v52 = vpop.f32.mrf.mxu2  ;;  %v3427_v26 = vpop.f32.mrf.mxu3 }
 0xcba   :  { %v3433_v36 = vadd.f32 %v3414_v52, %v2856_v48  ;;  %v3434_v4 = vadd.f32 %v3427_v26, %v2885_v38  ;;  %v3390_v10 = vpop.f32.mrf.mxu0  ;;  %v3403_v33 = vpop.f32.mrf.mxu1  ;;  %v6933_v38 = vld [vmem:[#allocation19_spill] sm:$0xff] }
 0xcbb   :  { %v2830_v52 = vadd.f32 %v6933_v38, %v6526_v41 }
 0xcbc   :  { %5117 = vtanh.f32 %v3433_v36  ;;  %v3444_v44 = vmul.f32 0.5, %v3434_v4 }
 0xcbd   :  { %v5114_v18 = vpop.eup %5113 }
 0xcbe   :  { %v5116_v59 = vpop.eup %5115  ;;  %v3437_v12 = vmul.f32 0.5, %v5114_v18  ;;  %5119 = vtanh.f32 %v3444_v44  ;;  %v6934_v18 = vld [vmem:[#allocation21_spill] sm:$0xff] }
 0xcbf   :  { %v3441_v21 = vmul.f32 0.5, %v5116_v59  ;;  %v2859_v59 = vadd.f32 %v6934_v18, %v6534_v17 }
 0xcc0   :  { %v3438_v19 = vadd.f32 0.5, %v3437_v12  ;;  %v6935_v12 = vld [vmem:[#allocation20_spill] sm:$0xff] }
 0xcc1   :  { %v3442_v31 = vadd.f32 0.5, %v3441_v21  ;;  %v3416_v37 = vpop.f32.mrf.mxu2  ;;  %v3429_v1 = vpop.f32.mrf.mxu3  ;;  %v2888_v21 = vadd.f32 %v6935_v12, %v6536_v55 }
 0xcc2   :  { %v5118_v27 = vpop.eup %5117 }
 0xcc3   :  { %v3449_v15 = vmul.f32 %v3442_v31, %v6628_v28  ;;  %v3450_v9 = vmul.f32 %v5118_v27, %v3438_v19  ;;  %v6932_v28 = vld [vmem:[#allocation18_spill] sm:$0xff] }
 0xcc4   :  { %v5120_v50 = vpop.eup %5119  ;;  %v2801_v16 = vadd.f32 %v6932_v28, %v6524_v0 }
 0xcc5   :  { %v6672_v24 = vadd.f32 %v3450_v9, %v3449_v15  ;;  %v3446_v7 = vmul.f32 0.5, %v5120_v50 }
 0xcc7   :  { %5121 = vtanh.f32 %v6672_v24  ;;  %v3447_v3 = vadd.f32 0.5, %v3446_v7 }
 0xccd   :  { %v5122_v63 = vpop.eup %5121 }
 0xcce   :  { %v3453_v47 = vmul.f32 %v5122_v63, %v3447_v3 }
 0xcd0   :  { %v3461_v48 = vpack.c.bf16 %v3453_v47, %v3453_v47 }
 0xcd2   :  { %3470 = vmatmul.bf16.vlgmr.msrb.gmra.mxu0 %v3461_v48  ;;  %3483 = vmatmul.bf16.vlgmr.msrb.gmra.mxu1 %v3461_v48 }
 0xcd3   :  { %3496 = vmatmul.bf16.vlgmr.msrb.gmra.mxu2 %v3461_v48  ;;  %3509 = vmatmul.bf16.vlgmr.msrb.gmra.mxu3 %v3461_v48 }
 0xcd4   :  { %3628 = vmatpush.bf16.msrb.mxu0 %v6291_v53  ;;  %3641 = vmatpush.bf16.msrb.mxu1 %v6293_v30 }
 0xcd5   :  { %3654 = vmatpush.bf16.msrb.mxu2 %v6295_v58  ;;  %3667 = vmatpush.bf16.msrb.mxu3 %v6298_v11 }
 0xcd8   :  { %3629 = vmatpush.bf16.msrb.mxu0 %v6302_v45  ;;  %3642 = vmatpush.bf16.msrb.mxu1 %v6304_v34 }
 0xcd9   :  { %3655 = vmatpush.bf16.msrb.mxu2 %v6307_v8  ;;  %3668 = vmatpush.bf16.msrb.mxu3 %v6309_v49 }
 0xcdc   :  { %3630 = vmatpush.bf16.msrb.mxu0 %v6312_v51  ;;  %3643 = vmatpush.bf16.msrb.mxu1 %v6316_v13 }
 0xcdd   :  { %3656 = vmatpush.bf16.msrb.mxu2 %v6318_v32  ;;  %3669 = vmatpush.bf16.msrb.mxu3 %v6328_v54 }
 0xce0   :  { %3631 = vmatpush.bf16.msrb.mxu0 %v6331_v43  ;;  %3644 = vmatpush.bf16.msrb.mxu1 %v6333_v22 }
 0xce1   :  { %3657 = vmatpush.bf16.msrb.mxu2 %v6335_v35  ;;  %3670 = vmatpush.bf16.msrb.mxu3 %v6338_v46 }
 0xce4   :  { %3632 = vmatpush.bf16.msrb.mxu0 %v6342_v23  ;;  %3645 = vmatpush.bf16.msrb.mxu1 %v6344_v40 }
 0xce5   :  { %3658 = vmatpush.bf16.msrb.mxu2 %v6351_v42  ;;  %3671 = vmatpush.bf16.msrb.mxu3 %v6353_v61 }
 0xce8   :  { %3633 = vmatpush.bf16.msrb.mxu0 %v6356_v60  ;;  %3646 = vmatpush.bf16.msrb.mxu1 %v6360_v20 }
 0xce9   :  { %3659 = vmatpush.bf16.msrb.mxu2 %v6362_v25  ;;  %3672 = vmatpush.bf16.msrb.mxu3 %v6365_v14 }
 0xcec   :  { %3634 = vmatpush.bf16.msrb.mxu0 %v6370_v62  ;;  %3647 = vmatpush.bf16.msrb.mxu1 %v6376_v29 }
 0xced   :  { %3660 = vmatpush.bf16.msrb.mxu2 %v6378_v5  ;;  %3673 = vmatpush.bf16.msrb.mxu3 %v6381_v6 }
 0xcf0   :  { %3635 = vmatpush.bf16.msrb.mxu0 %v6384_v56  ;;  %3648 = vmatpush.bf16.msrb.mxu1 %v6388_v57 }
 0xcf1   :  { %3661 = vmatpush.bf16.msrb.mxu2 %v6390_v39  ;;  %3674 = vmatpush.bf16.msrb.mxu3 %v6393_v2 }
 0xd4f   :  { %v3471_v26 = vpop.f32.mrf.mxu0  ;;  %v3484_v36 = vpop.f32.mrf.mxu1 }
 0xd50   :  { %v3514_v4 = vadd.f32 %v3471_v26, %v2801_v16  ;;  %v3515_v10 = vadd.f32 %v3484_v36, %v2830_v52 }
 0xd52   :  { %v3518_v33 = vmul.f32 0.5, %v3514_v4  ;;  %v3522_v44 = vmul.f32 0.5, %v3515_v10 }
 0xd54   :  { %5123 = vtanh.f32 %v3518_v33 }
 0xd55   :  { %5125 = vtanh.f32 %v3522_v44 }
 0xd56   :  { %v3497_v19 = vpop.f32.mrf.mxu2  ;;  %v3510_v31 = vpop.f32.mrf.mxu3 }
 0xd57   :  { %v3516_v37 = vadd.f32 %v3497_v19, %v2859_v59  ;;  %v3517_v1 = vadd.f32 %v3510_v31, %v2888_v21  ;;  %v3473_v27 = vpop.f32.mrf.mxu0  ;;  %v3486_v15 = vpop.f32.mrf.mxu1 }
 0xd58   :  { %v6940_v27 = vld [vmem:[#allocation26_spill] sm:$0xff] }
 0xd59   :  { %5127 = vtanh.f32 %v3516_v37  ;;  %v3527_v9 = vmul.f32 0.5, %v3517_v1  ;;  %v2806_v15 = vadd.f32 %v6940_v27, %v6524_v0 }
 0xd5a   :  { %v5124_v50 = vpop.eup %5123 }
 0xd5b   :  { %v5126_v7 = vpop.eup %5125  ;;  %v3520_v3 = vmul.f32 0.5, %v5124_v50  ;;  %5129 = vtanh.f32 %v3527_v9  ;;  %v6941_v9 = vld [vmem:[#allocation27_spill] sm:$0xff] }
 0xd5c   :  { %v3524_v63 = vmul.f32 0.5, %v5126_v7  ;;  %v2835_v50 = vadd.f32 %v6941_v9, %v6526_v41 }
 0xd5d   :  { %v3521_v47 = vadd.f32 0.5, %v3520_v3 }
 0xd5e   :  { %v3525_v48 = vadd.f32 0.5, %v3524_v63  ;;  %v3499_v28 = vpop.f32.mrf.mxu2  ;;  %v3512_v16 = vpop.f32.mrf.mxu3 }
 0xd5f   :  { %v5128_v38 = vpop.eup %5127  ;;  %v6942_v16 = vld [vmem:[#allocation29_spill] sm:$0xff] }
 0xd60   :  { %v3532_v52 = vmul.f32 %v3525_v48, %v6672_v24  ;;  %v3533_v26 = vmul.f32 %v5128_v38, %v3521_v47  ;;  %v2864_v38 = vadd.f32 %v6942_v16, %v6534_v17 }
 0xd61   :  { %v5130_v36 = vpop.eup %5129 }
 0xd62   :  { %v6716_v4 = vadd.f32 %v3533_v26, %v3532_v52  ;;  %v3529_v10 = vmul.f32 0.5, %v5130_v36  ;;  %v6943_v52 = vld [vmem:[#allocation28_spill] sm:$0xff] }
 0xd63   :  { %v2893_v26 = vadd.f32 %v6943_v52, %v6536_v55 }
 0xd64   :  { %5131 = vtanh.f32 %v6716_v4  ;;  %v3530_v33 = vadd.f32 0.5, %v3529_v10 }
 0xd6a   :  { %v5132_v44 = vpop.eup %5131 }
 0xd6b   :  { %v3536_v18 = vmul.f32 %v5132_v44, %v3530_v33 }
 0xd6d   :  { %v3544_v59 = vpack.c.bf16 %v3536_v18, %v3536_v18 }
 0xd6f   :  { %3553 = vmatmul.bf16.vlgmr.msra.gmra.mxu0 %v3544_v59  ;;  %3566 = vmatmul.bf16.vlgmr.msra.gmra.mxu1 %v3544_v59 }
 0xd70   :  { %3579 = vmatmul.bf16.vlgmr.msra.gmra.mxu2 %v3544_v59  ;;  %3592 = vmatmul.bf16.vlgmr.msra.gmra.mxu3 %v3544_v59 }
 0xd71   :  { %3711 = vmatpush.bf16.msra.mxu0 %v6291_v53  ;;  %3724 = vmatpush.bf16.msra.mxu1 %v6293_v30  ;;  %v6936_v53 = vld [vmem:[#allocation22_spill] sm:$0xff] }
 0xd72   :  { %3737 = vmatpush.bf16.msra.mxu2 %v6295_v58  ;;  %3750 = vmatpush.bf16.msra.mxu3 %v6298_v11  ;;  %v2803_v30 = vadd.f32 %v6936_v53, %v6524_v0  ;;  %v6937_v58 = vld [vmem:[#allocation23_spill] sm:$0xff] }
 0xd73   :  { %v2832_v11 = vadd.f32 %v6937_v58, %v6526_v41 }
 0xd75   :  { %3712 = vmatpush.bf16.msra.mxu0 %v6302_v45  ;;  %3725 = vmatpush.bf16.msra.mxu1 %v6304_v34 }
 0xd76   :  { %3738 = vmatpush.bf16.msra.mxu2 %v6307_v8  ;;  %3751 = vmatpush.bf16.msra.mxu3 %v6309_v49 }
 0xd79   :  { %3713 = vmatpush.bf16.msra.mxu0 %v6312_v51  ;;  %3726 = vmatpush.bf16.msra.mxu1 %v6316_v13 }
 0xd7a   :  { %3739 = vmatpush.bf16.msra.mxu2 %v6318_v32  ;;  %3752 = vmatpush.bf16.msra.mxu3 %v6328_v54  ;;  %v6938_v32 = vld [vmem:[#allocation24_spill] sm:$0xff] }
 0xd7b   :  { %v2861_v54 = vadd.f32 %v6938_v32, %v6534_v17 }
 0xd7d   :  { %3714 = vmatpush.bf16.msra.mxu0 %v6331_v43  ;;  %3727 = vmatpush.bf16.msra.mxu1 %v6333_v22  ;;  %v6939_v43 = vld [vmem:[#allocation25_spill] sm:$0xff] }
 0xd7e   :  { %3740 = vmatpush.bf16.msra.mxu2 %v6335_v35  ;;  %3753 = vmatpush.bf16.msra.mxu3 %v6338_v46  ;;  %v2890_v22 = vadd.f32 %v6939_v43, %v6536_v55 }
 0xd81   :  { %3715 = vmatpush.bf16.msra.mxu0 %v6342_v23  ;;  %3728 = vmatpush.bf16.msra.mxu1 %v6344_v40 }
 0xd82   :  { %3741 = vmatpush.bf16.msra.mxu2 %v6351_v42  ;;  %3754 = vmatpush.bf16.msra.mxu3 %v6353_v61 }
 0xd85   :  { %3716 = vmatpush.bf16.msra.mxu0 %v6356_v60  ;;  %3729 = vmatpush.bf16.msra.mxu1 %v6360_v20 }
 0xd86   :  { %3742 = vmatpush.bf16.msra.mxu2 %v6362_v25  ;;  %3755 = vmatpush.bf16.msra.mxu3 %v6365_v14 }
 0xd89   :  { %3717 = vmatpush.bf16.msra.mxu0 %v6370_v62  ;;  %3730 = vmatpush.bf16.msra.mxu1 %v6376_v29 }
 0xd8a   :  { %3743 = vmatpush.bf16.msra.mxu2 %v6378_v5  ;;  %3756 = vmatpush.bf16.msra.mxu3 %v6381_v6 }
 0xd8d   :  { %3718 = vmatpush.bf16.msra.mxu0 %v6384_v56  ;;  %3731 = vmatpush.bf16.msra.mxu1 %v6388_v57 }
 0xd8e   :  { %3744 = vmatpush.bf16.msra.mxu2 %v6390_v39  ;;  %3757 = vmatpush.bf16.msra.mxu3 %v6393_v2 }
 0xdec   :  { %v3554_v45 = vpop.f32.mrf.mxu0  ;;  %v3567_v34 = vpop.f32.mrf.mxu1 }
 0xded   :  { %v3597_v8 = vadd.f32 %v3554_v45, %v2803_v30  ;;  %v3598_v49 = vadd.f32 %v3567_v34, %v2832_v11 }
 0xdef   :  { %v3601_v51 = vmul.f32 0.5, %v3597_v8  ;;  %v3605_v13 = vmul.f32 0.5, %v3598_v49 }
 0xdf1   :  { %5133 = vtanh.f32 %v3601_v51 }
 0xdf2   :  { %5135 = vtanh.f32 %v3605_v13 }
 0xdf3   :  { %v3580_v35 = vpop.f32.mrf.mxu2  ;;  %v3593_v46 = vpop.f32.mrf.mxu3 }
 0xdf4   :  { %v3599_v23 = vadd.f32 %v3580_v35, %v2861_v54  ;;  %v3600_v40 = vadd.f32 %v3593_v46, %v2890_v22  ;;  %v3556_v42 = vpop.f32.mrf.mxu0  ;;  %v3569_v61 = vpop.f32.mrf.mxu1 }
 0xdf5   :  { %v4916_v42 = vld [vmem:[%s6810_s4 + $0x38] sm:$0xff]  ;;  %v4915_v61 = vld [vmem:[%s6810_s4 + $0x30] sm:$0xff] }
 0xdf6   :  { %5137 = vtanh.f32 %v3599_v23  ;;  %v3610_v60 = vmul.f32 0.5, %v3600_v40 }
 0xdf7   :  { %v5134_v20 = vpop.eup %5133 }
 0xdf8   :  { %v5136_v25 = vpop.eup %5135  ;;  %v3603_v14 = vmul.f32 0.5, %v5134_v20  ;;  %5139 = vtanh.f32 %v3610_v60  ;;  %v4914_v60 = vld [vmem:[%s6810_s4 + $0x28] sm:$0xff]  ;;  %v4913_v20 = vld [vmem:[%s6810_s4 + $0x20] sm:$0xff] }
 0xdf9   :  { %v3607_v62 = vmul.f32 0.5, %v5136_v25  ;;  %v4912_v25 = vld [vmem:[%s6810_s4 + $0x18] sm:$0xff] }
 0xdfa   :  { %v3604_v29 = vadd.f32 0.5, %v3603_v14  ;;  %v4911_v14 = vld [vmem:[%s6810_s4 + $0x10] sm:$0xff] }
 0xdfb   :  { %v3608_v5 = vadd.f32 0.5, %v3607_v62  ;;  %v3582_v6 = vpop.f32.mrf.mxu2  ;;  %v3595_v56 = vpop.f32.mrf.mxu3  ;;  %v4910_v62 = vld [vmem:[%s6810_s4 + $0x8] sm:$0xff] }
 0xdfc   :  { %v5138_v57 = vpop.eup %5137  ;;  %v6945_v56 = vld [vmem:[#allocation31_spill] sm:$0xff] }
 0xdfd   :  { %v3615_v39 = vmul.f32 %v3608_v5, %v6716_v4  ;;  %v3616_v2 = vmul.f32 %v5138_v57, %v3604_v29  ;;  %v4909_v29 = vld [vmem:[%s6810_s4] sm:$0xff]  ;;  %v6944_v5 = vld [vmem:[#allocation30_spill] sm:$0xff]  ;;  %v2837_v57 = vadd.f32 %v6945_v56, %v6526_v41 }
 0xdfe   :  { %v5140_v24 = vpop.eup %5139  ;;  %v2808_v6 = vadd.f32 %v6944_v5, %v6524_v0 }
 0xdff   :  { %v3617_v12 = vadd.f32 %v3616_v2, %v3615_v39  ;;  %v3612_v21 = vmul.f32 0.5, %v5140_v24 }
 0xe01   :  { %5141 = vtanh.f32 %v3617_v12  ;;  %v3613_v19 = vadd.f32 0.5, %v3612_v21 }
 0xe07   :  { %v5142_v31 = vpop.eup %5141 }
 0xe08   :  { %v3619_v37 = vmul.f32 %v5142_v31, %v3613_v19  ;;  %v6946_v31 = vld [vmem:[#allocation32_spill] sm:$0xff] }
 0xe0a   :  { %v3627_v1 = vpack.c.bf16 %v3619_v37, %v3619_v37  ;;  %v2866_v37 = vadd.f32 %v6946_v31, %v6534_v17 }
 0xe0c   :  { %3636 = vmatmul.bf16.vlgmr.msrb.gmra.mxu0 %v3627_v1  ;;  %3649 = vmatmul.bf16.vlgmr.msrb.gmra.mxu1 %v3627_v1 }
 0xe0d   :  { %3662 = vmatmul.bf16.vlgmr.msrb.gmra.mxu2 %v3627_v1  ;;  %3675 = vmatmul.bf16.vlgmr.msrb.gmra.mxu3 %v3627_v1  ;;  %v6947_v1 = vld [vmem:[#allocation33_spill] sm:$0xff] }
 0xe0e   :  { %3858 = vmatpush.bf16.msrb.mxu0 %v4916_v42  ;;  %v2895_v27 = vadd.f32 %v6947_v1, %v6536_v55 }
 0xe12   :  { %3859 = vmatpush.bf16.msrb.mxu0 %v4915_v61 }
 0xe16   :  { %3860 = vmatpush.bf16.msrb.mxu0 %v4914_v60 }
 0xe1a   :  { %3861 = vmatpush.bf16.msrb.mxu0 %v4913_v20 }
 0xe1e   :  { %3862 = vmatpush.bf16.msrb.mxu0 %v4912_v25 }
 0xe22   :  { %3863 = vmatpush.bf16.msrb.mxu0 %v4911_v14 }
 0xe26   :  { %3864 = vmatpush.bf16.msrb.mxu0 %v4910_v62 }
 0xe2a   :  { %3865 = vmatpush.bf16.msrb.mxu0 %v4909_v29 }
 0xe89   :  { %v3637_v7 = vpop.f32.mrf.mxu0  ;;  %v3650_v3 = vpop.f32.mrf.mxu1 }
 0xe8a   :  { %v3680_v63 = vadd.f32 %v3637_v7, %v2806_v15  ;;  %v3681_v47 = vadd.f32 %v3650_v3, %v2835_v50 }
 0xe8c   :  { %v3684_v48 = vmul.f32 0.5, %v3680_v63  ;;  %v3688_v28 = vmul.f32 0.5, %v3681_v47 }
 0xe8e   :  { %5143 = vtanh.f32 %v3684_v48 }
 0xe8f   :  { %5145 = vtanh.f32 %v3688_v28 }
 0xe90   :  { %v3663_v36 = vpop.f32.mrf.mxu2  ;;  %v3676_v4 = vpop.f32.mrf.mxu3 }
 0xe91   :  { %v3682_v10 = vadd.f32 %v3663_v36, %v2864_v38  ;;  %v3683_v33 = vadd.f32 %v3676_v4, %v2893_v26  ;;  %v3639_v44 = vpop.f32.mrf.mxu0  ;;  %v3652_v18 = vpop.f32.mrf.mxu1 }
 0xe93   :  { %5147 = vtanh.f32 %v3682_v10  ;;  %v3693_v59 = vmul.f32 0.5, %v3683_v33 }
 0xe94   :  { %v5144_v53 = vpop.eup %5143 }
 0xe95   :  { %v5146_v30 = vpop.eup %5145  ;;  %v3686_v58 = vmul.f32 0.5, %v5144_v53  ;;  %5149 = vtanh.f32 %v3693_v59 }
 0xe96   :  { %v3690_v11 = vmul.f32 0.5, %v5146_v30  ;;  %v4922_v30 = vld [vmem:[%s6811_s5] ss:$0 sm:$0xff] }
 0xe97   :  { %v3687_v45 = vadd.f32 0.5, %v3686_v58 }
 0xe98   :  { %v3691_v34 = vadd.f32 0.5, %v3690_v11  ;;  %v3665_v8 = vpop.f32.mrf.mxu2  ;;  %v3678_v49 = vpop.f32.mrf.mxu3 }
 0xe99   :  { %v5148_v51 = vpop.eup %5147 }
 0xe9a   :  { %v3698_v13 = vmul.f32 %v3691_v34, %v3617_v12  ;;  %v3699_v32 = vmul.f32 %v5148_v51, %v3687_v45 }
 0xe9b   :  { %v5150_v54 = vpop.eup %5149 }
 0xe9c   :  { %v3700_v43 = vadd.f32 %v3699_v32, %v3698_v13  ;;  %v3695_v22 = vmul.f32 0.5, %v5150_v54 }
 0xe9e   :  { %5151 = vtanh.f32 %v3700_v43  ;;  %v3696_v35 = vadd.f32 0.5, %v3695_v22 }
 0xea4   :  { %v5152_v46 = vpop.eup %5151 }
 0xea5   :  { %v3702_v23 = vmul.f32 %v5152_v46, %v3696_v35 }
 0xea7   :  { %v3710_v40 = vpack.c.bf16 %v3702_v23, %v3702_v23 }
 0xea9   :  { %3719 = vmatmul.bf16.vlgmr.msra.gmra.mxu0 %v3710_v40  ;;  %3732 = vmatmul.bf16.vlgmr.msra.gmra.mxu1 %v3710_v40 }
 0xeaa   :  { %3745 = vmatmul.bf16.vlgmr.msra.gmra.mxu2 %v3710_v40  ;;  %3758 = vmatmul.bf16.vlgmr.msra.gmra.mxu3 %v3710_v40 }
 0xf26   :  { %v3720_v39 = vpop.f32.mrf.mxu0  ;;  %v3733_v2 = vpop.f32.mrf.mxu1 }
 0xf27   :  { %v3763_v24 = vadd.f32 %v3720_v39, %v2808_v6  ;;  %v3764_v12 = vadd.f32 %v3733_v2, %v2837_v57 }
 0xf29   :  { %v3767_v21 = vmul.f32 0.5, %v3763_v24  ;;  %v3771_v19 = vmul.f32 0.5, %v3764_v12 }
 0xf2b   :  { %5153 = vtanh.f32 %v3767_v21 }
 0xf2c   :  { %5155 = vtanh.f32 %v3771_v19 }
 0xf2d   :  { %v3746_v15 = vpop.f32.mrf.mxu2  ;;  %v3759_v9 = vpop.f32.mrf.mxu3 }
 0xf2e   :  { %v3765_v0 = vadd.f32 %v3746_v15, %v2866_v37  ;;  %v3766_v50 = vadd.f32 %v3759_v9, %v2895_v27  ;;  %v3722_v7 = vpop.f32.mrf.mxu0  ;;  %v3735_v41 = vpop.f32.mrf.mxu1 }
 0xf30   :  { %5157 = vtanh.f32 %v3765_v0  ;;  %v3776_v3 = vmul.f32 0.5, %v3766_v50 }
 0xf31   :  { %v5154_v63 = vpop.eup %5153 }
 0xf32   :  { %v5156_v47 = vpop.eup %5155  ;;  %v3769_v48 = vmul.f32 0.5, %v5154_v63  ;;  %5159 = vtanh.f32 %v3776_v3 }
 0xf33   :  { %v3773_v28 = vmul.f32 0.5, %v5156_v47 }
 0xf34   :  { %v3770_v16 = vadd.f32 0.5, %v3769_v48 }
 0xf35   :  { %v3774_v38 = vadd.f32 0.5, %v3773_v28  ;;  %v3748_v17 = vpop.f32.mrf.mxu2  ;;  %v3761_v52 = vpop.f32.mrf.mxu3 }
 0xf36   :  { %v5158_v26 = vpop.eup %5157 }
 0xf37   :  { %v3781_v55 = vmul.f32 %v3774_v38, %v3700_v43  ;;  %v3782_v36 = vmul.f32 %v5158_v26, %v3770_v16 }
 0xf38   :  { %v5160_v4 = vpop.eup %5159 }
 0xf39   :  { %v3783_v10 = vadd.f32 %v3782_v36, %v3781_v55  ;;  %v3778_v33 = vmul.f32 0.5, %v5160_v4 }
 0xf3b   :  { %5161 = vtanh.f32 %v3783_v10  ;;  %v3779_v44 = vadd.f32 0.5, %v3778_v33 }
 0xf41   :  { %v5162_v18 = vpop.eup %5161 }
 0xf42   :  { %v3785_v59 = vmul.f32 %v5162_v18, %v3779_v44 }
 0xf44   :  { %v3789_v53 = vpack.c.bf16 %v3785_v59, %v3785_v59 }
 0xf46   :  { %3866 = vmatmul.bf16.vlgmr.msrb.gmra.mxu0 %v3789_v53 }
 0xfc3   :  { %v3867_v58 = vpop.f32.mrf.mxu0 }
 0xfc4   :  { %v3868_v11 = vadd.f32 %v4922_v30, %v3867_v58 }
 0xfc6   :  { %3871 = vmax.xlane.f32.xlu0 %v3868_v11 }
 0xfcb   :  { %v3869_v45 = vpop.f32.mrf.mxu0 }
0x1039   :  { %v3872_v34 = vpop.xlane.xlu0 %3871 }
0x103a   :  { %v3873_v8 = vsub.f32 %v3868_v11, %v3872_v34 }
0x103c   :  { %v3874_v49 = vmul.f32 1.442695, %v3873_v8 }
0x103e   :  { %5163 = vpow2.f32 %v3874_v49 }
0x1044   :  { %v5164_v51 = vpop.eup %5163 }
0x1045   :  { %3876 = vadd.xlane.f32.xlu0 %v5164_v51 }
0x10b8   :  { %v3877_v13 = vpop.xlane.xlu0 %3876 }
0x10b9   :  { %5165 = vlog2.f32 %v3877_v13 }
0x10bf   :  { %v5166_v32 = vpop.eup %5165 }
0x10c0   :  { %v3879_v54 = vmul.f32 0.6931472, %v5166_v32 }
0x10c2   :  { %v3880_v43 = vsub.f32 %v3873_v8, %v3879_v54 }
0x10c4   :  { %3881 = vst [vmem:[%s6812_s6] sm:$0xff] %v3880_v43 }
0x10c5   :  { %3886 = vsyncpa [#allocation7], 1 }
0x10c6   :  { %3887 = vsyncpa [#allocation9], 1 }

</bundles_post_ra>
